<compile_context>
chip_gen: v5e
topology: v5e:2x2
jax: 0.10.0
libtpu: 0.0.40
codegen_flags: <defaults>
</compile_context>

<pallas_src>
import jax
import jax.numpy as jnp
from jax.experimental import pallas as pl
from jax.experimental.pallas import tpu as pltpu


# Geometry implied by Linear(16384, 200): 64 ch * 16 * 16  ->  input is 3x64x64.
H_IN = 64
H1 = 32            # conv1 output spatial size (stride 2, pad 1)
H2 = 16            # conv2 output spatial size
K1 = 32            # conv1 patch features, zero-padded 27 -> 32
C1 = 32            # conv1 out channels
C2 = 64            # conv2 out channels
N_OUT = 200
K_LIN = H2 * H2 * C2   # 16384


# ----------------------------------------------------------------------------
# Kernel 1: fused conv1 + conv2 for one batch element (grid=(B,), "parallel").
# ----------------------------------------------------------------------------
def _conv_fused_kernel(p1_ref, w1_ref, b1_ref, w2_ref, b2_ref, o_ref,
                       eo_s, oe_s, oo_s):
    """conv1 (3->32, s2, p1, ReLU) + conv2 (32->64, s2, p1, ReLU).

    p1_ref : (4*256, 32) bf16  conv1 patches, rows grouped by output-pixel
             parity p = (r%2, c%2), then (i, j) = (r//2, c//2) row-major.
    w1_ref : (32, 32)  bf16    conv1 weight, rows (kh, kw, cin), K padded to 32.
    w2_ref : (9, 32, 64) bf16  conv2 weight, one (cin, cout) tile per tap.
    o_ref  : (256, 64) bf16    conv2 output, rows (i, j) row-major (NHWC flat).
    *_s    : (17, 17, 32) f32  zero-padded halo scratches (interior at [1:,1:]).
    """
    npix = H2 * H2                                       # 256

    # ---- conv1: one bf16 MXU matmul covering all 4 parity groups ----------
    h1 = jnp.dot(p1_ref[...], w1_ref[...], preferred_element_type=jnp.float32)
    h1 = jnp.maximum(h1 + b1_ref[...], 0.0)              # (1024, 32) f32

    v_ee = h1[0 * npix:1 * npix]                         # even row, even col
    v_eo = h1[1 * npix:2 * npix]                         # even row, odd  col
    v_oe = h1[2 * npix:3 * npix]                         # odd  row, even col
    v_oo = h1[3 * npix:4 * npix]                         # odd  row, odd  col

    # ---- stage shift-by-one (halo) copies in zero-padded VMEM scratch -----
    eo_s[...] = jnp.zeros_like(eo_s)
    oe_s[...] = jnp.zeros_like(oe_s)
    oo_s[...] = jnp.zeros_like(oo_s)
    eo_s[1:17, 1:17, :] = v_eo.reshape(H2, H2, C1)
    oe_s[1:17, 1:17, :] = v_oe.reshape(H2, H2, C1)
    oo_s[1:17, 1:17, :] = v_oo.reshape(H2, H2, C1)

    # ---- conv2: tap t = kh*3+kw ; output (i,j) reads conv1 pixel
    #      (2i-1+kh, 2j-1+kw) -> always a unit-stride slab of one parity array.
    slabs = (
        oo_s[0:16, 0:16, :].reshape(npix, C1),   # (0,0): oo[i-1, j-1]
        oe_s[0:16, 1:17, :].reshape(npix, C1),   # (0,1): oe[i-1, j  ]
        oo_s[0:16, 1:17, :].reshape(npix, C1),   # (0,2): oo[i-1, j  ]
        eo_s[1:17, 0:16, :].reshape(npix, C1),   # (1,0): eo[i  , j-1]
        v_ee,                                    # (1,1): ee[i  , j  ]
        v_eo,                                    # (1,2): eo[i  , j  ]
        oo_s[1:17, 0:16, :].reshape(npix, C1),   # (2,0): oo[i  , j-1]
        v_oe,                                    # (2,1): oe[i  , j  ]
        v_oo,                                    # (2,2): oo[i  , j  ]
    )
    acc = None
    for t in range(9):
        part = jnp.dot(slabs[t].astype(jnp.bfloat16), w2_ref[t],
                       preferred_element_type=jnp.float32)
        acc = part if acc is None else acc + part
    h2 = jnp.maximum(acc + b2_ref[...], 0.0)             # (256, 64) f32
    o_ref[...] = h2.astype(o_ref.dtype)


def conv1_conv2(p1, w1m, b1m, w2m, b2m):
    B = p1.shape[0]
    return pl.pallas_call(
        _conv_fused_kernel,
        out_shape=jax.ShapeDtypeStruct((B, H2 * H2, C2), jnp.bfloat16),
        grid_spec=pltpu.PrefetchScalarGridSpec(
            num_scalar_prefetch=0,
            grid=(B,),
            in_specs=[
                pl.BlockSpec((None, 4 * H2 * H2, K1), lambda b: (b, 0, 0)),
                pl.BlockSpec((K1, C1), lambda b: (0, 0)),
                pl.BlockSpec((1, C1), lambda b: (0, 0)),
                pl.BlockSpec((9, C1, C2), lambda b: (0, 0, 0)),
                pl.BlockSpec((1, C2), lambda b: (0, 0)),
            ],
            out_specs=pl.BlockSpec((None, H2 * H2, C2), lambda b: (b, 0, 0)),
            scratch_shapes=[pltpu.VMEM((H2 + 1, H2 + 1, C1), jnp.float32)
                            for _ in range(3)],
        ),
        compiler_params=pltpu.CompilerParams(
            dimension_semantics=("parallel",)),
    )(p1, w1m, b1m, w2m, b2m)


# ----------------------------------------------------------------------------
# Kernel 2: Linear 16384 -> 200, K split into 2 chunks reduced IN-kernel.
# ----------------------------------------------------------------------------
def _linear_kernel(x_ref, w_ref, b_ref, o_ref):
    s = pl.program_id(0)

    @pl.when(s == 0)
    def _():
        o_ref[...] = jnp.zeros_like(o_ref)

    o_ref[...] += jnp.dot(x_ref[...], w_ref[...],
                          preferred_element_type=jnp.float32)

    @pl.when(s == pl.num_programs(0) - 1)
    def _():
        o_ref[...] += b_ref[...]


def linear(x, w, b2d, *, k_splits=2):
    M, K = x.shape
    K2, N = w.shape
    assert K == K2 and K % k_splits == 0
    kc = K // k_splits
    return pl.pallas_call(
        _linear_kernel,
        out_shape=jax.ShapeDtypeStruct((M, N), jnp.float32),
        grid_spec=pltpu.PrefetchScalarGridSpec(
            num_scalar_prefetch=0,
            grid=(k_splits,),
            in_specs=[
                pl.BlockSpec((M, kc), lambda s: (0, s)),
                pl.BlockSpec((kc, N), lambda s: (s, 0)),
                pl.BlockSpec((1, N), lambda s: (0, 0)),
            ],
            out_specs=pl.BlockSpec((M, N), lambda s: (0, 0)),
        ),
        compiler_params=pltpu.CompilerParams(
            dimension_semantics=("arbitrary",)),
    )(x, w, b2d)


# ----------------------------------------------------------------------------
# XLA glue: conv1 im2col (3x3, stride 2, pad 1), K padded to 32, parity-grouped.
# ----------------------------------------------------------------------------
def _conv1_patches(x_nchw):
    B = x_nchw.shape[0]
    x = jnp.transpose(x_nchw, (0, 2, 3, 1))                    # NHWC
    xp = jnp.pad(x, ((0, 0), (1, 1), (1, 1), (0, 0)))
    taps = []
    for kh in range(3):
        for kw in range(3):
            taps.append(xp[:, kh:kh + 2 * H1:2, kw:kw + 2 * H1:2, :])
    p = jnp.stack(taps, axis=3).reshape(B, H1, H1, 27)         # (kh, kw, cin)
    p = jnp.pad(p, ((0, 0), (0, 0), (0, 0), (0, K1 - 27)))     # 27 -> 32
    # group rows by output-pixel parity (r%2, c%2), then (i, j) = (r//2, c//2)
    p = (p.reshape(B, H2, 2, H2, 2, K1)
          .transpose(0, 2, 4, 1, 3, 5)
          .reshape(B, 4 * H2 * H2, K1))
    return p.astype(jnp.bfloat16)


# ----------------------------------------------------------------------------
# One-time parameter prep: permute / pad / cast weights (data is never permuted
# at run time).
# ----------------------------------------------------------------------------
def prepare_params(params):
    w1, b1, w2, b2, wl, bl = params
    # conv1 weight rows (kh, kw, cin) to match patch order; K padded 27 -> 32.
    w1m = w1.transpose(2, 3, 1, 0).reshape(27, C1)
    w1m = jnp.pad(w1m, ((0, K1 - 27), (0, 0))).astype(jnp.bfloat16)
    b1m = b1.reshape(1, C1).astype(jnp.float32)
    # conv2: one (cin, cout) tile per tap t = kh*3 + kw.
    w2m = w2.transpose(2, 3, 1, 0).reshape(9, C1, C2).astype(jnp.bfloat16)
    b2m = b2.reshape(1, C2).astype(jnp.float32)
    # Linear: reorder input columns from torch's (c, h, w) flatten to the NHWC
    # (h, w, c) flatten the conv kernel produces; transpose; cast bf16.
    wlm = (wl.reshape(N_OUT, C2, H2, H2)
             .transpose(0, 2, 3, 1)
             .reshape(N_OUT, K_LIN)
             .T.astype(jnp.bfloat16))
    blm = bl.reshape(1, N_OUT).astype(jnp.float32)
    return w1m, b1m, w2m, b2m, wlm, blm


# ----------------------------------------------------------------------------
# Forward pass (matches torch CNN.forward; nn.Softmax is unused in forward).
# ----------------------------------------------------------------------------
def cnn_forward(x, prepped):
    w1m, b1m, w2m, b2m, wlm, blm = prepped
    B = x.shape[0]
    assert x.shape[1:] == (3, H_IN, H_IN)
    p1 = _conv1_patches(x)                                # [B, 1024, 32] bf16
    h2 = conv1_conv2(p1, w1m, b1m, w2m, b2m)              # [B, 256, 64] bf16
    flat = h2.reshape(B, K_LIN)                           # metadata-only reshape
    return linear(flat, wlm, blm, k_splits=2)             # [B, 200] f32


def init_params(key):
    ks = jax.random.split(key, 6)
    w1 = 0.05 * jax.random.normal(ks[0], (C1, 3, 3, 3), jnp.float32)
    b1 = 0.05 * jax.random.normal(ks[1], (C1,), jnp.float32)
    w2 = 0.05 * jax.random.normal(ks[2], (C2, C1, 3, 3), jnp.float32)
    b2 = 0.05 * jax.random.normal(ks[3], (C2,), jnp.float32)
    wl = 0.02 * jax.random.normal(ks[4], (N_OUT, K_LIN), jnp.float32)
    bl = 0.02 * jax.random.normal(ks[5], (N_OUT,), jnp.float32)
    return (w1, b1, w2, b2, wl, bl)


def cnn_forward_ref(x, params):
    """Independent f32 reference (lax.conv, torch NCHW flatten order)."""
    w1, b1, w2, b2, wl, bl = params
    dn = ('NCHW', 'OIHW', 'NCHW')
    y = jax.lax.conv_general_dilated(x, w1, (2, 2), ((1, 1), (1, 1)),
                                     dimension_numbers=dn)
    y = jnp.maximum(y + b1[None, :, None, None], 0.0)
    y = jax.lax.conv_general_dilated(y, w2, (2, 2), ((1, 1), (1, 1)),
                                     dimension_numbers=dn)
    y = jnp.maximum(y + b2[None, :, None, None], 0.0)
    flat = y.reshape(x.shape[0], -1)
    return flat @ wl.T + bl


if __name__ == "__main__":
    key = jax.random.PRNGKey(0)
    kx, kp = jax.random.split(key)
    # Linear(16384, 200) with 64 channels at H/4 x W/4 implies a 3x64x64 input.
    x = jax.random.normal(kx, (2, 3, H_IN, H_IN), jnp.float32)
    params = init_params(kp)
    prepped = prepare_params(params)

    fwd = jax.jit(cnn_forward)
    out = jax.block_until_ready(fwd(x, prepped))
    assert out.shape == (2, N_OUT), out.shape

    ref = jax.block_until_ready(cnn_forward_ref(x, params))
    max_err = float(jnp.max(jnp.abs(out - ref)))
    assert jnp.allclose(out, ref, atol=3e-2, rtol=3e-2), max_err

    print("KERNEL_OK")
</pallas_src>

<mosaic_0001>
module attributes {stable_mosaic.version = 11 : i64} {
  func.func @_conv_fused_kernel(%arg0: i32, %arg1: memref<1x1024x32xbf16, #tpu.memory_space<vmem>>, %arg2: memref<32x32xbf16, #tpu.memory_space<vmem>>, %arg3: memref<1x32xf32, #tpu.memory_space<vmem>>, %arg4: memref<9x32x64xbf16, #tpu.memory_space<vmem>>, %arg5: memref<1x64xf32, #tpu.memory_space<vmem>>, %arg6: memref<1x256x64xbf16, #tpu.memory_space<vmem>>, %arg7: memref<17x17x32xf32, #tpu.memory_space<vmem>>, %arg8: memref<17x17x32xf32, #tpu.memory_space<vmem>>, %arg9: memref<17x17x32xf32, #tpu.memory_space<vmem>>) attributes {dimension_semantics = [#tpu.dimension_semantics<parallel>], iteration_bounds = array<i64: 2>, scalar_prefetch = 0 : i64, scratch_operands = 3 : i64, tpu.core_type = #tpu.core_type<tc>, window_params = [{transform_indices = @transform_0, window_bounds = array<i64: 1, 1024, 32>}, {pipeline_mode = #tpu.pipeline_mode<synchronous>, transform_indices = @transform_1, window_bounds = array<i64: 32, 32>}, {pipeline_mode = #tpu.pipeline_mode<synchronous>, transform_indices = @transform_2, window_bounds = array<i64: 1, 32>}, {pipeline_mode = #tpu.pipeline_mode<synchronous>, transform_indices = @transform_3, window_bounds = array<i64: 9, 32, 64>}, {pipeline_mode = #tpu.pipeline_mode<synchronous>, transform_indices = @transform_4, window_bounds = array<i64: 1, 64>}, {transform_indices = @transform_5, window_bounds = array<i64: 1, 256, 64>}]} {
    %c0 = arith.constant 0 : index
    %c0_0 = arith.constant 0 : index
    %c0_1 = arith.constant 0 : index
    %0 = vector.load %arg1[%c0, %c0_0, %c0_1] : memref<1x1024x32xbf16, #tpu.memory_space<vmem>>, vector<1x1024x32xbf16>
    %1 = vector.shape_cast %0 : vector<1x1024x32xbf16> to vector<1024x32xbf16>
    %c0_2 = arith.constant 0 : index
    %c0_3 = arith.constant 0 : index
    %2 = vector.load %arg2[%c0_2, %c0_3] : memref<32x32xbf16, #tpu.memory_space<vmem>>, vector<32x32xbf16>
    %cst = arith.constant dense<0.000000e+00> : vector<1024x32xf32>
    %3 = tpu.matmul %1, %2, %cst {dimension_numbers = #tpu.dot_dimension_numbers<[1], [0], [0], [1], [0, 0, 1, 1], [], []>} : vector<1024x32xbf16>, vector<32x32xbf16>, vector<1024x32xf32> -> vector<1024x32xf32>
    %c0_4 = arith.constant 0 : index
    %c0_5 = arith.constant 0 : index
    %4 = vector.load %arg3[%c0_4, %c0_5] : memref<1x32xf32, #tpu.memory_space<vmem>>, vector<1x32xf32>
    %5 = vector.broadcast %4 : vector<1x32xf32> to vector<1024x32xf32>
    %6 = arith.addf %3, %5 : vector<1024x32xf32>
    %cst_6 = arith.constant 0.000000e+00 : f32
    %7 = vector.broadcast %cst_6 : f32 to vector<1024x32xf32>
    %8 = arith.maximumf %6, %7 : vector<1024x32xf32>
    %9 = vector.extract_strided_slice %8 {offsets = [0, 0], sizes = [256, 32], strides = [1, 1]} : vector<1024x32xf32> to vector<256x32xf32>
    %10 = vector.extract_strided_slice %8 {offsets = [256, 0], sizes = [256, 32], strides = [1, 1]} : vector<1024x32xf32> to vector<256x32xf32>
    %11 = vector.extract_strided_slice %8 {offsets = [512, 0], sizes = [256, 32], strides = [1, 1]} : vector<1024x32xf32> to vector<256x32xf32>
    %12 = vector.extract_strided_slice %8 {offsets = [768, 0], sizes = [256, 32], strides = [1, 1]} : vector<1024x32xf32> to vector<256x32xf32>
    %cst_7 = arith.constant 0.000000e+00 : f32
    %13 = vector.broadcast %cst_7 : f32 to vector<17x17x32xf32>
    %c0_8 = arith.constant 0 : index
    %c0_9 = arith.constant 0 : index
    %c0_10 = arith.constant 0 : index
    %14 = vector.load %arg7[%c0_8, %c0_9, %c0_10] : memref<17x17x32xf32, #tpu.memory_space<vmem>>, vector<17x17x32xf32>
    tpu.vector_store %arg7[%c0_8, %c0_9, %c0_10], %13 {strides = array<i32>} : memref<17x17x32xf32, #tpu.memory_space<vmem>>, vector<17x17x32xf32>,
    %cst_11 = arith.constant 0.000000e+00 : f32
    %15 = vector.broadcast %cst_11 : f32 to vector<17x17x32xf32>
    %c0_12 = arith.constant 0 : index
    %c0_13 = arith.constant 0 : index
    %c0_14 = arith.constant 0 : index
    %16 = vector.load %arg8[%c0_12, %c0_13, %c0_14] : memref<17x17x32xf32, #tpu.memory_space<vmem>>, vector<17x17x32xf32>
    tpu.vector_store %arg8[%c0_12, %c0_13, %c0_14], %15 {strides = array<i32>} : memref<17x17x32xf32, #tpu.memory_space<vmem>>, vector<17x17x32xf32>,
    %cst_15 = arith.constant 0.000000e+00 : f32
    %17 = vector.broadcast %cst_15 : f32 to vector<17x17x32xf32>
    %c0_16 = arith.constant 0 : index
    %c0_17 = arith.constant 0 : index
    %c0_18 = arith.constant 0 : index
    %18 = vector.load %arg9[%c0_16, %c0_17, %c0_18] : memref<17x17x32xf32, #tpu.memory_space<vmem>>, vector<17x17x32xf32>
    tpu.vector_store %arg9[%c0_16, %c0_17, %c0_18], %17 {strides = array<i32>} : memref<17x17x32xf32, #tpu.memory_space<vmem>>, vector<17x17x32xf32>,
    %19 = vector.shape_cast %10 : vector<256x32xf32> to vector<16x16x32xf32>
    %c1 = arith.constant 1 : index
    %c1_19 = arith.constant 1 : index
    %c0_20 = arith.constant 0 : index
    %20 = vector.load %arg7[%c1, %c1_19, %c0_20] : memref<17x17x32xf32, #tpu.memory_space<vmem>>, vector<16x16x32xf32>
    tpu.vector_store %arg7[%c1, %c1_19, %c0_20], %19 {strides = array<i32>} : memref<17x17x32xf32, #tpu.memory_space<vmem>>, vector<16x16x32xf32>,
    %21 = vector.shape_cast %11 : vector<256x32xf32> to vector<16x16x32xf32>
    %c1_21 = arith.constant 1 : index
    %c1_22 = arith.constant 1 : index
    %c0_23 = arith.constant 0 : index
    %22 = vector.load %arg8[%c1_21, %c1_22, %c0_23] : memref<17x17x32xf32, #tpu.memory_space<vmem>>, vector<16x16x32xf32>
    tpu.vector_store %arg8[%c1_21, %c1_22, %c0_23], %21 {strides = array<i32>} : memref<17x17x32xf32, #tpu.memory_space<vmem>>, vector<16x16x32xf32>,
    %23 = vector.shape_cast %12 : vector<256x32xf32> to vector<16x16x32xf32>
    %c1_24 = arith.constant 1 : index
    %c1_25 = arith.constant 1 : index
    %c0_26 = arith.constant 0 : index
    %24 = vector.load %arg9[%c1_24, %c1_25, %c0_26] : memref<17x17x32xf32, #tpu.memory_space<vmem>>, vector<16x16x32xf32>
    tpu.vector_store %arg9[%c1_24, %c1_25, %c0_26], %23 {strides = array<i32>} : memref<17x17x32xf32, #tpu.memory_space<vmem>>, vector<16x16x32xf32>,
    %c0_27 = arith.constant 0 : index
    %c0_28 = arith.constant 0 : index
    %c0_29 = arith.constant 0 : index
    %25 = vector.load %arg9[%c0_27, %c0_28, %c0_29] : memref<17x17x32xf32, #tpu.memory_space<vmem>>, vector<16x16x32xf32>
    %26 = vector.shape_cast %25 : vector<16x16x32xf32> to vector<256x32xf32>
    %c0_30 = arith.constant 0 : index
    %c1_31 = arith.constant 1 : index
    %c0_32 = arith.constant 0 : index
    %27 = vector.load %arg8[%c0_30, %c1_31, %c0_32] : memref<17x17x32xf32, #tpu.memory_space<vmem>>, vector<16x16x32xf32>
    %28 = vector.shape_cast %27 : vector<16x16x32xf32> to vector<256x32xf32>
    %c0_33 = arith.constant 0 : index
    %c1_34 = arith.constant 1 : index
    %c0_35 = arith.constant 0 : index
    %29 = vector.load %arg9[%c0_33, %c1_34, %c0_35] : memref<17x17x32xf32, #tpu.memory_space<vmem>>, vector<16x16x32xf32>
    %30 = vector.shape_cast %29 : vector<16x16x32xf32> to vector<256x32xf32>
    %c1_36 = arith.constant 1 : index
    %c0_37 = arith.constant 0 : index
    %c0_38 = arith.constant 0 : index
    %31 = vector.load %arg7[%c1_36, %c0_37, %c0_38] : memref<17x17x32xf32, #tpu.memory_space<vmem>>, vector<16x16x32xf32>
    %32 = vector.shape_cast %31 : vector<16x16x32xf32> to vector<256x32xf32>
    %c1_39 = arith.constant 1 : index
    %c0_40 = arith.constant 0 : index
    %c0_41 = arith.constant 0 : index
    %33 = vector.load %arg9[%c1_39, %c0_40, %c0_41] : memref<17x17x32xf32, #tpu.memory_space<vmem>>, vector<16x16x32xf32>
    %34 = vector.shape_cast %33 : vector<16x16x32xf32> to vector<256x32xf32>
    %35 = arith.truncf %26 : vector<256x32xf32> to vector<256x32xbf16>
    %c0_42 = arith.constant 0 : index
    %c0_43 = arith.constant 0 : index
    %c0_44 = arith.constant 0 : index
    %36 = vector.load %arg4[%c0_42, %c0_43, %c0_44] : memref<9x32x64xbf16, #tpu.memory_space<vmem>>, vector<1x32x64xbf16>
    %37 = vector.shape_cast %36 : vector<1x32x64xbf16> to vector<32x64xbf16>
    %cst_45 = arith.constant dense<0.000000e+00> : vector<256x64xf32>
    %38 = tpu.matmul %35, %37, %cst_45 {dimension_numbers = #tpu.dot_dimension_numbers<[1], [0], [0], [1], [0, 0, 1, 1], [], []>} : vector<256x32xbf16>, vector<32x64xbf16>, vector<256x64xf32> -> vector<256x64xf32>
    %39 = arith.truncf %28 : vector<256x32xf32> to vector<256x32xbf16>
    %c1_46 = arith.constant 1 : index
    %c0_47 = arith.constant 0 : index
    %c0_48 = arith.constant 0 : index
    %40 = vector.load %arg4[%c1_46, %c0_47, %c0_48] : memref<9x32x64xbf16, #tpu.memory_space<vmem>>, vector<1x32x64xbf16>
    %41 = vector.shape_cast %40 : vector<1x32x64xbf16> to vector<32x64xbf16>
    %cst_49 = arith.constant dense<0.000000e+00> : vector<256x64xf32>
    %42 = tpu.matmul %39, %41, %cst_49 {dimension_numbers = #tpu.dot_dimension_numbers<[1], [0], [0], [1], [0, 0, 1, 1], [], []>} : vector<256x32xbf16>, vector<32x64xbf16>, vector<256x64xf32> -> vector<256x64xf32>
    %43 = arith.addf %38, %42 : vector<256x64xf32>
    %44 = arith.truncf %30 : vector<256x32xf32> to vector<256x32xbf16>
    %c2 = arith.constant 2 : index
    %c0_50 = arith.constant 0 : index
    %c0_51 = arith.constant 0 : index
    %45 = vector.load %arg4[%c2, %c0_50, %c0_51] : memref<9x32x64xbf16, #tpu.memory_space<vmem>>, vector<1x32x64xbf16>
    %46 = vector.shape_cast %45 : vector<1x32x64xbf16> to vector<32x64xbf16>
    %cst_52 = arith.constant dense<0.000000e+00> : vector<256x64xf32>
    %47 = tpu.matmul %44, %46, %cst_52 {dimension_numbers = #tpu.dot_dimension_numbers<[1], [0], [0], [1], [0, 0, 1, 1], [], []>} : vector<256x32xbf16>, vector<32x64xbf16>, vector<256x64xf32> -> vector<256x64xf32>
    %48 = arith.addf %43, %47 : vector<256x64xf32>
    %49 = arith.truncf %32 : vector<256x32xf32> to vector<256x32xbf16>
    %c3 = arith.constant 3 : index
    %c0_53 = arith.constant 0 : index
    %c0_54 = arith.constant 0 : index
    %50 = vector.load %arg4[%c3, %c0_53, %c0_54] : memref<9x32x64xbf16, #tpu.memory_space<vmem>>, vector<1x32x64xbf16>
    %51 = vector.shape_cast %50 : vector<1x32x64xbf16> to vector<32x64xbf16>
    %cst_55 = arith.constant dense<0.000000e+00> : vector<256x64xf32>
    %52 = tpu.matmul %49, %51, %cst_55 {dimension_numbers = #tpu.dot_dimension_numbers<[1], [0], [0], [1], [0, 0, 1, 1], [], []>} : vector<256x32xbf16>, vector<32x64xbf16>, vector<256x64xf32> -> vector<256x64xf32>
    %53 = arith.addf %48, %52 : vector<256x64xf32>
    %54 = arith.truncf %9 : vector<256x32xf32> to vector<256x32xbf16>
    %c4 = arith.constant 4 : index
    %c0_56 = arith.constant 0 : index
    %c0_57 = arith.constant 0 : index
    %55 = vector.load %arg4[%c4, %c0_56, %c0_57] : memref<9x32x64xbf16, #tpu.memory_space<vmem>>, vector<1x32x64xbf16>
    %56 = vector.shape_cast %55 : vector<1x32x64xbf16> to vector<32x64xbf16>
    %cst_58 = arith.constant dense<0.000000e+00> : vector<256x64xf32>
    %57 = tpu.matmul %54, %56, %cst_58 {dimension_numbers = #tpu.dot_dimension_numbers<[1], [0], [0], [1], [0, 0, 1, 1], [], []>} : vector<256x32xbf16>, vector<32x64xbf16>, vector<256x64xf32> -> vector<256x64xf32>
    %58 = arith.addf %53, %57 : vector<256x64xf32>
    %59 = arith.truncf %10 : vector<256x32xf32> to vector<256x32xbf16>
    %c5 = arith.constant 5 : index
    %c0_59 = arith.constant 0 : index
    %c0_60 = arith.constant 0 : index
    %60 = vector.load %arg4[%c5, %c0_59, %c0_60] : memref<9x32x64xbf16, #tpu.memory_space<vmem>>, vector<1x32x64xbf16>
    %61 = vector.shape_cast %60 : vector<1x32x64xbf16> to vector<32x64xbf16>
    %cst_61 = arith.constant dense<0.000000e+00> : vector<256x64xf32>
    %62 = tpu.matmul %59, %61, %cst_61 {dimension_numbers = #tpu.dot_dimension_numbers<[1], [0], [0], [1], [0, 0, 1, 1], [], []>} : vector<256x32xbf16>, vector<32x64xbf16>, vector<256x64xf32> -> vector<256x64xf32>
    %63 = arith.addf %58, %62 : vector<256x64xf32>
    %64 = arith.truncf %34 : vector<256x32xf32> to vector<256x32xbf16>
    %c6 = arith.constant 6 : index
    %c0_62 = arith.constant 0 : index
    %c0_63 = arith.constant 0 : index
    %65 = vector.load %arg4[%c6, %c0_62, %c0_63] : memref<9x32x64xbf16, #tpu.memory_space<vmem>>, vector<1x32x64xbf16>
    %66 = vector.shape_cast %65 : vector<1x32x64xbf16> to vector<32x64xbf16>
    %cst_64 = arith.constant dense<0.000000e+00> : vector<256x64xf32>
    %67 = tpu.matmul %64, %66, %cst_64 {dimension_numbers = #tpu.dot_dimension_numbers<[1], [0], [0], [1], [0, 0, 1, 1], [], []>} : vector<256x32xbf16>, vector<32x64xbf16>, vector<256x64xf32> -> vector<256x64xf32>
    %68 = arith.addf %63, %67 : vector<256x64xf32>
    %69 = arith.truncf %11 : vector<256x32xf32> to vector<256x32xbf16>
    %c7 = arith.constant 7 : index
    %c0_65 = arith.constant 0 : index
    %c0_66 = arith.constant 0 : index
    %70 = vector.load %arg4[%c7, %c0_65, %c0_66] : memref<9x32x64xbf16, #tpu.memory_space<vmem>>, vector<1x32x64xbf16>
    %71 = vector.shape_cast %70 : vector<1x32x64xbf16> to vector<32x64xbf16>
    %cst_67 = arith.constant dense<0.000000e+00> : vector<256x64xf32>
    %72 = tpu.matmul %69, %71, %cst_67 {dimension_numbers = #tpu.dot_dimension_numbers<[1], [0], [0], [1], [0, 0, 1, 1], [], []>} : vector<256x32xbf16>, vector<32x64xbf16>, vector<256x64xf32> -> vector<256x64xf32>
    %73 = arith.addf %68, %72 : vector<256x64xf32>
    %74 = arith.truncf %12 : vector<256x32xf32> to vector<256x32xbf16>
    %c8 = arith.constant 8 : index
    %c0_68 = arith.constant 0 : index
    %c0_69 = arith.constant 0 : index
    %75 = vector.load %arg4[%c8, %c0_68, %c0_69] : memref<9x32x64xbf16, #tpu.memory_space<vmem>>, vector<1x32x64xbf16>
    %76 = vector.shape_cast %75 : vector<1x32x64xbf16> to vector<32x64xbf16>
    %cst_70 = arith.constant dense<0.000000e+00> : vector<256x64xf32>
    %77 = tpu.matmul %74, %76, %cst_70 {dimension_numbers = #tpu.dot_dimension_numbers<[1], [0], [0], [1], [0, 0, 1, 1], [], []>} : vector<256x32xbf16>, vector<32x64xbf16>, vector<256x64xf32> -> vector<256x64xf32>
    %78 = arith.addf %73, %77 : vector<256x64xf32>
    %c0_71 = arith.constant 0 : index
    %c0_72 = arith.constant 0 : index
    %79 = vector.load %arg5[%c0_71, %c0_72] : memref<1x64xf32, #tpu.memory_space<vmem>>, vector<1x64xf32>
    %80 = vector.broadcast %79 : vector<1x64xf32> to vector<256x64xf32>
    %81 = arith.addf %78, %80 : vector<256x64xf32>
    %cst_73 = arith.constant 0.000000e+00 : f32
    %82 = vector.broadcast %cst_73 : f32 to vector<256x64xf32>
    %83 = arith.maximumf %81, %82 : vector<256x64xf32>
    %84 = arith.truncf %83 : vector<256x64xf32> to vector<256x64xbf16>
    %c0_74 = arith.constant 0 : index
    %c0_75 = arith.constant 0 : index
    %c0_76 = arith.constant 0 : index
    %85 = vector.load %arg6[%c0_74, %c0_75, %c0_76] : memref<1x256x64xbf16, #tpu.memory_space<vmem>>, vector<1x256x64xbf16>
    %86 = vector.shape_cast %85 : vector<1x256x64xbf16> to vector<256x64xbf16>
    %87 = vector.shape_cast %84 : vector<256x64xbf16> to vector<1x256x64xbf16>
    tpu.vector_store %arg6[%c0_74, %c0_75, %c0_76], %87 {strides = array<i32>} : memref<1x256x64xbf16, #tpu.memory_space<vmem>>, vector<1x256x64xbf16>,
    return
  }
  func.func @transform_0(%arg0: i32) -> (i32, i32, i32) {
    %c0_i32 = arith.constant 0 : i32
    %c0_i32_0 = arith.constant 0 : i32
    %c0_i32_1 = arith.constant 0 : i32
    return %arg0, %c0_i32, %c0_i32_0 : i32, i32, i32
  }
  func.func @transform_1(%arg0: i32) -> (i32, i32) {
    %c0_i32 = arith.constant 0 : i32
    %c0_i32_0 = arith.constant 0 : i32
    %c0_i32_1 = arith.constant 0 : i32
    return %c0_i32, %c0_i32_0 : i32, i32
  }
  func.func @transform_2(%arg0: i32) -> (i32, i32) {
    %c0_i32 = arith.constant 0 : i32
    %c0_i32_0 = arith.constant 0 : i32
    %c0_i32_1 = arith.constant 0 : i32
    return %c0_i32, %c0_i32_0 : i32, i32
  }
  func.func @transform_3(%arg0: i32) -> (i32, i32, i32) {
    %c0_i32 = arith.constant 0 : i32
    %c0_i32_0 = arith.constant 0 : i32
    %c0_i32_1 = arith.constant 0 : i32
    %c0_i32_2 = arith.constant 0 : i32
    return %c0_i32, %c0_i32_0, %c0_i32_1 : i32, i32, i32
  }
  func.func @transform_4(%arg0: i32) -> (i32, i32) {
    %c0_i32 = arith.constant 0 : i32
    %c0_i32_0 = arith.constant 0 : i32
    %c0_i32_1 = arith.constant 0 : i32
    return %c0_i32, %c0_i32_0 : i32, i32
  }
  func.func @transform_5(%arg0: i32) -> (i32, i32, i32) {
    %c0_i32 = arith.constant 0 : i32
    %c0_i32_0 = arith.constant 0 : i32
    %c0_i32_1 = arith.constant 0 : i32
    return %arg0, %c0_i32, %c0_i32_0 : i32, i32, i32
  }
}

module attributes {stable_mosaic.version = 11 : i64} {
  func.func @_linear_kernel(%arg0: i32, %arg1: memref<2x8192xbf16, #tpu.memory_space<vmem>>, %arg2: memref<8192x200xbf16, #tpu.memory_space<vmem>>, %arg3: memref<1x200xf32, #tpu.memory_space<vmem>>, %arg4: memref<2x200xf32, #tpu.memory_space<vmem>>) attributes {dimension_semantics = [#tpu.dimension_semantics<arbitrary>], iteration_bounds = array<i64: 2>, scalar_prefetch = 0 : i64, scratch_operands = 0 : i64, tpu.core_type = #tpu.core_type<tc>, window_params = [{transform_indices = @transform_0, window_bounds = array<i64: 2, 8192>}, {transform_indices = @transform_1, window_bounds = array<i64: 8192, 200>}, {pipeline_mode = #tpu.pipeline_mode<synchronous>, transform_indices = @transform_2, window_bounds = array<i64: 1, 200>}, {pipeline_mode = #tpu.pipeline_mode<synchronous>, transform_indices = @transform_3, window_bounds = array<i64: 2, 200>}]} {
    %c0_i32 = arith.constant 0 : i32
    %0 = arith.cmpi eq, %arg0, %c0_i32 : i32
    %1 = arith.extui %0 : i1 to i32
    %c0_i32_0 = arith.constant 0 : i32
    %2 = arith.cmpi ne, %1, %c0_i32_0 : i32
    scf.if %2 {
      %cst_9 = arith.constant 0.000000e+00 : f32
      %12 = vector.broadcast %cst_9 : f32 to vector<2x200xf32>
      %c0_10 = arith.constant 0 : index
      %c0_11 = arith.constant 0 : index
      %13 = vector.load %arg4[%c0_10, %c0_11] : memref<2x200xf32, #tpu.memory_space<vmem>>, vector<2x200xf32>
      tpu.vector_store %arg4[%c0_10, %c0_11], %12 {strides = array<i32>} : memref<2x200xf32, #tpu.memory_space<vmem>>, vector<2x200xf32>,
    } else {
    }
    %c0 = arith.constant 0 : index
    %c0_1 = arith.constant 0 : index
    %3 = vector.load %arg4[%c0, %c0_1] : memref<2x200xf32, #tpu.memory_space<vmem>>, vector<2x200xf32>
    %c0_2 = arith.constant 0 : index
    %c0_3 = arith.constant 0 : index
    %4 = vector.load %arg1[%c0_2, %c0_3] : memref<2x8192xbf16, #tpu.memory_space<vmem>>, vector<2x8192xbf16>
    %c0_4 = arith.constant 0 : index
    %c0_5 = arith.constant 0 : index
    %5 = vector.load %arg2[%c0_4, %c0_5] : memref<8192x200xbf16, #tpu.memory_space<vmem>>, vector<8192x200xbf16>
    %cst = arith.constant dense<0.000000e+00> : vector<2x200xf32>
    %6 = tpu.matmul %4, %5, %cst {dimension_numbers = #tpu.dot_dimension_numbers<[1], [0], [0], [1], [0, 0, 1, 1], [], []>} : vector<2x8192xbf16>, vector<8192x200xbf16>, vector<2x200xf32> -> vector<2x200xf32>
    %7 = arith.addf %3, %6 : vector<2x200xf32>
    %c0_6 = arith.constant 0 : index
    %c0_7 = arith.constant 0 : index
    %8 = vector.load %arg4[%c0_6, %c0_7] : memref<2x200xf32, #tpu.memory_space<vmem>>, vector<2x200xf32>
    tpu.vector_store %arg4[%c0_6, %c0_7], %7 {strides = array<i32>} : memref<2x200xf32, #tpu.memory_space<vmem>>, vector<2x200xf32>,
    %c1_i32 = arith.constant 1 : i32
    %9 = arith.cmpi eq, %arg0, %c1_i32 : i32
    %10 = arith.extui %9 : i1 to i32
    %c0_i32_8 = arith.constant 0 : i32
    %11 = arith.cmpi ne, %10, %c0_i32_8 : i32
    scf.if %11 {
      %c0_9 = arith.constant 0 : index
      %c0_10 = arith.constant 0 : index
      %12 = vector.load %arg4[%c0_9, %c0_10] : memref<2x200xf32, #tpu.memory_space<vmem>>, vector<2x200xf32>
      %c0_11 = arith.constant 0 : index
      %c0_12 = arith.constant 0 : index
      %13 = vector.load %arg3[%c0_11, %c0_12] : memref<1x200xf32, #tpu.memory_space<vmem>>, vector<1x200xf32>
      %14 = vector.broadcast %13 : vector<1x200xf32> to vector<2x200xf32>
      %15 = arith.addf %12, %14 : vector<2x200xf32>
      %c0_13 = arith.constant 0 : index
      %c0_14 = arith.constant 0 : index
      %16 = vector.load %arg4[%c0_13, %c0_14] : memref<2x200xf32, #tpu.memory_space<vmem>>, vector<2x200xf32>
      tpu.vector_store %arg4[%c0_13, %c0_14], %15 {strides = array<i32>} : memref<2x200xf32, #tpu.memory_space<vmem>>, vector<2x200xf32>,
    } else {
    }
    return
  }
  func.func @transform_0(%arg0: i32) -> (i32, i32) {
    %c0_i32 = arith.constant 0 : i32
    %c0_i32_0 = arith.constant 0 : i32
    return %c0_i32, %arg0 : i32, i32
  }
  func.func @transform_1(%arg0: i32) -> (i32, i32) {
    %c0_i32 = arith.constant 0 : i32
    %c0_i32_0 = arith.constant 0 : i32
    return %arg0, %c0_i32 : i32, i32
  }
  func.func @transform_2(%arg0: i32) -> (i32, i32) {
    %c0_i32 = arith.constant 0 : i32
    %c0_i32_0 = arith.constant 0 : i32
    %c0_i32_1 = arith.constant 0 : i32
    return %c0_i32, %c0_i32_0 : i32, i32
  }
  func.func @transform_3(%arg0: i32) -> (i32, i32) {
    %c0_i32 = arith.constant 0 : i32
    %c0_i32_0 = arith.constant 0 : i32
    %c0_i32_1 = arith.constant 0 : i32
    return %c0_i32, %c0_i32_0 : i32, i32
  }
}

</mosaic_0001>

<bundles_post_ra>
// kernel: cnn_forward.2
= control target key start
LH: loop header
LB: loop body
LE: loop exit
PB: predicated region body
PF: predicated region fallthrough
CT: control target
= control target key end

     0   :  { %10 = vsyncpa [#allocation6], 0  ;;  %s6167_s0 = inlined_call_operand.vmem [shape: bf16[2,1024,32], index: 0, kind: input, shape index: {}]   ;;  %s6168_s1 = inlined_call_operand.hbm [shape: bf16[32,32], index: 1, kind: input, shape index: {}]   ;;  %s6169_s2 = inlined_call_operand.hbm [shape: f32[1,32], index: 2, kind: input, shape index: {}]   ;;  %s6170_s3 = inlined_call_operand.hbm [shape: bf16[9,32,64], index: 3, kind: input, shape index: {}]   ;;  %s6171_s4 = inlined_call_operand.hbm [shape: f32[1,64], index: 4, kind: input, shape index: {}]   ;;  %s6172_s5 = inlined_call_operand.vmem [shape: bf16[2,256,64], index: 5, kind: output, shape index: {}]  }
   0x1   :  { %11 = vsyncpa [#allocation8], 0 }
   0x2   :  { %12 = vsyncpa [#allocation11], 0  ;;  %s4689_s18 = smov 0  }
   0x3 LB: > { %s185_s21 = sshll.u32 %s6169_s2, 4  ;;  %s4698_s22 = sadd.s32 4294967295, %s4650_s18   ;;  %s4650_s18 = sphi %s4689_s18, %s18_s18   ;;  %s186_s21 = int_to_ptr.hbm [resolvable:$true] %s185_s21 }
   0x4   : > { %p3804_p0 = scmp.ge.s32.totalorder %s4650_s18, 1  ;;  %p159_p1 = scmp.lt.s32.totalorder %s4650_s18, 3 }
   0x5   : > { %p4486_p2 = scmp.eq.s32.totalorder %s4698_s22, 0  ;;  %s4652_s24 = smov [#allocation7]  }
   0x6   : > { %p4703_p3 = pnand %p3804_p0, %p159_p1  ;;  %s187_s25 = sshll.u32 %s4652_s24, 4  ;;  %s188_s25 = int_to_ptr.vmem [resolvable:$true] %s187_s25 }
   0x7   : > { %s170_s28 = sshll.u32 %s6168_s1, 4  ;;  %s4653_s30 = smov [#allocation5]   ;;  %s171_s28 = int_to_ptr.hbm [resolvable:$true] %s170_s28 }
   0x8   : > { %p4473_p4 = pneg %p4703_p3  ;;  %s172_s6 = sshll.u32 %s4653_s30, 4  ;;  %s173_s6 = int_to_ptr.vmem [resolvable:$true] %s172_s6 }
   0x9   : > { %s196_s9 = sshll.u32 %s6170_s3, 4  ;;  %s4654_s10 = smov 64   ;;  %s197_s9 = int_to_ptr.hbm [resolvable:$true] %s196_s9 }
   0xa   : > { %p4714_p5 = pnand %p4486_p2, %p4473_p4  ;;  %s4655_s11 = smov 4  }
   0xb   : > { %s4656_s12 = smov [#allocation9]   ;;  %s211_s16 = sshll.u32 %s6171_s4, 4  ;;  %s212_s16 = int_to_ptr.hbm [resolvable:$true] %s211_s16 }
   0xc   : > { %4479 = dma.hbm_to_vmem [thread:$0]  (!%p4714_p5), %s186_s21, 16, %s188_s25, [#allocation8]  }
   0xd   : > { %4476 = dma.hbm_to_vmem [thread:$0]  (!%p4714_p5), %s171_s28, 256, %s173_s6, [#allocation6], %s4654_s10, %s4654_s10, %s4655_s11  }
   0xe   : > { %s198_s13 = sshll.u32 %s4656_s12, 4  ;;  %s4657_s17 = smov [#allocation10]   ;;  %s199_s13 = int_to_ptr.vmem [resolvable:$true] %s198_s13 }
   0xf   : > { %4482 = dma.hbm_to_vmem [thread:$0]  (!%p4714_p5), %s197_s9, 2304, %s199_s13, [#allocation8], %s4654_s10, %s4654_s10, %s4655_s11  }
  0x10   : > { %s213_s19 = sshll.u32 %s4657_s17, 4  ;;  %234 = sbr.rel (%p4703_p3) target bundleno = 1838 (0x72e), region = 40  ;;  %s214_s19 = int_to_ptr.vmem [resolvable:$true] %s213_s19 }
  0x11   : > { %4485 = dma.hbm_to_vmem [thread:$0]  (!%p4714_p5), %s212_s16, 16, %s214_s19, [#allocation11]  }
  0x15   : > { %4637 = dma.done.wait (%p4486_p2), [#allocation6], 256  }
  0x16   : > { %4639 = vsyncadd (%p4486_p2), [#allocation6], 4294967040 }
  0x17   : > { %4641 = dma.done.wait (%p4486_p2), [#allocation8], 2320  }
  0x18   : > { %4643 = vsyncadd (%p4486_p2), [#allocation8], 4294964976 }
  0x19   : > { %4645 = dma.done.wait (%p4486_p2), [#allocation11], 16  }
  0x1a   : > { %4647 = vsyncadd (%p4486_p2), [#allocation11], 4294967280  ;;  %vm757_vm0 = vcmask 261120   ;;  %p278_p6 = scmp.lt.s32.totalorder %s4698_s22, 1  ;;  %vm1409_vm1 = vcmask 253952   ;;  %v4658_v0 = vmov 0.0  }
  0x1b   : > { %1411 = vst.msk [vmem:[#allocation2 + $0x18] sm:$0xff] %vm757_vm0, %v4658_v0  ;;  %v4432_v1 = vld [vmem:[#allocation5 + $0x8] sm:$0xff]  ;;  %v4431_v2 = vld [vmem:[#allocation5] sm:$0xff]  ;;  %v5017_v13 = vld [vmem:[#allocation7] ss:$0 sm:$0xff]  ;;  %vm3673_vm2 = vcmask 519168  }
  0x1c   : > { %s6317_s22 = smov (!%p278_p6, %s4698_s22), 1  ;;  %1412 = vst.msk [vmem:[#allocation2 + $0x20] sm:$0xff] %vm757_vm0, %v4658_v0  ;;  %956 = vmatpush.bf16.msra.mxu0 %v4432_v1  ;;  %4451 = vmatpush.bf16.msra.mxu1 %v4432_v1 }
  0x1d   : > { %s4365_s20 = sshll.u32 %s6317_s22, 9  ;;  %1414 = vst.msk [vmem:[#allocation2 + $0x30] sm:$0xff] %vm757_vm0, %v4658_v0  ;;  %4452 = vmatpush.bf16.msra.mxu2 %v4432_v1  ;;  %4453 = vmatpush.bf16.msra.mxu3 %v4432_v1  ;;  %s4366_s25 = sshll.u32 %s6317_s22, 7 }
  0x1e   : > { %1415 = vst.msk [vmem:[#allocation2 + $0x38] sm:$0xff] %vm757_vm0, %v4658_v0  ;;  %s4762_s24 = scalar_lea.vmem %s6167_s0, %s4365_s20  ;;  %s6008_s28 = scalar_lea.vmem %s6172_s5, %s4366_s25 }
  0x1f   : > { %1417 = vst.msk [vmem:[#allocation2 + $0x48] sm:$0xff] %vm757_vm0, %v4658_v0  ;;  %v4367_v3 = vld [vmem:[%s4762_s24] sm:$0xff]  ;;  %v4368_v4 = vld [vmem:[%s4762_s24 + $0x8] sm:$0xff]  ;;  %v4369_v5 = vld [vmem:[%s4762_s24 + $0x10] sm:$0xff] }
  0x20   : > { %1418 = vst.msk [vmem:[#allocation2 + $0x50] sm:$0xff] %vm757_vm0, %v4658_v0  ;;  %957 = vmatpush.bf16.msra.mxu0 %v4431_v2  ;;  %4454 = vmatpush.bf16.msra.mxu1 %v4431_v2  ;;  %v4370_v6 = vld [vmem:[%s4762_s24 + $0x18] sm:$0xff]  ;;  %v4371_v7 = vld [vmem:[%s4762_s24 + $0x20] sm:$0xff]  ;;  %v4372_v8 = vld [vmem:[%s4762_s24 + $0x28] sm:$0xff] }
  0x21   : > { %1420 = vst.msk [vmem:[#allocation2 + $0x60] sm:$0xff] %vm757_vm0, %v4658_v0  ;;  %4455 = vmatpush.bf16.msra.mxu2 %v4431_v2  ;;  %4456 = vmatpush.bf16.msra.mxu3 %v4431_v2  ;;  %v4373_v9 = vld [vmem:[%s4762_s24 + $0x30] sm:$0xff]  ;;  %v4374_v10 = vld [vmem:[%s4762_s24 + $0x38] sm:$0xff]  ;;  %v4375_v11 = vld [vmem:[%s4762_s24 + $0x40] sm:$0xff] }
  0x22   : > { %1421 = vst.msk [vmem:[#allocation2 + $0x68] sm:$0xff] %vm757_vm0, %v4658_v0  ;;  %v4376_v20 = vld [vmem:[%s4762_s24 + $0x48] sm:$0xff]  ;;  %v4377_v28 = vld [vmem:[%s4762_s24 + $0x50] sm:$0xff]  ;;  %v4378_v36 = vld [vmem:[%s4762_s24 + $0x58] sm:$0xff] }
  0x23   : > { %1423 = vst.msk [vmem:[#allocation2 + $0x78] sm:$0xff] %vm757_vm0, %v4658_v0  ;;  %4083 = vmatmul.msk.bf16.vlgmr.msra.gmra.mxu0 %vm757_vm0, %v4367_v3  ;;  %v4379_v44 = vld [vmem:[%s4762_s24 + $0x60] sm:$0xff]  ;;  %v4380_v52 = vld [vmem:[%s4762_s24 + $0x68] sm:$0xff]  ;;  %v4381_v60 = vld [vmem:[%s4762_s24 + $0x70] sm:$0xff] }
  0x24   : > { %1424 = vst.msk [vmem:[#allocation2 + $0x80] sm:$0xff] %vm757_vm0, %v4658_v0 }
  0x25   : > { %1426 = vst.msk [vmem:[#allocation2 + $0x90] sm:$0xff] %vm757_vm0, %v4658_v0 }
  0x26   : > { %1427 = vst.msk [vmem:[#allocation2 + $0x98] sm:$0xff] %vm757_vm0, %v4658_v0 }
  0x27   : > { %1429 = vst.msk [vmem:[#allocation2 + $0xa8] sm:$0xff] %vm757_vm0, %v4658_v0 }
  0x28   : > { %1430 = vst.msk [vmem:[#allocation2 + $0xb0] sm:$0xff] %vm757_vm0, %v4658_v0 }
  0x29   : > { %1432 = vst.msk [vmem:[#allocation2 + $0xc0] sm:$0xff] %vm757_vm0, %v4658_v0 }
  0x2a   : > { %1433 = vst.msk [vmem:[#allocation2 + $0xc8] sm:$0xff] %vm757_vm0, %v4658_v0 }
  0x2b   : > { %1435 = vst.msk [vmem:[#allocation2 + $0xd8] sm:$0xff] %vm757_vm0, %v4658_v0 }
  0x2c   : > { %1436 = vst.msk [vmem:[#allocation2 + $0xe0] sm:$0xff] %vm757_vm0, %v4658_v0 }
  0x2d   : > { %1438 = vst.msk [vmem:[#allocation2 + $0xf0] sm:$0xff] %vm757_vm0, %v4658_v0 }
  0x2e   : > { %1439 = vst.msk [vmem:[#allocation2 + $0xf8] sm:$0xff] %vm757_vm0, %v4658_v0 }
  0x2f   : > { %1441 = vst.msk [vmem:[#allocation2 + $0x108] sm:$0xff] %vm757_vm0, %v4658_v0 }
  0x30   : > { %1442 = vst.msk [vmem:[#allocation2 + $0x110] sm:$0xff] %vm757_vm0, %v4658_v0 }
  0x31   : > { %1444 = vst.msk [vmem:[#allocation2 + $0x120] sm:$0xff] %vm757_vm0, %v4658_v0 }
  0x32   : > { %1445 = vst.msk [vmem:[#allocation2 + $0x128] sm:$0xff] %vm757_vm0, %v4658_v0 }
  0x33   : > { %4084 = vmatmul.msk.bf16.gmra.mxu0 %vm757_vm0, %v4368_v4  ;;  %1447 = vst.msk [vmem:[#allocation2 + $0x138] sm:$0xff] %vm757_vm0, %v4658_v0  ;;  %v4382_v4 = vld [vmem:[%s4762_s24 + $0x78] sm:$0xff] }
  0x34   : > { %1448 = vst.msk [vmem:[#allocation2 + $0x140] sm:$0xff] %vm757_vm0, %v4658_v0 }
  0x35   : > { %1450 = vst.msk [vmem:[#allocation2 + $0x150] sm:$0xff] %vm757_vm0, %v4658_v0 }
  0x36   : > { %1451 = vst.msk [vmem:[#allocation2 + $0x158] sm:$0xff] %vm757_vm0, %v4658_v0 }
  0x37   : > { %1453 = vst.msk [vmem:[#allocation2 + $0x168] sm:$0xff] %vm757_vm0, %v4658_v0 }
  0x38   : > { %1454 = vst.msk [vmem:[#allocation2 + $0x170] sm:$0xff] %vm757_vm0, %v4658_v0 }
  0x39   : > { %1456 = vst.msk [vmem:[#allocation2 + $0x180] sm:$0xff] %vm757_vm0, %v4658_v0 }
  0x3a   : > { %1457 = vst.msk [vmem:[#allocation2 + $0x188] sm:$0xff] %vm757_vm0, %v4658_v0 }
  0x3b   : > { %1459 = vst.msk [vmem:[#allocation3] sm:$0xff] %vm757_vm0, %v4658_v0 }
  0x3c   : > { %1460 = vst.msk [vmem:[#allocation3 + $0x8] sm:$0xff] %vm757_vm0, %v4658_v0 }
  0x3d   : > { %1461 = vst.msk [vmem:[#allocation3 + $0x10] sm:$0x1] %vm1409_vm1, %v4658_v0 }
  0x3e   : > { %1462 = vst.msk [vmem:[#allocation3 + $0x18] sm:$0xff] %vm757_vm0, %v4658_v0 }
  0x3f   : > { %1463 = vst.msk [vmem:[#allocation3 + $0x20] sm:$0xff] %vm757_vm0, %v4658_v0 }
  0x40   : > { %1464 = vst.msk [vmem:[#allocation3 + $0x28] sm:$0x1] %vm1409_vm1, %v4658_v0 }
  0x41   : > { %1465 = vst.msk [vmem:[#allocation3 + $0x30] sm:$0xff] %vm757_vm0, %v4658_v0 }
  0x42   : > { %1466 = vst.msk [vmem:[#allocation3 + $0x38] sm:$0xff] %vm757_vm0, %v4658_v0 }
  0x43   : > { %4085 = vmatmul.msk.bf16.gmra.mxu0 %vm757_vm0, %v4369_v5  ;;  %1467 = vst.msk [vmem:[#allocation3 + $0x40] sm:$0x1] %vm1409_vm1, %v4658_v0 }
  0x44   : > { %1468 = vst.msk [vmem:[#allocation3 + $0x48] sm:$0xff] %vm757_vm0, %v4658_v0 }
  0x45   : > { %1469 = vst.msk [vmem:[#allocation3 + $0x50] sm:$0xff] %vm757_vm0, %v4658_v0 }
  0x46   : > { %1470 = vst.msk [vmem:[#allocation3 + $0x58] sm:$0x1] %vm1409_vm1, %v4658_v0 }
  0x47   : > { %1471 = vst.msk [vmem:[#allocation3 + $0x60] sm:$0xff] %vm757_vm0, %v4658_v0 }
  0x48   : > { %1472 = vst.msk [vmem:[#allocation3 + $0x68] sm:$0xff] %vm757_vm0, %v4658_v0 }
  0x49   : > { %1473 = vst.msk [vmem:[#allocation3 + $0x70] sm:$0x1] %vm1409_vm1, %v4658_v0 }
  0x4a   : > { %1474 = vst.msk [vmem:[#allocation3 + $0x78] sm:$0xff] %vm757_vm0, %v4658_v0 }
  0x4b   : > { %1475 = vst.msk [vmem:[#allocation3 + $0x80] sm:$0xff] %vm757_vm0, %v4658_v0 }
  0x4c   : > { %1476 = vst.msk [vmem:[#allocation3 + $0x88] sm:$0x1] %vm1409_vm1, %v4658_v0 }
  0x4d   : > { %1477 = vst.msk [vmem:[#allocation3 + $0x90] sm:$0xff] %vm757_vm0, %v4658_v0 }
  0x4e   : > { %1478 = vst.msk [vmem:[#allocation3 + $0x98] sm:$0xff] %vm757_vm0, %v4658_v0 }
  0x4f   : > { %1479 = vst.msk [vmem:[#allocation3 + $0xa0] sm:$0x1] %vm1409_vm1, %v4658_v0 }
  0x50   : > { %1480 = vst.msk [vmem:[#allocation3 + $0xa8] sm:$0xff] %vm757_vm0, %v4658_v0 }
  0x51   : > { %1481 = vst.msk [vmem:[#allocation3 + $0xb0] sm:$0xff] %vm757_vm0, %v4658_v0 }
  0x52   : > { %1482 = vst.msk [vmem:[#allocation3 + $0xb8] sm:$0x1] %vm1409_vm1, %v4658_v0 }
  0x53   : > { %4086 = vmatmul.msk.bf16.gmra.mxu0 %vm757_vm0, %v4370_v6  ;;  %1483 = vst.msk [vmem:[#allocation3 + $0xc0] sm:$0xff] %vm757_vm0, %v4658_v0 }
  0x54   : > { %1484 = vst.msk [vmem:[#allocation3 + $0xc8] sm:$0xff] %vm757_vm0, %v4658_v0 }
  0x55   : > { %1485 = vst.msk [vmem:[#allocation3 + $0xd0] sm:$0x1] %vm1409_vm1, %v4658_v0 }
  0x56   : > { %1486 = vst.msk [vmem:[#allocation3 + $0xd8] sm:$0xff] %vm757_vm0, %v4658_v0 }
  0x57   : > { %1487 = vst.msk [vmem:[#allocation3 + $0xe0] sm:$0xff] %vm757_vm0, %v4658_v0 }
  0x58   : > { %1488 = vst.msk [vmem:[#allocation3 + $0xe8] sm:$0x1] %vm1409_vm1, %v4658_v0 }
  0x59   : > { %1489 = vst.msk [vmem:[#allocation3 + $0xf0] sm:$0xff] %vm757_vm0, %v4658_v0 }
  0x5a   : > { %1490 = vst.msk [vmem:[#allocation3 + $0xf8] sm:$0xff] %vm757_vm0, %v4658_v0 }
  0x5b   : > { %1491 = vst.msk [vmem:[#allocation3 + $0x100] sm:$0x1] %vm1409_vm1, %v4658_v0 }
  0x5c   : > { %1492 = vst.msk [vmem:[#allocation3 + $0x108] sm:$0xff] %vm757_vm0, %v4658_v0 }
  0x5d   : > { %1493 = vst.msk [vmem:[#allocation3 + $0x110] sm:$0xff] %vm757_vm0, %v4658_v0 }
  0x5e   : > { %1494 = vst.msk [vmem:[#allocation3 + $0x118] sm:$0x1] %vm1409_vm1, %v4658_v0 }
  0x5f   : > { %1495 = vst.msk [vmem:[#allocation3 + $0x120] sm:$0xff] %vm757_vm0, %v4658_v0 }
  0x60   : > { %1496 = vst.msk [vmem:[#allocation3 + $0x128] sm:$0xff] %vm757_vm0, %v4658_v0 }
  0x61   : > { %1497 = vst.msk [vmem:[#allocation3 + $0x130] sm:$0x1] %vm1409_vm1, %v4658_v0 }
  0x62   : > { %1498 = vst.msk [vmem:[#allocation3 + $0x138] sm:$0xff] %vm757_vm0, %v4658_v0 }
  0x63   : > { %4087 = vmatmul.msk.bf16.gmra.mxu0 %vm757_vm0, %v4371_v7  ;;  %1499 = vst.msk [vmem:[#allocation3 + $0x140] sm:$0xff] %vm757_vm0, %v4658_v0 }
  0x64   : > { %1500 = vst.msk [vmem:[#allocation3 + $0x148] sm:$0x1] %vm1409_vm1, %v4658_v0 }
  0x65   : > { %1501 = vst.msk [vmem:[#allocation3 + $0x150] sm:$0xff] %vm757_vm0, %v4658_v0 }
  0x66   : > { %1502 = vst.msk [vmem:[#allocation3 + $0x158] sm:$0xff] %vm757_vm0, %v4658_v0 }
  0x67   : > { %1503 = vst.msk [vmem:[#allocation3 + $0x160] sm:$0x1] %vm1409_vm1, %v4658_v0 }
  0x68   : > { %1504 = vst.msk [vmem:[#allocation3 + $0x168] sm:$0xff] %vm757_vm0, %v4658_v0 }
  0x69   : > { %1505 = vst.msk [vmem:[#allocation3 + $0x170] sm:$0xff] %vm757_vm0, %v4658_v0 }
  0x6a   : > { %1506 = vst.msk [vmem:[#allocation3 + $0x178] sm:$0x1] %vm1409_vm1, %v4658_v0 }
  0x6b   : > { %1510 = vst.msk [vmem:[#allocation4] sm:$0xff] %vm757_vm0, %v4658_v0 }
  0x6c   : > { %1511 = vst.msk [vmem:[#allocation4 + $0x8] sm:$0xff] %vm757_vm0, %v4658_v0 }
  0x6d   : > { %1512 = vst.msk [vmem:[#allocation4 + $0x10] sm:$0x1] %vm1409_vm1, %v4658_v0 }
  0x6e   : > { %1513 = vst.msk [vmem:[#allocation4 + $0x18] sm:$0xff] %vm757_vm0, %v4658_v0 }
  0x6f   : > { %1514 = vst.msk [vmem:[#allocation4 + $0x20] sm:$0xff] %vm757_vm0, %v4658_v0 }
  0x70   : > { %1515 = vst.msk [vmem:[#allocation4 + $0x28] sm:$0x1] %vm1409_vm1, %v4658_v0 }
  0x71   : > { %1516 = vst.msk [vmem:[#allocation4 + $0x30] sm:$0xff] %vm757_vm0, %v4658_v0 }
  0x72   : > { %1517 = vst.msk [vmem:[#allocation4 + $0x38] sm:$0xff] %vm757_vm0, %v4658_v0 }
  0x73   : > { %4088 = vmatmul.msk.bf16.gmra.mxu0 %vm757_vm0, %v4372_v8  ;;  %1518 = vst.msk [vmem:[#allocation4 + $0x40] sm:$0x1] %vm1409_vm1, %v4658_v0 }
  0x74   : > { %1519 = vst.msk [vmem:[#allocation4 + $0x48] sm:$0xff] %vm757_vm0, %v4658_v0 }
  0x75   : > { %1520 = vst.msk [vmem:[#allocation4 + $0x50] sm:$0xff] %vm757_vm0, %v4658_v0 }
  0x76   : > { %1521 = vst.msk [vmem:[#allocation4 + $0x58] sm:$0x1] %vm1409_vm1, %v4658_v0 }
  0x77   : > { %1522 = vst.msk [vmem:[#allocation4 + $0x60] sm:$0xff] %vm757_vm0, %v4658_v0 }
  0x78   : > { %1523 = vst.msk [vmem:[#allocation4 + $0x68] sm:$0xff] %vm757_vm0, %v4658_v0 }
  0x79   : > { %1524 = vst.msk [vmem:[#allocation4 + $0x70] sm:$0x1] %vm1409_vm1, %v4658_v0 }
  0x7a   : > { %1525 = vst.msk [vmem:[#allocation4 + $0x78] sm:$0xff] %vm757_vm0, %v4658_v0 }
  0x7b   : > { %1526 = vst.msk [vmem:[#allocation4 + $0x80] sm:$0xff] %vm757_vm0, %v4658_v0 }
  0x7c   : > { %1527 = vst.msk [vmem:[#allocation4 + $0x88] sm:$0x1] %vm1409_vm1, %v4658_v0 }
  0x7d   : > { %1528 = vst.msk [vmem:[#allocation4 + $0x90] sm:$0xff] %vm757_vm0, %v4658_v0 }
  0x7e   : > { %1529 = vst.msk [vmem:[#allocation4 + $0x98] sm:$0xff] %vm757_vm0, %v4658_v0 }
  0x7f   : > { %1530 = vst.msk [vmem:[#allocation4 + $0xa0] sm:$0x1] %vm1409_vm1, %v4658_v0 }
  0x80   : > { %1531 = vst.msk [vmem:[#allocation4 + $0xa8] sm:$0xff] %vm757_vm0, %v4658_v0 }
  0x81   : > { %1532 = vst.msk [vmem:[#allocation4 + $0xb0] sm:$0xff] %vm757_vm0, %v4658_v0 }
  0x82   : > { %1533 = vst.msk [vmem:[#allocation4 + $0xb8] sm:$0x1] %vm1409_vm1, %v4658_v0 }
  0x83   : > { %4089 = vmatmul.msk.bf16.gmra.mxu0 %vm757_vm0, %v4373_v9  ;;  %1534 = vst.msk [vmem:[#allocation4 + $0xc0] sm:$0xff] %vm757_vm0, %v4658_v0 }
  0x84   : > { %1535 = vst.msk [vmem:[#allocation4 + $0xc8] sm:$0xff] %vm757_vm0, %v4658_v0 }
  0x85   : > { %1536 = vst.msk [vmem:[#allocation4 + $0xd0] sm:$0x1] %vm1409_vm1, %v4658_v0 }
  0x86   : > { %1537 = vst.msk [vmem:[#allocation4 + $0xd8] sm:$0xff] %vm757_vm0, %v4658_v0 }
  0x87   : > { %1538 = vst.msk [vmem:[#allocation4 + $0xe0] sm:$0xff] %vm757_vm0, %v4658_v0 }
  0x88   : > { %1539 = vst.msk [vmem:[#allocation4 + $0xe8] sm:$0x1] %vm1409_vm1, %v4658_v0 }
  0x89   : > { %1540 = vst.msk [vmem:[#allocation4 + $0xf0] sm:$0xff] %vm757_vm0, %v4658_v0 }
  0x8a   : > { %1541 = vst.msk [vmem:[#allocation4 + $0xf8] sm:$0xff] %vm757_vm0, %v4658_v0 }
  0x8b   : > { %1542 = vst.msk [vmem:[#allocation4 + $0x100] sm:$0x1] %vm1409_vm1, %v4658_v0 }
  0x8c   : > { %1543 = vst.msk [vmem:[#allocation4 + $0x108] sm:$0xff] %vm757_vm0, %v4658_v0 }
  0x8d   : > { %1544 = vst.msk [vmem:[#allocation4 + $0x110] sm:$0xff] %vm757_vm0, %v4658_v0 }
  0x8e   : > { %1545 = vst.msk [vmem:[#allocation4 + $0x118] sm:$0x1] %vm1409_vm1, %v4658_v0 }
  0x8f   : > { %1546 = vst.msk [vmem:[#allocation4 + $0x120] sm:$0xff] %vm757_vm0, %v4658_v0 }
  0x90   : > { %1547 = vst.msk [vmem:[#allocation4 + $0x128] sm:$0xff] %vm757_vm0, %v4658_v0 }
  0x91   : > { %1548 = vst.msk [vmem:[#allocation4 + $0x130] sm:$0x1] %vm1409_vm1, %v4658_v0 }
  0x92   : > { %1549 = vst.msk [vmem:[#allocation4 + $0x138] sm:$0xff] %vm757_vm0, %v4658_v0 }
  0x93   : > { %4090 = vmatmul.msk.bf16.gmra.mxu0 %vm757_vm0, %v4374_v10  ;;  %1550 = vst.msk [vmem:[#allocation4 + $0x140] sm:$0xff] %vm757_vm0, %v4658_v0 }
  0x94   : > { %1551 = vst.msk [vmem:[#allocation4 + $0x148] sm:$0x1] %vm1409_vm1, %v4658_v0 }
  0x95   : > { %1552 = vst.msk [vmem:[#allocation4 + $0x150] sm:$0xff] %vm757_vm0, %v4658_v0 }
  0x96   : > { %1553 = vst.msk [vmem:[#allocation4 + $0x158] sm:$0xff] %vm757_vm0, %v4658_v0 }
  0x97   : > { %1554 = vst.msk [vmem:[#allocation4 + $0x160] sm:$0x1] %vm1409_vm1, %v4658_v0 }
  0x98   : > { %1555 = vst.msk [vmem:[#allocation4 + $0x168] sm:$0xff] %vm757_vm0, %v4658_v0 }
  0x99   : > { %1556 = vst.msk [vmem:[#allocation4 + $0x170] sm:$0xff] %vm757_vm0, %v4658_v0 }
  0x9a   : > { %1557 = vst.msk [vmem:[#allocation4 + $0x178] sm:$0x1] %vm1409_vm1, %v4658_v0 }
  0x9b   : > { %1558 = vst.msk [vmem:[#allocation4 + $0x180] sm:$0xff] %vm757_vm0, %v4658_v0 }
  0x9c   : > { %1559 = vst.msk [vmem:[#allocation4 + $0x188] sm:$0xff] %vm757_vm0, %v4658_v0 }
  0xa0   : > { %v959_v12 = vpop.f32.mrf.mxu0 }
  0xa1   : > { %v960_v14 = vadd.f32 %v5017_v13, %v959_v12  ;;  %v4383_v12 = vld [vmem:[%s4762_s24 + $0x80] sm:$0xff] }
  0xa3   : > { %4091 = vmatmul.msk.bf16.gmra.mxu0 %vm757_vm0, %v4375_v11  ;;  %v1279_v17 = vmax.f32 %v960_v14, 0.0 }
  0xa8   : > { %v961_v15 = vpop.f32.mrf.mxu0 }
  0xa9   : > { %v962_v16 = vadd.f32 %v5017_v13, %v961_v15 }
  0xab   : > { %v1280_v18 = vmax.f32 %v962_v16, 0.0 }
  0xad   : > { %v5038_v19 = vpack.c.bf16 %v1280_v18, %v1279_v17 }
  0xb0   : > { %v964_v21 = vpop.f32.mrf.mxu0 }
  0xb1   : > { %v965_v22 = vadd.f32 %v5017_v13, %v964_v21 }
  0xb3   : > { %4092 = vmatmul.msk.bf16.gmra.mxu0 %vm757_vm0, %v4376_v20  ;;  %v1281_v25 = vmax.f32 %v965_v22, 0.0  ;;  %v4384_v22 = vld [vmem:[%s4762_s24 + $0x88] sm:$0xff] }
  0xb8   : > { %v966_v23 = vpop.f32.mrf.mxu0 }
  0xb9   : > { %v967_v24 = vadd.f32 %v5017_v13, %v966_v23 }
  0xbb   : > { %v1282_v26 = vmax.f32 %v967_v24, 0.0 }
  0xbd   : > { %v5044_v27 = vpack.c.bf16 %v1282_v26, %v1281_v25 }
  0xc0   : > { %v969_v29 = vpop.f32.mrf.mxu0 }
  0xc1   : > { %v970_v30 = vadd.f32 %v5017_v13, %v969_v29 }
  0xc3   : > { %4093 = vmatmul.msk.bf16.gmra.mxu0 %vm757_vm0, %v4377_v28  ;;  %v1283_v33 = vmax.f32 %v970_v30, 0.0 }
  0xc8   : > { %v971_v31 = vpop.f32.mrf.mxu0 }
  0xc9   : > { %v972_v32 = vadd.f32 %v5017_v13, %v971_v31  ;;  %v4385_v31 = vld [vmem:[%s4762_s24 + $0x90] sm:$0xff] }
  0xcb   : > { %v1284_v34 = vmax.f32 %v972_v32, 0.0 }
  0xcd   : > { %v5050_v35 = vpack.c.bf16 %v1284_v34, %v1283_v33 }
  0xd0   : > { %v974_v37 = vpop.f32.mrf.mxu0 }
  0xd1   : > { %v975_v38 = vadd.f32 %v5017_v13, %v974_v37 }
  0xd3   : > { %4094 = vmatmul.msk.bf16.gmra.mxu0 %vm757_vm0, %v4378_v36  ;;  %v1285_v41 = vmax.f32 %v975_v38, 0.0 }
  0xd8   : > { %v976_v39 = vpop.f32.mrf.mxu0 }
  0xd9   : > { %v977_v40 = vadd.f32 %v5017_v13, %v976_v39 }
  0xdb   : > { %v1286_v42 = vmax.f32 %v977_v40, 0.0  ;;  %v4386_v40 = vld [vmem:[%s4762_s24 + $0x98] sm:$0xff] }
  0xdd   : > { %v5056_v43 = vpack.c.bf16 %v1286_v42, %v1285_v41 }
  0xe0   : > { %v979_v45 = vpop.f32.mrf.mxu0 }
  0xe1   : > { %v980_v46 = vadd.f32 %v5017_v13, %v979_v45 }
  0xe3   : > { %4095 = vmatmul.msk.bf16.gmra.mxu0 %vm757_vm0, %v4379_v44  ;;  %v1287_v49 = vmax.f32 %v980_v46, 0.0 }
  0xe8   : > { %v981_v47 = vpop.f32.mrf.mxu0 }
  0xe9   : > { %v982_v48 = vadd.f32 %v5017_v13, %v981_v47 }
  0xeb   : > { %v1288_v50 = vmax.f32 %v982_v48, 0.0 }
  0xed   : > { %v5062_v51 = vpack.c.bf16 %v1288_v50, %v1287_v49  ;;  %v4387_v49 = vld [vmem:[%s4762_s24 + $0xa0] sm:$0xff] }
  0xf0   : > { %v984_v53 = vpop.f32.mrf.mxu0 }
  0xf1   : > { %v985_v54 = vadd.f32 %v5017_v13, %v984_v53 }
  0xf3   : > { %4096 = vmatmul.msk.bf16.gmra.mxu0 %vm757_vm0, %v4380_v52  ;;  %v1289_v57 = vmax.f32 %v985_v54, 0.0 }
  0xf8   : > { %v986_v55 = vpop.f32.mrf.mxu0 }
  0xf9   : > { %v987_v56 = vadd.f32 %v5017_v13, %v986_v55 }
  0xfb   : > { %v1290_v58 = vmax.f32 %v987_v56, 0.0 }
  0xfd   : > { %v5068_v59 = vpack.c.bf16 %v1290_v58, %v1289_v57  ;;  %v4388_v58 = vld [vmem:[%s4762_s24 + $0xa8] sm:$0xff] }
 0x100   : > { %v989_v61 = vpop.f32.mrf.mxu0 }
 0x101   : > { %v990_v62 = vadd.f32 %v5017_v13, %v989_v61 }
 0x103   : > { %4097 = vmatmul.msk.bf16.gmra.mxu0 %vm757_vm0, %v4381_v60  ;;  %v1291_v1 = vmax.f32 %v990_v62, 0.0 }
 0x108   : > { %v991_v63 = vpop.f32.mrf.mxu0 }
 0x109   : > { %v992_v0 = vadd.f32 %v5017_v13, %v991_v63 }
 0x10b   : > { %v1292_v2 = vmax.f32 %v992_v0, 0.0 }
 0x10d   : > { %v5074_v3 = vpack.c.bf16 %v1292_v2, %v1291_v1 }
 0x10f   : > { %6178 = vst [vmem:[#allocation15_spill] sm:$0xff] %v5074_v3 }
 0x110   : > { %v994_v5 = vpop.f32.mrf.mxu0 }
 0x111   : > { %v995_v6 = vadd.f32 %v5017_v13, %v994_v5 }
 0x113   : > { %4098 = vmatmul.msk.bf16.gmra.mxu0 %vm757_vm0, %v4382_v4  ;;  %v1293_v9 = vmax.f32 %v995_v6, 0.0  ;;  %v4389_v4 = vld [vmem:[%s4762_s24 + $0xb0] sm:$0xff] }
 0x118   : > { %v996_v7 = vpop.f32.mrf.mxu0 }
 0x119   : > { %v997_v8 = vadd.f32 %v5017_v13, %v996_v7 }
 0x11b   : > { %v1294_v10 = vmax.f32 %v997_v8, 0.0 }
 0x11d   : > { %v5080_v11 = vpack.c.bf16 %v1294_v10, %v1293_v9 }
 0x11f   : > { %6179 = vst [vmem:[#allocation16_spill] sm:$0xff] %v5080_v11 }
 0x120   : > { %v999_v14 = vpop.f32.mrf.mxu0 }
 0x121   : > { %v1000_v15 = vadd.f32 %v5017_v13, %v999_v14  ;;  %v4390_v14 = vld [vmem:[%s4762_s24 + $0xb8] sm:$0xff] }
 0x123   : > { %4099 = vmatmul.msk.bf16.gmra.mxu0 %vm757_vm0, %v4383_v12  ;;  %v1295_v18 = vmax.f32 %v1000_v15, 0.0 }
 0x128   : > { %v1001_v16 = vpop.f32.mrf.mxu0 }
 0x129   : > { %v1002_v17 = vadd.f32 %v5017_v13, %v1001_v16 }
 0x12b   : > { %v1296_v20 = vmax.f32 %v1002_v17, 0.0 }
 0x12d   : > { %v5086_v21 = vpack.c.bf16 %v1296_v20, %v1295_v18 }
 0x12f   : > { %6180 = vst [vmem:[#allocation17_spill] sm:$0xff] %v5086_v21 }
 0x130   : > { %v1004_v23 = vpop.f32.mrf.mxu0 }
 0x131   : > { %v1005_v24 = vadd.f32 %v5017_v13, %v1004_v23 }
 0x133   : > { %4100 = vmatmul.msk.bf16.gmra.mxu0 %vm757_vm0, %v4384_v22  ;;  %v1297_v28 = vmax.f32 %v1005_v24, 0.0  ;;  %v4391_v24 = vld [vmem:[%s4762_s24 + $0xc0] sm:$0xff] }
 0x138   : > { %v1006_v25 = vpop.f32.mrf.mxu0 }
 0x139   : > { %v1007_v26 = vadd.f32 %v5017_v13, %v1006_v25 }
 0x13b   : > { %v1298_v29 = vmax.f32 %v1007_v26, 0.0 }
 0x13d   : > { %v5092_v30 = vpack.c.bf16 %v1298_v29, %v1297_v28 }
 0x13f   : > { %6181 = vst [vmem:[#allocation18_spill] sm:$0xff] %v5092_v30 }
 0x140   : > { %v1009_v32 = vpop.f32.mrf.mxu0 }
 0x141   : > { %v1010_v33 = vadd.f32 %v5017_v13, %v1009_v32 }
 0x143   : > { %4101 = vmatmul.msk.bf16.gmra.mxu0 %vm757_vm0, %v4385_v31  ;;  %v1299_v37 = vmax.f32 %v1010_v33, 0.0 }
 0x148   : > { %v1011_v34 = vpop.f32.mrf.mxu0 }
 0x149   : > { %v1012_v36 = vadd.f32 %v5017_v13, %v1011_v34  ;;  %v4392_v34 = vld [vmem:[%s4762_s24 + $0xc8] sm:$0xff] }
 0x14b   : > { %v1300_v38 = vmax.f32 %v1012_v36, 0.0 }
 0x14d   : > { %v5098_v39 = vpack.c.bf16 %v1300_v38, %v1299_v37 }
 0x14f   : > { %6182 = vst [vmem:[#allocation19_spill] sm:$0xff] %v5098_v39 }
 0x150   : > { %v1014_v41 = vpop.f32.mrf.mxu0 }
 0x151   : > { %v1015_v42 = vadd.f32 %v5017_v13, %v1014_v41 }
 0x153   : > { %4102 = vmatmul.msk.bf16.gmra.mxu0 %vm757_vm0, %v4386_v40  ;;  %v1301_v46 = vmax.f32 %v1015_v42, 0.0 }
 0x158   : > { %v1016_v44 = vpop.f32.mrf.mxu0 }
 0x159   : > { %v1017_v45 = vadd.f32 %v5017_v13, %v1016_v44 }
 0x15b   : > { %v1302_v47 = vmax.f32 %v1017_v45, 0.0  ;;  %v4393_v45 = vld [vmem:[%s4762_s24 + $0xd0] sm:$0xff] }
 0x15d   : > { %v5104_v48 = vpack.c.bf16 %v1302_v47, %v1301_v46 }
 0x15f   : > { %6183 = vst [vmem:[#allocation20_spill] sm:$0xff] %v5104_v48 }
 0x160   : > { %v1019_v50 = vpop.f32.mrf.mxu0 }
 0x161   : > { %v1020_v52 = vadd.f32 %v5017_v13, %v1019_v50 }
 0x163   : > { %4103 = vmatmul.msk.bf16.gmra.mxu0 %vm757_vm0, %v4387_v49  ;;  %v1303_v55 = vmax.f32 %v1020_v52, 0.0 }
 0x168   : > { %v1021_v53 = vpop.f32.mrf.mxu0 }
 0x169   : > { %v1022_v54 = vadd.f32 %v5017_v13, %v1021_v53 }
 0x16b   : > { %v1304_v56 = vmax.f32 %v1022_v54, 0.0 }
 0x16d   : > { %v5110_v57 = vpack.c.bf16 %v1304_v56, %v1303_v55  ;;  %v4394_v55 = vld [vmem:[%s4762_s24 + $0xd8] sm:$0xff] }
 0x16f   : > { %6184 = vst [vmem:[#allocation21_spill] sm:$0xff] %v5110_v57 }
 0x170   : > { %v1024_v60 = vpop.f32.mrf.mxu0 }
 0x171   : > { %v1025_v61 = vadd.f32 %v5017_v13, %v1024_v60 }
 0x173   : > { %4104 = vmatmul.msk.bf16.gmra.mxu0 %vm757_vm0, %v4388_v58  ;;  %v1305_v0 = vmax.f32 %v1025_v61, 0.0 }
 0x178   : > { %v1026_v62 = vpop.f32.mrf.mxu0 }
 0x179   : > { %v1027_v63 = vadd.f32 %v5017_v13, %v1026_v62 }
 0x17b   : > { %v1306_v1 = vmax.f32 %v1027_v63, 0.0 }
 0x17d   : > { %v5116_v2 = vpack.c.bf16 %v1306_v1, %v1305_v0  ;;  %v4395_v1 = vld [vmem:[%s4762_s24 + $0xe0] sm:$0xff] }
 0x17f   : > { %6185 = vst [vmem:[#allocation22_spill] sm:$0xff] %v5116_v2 }
 0x180   : > { %v1029_v5 = vpop.f32.mrf.mxu0 }
 0x181   : > { %v1030_v6 = vadd.f32 %v5017_v13, %v1029_v5 }
 0x183   : > { %4105 = vmatmul.msk.bf16.gmra.mxu0 %vm757_vm0, %v4389_v4  ;;  %v1307_v9 = vmax.f32 %v1030_v6, 0.0 }
 0x188   : > { %v1031_v7 = vpop.f32.mrf.mxu0 }
 0x189   : > { %v1032_v8 = vadd.f32 %v5017_v13, %v1031_v7 }
 0x18b   : > { %v1308_v10 = vmax.f32 %v1032_v8, 0.0 }
 0x18d   : > { %v5122_v12 = vpack.c.bf16 %v1308_v10, %v1307_v9 }
 0x18f   : > { %6186 = vst [vmem:[#allocation23_spill] sm:$0xff] %v5122_v12 }
 0x190   : > { %v1034_v15 = vpop.f32.mrf.mxu0 }
 0x191   : > { %v1035_v16 = vadd.f32 %v5017_v13, %v1034_v15 }
 0x193   : > { %4106 = vmatmul.msk.bf16.gmra.mxu0 %vm757_vm0, %v4390_v14  ;;  %v1309_v20 = vmax.f32 %v1035_v16, 0.0  ;;  %v4396_v14 = vld [vmem:[%s4762_s24 + $0xe8] sm:$0xff] }
 0x198   : > { %v1036_v17 = vpop.f32.mrf.mxu0 }
 0x199   : > { %v1037_v18 = vadd.f32 %v5017_v13, %v1036_v17 }
 0x19b   : > { %v1310_v22 = vmax.f32 %v1037_v18, 0.0 }
 0x19d   : > { %v5128_v23 = vpack.c.bf16 %v1310_v22, %v1309_v20 }
 0x19f   : > { %6187 = vst [vmem:[#allocation24_spill] sm:$0xff] %v5128_v23 }
 0x1a0   : > { %v1039_v25 = vpop.f32.mrf.mxu0 }
 0x1a1   : > { %v1040_v26 = vadd.f32 %v5017_v13, %v1039_v25  ;;  %v4397_v25 = vld [vmem:[%s4762_s24 + $0xf0] sm:$0xff] }
 0x1a3   : > { %v1311_v28 = vmax.f32 %v1040_v26, 0.0  ;;  %4107 = vmatmul.msk.bf16.gmra.mxu0 %vm757_vm0, %v4391_v24 }
 0x1a5   : > { %1562 = vst.msk [vmem:[#allocation2 + $0x19] sm:$0xff] %vm757_vm0, %v1311_v28 }
 0x1a8   : > { %v1041_v29 = vpop.f32.mrf.mxu0 }
 0x1a9   : > { %v1042_v31 = vadd.f32 %v5017_v13, %v1041_v29 }
 0x1ab   : > { %v1312_v32 = vmax.f32 %v1042_v31, 0.0 }
 0x1ad   : > { %1563 = vst.msk [vmem:[#allocation2 + $0x21] sm:$0xff] %vm757_vm0, %v1312_v32  ;;  %v5136_v33 = vpack.c.bf16 %v1312_v32, %v1311_v28 }
 0x1b0   : > { %v1044_v36 = vpop.f32.mrf.mxu0 }
 0x1b1   : > { %v1045_v37 = vadd.f32 %v5017_v13, %v1044_v36 }
 0x1b3   : > { %v1313_v38 = vmax.f32 %v1045_v37, 0.0  ;;  %4108 = vmatmul.msk.bf16.gmra.mxu0 %vm757_vm0, %v4392_v34  ;;  %v4398_v37 = vld [vmem:[%s4762_s24 + $0xf8] sm:$0xff] }
 0x1b5   : > { %1564 = vst.msk [vmem:[#allocation2 + $0x31] sm:$0xff] %vm757_vm0, %v1313_v38 }
 0x1b8   : > { %v1046_v40 = vpop.f32.mrf.mxu0 }
 0x1b9   : > { %v1047_v41 = vadd.f32 %v5017_v13, %v1046_v40 }
 0x1bb   : > { %v1314_v42 = vmax.f32 %v1047_v41, 0.0 }
 0x1bc   : > { %v1758_v23 = vld [vmem:[#allocation2 + $0x30] sm:$0xff] }
 0x1bd   : > { %1565 = vst.msk [vmem:[#allocation2 + $0x39] sm:$0xff] %vm757_vm0, %v1314_v42  ;;  %v5144_v44 = vpack.c.bf16 %v1314_v42, %v1313_v38 }
 0x1c0   : > { %v1049_v46 = vpop.f32.mrf.mxu0 }
 0x1c1   : > { %v1050_v47 = vadd.f32 %v5017_v13, %v1049_v46 }
 0x1c3   : > { %v1315_v49 = vmax.f32 %v1050_v47, 0.0  ;;  %4109 = vmatmul.msk.bf16.gmra.mxu0 %vm757_vm0, %v4393_v45 }
 0x1c5   : > { %1566 = vst.msk [vmem:[#allocation2 + $0x49] sm:$0xff] %vm757_vm0, %v1315_v49 }
 0x1c8   : > { %v1051_v50 = vpop.f32.mrf.mxu0 }
 0x1c9   : > { %v1052_v52 = vadd.f32 %v5017_v13, %v1051_v50 }
 0x1cb   : > { %v1316_v53 = vmax.f32 %v1052_v52, 0.0 }
 0x1cd   : > { %1567 = vst.msk [vmem:[#allocation2 + $0x51] sm:$0xff] %vm757_vm0, %v1316_v53  ;;  %v5152_v54 = vpack.c.bf16 %v1316_v53, %v1315_v49  ;;  %v4399_v49 = vld [vmem:[%s4762_s24 + $0x100] sm:$0xff] }
 0x1d0   : > { %v1054_v56 = vpop.f32.mrf.mxu0 }
 0x1d1   : > { %v1055_v58 = vadd.f32 %v5017_v13, %v1054_v56 }
 0x1d3   : > { %v1317_v60 = vmax.f32 %v1055_v58, 0.0  ;;  %4110 = vmatmul.msk.bf16.gmra.mxu0 %vm757_vm0, %v4394_v55 }
 0x1d5   : > { %1568 = vst.msk [vmem:[#allocation2 + $0x61] sm:$0xff] %vm757_vm0, %v1317_v60 }
 0x1d8   : > { %v1056_v61 = vpop.f32.mrf.mxu0 }
 0x1d9   : > { %v1057_v62 = vadd.f32 %v5017_v13, %v1056_v61  ;;  %v4400_v61 = vld [vmem:[%s4762_s24 + $0x108] sm:$0xff] }
 0x1db   : > { %v1318_v63 = vmax.f32 %v1057_v62, 0.0 }
 0x1dd   : > { %1569 = vst.msk [vmem:[#allocation2 + $0x69] sm:$0xff] %vm757_vm0, %v1318_v63  ;;  %v5160_v0 = vpack.c.bf16 %v1318_v63, %v1317_v60 }
 0x1e0   : > { %v1059_v4 = vpop.f32.mrf.mxu0 }
 0x1e1   : > { %v1060_v5 = vadd.f32 %v5017_v13, %v1059_v4 }
 0x1e3   : > { %v1319_v6 = vmax.f32 %v1060_v5, 0.0  ;;  %4111 = vmatmul.msk.bf16.gmra.mxu0 %vm757_vm0, %v4395_v1 }
 0x1e4   : > { %v1763_v48 = vld [vmem:[#allocation2 + $0x68] sm:$0xff] }
 0x1e5   : > { %1570 = vst.msk [vmem:[#allocation2 + $0x79] sm:$0xff] %vm757_vm0, %v1319_v6 }
 0x1e8   : > { %v1061_v7 = vpop.f32.mrf.mxu0 }
 0x1e9   : > { %v1062_v8 = vadd.f32 %v5017_v13, %v1061_v7 }
 0x1eb   : > { %v1320_v9 = vmax.f32 %v1062_v8, 0.0  ;;  %v4401_v8 = vld [vmem:[%s4762_s24 + $0x110] sm:$0xff] }
 0x1ed   : > { %1571 = vst.msk [vmem:[#allocation2 + $0x81] sm:$0xff] %vm757_vm0, %v1320_v9  ;;  %v5168_v10 = vpack.c.bf16 %v1320_v9, %v1319_v6 }
 0x1f0   : > { %v1064_v15 = vpop.f32.mrf.mxu0 }
 0x1f1   : > { %v1065_v16 = vadd.f32 %v5017_v13, %v1064_v15 }
 0x1f3   : > { %v1321_v17 = vmax.f32 %v1065_v16, 0.0  ;;  %4112 = vmatmul.msk.bf16.gmra.mxu0 %vm757_vm0, %v4396_v14  ;;  %v4419_v16 = vld [vmem:[%s4762_s24 + $0x1a0] sm:$0xff] }
 0x1f4   : > { %4135 = vmatmul.msk.bf16.vlgmr.msra.gmra.mxu1 %vm757_vm0, %v4419_v16 }
 0x1f5   : > { %1572 = vst.msk [vmem:[#allocation2 + $0x91] sm:$0xff] %vm757_vm0, %v1321_v17 }
 0x1f8   : > { %v1066_v18 = vpop.f32.mrf.mxu0 }
 0x1f9   : > { %v1067_v20 = vadd.f32 %v5017_v13, %v1066_v18 }
 0x1fb   : > { %v1322_v22 = vmax.f32 %v1067_v20, 0.0 }
 0x1fd   : > { %1573 = vst.msk [vmem:[#allocation2 + $0x99] sm:$0xff] %vm757_vm0, %v1322_v22  ;;  %v5176_v24 = vpack.c.bf16 %v1322_v22, %v1321_v17 }
 0x200   : > { %v1069_v26 = vpop.f32.mrf.mxu0 }
 0x201   : > { %v1070_v28 = vadd.f32 %v5017_v13, %v1069_v26 }
 0x203   : > { %v1323_v29 = vmax.f32 %v1070_v28, 0.0  ;;  %4113 = vmatmul.msk.bf16.gmra.mxu0 %vm757_vm0, %v4397_v25  ;;  %v4402_v25 = vld [vmem:[%s4762_s24 + $0x118] sm:$0xff] }
 0x204   : > { %v1767_v30 = vld [vmem:[#allocation2 + $0x98] sm:$0xff] }
 0x205   : > { %1574 = vst.msk [vmem:[#allocation2 + $0xa9] sm:$0xff] %vm757_vm0, %v1323_v29 }
 0x208   : > { %v1071_v31 = vpop.f32.mrf.mxu0 }
 0x209   : > { %v1072_v32 = vadd.f32 %v5017_v13, %v1071_v31  ;;  %v4420_v31 = vld [vmem:[%s4762_s24 + $0x1a8] sm:$0xff] }
 0x20a   : > { %4136 = vmatmul.msk.bf16.gmra.mxu1 %vm757_vm0, %v4420_v31  ;;  %v4406_v31 = vld [vmem:[%s4762_s24 + $0x138] sm:$0xff] }
 0x20b   : > { %v1324_v34 = vmax.f32 %v1072_v32, 0.0 }
 0x20d   : > { %1575 = vst.msk [vmem:[#allocation2 + $0xb1] sm:$0xff] %vm757_vm0, %v1324_v34  ;;  %v5184_v36 = vpack.c.bf16 %v1324_v34, %v1323_v29 }
 0x20f   : > { %6188 = vst [vmem:[#allocation25_spill] sm:$0xff] %v5184_v36 }
 0x210   : > { %v1074_v38 = vpop.f32.mrf.mxu0 }
 0x211   : > { %v1075_v40 = vadd.f32 %v5017_v13, %v1074_v38 }
 0x213   : > { %v1325_v41 = vmax.f32 %v1075_v40, 0.0  ;;  %4114 = vmatmul.msk.bf16.gmra.mxu0 %vm757_vm0, %v4398_v37  ;;  %v4403_v40 = vld [vmem:[%s4762_s24 + $0x120] sm:$0xff] }
 0x214   : > { %v1769_v21 = vld [vmem:[#allocation2 + $0xb0] sm:$0xff] }
 0x215   : > { %1576 = vst.msk [vmem:[#allocation2 + $0xc1] sm:$0xff] %vm757_vm0, %v1325_v41 }
 0x218   : > { %v1076_v42 = vpop.f32.mrf.mxu0 }
 0x219   : > { %v1077_v45 = vadd.f32 %v5017_v13, %v1076_v42 }
 0x21b   : > { %v1326_v46 = vmax.f32 %v1077_v45, 0.0 }
 0x21d   : > { %1577 = vst.msk [vmem:[#allocation2 + $0xc9] sm:$0xff] %vm757_vm0, %v1326_v46  ;;  %v5192_v47 = vpack.c.bf16 %v1326_v46, %v1325_v41  ;;  %v4421_v46 = vld [vmem:[%s4762_s24 + $0x1b0] sm:$0xff] }
 0x21e   : > { %4137 = vmatmul.msk.bf16.gmra.mxu1 %vm757_vm0, %v4421_v46  ;;  %v4407_v46 = vld [vmem:[%s4762_s24 + $0x140] sm:$0xff] }
 0x21f   : > { %6189 = vst [vmem:[#allocation26_spill] sm:$0xff] %v5192_v47 }
 0x220   : > { %v1079_v50 = vpop.f32.mrf.mxu0 }
 0x221   : > { %v1080_v52 = vadd.f32 %v5017_v13, %v1079_v50 }
 0x223   : > { %v1327_v53 = vmax.f32 %v1080_v52, 0.0  ;;  %4115 = vmatmul.msk.bf16.gmra.mxu0 %vm757_vm0, %v4399_v49 }
 0x225   : > { %1578 = vst.msk [vmem:[#allocation2 + $0xd9] sm:$0xff] %vm757_vm0, %v1327_v53 }
 0x228   : > { %v1081_v55 = vpop.f32.mrf.mxu0 }
 0x229   : > { %v1082_v56 = vadd.f32 %v5017_v13, %v1081_v55  ;;  %v4404_v55 = vld [vmem:[%s4762_s24 + $0x128] sm:$0xff] }
 0x22b   : > { %v1328_v58 = vmax.f32 %v1082_v56, 0.0 }
 0x22d   : > { %1579 = vst.msk [vmem:[#allocation2 + $0xe1] sm:$0xff] %vm757_vm0, %v1328_v58  ;;  %v5200_v60 = vpack.c.bf16 %v1328_v58, %v1327_v53 }
 0x22f   : > { %6190 = vst [vmem:[#allocation27_spill] sm:$0xff] %v5200_v60 }
 0x230   : > { %v1084_v62 = vpop.f32.mrf.mxu0 }
 0x231   : > { %v1085_v63 = vadd.f32 %v5017_v13, %v1084_v62  ;;  %v4422_v62 = vld [vmem:[%s4762_s24 + $0x1b8] sm:$0xff] }
 0x232   : > { %4138 = vmatmul.msk.bf16.gmra.mxu1 %vm757_vm0, %v4422_v62  ;;  %v4408_v62 = vld [vmem:[%s4762_s24 + $0x148] sm:$0xff] }
 0x233   : > { %v1329_v1 = vmax.f32 %v1085_v63, 0.0  ;;  %4116 = vmatmul.msk.bf16.gmra.mxu0 %vm757_vm0, %v4400_v61 }
 0x235   : > { %1580 = vst.msk [vmem:[#allocation2 + $0xf1] sm:$0xff] %vm757_vm0, %v1329_v1 }
 0x238   : > { %v1086_v4 = vpop.f32.mrf.mxu0 }
 0x239   : > { %v1087_v5 = vadd.f32 %v5017_v13, %v1086_v4 }
 0x23b   : > { %v1330_v6 = vmax.f32 %v1087_v5, 0.0 }
 0x23d   : > { %1581 = vst.msk [vmem:[#allocation2 + $0xf9] sm:$0xff] %vm757_vm0, %v1330_v6  ;;  %v5208_v7 = vpack.c.bf16 %v1330_v6, %v1329_v1  ;;  %v4436_v6 = vld [vmem:[#allocation9 + $0x18] sm:$0xff] }
 0x23e   : > { %1927 = vmatpush.bf16.msrb.mxu1 %v4436_v6 }
 0x23f   : > { %6191 = vst [vmem:[#allocation28_spill] sm:$0xff] %v5208_v7 }
 0x240   : > { %v1089_v9 = vpop.f32.mrf.mxu0 }
 0x241   : > { %v1090_v14 = vadd.f32 %v5017_v13, %v1089_v9 }
 0x243   : > { %v1331_v15 = vmax.f32 %v1090_v14, 0.0  ;;  %4117 = vmatmul.msk.bf16.gmra.mxu0 %vm757_vm0, %v4401_v8  ;;  %v4405_v8 = vld [vmem:[%s4762_s24 + $0x130] sm:$0xff] }
 0x245   : > { %1582 = vst.msk [vmem:[#allocation2 + $0x109] sm:$0xff] %vm757_vm0, %v1331_v15 }
 0x248   : > { %v1091_v17 = vpop.f32.mrf.mxu0 }
 0x249   : > { %v1092_v18 = vadd.f32 %v5017_v13, %v1091_v17  ;;  %v1692_v17 = vld [vmem:[#allocation3 + $0x1] sm:$0xff] }
 0x24b   : > { %v1332_v20 = vmax.f32 %v1092_v18, 0.0  ;;  %v1693_v18 = vld [vmem:[#allocation3 + $0x9] sm:$0xff] }
 0x24c   : > { %v1776_v3 = vld [vmem:[#allocation2 + $0x108] sm:$0xff] }
 0x24d   : > { %1583 = vst.msk [vmem:[#allocation2 + $0x111] sm:$0xff] %vm757_vm0, %v1332_v20  ;;  %v5218_v22 = vpack.c.bf16 %v1332_v20, %v1331_v15  ;;  %v4435_v15 = vld [vmem:[#allocation9 + $0x10] sm:$0xff]  ;;  %v1840_v20 = vpack.c.bf16 %v1693_v18, %v1692_v17 }
 0x24e   : > { %1928 = vmatpush.bf16.msrb.mxu1 %v4435_v15  ;;  %v4409_v18 = vld [vmem:[%s4762_s24 + $0x150] sm:$0xff] }
 0x24f   : > { %6192 = vst [vmem:[#allocation29_spill] sm:$0xff] %v5218_v22  ;;  %v1765_v22 = vld [vmem:[#allocation2 + $0x80] sm:$0xff] }
 0x250   : > { %v1094_v26 = vpop.f32.mrf.mxu0 }
 0x251   : > { %v1095_v28 = vadd.f32 %v5017_v13, %v1094_v26  ;;  %4155 = vmatmul.msk.bf16.vlgmr.msrb.gmra.mxu1 %vm757_vm0, %v1840_v20 }
 0x253   : > { %v1333_v29 = vmax.f32 %v1095_v28, 0.0  ;;  %4118 = vmatmul.msk.bf16.gmra.mxu0 %vm757_vm0, %v4402_v25 }
 0x255   : > { %1584 = vst.msk [vmem:[#allocation2 + $0x121] sm:$0xff] %vm757_vm0, %v1333_v29 }
 0x258   : > { %v1096_v32 = vpop.f32.mrf.mxu0 }
 0x259   : > { %v1097_v34 = vadd.f32 %v5017_v13, %v1096_v32 }
 0x25b   : > { %v1334_v37 = vmax.f32 %v1097_v34, 0.0 }
 0x25d   : > { %1585 = vst.msk [vmem:[#allocation2 + $0x129] sm:$0xff] %vm757_vm0, %v1334_v37  ;;  %v5228_v38 = vpack.c.bf16 %v1334_v37, %v1333_v29 }
 0x25f   : > { %6193 = vst [vmem:[#allocation30_spill] sm:$0xff] %v5228_v38 }
 0x260   : > { %v1099_v41 = vpop.f32.mrf.mxu0 }
 0x261   : > { %v1100_v42 = vadd.f32 %v5017_v13, %v1099_v41 }
 0x263   : > { %v1335_v45 = vmax.f32 %v1100_v42, 0.0  ;;  %4119 = vmatmul.msk.bf16.gmra.mxu0 %vm757_vm0, %v4403_v40 }
 0x265   : > { %1586 = vst.msk [vmem:[#allocation2 + $0x139] sm:$0xff] %vm757_vm0, %v1335_v45 }
 0x268   : > { %v1101_v49 = vpop.f32.mrf.mxu0 }
 0x269   : > { %v1102_v50 = vadd.f32 %v5017_v13, %v1101_v49 }
 0x26b   : > { %v1336_v52 = vmax.f32 %v1102_v50, 0.0 }
 0x26d   : > { %1587 = vst.msk [vmem:[#allocation2 + $0x141] sm:$0xff] %vm757_vm0, %v1336_v52  ;;  %v5238_v53 = vpack.c.bf16 %v1336_v52, %v1335_v45 }
 0x26f   : > { %6194 = vst [vmem:[#allocation31_spill] sm:$0xff] %v5238_v53 }
 0x270   : > { %v1104_v56 = vpop.f32.mrf.mxu0 }
 0x271   : > { %v1105_v58 = vadd.f32 %v5017_v13, %v1104_v56 }
 0x273   : > { %v1337_v61 = vmax.f32 %v1105_v58, 0.0  ;;  %4120 = vmatmul.msk.bf16.gmra.mxu0 %vm757_vm0, %v4404_v55 }
 0x275   : > { %1588 = vst.msk [vmem:[#allocation2 + $0x151] sm:$0xff] %vm757_vm0, %v1337_v61 }
 0x278   : > { %v1106_v63 = vpop.f32.mrf.mxu0 }
 0x279   : > { %v1107_v1 = vadd.f32 %v5017_v13, %v1106_v63 }
 0x27b   : > { %v1338_v4 = vmax.f32 %v1107_v1, 0.0 }
 0x27d   : > { %1589 = vst.msk [vmem:[#allocation2 + $0x159] sm:$0xff] %vm757_vm0, %v1338_v4  ;;  %v5248_v5 = vpack.c.bf16 %v1338_v4, %v1337_v61 }
 0x27f   : > { %6195 = vst [vmem:[#allocation32_spill] sm:$0xff] %v5248_v5 }
 0x280   : > { %v1109_v9 = vpop.f32.mrf.mxu0 }
 0x281   : > { %v1110_v14 = vadd.f32 %v5017_v13, %v1109_v9 }
 0x283   : > { %v1339_v16 = vmax.f32 %v1110_v14, 0.0  ;;  %4121 = vmatmul.msk.bf16.gmra.mxu0 %vm757_vm0, %v4405_v8 }
 0x285   : > { %1590 = vst.msk [vmem:[#allocation2 + $0x169] sm:$0xff] %vm757_vm0, %v1339_v16 }
 0x288   : > { %v1111_v25 = vpop.f32.mrf.mxu0 }
 0x289   : > { %v1112_v26 = vadd.f32 %v5017_v13, %v1111_v25 }
 0x28b   : > { %v1340_v28 = vmax.f32 %v1112_v26, 0.0 }
 0x28d   : > { %1591 = vst.msk [vmem:[#allocation2 + $0x171] sm:$0xff] %vm757_vm0, %v1340_v28  ;;  %v5257_v29 = vpack.c.bf16 %v1340_v28, %v1339_v16 }
 0x28f   : > { %6196 = vst [vmem:[#allocation33_spill] sm:$0xff] %v5257_v29 }
 0x290   : > { %v1114_v32 = vpop.f32.mrf.mxu0 }
 0x291   : > { %v1115_v34 = vadd.f32 %v5017_v13, %v1114_v32  ;;  %v1219_v32 = vpop.f32.mrf.mxu1 }
 0x293   : > { %v1341_v37 = vmax.f32 %v1115_v34, 0.0  ;;  %4122 = vmatmul.msk.bf16.gmra.mxu0 %vm757_vm0, %v4406_v31 }
 0x295   : > { %1592 = vst.msk [vmem:[#allocation2 + $0x181] sm:$0xff] %vm757_vm0, %v1341_v37 }
 0x298   : > { %v1116_v40 = vpop.f32.mrf.mxu0 }
 0x299   : > { %v1117_v41 = vadd.f32 %v5017_v13, %v1116_v40 }
 0x29b   : > { %v1342_v42 = vmax.f32 %v1117_v41, 0.0 }
 0x29d   : > { %1593 = vst.msk [vmem:[#allocation2 + $0x189] sm:$0xff] %vm757_vm0, %v1342_v42  ;;  %v5265_v45 = vpack.c.bf16 %v1342_v42, %v1341_v37  ;;  %v1220_v37 = vadd.f32 %v5017_v13, %v1219_v32 }
 0x29f   : > { %6197 = vst [vmem:[#allocation34_spill] sm:$0xff] %v5265_v45  ;;  %v1383_v40 = vmax.f32 %v1220_v37, 0.0 }
 0x2a0   : > { %v1119_v49 = vpop.f32.mrf.mxu0 }
 0x2a1   : > { %v1120_v50 = vadd.f32 %v5017_v13, %v1119_v49  ;;  %1636 = vst.msk [vmem:[#allocation4 + $0x79] sm:$0xff] %vm757_vm0, %v1383_v40  ;;  %v1221_v49 = vpop.f32.mrf.mxu1 }
 0x2a3   : > { %v1343_v52 = vmax.f32 %v1120_v50, 0.0  ;;  %4123 = vmatmul.msk.bf16.gmra.mxu0 %vm757_vm0, %v4407_v46 }
 0x2a5   : > { %1595 = vst.msk [vmem:[#allocation3 + $0x19] sm:$0xff] %vm757_vm0, %v1343_v52 }
 0x2a8   : > { %v1121_v55 = vpop.f32.mrf.mxu0 }
 0x2a9   : > { %v1122_v56 = vadd.f32 %v5017_v13, %v1121_v55  ;;  %v4410_v55 = vld [vmem:[%s4762_s24 + $0x158] sm:$0xff] }
 0x2ab   : > { %v1344_v58 = vmax.f32 %v1122_v56, 0.0 }
 0x2ac   : > { %v1694_v6 = vld [vmem:[#allocation3 + $0x19] sm:$0xff] }
 0x2ad   : > { %1596 = vst.msk [vmem:[#allocation3 + $0x21] sm:$0xff] %vm757_vm0, %v1344_v58  ;;  %v5273_v61 = vpack.c.bf16 %v1344_v58, %v1343_v52  ;;  %v1222_v52 = vadd.f32 %v5017_v13, %v1221_v49 }
 0x2af   : > { %6198 = vst [vmem:[#allocation35_spill] sm:$0xff] %v5273_v61  ;;  %v1384_v56 = vmax.f32 %v1222_v52, 0.0  ;;  %v1759_v61 = vld [vmem:[#allocation2 + $0x38] sm:$0xff] }
 0x2b0   : > { %v1124_v63 = vpop.f32.mrf.mxu0  ;;  %v2362_v29 = vpack.c.bf16 %v1759_v61, %v1758_v23 }
 0x2b1   : > { %v1125_v1 = vadd.f32 %v5017_v13, %v1124_v63  ;;  %1637 = vst.msk [vmem:[#allocation4 + $0x81] sm:$0xff] %vm757_vm0, %v1384_v56  ;;  %v5299_v63 = vpack.c.bf16 %v1384_v56, %v1383_v40 }
 0x2b3   : > { %v1345_v4 = vmax.f32 %v1125_v1, 0.0  ;;  %4124 = vmatmul.msk.bf16.gmra.mxu0 %vm757_vm0, %v4408_v62  ;;  %6201 = vst [vmem:[#allocation38_spill] sm:$0xff] %v5299_v63 }
 0x2b4   : > { %v1695_v8 = vld [vmem:[#allocation3 + $0x21] sm:$0xff] }
 0x2b5   : > { %1597 = vst.msk [vmem:[#allocation3 + $0x31] sm:$0xff] %vm757_vm0, %v1345_v4  ;;  %v1841_v9 = vpack.c.bf16 %v1695_v8, %v1694_v6  ;;  %v1224_v8 = vpop.f32.mrf.mxu1 }
 0x2b7   : > { %4156 = vmatmul.msk.bf16.gmra.mxu1 %vm757_vm0, %v1841_v9 }
 0x2b8   : > { %v1126_v14 = vpop.f32.mrf.mxu0 }
 0x2b9   : > { %v1127_v15 = vadd.f32 %v5017_v13, %v1126_v14  ;;  %v1225_v14 = vadd.f32 %v5017_v13, %v1224_v8 }
 0x2bb   : > { %v1346_v16 = vmax.f32 %v1127_v15, 0.0  ;;  %v1385_v15 = vmax.f32 %v1225_v14, 0.0 }
 0x2bc   : > { %v1696_v28 = vld [vmem:[#allocation3 + $0x31] sm:$0xff] }
 0x2bd   : > { %1598 = vst.msk [vmem:[#allocation3 + $0x39] sm:$0xff] %vm757_vm0, %v1346_v16  ;;  %v5282_v17 = vpack.c.bf16 %v1346_v16, %v1345_v4 }
 0x2be   : > { %1638 = vst.msk [vmem:[#allocation4 + $0x91] sm:$0xff] %vm757_vm0, %v1385_v15 }
 0x2bf   : > { %6199 = vst [vmem:[#allocation36_spill] sm:$0xff] %v5282_v17  ;;  %v1756_v17 = vld [vmem:[#allocation2 + $0x18] sm:$0xff] }
 0x2c0   : > { %v1129_v20 = vpop.f32.mrf.mxu0 }
 0x2c1   : > { %v1130_v25 = vadd.f32 %v5017_v13, %v1129_v20 }
 0x2c3   : > { %v1347_v26 = vmax.f32 %v1130_v25, 0.0  ;;  %4125 = vmatmul.msk.bf16.gmra.mxu0 %vm757_vm0, %v4409_v18  ;;  %v1226_v25 = vpop.f32.mrf.mxu1 }
 0x2c4   : > { %v1697_v31 = vld [vmem:[#allocation3 + $0x39] sm:$0xff] }
 0x2c5   : > { %1599 = vst.msk [vmem:[#allocation3 + $0x49] sm:$0xff] %vm757_vm0, %v1347_v26  ;;  %v1842_v34 = vpack.c.bf16 %v1697_v31, %v1696_v28  ;;  %v1227_v28 = vadd.f32 %v5017_v13, %v1226_v25  ;;  %v4411_v31 = vld [vmem:[%s4762_s24 + $0x160] sm:$0xff] }
 0x2c7   : > { %4157 = vmatmul.msk.bf16.gmra.mxu1 %vm757_vm0, %v1842_v34  ;;  %v1386_v32 = vmax.f32 %v1227_v28, 0.0 }
 0x2c8   : > { %v1131_v41 = vpop.f32.mrf.mxu0 }
 0x2c9   : > { %v1132_v42 = vadd.f32 %v5017_v13, %v1131_v41  ;;  %1639 = vst.msk [vmem:[#allocation4 + $0x99] sm:$0xff] %vm757_vm0, %v1386_v32  ;;  %v5314_v40 = vpack.c.bf16 %v1386_v32, %v1385_v15 }
 0x2cb   : > { %v1348_v46 = vmax.f32 %v1132_v42, 0.0  ;;  %6203 = vst [vmem:[#allocation40_spill] sm:$0xff] %v5314_v40  ;;  %v1229_v49 = vpop.f32.mrf.mxu1 }
 0x2cc   : > { %v1698_v4 = vld [vmem:[#allocation3 + $0x49] sm:$0xff] }
 0x2cd   : > { %1600 = vst.msk [vmem:[#allocation3 + $0x51] sm:$0xff] %vm757_vm0, %v1348_v46  ;;  %v5293_v50 = vpack.c.bf16 %v1348_v46, %v1347_v26 }
 0x2cf   : > { %6200 = vst [vmem:[#allocation37_spill] sm:$0xff] %v5293_v50 }
 0x2d0   : > { %v1134_v58 = vpop.f32.mrf.mxu0 }
 0x2d1   : > { %v1135_v62 = vadd.f32 %v5017_v13, %v1134_v58 }
 0x2d3   : > { %v1349_v1 = vmax.f32 %v1135_v62, 0.0  ;;  %4126 = vmatmul.msk.bf16.gmra.mxu0 %vm757_vm0, %v4410_v55  ;;  %v1230_v55 = vadd.f32 %v5017_v13, %v1229_v49 }
 0x2d4   : > { %v1699_v6 = vld [vmem:[#allocation3 + $0x51] sm:$0xff] }
 0x2d5   : > { %1601 = vst.msk [vmem:[#allocation3 + $0x61] sm:$0xff] %vm757_vm0, %v1349_v1  ;;  %v1843_v9 = vpack.c.bf16 %v1699_v6, %v1698_v4  ;;  %v1387_v56 = vmax.f32 %v1230_v55, 0.0  ;;  %v1231_v4 = vpop.f32.mrf.mxu1 }
 0x2d6   : > { %v1232_v8 = vadd.f32 %v5017_v13, %v1231_v4 }
 0x2d7   : > { %4158 = vmatmul.msk.bf16.gmra.mxu1 %vm757_vm0, %v1843_v9  ;;  %1640 = vst.msk [vmem:[#allocation4 + $0xa9] sm:$0xff] %vm757_vm0, %v1387_v56  ;;  %v4412_v9 = vld [vmem:[%s4762_s24 + $0x168] sm:$0xff] }
 0x2d8   : > { %v1136_v16 = vpop.f32.mrf.mxu0  ;;  %v1388_v14 = vmax.f32 %v1232_v8, 0.0 }
 0x2d9   : > { %v1137_v18 = vadd.f32 %v5017_v13, %v1136_v16 }
 0x2da   : > { %1641 = vst.msk [vmem:[#allocation4 + $0xb1] sm:$0xff] %vm757_vm0, %v1388_v14 }
 0x2db   : > { %v1350_v20 = vmax.f32 %v1137_v18, 0.0  ;;  %v5329_v18 = vpack.c.bf16 %v1388_v14, %v1387_v56  ;;  %v4413_v56 = vld [vmem:[%s4762_s24 + $0x170] sm:$0xff] }
 0x2dc   : > { %v1700_v42 = vld [vmem:[#allocation3 + $0x61] sm:$0xff] }
 0x2dd   : > { %1602 = vst.msk [vmem:[#allocation3 + $0x69] sm:$0xff] %vm757_vm0, %v1350_v20  ;;  %v5308_v26 = vpack.c.bf16 %v1350_v20, %v1349_v1 }
 0x2de   : > { %6205 = vst [vmem:[#allocation42_spill] sm:$0xff] %v5329_v18  ;;  %v4430_v18 = vld [vmem:[%s4762_s24 + $0x1f8] sm:$0xff] }
 0x2df   : > { %6202 = vst [vmem:[#allocation39_spill] sm:$0xff] %v5308_v26 }
 0x2e0   : > { %v1139_v34 = vpop.f32.mrf.mxu0 }
 0x2e1   : > { %v1140_v37 = vadd.f32 %v5017_v13, %v1139_v34 }
 0x2e3   : > { %v1351_v41 = vmax.f32 %v1140_v37, 0.0  ;;  %4127 = vmatmul.msk.bf16.gmra.mxu0 %vm757_vm0, %v4411_v31  ;;  %v1234_v31 = vpop.f32.mrf.mxu1 }
 0x2e4   : > { %v1701_v46 = vld [vmem:[#allocation3 + $0x69] sm:$0xff]  ;;  %v1235_v34 = vadd.f32 %v5017_v13, %v1234_v31  ;;  %v4414_v31 = vld [vmem:[%s4762_s24 + $0x178] sm:$0xff] }
 0x2e5   : > { %1603 = vst.msk [vmem:[#allocation3 + $0x79] sm:$0xff] %vm757_vm0, %v1351_v41  ;;  %v1844_v52 = vpack.c.bf16 %v1701_v46, %v1700_v42 }
 0x2e6   : > { %v1389_v37 = vmax.f32 %v1235_v34, 0.0 }
 0x2e7   : > { %4159 = vmatmul.msk.bf16.gmra.mxu1 %vm757_vm0, %v1844_v52 }
 0x2e8   : > { %v1141_v58 = vpop.f32.mrf.mxu0  ;;  %1642 = vst.msk [vmem:[#allocation4 + $0xc1] sm:$0xff] %vm757_vm0, %v1389_v37 }
 0x2e9   : > { %v1142_v62 = vadd.f32 %v5017_v13, %v1141_v58 }
 0x2eb   : > { %v1352_v1 = vmax.f32 %v1142_v62, 0.0  ;;  %v1236_v49 = vpop.f32.mrf.mxu1 }
 0x2ec   : > { %v1702_v25 = vld [vmem:[#allocation3 + $0x79] sm:$0xff]  ;;  %v1237_v55 = vadd.f32 %v5017_v13, %v1236_v49 }
 0x2ed   : > { %1604 = vst.msk [vmem:[#allocation3 + $0x81] sm:$0xff] %vm757_vm0, %v1352_v1  ;;  %v5323_v6 = vpack.c.bf16 %v1352_v1, %v1351_v41 }
 0x2ee   : > { %v1390_v58 = vmax.f32 %v1237_v55, 0.0 }
 0x2ef   : > { %6204 = vst [vmem:[#allocation41_spill] sm:$0xff] %v5323_v6 }
 0x2f0   : > { %v1144_v15 = vpop.f32.mrf.mxu0  ;;  %1643 = vst.msk [vmem:[#allocation4 + $0xc9] sm:$0xff] %vm757_vm0, %v1390_v58  ;;  %v5344_v4 = vpack.c.bf16 %v1390_v58, %v1389_v37 }
 0x2f1   : > { %v1145_v16 = vadd.f32 %v5017_v13, %v1144_v15 }
 0x2f2   : > { %6207 = vst [vmem:[#allocation44_spill] sm:$0xff] %v5344_v4 }
 0x2f3   : > { %v1353_v20 = vmax.f32 %v1145_v16, 0.0  ;;  %4128 = vmatmul.msk.bf16.gmra.mxu0 %vm757_vm0, %v4412_v9 }
 0x2f4   : > { %v1703_v28 = vld [vmem:[#allocation3 + $0x81] sm:$0xff] }
 0x2f5   : > { %1605 = vst.msk [vmem:[#allocation3 + $0x91] sm:$0xff] %vm757_vm0, %v1353_v20  ;;  %v1845_v32 = vpack.c.bf16 %v1703_v28, %v1702_v25 }
 0x2f7   : > { %4160 = vmatmul.msk.bf16.gmra.mxu1 %vm757_vm0, %v1845_v32 }
 0x2f8   : > { %v1146_v41 = vpop.f32.mrf.mxu0 }
 0x2f9   : > { %v1147_v42 = vadd.f32 %v5017_v13, %v1146_v41 }
 0x2fb   : > { %v1354_v46 = vmax.f32 %v1147_v42, 0.0 }
 0x2fc   : > { %v1704_v9 = vld [vmem:[#allocation3 + $0x91] sm:$0xff] }
 0x2fd   : > { %1606 = vst.msk [vmem:[#allocation3 + $0x99] sm:$0xff] %vm757_vm0, %v1354_v46  ;;  %v5338_v52 = vpack.c.bf16 %v1354_v46, %v1353_v20 }
 0x2ff   : > { %6206 = vst [vmem:[#allocation43_spill] sm:$0xff] %v5338_v52 }
 0x300   : > { %v1149_v62 = vpop.f32.mrf.mxu0 }
 0x301   : > { %v1150_v1 = vadd.f32 %v5017_v13, %v1149_v62  ;;  %v4415_v62 = vld [vmem:[%s4762_s24 + $0x180] sm:$0xff] }
 0x303   : > { %v1355_v8 = vmax.f32 %v1150_v1, 0.0  ;;  %4129 = vmatmul.msk.bf16.gmra.mxu0 %vm757_vm0, %v4413_v56 }
 0x304   : > { %v1705_v14 = vld [vmem:[#allocation3 + $0x99] sm:$0xff] }
 0x305   : > { %1607 = vst.msk [vmem:[#allocation3 + $0xa9] sm:$0xff] %vm757_vm0, %v1355_v8  ;;  %v1846_v15 = vpack.c.bf16 %v1705_v14, %v1704_v9 }
 0x307   : > { %4161 = vmatmul.msk.bf16.gmra.mxu1 %vm757_vm0, %v1846_v15 }
 0x308   : > { %v1151_v16 = vpop.f32.mrf.mxu0 }
 0x309   : > { %v1152_v20 = vadd.f32 %v5017_v13, %v1151_v16 }
 0x30b   : > { %v1356_v25 = vmax.f32 %v1152_v20, 0.0 }
 0x30c   : > { %v1706_v41 = vld [vmem:[#allocation3 + $0xa9] sm:$0xff] }
 0x30d   : > { %1608 = vst.msk [vmem:[#allocation3 + $0xb1] sm:$0xff] %vm757_vm0, %v1356_v25  ;;  %v5351_v28 = vpack.c.bf16 %v1356_v25, %v1355_v8  ;;  %v5363_v8 = vpop.f32.mrf.mxu1 }
 0x30f   : > { %6208 = vst [vmem:[#allocation45_spill] sm:$0xff] %v5351_v28 }
 0x310   : > { %v1154_v32 = vpop.f32.mrf.mxu0 }
 0x311   : > { %v1155_v34 = vadd.f32 %v5017_v13, %v1154_v32 }
 0x313   : > { %v1357_v37 = vmax.f32 %v1155_v34, 0.0  ;;  %4130 = vmatmul.msk.bf16.gmra.mxu0 %vm757_vm0, %v4414_v31 }
 0x314   : > { %v1707_v42 = vld [vmem:[#allocation3 + $0xb1] sm:$0xff] }
 0x315   : > { %1609 = vst.msk [vmem:[#allocation3 + $0xc1] sm:$0xff] %vm757_vm0, %v1357_v37  ;;  %v1847_v46 = vpack.c.bf16 %v1707_v42, %v1706_v41  ;;  %v5370_v32 = vpop.f32.mrf.mxu1  ;;  %v4416_v41 = vld [vmem:[%s4762_s24 + $0x188] sm:$0xff] }
 0x316   : > { %6210 = vst [vmem:[#allocation47_spill] sm:$0xff] %v5370_v32 }
 0x317   : > { %4162 = vmatmul.msk.bf16.gmra.mxu1 %vm757_vm0, %v1847_v46  ;;  %v5376_v46 = vld [vmem:[#allocation7] ss:$0 sm:$0xff] }
 0x318   : > { %v1156_v49 = vpop.f32.mrf.mxu0 }
 0x319   : > { %v1157_v55 = vadd.f32 %v5017_v13, %v1156_v49 }
 0x31b   : > { %v1358_v56 = vmax.f32 %v1157_v55, 0.0 }
 0x31c   : > { %v1708_v15 = vld [vmem:[#allocation3 + $0xc1] sm:$0xff] }
 0x31d   : > { %1610 = vst.msk [vmem:[#allocation3 + $0xc9] sm:$0xff] %vm757_vm0, %v1358_v56  ;;  %v5360_v58 = vpack.c.bf16 %v1358_v56, %v1357_v37 }
 0x31f   : > { %6209 = vst [vmem:[#allocation46_spill] sm:$0xff] %v5360_v58 }
 0x320   : > { %v1159_v1 = vpop.f32.mrf.mxu0 }
 0x321   : > { %v1160_v9 = vadd.f32 %v5017_v13, %v1159_v1 }
 0x323   : > { %v1359_v14 = vmax.f32 %v1160_v9, 0.0  ;;  %4131 = vmatmul.msk.bf16.gmra.mxu0 %vm757_vm0, %v4415_v62 }
 0x324   : > { %v1709_v16 = vld [vmem:[#allocation3 + $0xc9] sm:$0xff] }
 0x325   : > { %1611 = vst.msk [vmem:[#allocation3 + $0xd9] sm:$0xff] %vm757_vm0, %v1359_v14  ;;  %v1848_v20 = vpack.c.bf16 %v1709_v16, %v1708_v15  ;;  %v4423_v16 = vld [vmem:[%s4762_s24 + $0x1c0] sm:$0xff] }
 0x326   : > { %4139 = vmatmul.msk.bf16.vlgmr.msra.gmra.mxu2 %vm757_vm0, %v4423_v16 }
 0x327   : > { %4163 = vmatmul.msk.bf16.gmra.mxu1 %vm757_vm0, %v1848_v20 }
 0x328   : > { %v1161_v25 = vpop.f32.mrf.mxu0 }
 0x329   : > { %v1162_v31 = vadd.f32 %v5017_v13, %v1161_v25 }
 0x32b   : > { %v1360_v34 = vmax.f32 %v1162_v31, 0.0  ;;  %v4427_v31 = vld [vmem:[%s4762_s24 + $0x1e0] sm:$0xff] }
 0x32c   : > { %v1710_v56 = vld [vmem:[#allocation3 + $0xd9] sm:$0xff]  ;;  %4143 = vmatmul.msk.bf16.vlgmr.msra.gmra.mxu3 %vm757_vm0, %v4427_v31  ;;  %v4424_v31 = vld [vmem:[%s4762_s24 + $0x1c8] sm:$0xff] }
 0x32d   : > { %1612 = vst.msk [vmem:[#allocation3 + $0xe1] sm:$0xff] %vm757_vm0, %v1360_v34  ;;  %v5373_v37 = vpack.c.bf16 %v1360_v34, %v1359_v14  ;;  %v4417_v34 = vld [vmem:[%s4762_s24 + $0x190] sm:$0xff] }
 0x32f   : > { %6211 = vst [vmem:[#allocation48_spill] sm:$0xff] %v5373_v37 }
 0x330   : > { %v1164_v42 = vpop.f32.mrf.mxu0 }
 0x331   : > { %v1165_v49 = vadd.f32 %v5376_v46, %v1164_v42 }
 0x333   : > { %v1361_v55 = vmax.f32 %v1165_v49, 0.0  ;;  %4132 = vmatmul.msk.bf16.gmra.mxu0 %vm757_vm0, %v4416_v41 }
 0x334   : > { %v5380_v13 = vpop.f32.mrf.mxu1  ;;  %v1711_v62 = vld [vmem:[#allocation3 + $0xe1] sm:$0xff] }
 0x335   : > { %1613 = vst.msk [vmem:[#allocation3 + $0xf1] sm:$0xff] %vm757_vm0, %v1361_v55  ;;  %v1849_v1 = vpack.c.bf16 %v1711_v62, %v1710_v56 }
 0x336   : > { %4140 = vmatmul.msk.bf16.gmra.mxu2 %vm757_vm0, %v4424_v31 }
 0x337   : > { %4164 = vmatmul.msk.bf16.gmra.mxu1 %vm757_vm0, %v1849_v1 }
 0x338   : > { %v1166_v9 = vpop.f32.mrf.mxu0 }
 0x339   : > { %v1167_v14 = vadd.f32 %v5376_v46, %v1166_v9  ;;  %v4434_v9 = vld [vmem:[#allocation9 + $0x8] sm:$0xff] }
 0x33a   : > { %2076 = vmatpush.bf16.msrb.mxu2 %v4434_v9 }
 0x33b   : > { %v1362_v15 = vmax.f32 %v1167_v14, 0.0 }
 0x33c   : > { %v5386_v20 = vpop.f32.mrf.mxu1  ;;  %v1712_v62 = vld [vmem:[#allocation3 + $0xf1] sm:$0xff] }
 0x33d   : > { %1614 = vst.msk [vmem:[#allocation3 + $0xf9] sm:$0xff] %vm757_vm0, %v1362_v15  ;;  %v5389_v25 = vpack.c.bf16 %v1362_v15, %v1361_v55 }
 0x33f   : > { %6212 = vst [vmem:[#allocation49_spill] sm:$0xff] %v5389_v25  ;;  %v4428_v25 = vld [vmem:[%s4762_s24 + $0x1e8] sm:$0xff] }
 0x340   : > { %v1169_v41 = vpop.f32.mrf.mxu0  ;;  %4144 = vmatmul.msk.bf16.gmra.mxu3 %vm757_vm0, %v4428_v25  ;;  %v4425_v25 = vld [vmem:[%s4762_s24 + $0x1d0] sm:$0xff] }
 0x341   : > { %v1170_v42 = vadd.f32 %v5376_v46, %v1169_v41 }
 0x343   : > { %v1363_v49 = vmax.f32 %v1170_v42, 0.0  ;;  %4133 = vmatmul.msk.bf16.gmra.mxu0 %vm757_vm0, %v4417_v34  ;;  %v4438_v42 = vld [vmem:[#allocation9 + $0x28] sm:$0xff] }
 0x344   : > { %v5397_v56 = vpop.f32.mrf.mxu1  ;;  %v1713_v1 = vld [vmem:[#allocation3 + $0xf9] sm:$0xff]  ;;  %2246 = vmatpush.bf16.msrb.mxu3 %v4438_v42 }
 0x345   : > { %1615 = vst.msk [vmem:[#allocation3 + $0x109] sm:$0xff] %vm757_vm0, %v1363_v49  ;;  %v1850_v55 = vpack.c.bf16 %v1713_v1, %v1712_v62  ;;  %v4418_v62 = vld [vmem:[%s4762_s24 + $0x198] sm:$0xff] }
 0x346   : > { %4141 = vmatmul.msk.bf16.gmra.mxu2 %vm757_vm0, %v4425_v25 }
 0x347   : > { %4165 = vmatmul.msk.bf16.gmra.mxu1 %vm757_vm0, %v1850_v55 }
 0x348   : > { %v1171_v14 = vpop.f32.mrf.mxu0 }
 0x349   : > { %v1172_v15 = vadd.f32 %v5376_v46, %v1171_v14 }
 0x34b   : > { %v1364_v16 = vmax.f32 %v1172_v15, 0.0 }
 0x34c   : > { %v5403_v41 = vpop.f32.mrf.mxu1 }
 0x34d   : > { %1616 = vst.msk [vmem:[#allocation3 + $0x111] sm:$0xff] %vm757_vm0, %v1364_v16  ;;  %v5406_v34 = vpack.c.bf16 %v1364_v16, %v1363_v49  ;;  %v1714_v49 = vld [vmem:[#allocation3 + $0x109] sm:$0xff] }
 0x34f   : > { %6213 = vst [vmem:[#allocation50_spill] sm:$0xff] %v5406_v34 }
 0x350   : > { %v1174_v1 = vpop.f32.mrf.mxu0 }
 0x351   : > { %v1175_v55 = vadd.f32 %v5376_v46, %v1174_v1 }
 0x353   : > { %v1365_v9 = vmax.f32 %v1175_v55, 0.0  ;;  %4134 = vmatmul.msk.bf16.gmra.mxu0 %vm757_vm0, %v4418_v62  ;;  %v4429_v62 = vld [vmem:[%s4762_s24 + $0x1f0] sm:$0xff] }
 0x354   : > { %v5414_v14 = vpop.f32.mrf.mxu1  ;;  %v1715_v15 = vld [vmem:[#allocation3 + $0x111] sm:$0xff]  ;;  %4145 = vmatmul.msk.bf16.gmra.mxu3 %vm757_vm0, %v4429_v62  ;;  %v4426_v62 = vld [vmem:[%s4762_s24 + $0x1d8] sm:$0xff] }
 0x355   : > { %1617 = vst.msk [vmem:[#allocation3 + $0x121] sm:$0xff] %vm757_vm0, %v1365_v9  ;;  %v1851_v16 = vpack.c.bf16 %v1715_v15, %v1714_v49 }
 0x356   : > { %4142 = vmatmul.msk.bf16.gmra.mxu2 %vm757_vm0, %v4426_v62  ;;  %v1660_v62 = vld [vmem:[#allocation4] sm:$0xff] }
 0x357   : > { %4166 = vmatmul.msk.bf16.gmra.mxu1 %vm757_vm0, %v1851_v16 }
 0x358   : > { %v1176_v31 = vpop.f32.mrf.mxu0 }
 0x359   : > { %v1177_v42 = vadd.f32 %v5376_v46, %v1176_v31 }
 0x35b   : > { %v1366_v34 = vmax.f32 %v1177_v42, 0.0 }
 0x35c   : > { %v5420_v37 = vpop.f32.mrf.mxu1  ;;  %v1716_v31 = vld [vmem:[#allocation3 + $0x121] sm:$0xff] }
 0x35d   : > { %1618 = vst.msk [vmem:[#allocation3 + $0x129] sm:$0xff] %vm757_vm0, %v1366_v34  ;;  %v5423_v1 = vpack.c.bf16 %v1366_v34, %v1365_v9  ;;  %v4433_v34 = vld [vmem:[#allocation9] sm:$0xff] }
 0x35e   : > { %2077 = vmatpush.bf16.msrb.mxu2 %v4433_v34 }
 0x35f   : > { %6214 = vst [vmem:[#allocation51_spill] sm:$0xff] %v5423_v1 }
 0x360   : > { %v1179_v55 = vpop.f32.mrf.mxu0 }
 0x361   : > { %v1180_v49 = vadd.f32 %v5376_v46, %v1179_v55 }
 0x363   : > { %v1367_v15 = vmax.f32 %v1180_v49, 0.0  ;;  %v4437_v49 = vld [vmem:[#allocation9 + $0x20] sm:$0xff] }
 0x364   : > { %v5429_v16 = vpop.f32.mrf.mxu1  ;;  %v1717_v42 = vld [vmem:[#allocation3 + $0x129] sm:$0xff]  ;;  %2247 = vmatpush.bf16.msrb.mxu3 %v4437_v49  ;;  %v1661_v49 = vld [vmem:[#allocation4 + $0x8] sm:$0xff] }
 0x365   : > { %1619 = vst.msk [vmem:[#allocation3 + $0x139] sm:$0xff] %vm757_vm0, %v1367_v15  ;;  %v1852_v4 = vpack.c.bf16 %v1717_v42, %v1716_v31  ;;  %4146 = vmatmul.msk.bf16.gmra.mxu3 %vm757_vm0, %v4430_v18  ;;  %v1820_v40 = vpack.c.bf16 %v1661_v49, %v1660_v62 }
 0x367   : > { %4167 = vmatmul.msk.bf16.gmra.mxu1 %vm757_vm0, %v1852_v4  ;;  %4179 = vmatmul.msk.bf16.vlgmr.msrb.gmra.mxu2 %vm757_vm0, %v1820_v40  ;;  %v4442_v40 = vld [vmem:[#allocation9 + $0x48] sm:$0xff] }
 0x368   : > { %v1181_v9 = vpop.f32.mrf.mxu0  ;;  %2650 = vmatpush.bf16.msra.mxu2 %v4442_v40 }
 0x369   : > { %v1182_v25 = vadd.f32 %v5376_v46, %v1181_v9 }
 0x36b   : > { %v1368_v1 = vmax.f32 %v1182_v25, 0.0 }
 0x36c   : > { %v5435_v58 = vpop.f32.mrf.mxu1  ;;  %v1718_v9 = vld [vmem:[#allocation3 + $0x139] sm:$0xff] }
 0x36d   : > { %1620 = vst.msk [vmem:[#allocation3 + $0x141] sm:$0xff] %vm757_vm0, %v1368_v1  ;;  %v5438_v55 = vpack.c.bf16 %v1368_v1, %v1367_v15 }
 0x36f   : > { %6215 = vst [vmem:[#allocation52_spill] sm:$0xff] %v5438_v55 }
 0x370   : > { %v1184_v31 = vpop.f32.mrf.mxu0 }
 0x371   : > { %v1185_v4 = vadd.f32 %v5376_v46, %v1184_v31  ;;  %v1724_v31 = vld [vmem:[#allocation4 + $0x1] sm:$0xff] }
 0x373   : > { %v1369_v42 = vmax.f32 %v1185_v4, 0.0  ;;  %v1725_v4 = vld [vmem:[#allocation4 + $0x9] sm:$0xff] }
 0x374   : > { %v5444_v34 = vpop.f32.mrf.mxu1  ;;  %v1719_v25 = vld [vmem:[#allocation3 + $0x141] sm:$0xff] }
 0x375   : > { %1621 = vst.msk [vmem:[#allocation3 + $0x151] sm:$0xff] %vm757_vm0, %v1369_v42  ;;  %v1853_v28 = vpack.c.bf16 %v1719_v25, %v1718_v9  ;;  %v2159_v9 = vpack.c.bf16 %v1725_v4, %v1724_v31  ;;  %v4440_v25 = vld [vmem:[#allocation9 + $0x38] sm:$0xff] }
 0x376   : > { %2448 = vmatpush.bf16.msra.mxu1 %v4440_v25 }
 0x377   : > { %4168 = vmatmul.msk.bf16.gmra.mxu1 %vm757_vm0, %v1853_v28  ;;  %4203 = vmatmul.msk.bf16.vlgmr.msrb.gmra.mxu3 %vm757_vm0, %v2159_v9 }
 0x378   : > { %v1186_v1 = vpop.f32.mrf.mxu0 }
 0x379   : > { %v1187_v15 = vadd.f32 %v5376_v46, %v1186_v1 }
 0x37b   : > { %v1370_v55 = vmax.f32 %v1187_v15, 0.0  ;;  %v4439_v15 = vld [vmem:[#allocation9 + $0x30] sm:$0xff] }
 0x37c   : > { %v5449_v18 = vpop.f32.mrf.mxu1  ;;  %v1720_v63 = vld [vmem:[#allocation3 + $0x151] sm:$0xff]  ;;  %2449 = vmatpush.bf16.msra.mxu1 %v4439_v15 }
 0x37d   : > { %1622 = vst.msk [vmem:[#allocation3 + $0x159] sm:$0xff] %vm757_vm0, %v1370_v55  ;;  %v5452_v52 = vpack.c.bf16 %v1370_v55, %v1369_v42 }
 0x37f   : > { %6216 = vst [vmem:[#allocation53_spill] sm:$0xff] %v5452_v52 }
 0x380   : > { %v1189_v28 = vpop.f32.mrf.mxu0 }
 0x381   : > { %v1190_v1 = vadd.f32 %v5376_v46, %v1189_v28  ;;  %v4444_v28 = vld [vmem:[#allocation9 + $0x58] sm:$0xff] }
 0x382   : > { %2852 = vmatpush.bf16.msra.mxu3 %v4444_v28 }
 0x383   : > { %v1371_v62 = vmax.f32 %v1190_v1, 0.0 }
 0x384   : > { %v5457_v49 = vpop.f32.mrf.mxu1  ;;  %v1721_v6 = vld [vmem:[#allocation3 + $0x159] sm:$0xff] }
 0x385   : > { %1623 = vst.msk [vmem:[#allocation3 + $0x169] sm:$0xff] %vm757_vm0, %v1371_v62  ;;  %v1854_v55 = vpack.c.bf16 %v1721_v6, %v1720_v63 }
 0x387   : > { %4169 = vmatmul.msk.bf16.gmra.mxu1 %vm757_vm0, %v1854_v55 }
 0x388   : > { %v1191_v42 = vpop.f32.mrf.mxu0 }
 0x389   : > { %v1192_v31 = vadd.f32 %v5376_v46, %v1191_v42 }
 0x38b   : > { %v1372_v4 = vmax.f32 %v1192_v31, 0.0 }
 0x38c   : > { %v5462_v9 = vpop.f32.mrf.mxu1  ;;  %v1722_v55 = vld [vmem:[#allocation3 + $0x169] sm:$0xff] }
 0x38d   : > { %1624 = vst.msk [vmem:[#allocation3 + $0x171] sm:$0xff] %vm757_vm0, %v1372_v4  ;;  %v5465_v25 = vpack.c.bf16 %v1372_v4, %v1371_v62 }
 0x38f   : > { %6217 = vst [vmem:[#allocation54_spill] sm:$0xff] %v5465_v25 }
 0x390   : > { %v1194_v1 = vpop.f32.mrf.mxu0 }
 0x391   : > { %v1195_v15 = vadd.f32 %v5376_v46, %v1194_v1  ;;  %v1757_v1 = vld [vmem:[#allocation2 + $0x20] sm:$0xff] }
 0x393   : > { %v1373_v63 = vmax.f32 %v1195_v15, 0.0 }
 0x394   : > { %v5468_v6 = vpop.f32.mrf.mxu1  ;;  %v1723_v52 = vld [vmem:[#allocation3 + $0x171] sm:$0xff] }
 0x395   : > { %v1855_v26 = vpack.c.bf16 %v1723_v52, %v1722_v55  ;;  %v2361_v52 = vpack.c.bf16 %v1757_v1, %v1756_v17 }
 0x397   : > { %4170 = vmatmul.msk.bf16.gmra.mxu1 %vm757_vm0, %v1855_v26 }
 0x398   : > { %v1196_v40 = vpop.f32.mrf.mxu0 }
 0x399   : > { %v1197_v42 = vadd.f32 %v5376_v46, %v1196_v40 }
 0x39b   : > { %v1374_v31 = vmax.f32 %v1197_v42, 0.0 }
 0x39c   : > { %v5472_v50 = vpop.f32.mrf.mxu1 }
 0x39d   : > { %v5474_v62 = vpack.c.bf16 %v1374_v31, %v1373_v63 }
 0x39f   : > { %6218 = vst [vmem:[#allocation55_spill] sm:$0xff] %v5474_v62 }
 0x3a0   : > { %v1199_v4 = vpop.f32.mrf.mxu0 }
 0x3a1   : > { %v1200_v28 = vadd.f32 %v5376_v46, %v1199_v4 }
 0x3a3   : > { %v1375_v15 = vmax.f32 %v1200_v28, 0.0 }
 0x3a4   : > { %v5477_v25 = vpop.f32.mrf.mxu1 }
 0x3a5   : > { %1628 = vst.msk [vmem:[#allocation4 + $0x19] sm:$0xff] %vm757_vm0, %v1375_v15 }
 0x3a7   : > { %4227 = vmatmul.msk.bf16.vlgmr.msra.gmra.mxu1 %vm757_vm0, %v2361_v52 }
 0x3a8   : > { %v1201_v26 = vpop.f32.mrf.mxu0 }
 0x3a9   : > { %v1202_v55 = vadd.f32 %v5376_v46, %v1201_v26 }
 0x3ab   : > { %v1376_v40 = vmax.f32 %v1202_v55, 0.0 }
 0x3ac   : > { %v5482_v42 = vpop.f32.mrf.mxu1  ;;  %v1662_v62 = vld [vmem:[#allocation4 + $0x18] sm:$0xff] }
 0x3ad   : > { %1629 = vst.msk [vmem:[#allocation4 + $0x21] sm:$0xff] %vm757_vm0, %v1376_v40  ;;  %v5485_v63 = vpack.c.bf16 %v1376_v40, %v1375_v15  ;;  %v1726_v1 = vld [vmem:[#allocation4 + $0x19] sm:$0xff] }
 0x3af   : > { %6219 = vst [vmem:[#allocation56_spill] sm:$0xff] %v5485_v63 }
 0x3b0   : > { %v1204_v31 = vpop.f32.mrf.mxu0 }
 0x3b1   : > { %v1205_v4 = vadd.f32 %v5376_v46, %v1204_v31 }
 0x3b3   : > { %v1377_v28 = vmax.f32 %v1205_v4, 0.0 }
 0x3b4   : > { %v5488_v45 = vpop.f32.mrf.mxu1  ;;  %v1663_v17 = vld [vmem:[#allocation4 + $0x20] sm:$0xff] }
 0x3b5   : > { %v1727_v52 = vld [vmem:[#allocation4 + $0x21] sm:$0xff]  ;;  %1630 = vst.msk [vmem:[#allocation4 + $0x31] sm:$0xff] %vm757_vm0, %v1377_v28  ;;  %v5491_v26 = vpack.c.bf16 %v1663_v17, %v1662_v62 }
 0x3b6   : > { %v2160_v55 = vpack.c.bf16 %v1727_v52, %v1726_v1  ;;  %v1239_v1 = vpop.f32.mrf.mxu2  ;;  %v1259_v52 = vpop.f32.mrf.mxu3 }
 0x3b7   : > { %4180 = vmatmul.msk.bf16.gmra.mxu2 %vm757_vm0, %v5491_v26  ;;  %4228 = vmatmul.msk.bf16.gmra.mxu1 %vm757_vm0, %v2362_v29  ;;  %v1240_v61 = vadd.f32 %v5376_v46, %v1239_v1  ;;  %v1761_v29 = vld [vmem:[#allocation2 + $0x50] sm:$0xff] }
 0x3b8   : > { %4204 = vmatmul.msk.bf16.gmra.mxu3 %vm757_vm0, %v2160_v55  ;;  %v1206_v15 = vpop.f32.mrf.mxu0 }
 0x3b9   : > { %v1207_v40 = vadd.f32 %v5376_v46, %v1206_v15  ;;  %v1391_v12 = vmax.f32 %v1240_v61, 0.0  ;;  %v1260_v15 = vadd.f32 %v5376_v46, %v1259_v52 }
 0x3bb   : > { %v1378_v31 = vmax.f32 %v1207_v40, 0.0  ;;  %1644 = vst.msk [vmem:[#allocation4 + $0xd9] sm:$0xff] %vm757_vm0, %v1391_v12 }
 0x3bc   : > { %v5498_v4 = vpop.f32.mrf.mxu1  ;;  %v1664_v63 = vld [vmem:[#allocation4 + $0x30] sm:$0xff] }
 0x3bd   : > { %1631 = vst.msk [vmem:[#allocation4 + $0x39] sm:$0xff] %vm757_vm0, %v1378_v31  ;;  %v5501_v62 = vpack.c.bf16 %v1378_v31, %v1377_v28  ;;  %v1728_v2 = vld [vmem:[#allocation4 + $0x31] sm:$0xff] }
 0x3be   : > { %v1241_v61 = vpop.f32.mrf.mxu2 }
 0x3bf   : > { %6220 = vst [vmem:[#allocation57_spill] sm:$0xff] %v5501_v62  ;;  %v1399_v62 = vmax.f32 %v1260_v15, 0.0 }
 0x3c0   : > { %v1209_v17 = vpop.f32.mrf.mxu0 }
 0x3c1   : > { %v1210_v23 = vadd.f32 %v5376_v46, %v1209_v17  ;;  %v1760_v17 = vld [vmem:[#allocation2 + $0x48] sm:$0xff]  ;;  %1652 = vst.msk [vmem:[#allocation4 + $0x139] sm:$0xff] %vm757_vm0, %v1399_v62 }
 0x3c2   : > { %v2363_v1 = vpack.c.bf16 %v1761_v29, %v1760_v17 }
 0x3c3   : > { %v1379_v55 = vmax.f32 %v1210_v23, 0.0 }
 0x3c4   : > { %v5506_v40 = vpop.f32.mrf.mxu1  ;;  %v1665_v5 = vld [vmem:[#allocation4 + $0x38] sm:$0xff] }
 0x3c5   : > { %v1729_v53 = vld [vmem:[#allocation4 + $0x39] sm:$0xff]  ;;  %1632 = vst.msk [vmem:[#allocation4 + $0x49] sm:$0xff] %vm757_vm0, %v1379_v55  ;;  %v5509_v28 = vpack.c.bf16 %v1665_v5, %v1664_v63 }
 0x3c6   : > { %v2161_v31 = vpack.c.bf16 %v1729_v53, %v1728_v2  ;;  %v1242_v2 = vadd.f32 %v5376_v46, %v1241_v61  ;;  %v1261_v53 = vpop.f32.mrf.mxu3 }
 0x3c7   : > { %4181 = vmatmul.msk.bf16.gmra.mxu2 %vm757_vm0, %v5509_v28  ;;  %4229 = vmatmul.msk.bf16.gmra.mxu1 %vm757_vm0, %v2363_v1  ;;  %v1262_v29 = vadd.f32 %v5376_v46, %v1261_v53 }
 0x3c8   : > { %4205 = vmatmul.msk.bf16.gmra.mxu3 %vm757_vm0, %v2161_v31  ;;  %v1211_v23 = vpop.f32.mrf.mxu0  ;;  %v1392_v52 = vmax.f32 %v1242_v2, 0.0 }
 0x3c9   : > { %v1212_v5 = vadd.f32 %v5376_v46, %v1211_v23  ;;  %v1400_v1 = vmax.f32 %v1262_v29, 0.0 }
 0x3ca   : > { %v5525_v17 = vpack.c.bf16 %v1392_v52, %v1391_v12  ;;  %1645 = vst.msk [vmem:[#allocation4 + $0xe1] sm:$0xff] %vm757_vm0, %v1392_v52 }
 0x3cb   : > { %v1380_v63 = vmax.f32 %v1212_v5, 0.0  ;;  %1653 = vst.msk [vmem:[#allocation4 + $0x141] sm:$0xff] %vm757_vm0, %v1400_v1  ;;  %v5529_v23 = vpack.c.bf16 %v1400_v1, %v1399_v62  ;;  %v1244_v5 = vpop.f32.mrf.mxu2 }
 0x3cc   : > { %v5520_v15 = vpop.f32.mrf.mxu1  ;;  %6222 = vst [vmem:[#allocation59_spill] sm:$0xff] %v5525_v17  ;;  %v1245_v53 = vadd.f32 %v5376_v46, %v1244_v5  ;;  %v1666_v38 = vld [vmem:[#allocation4 + $0x48] sm:$0xff] }
 0x3cd   : > { %1633 = vst.msk [vmem:[#allocation4 + $0x51] sm:$0xff] %vm757_vm0, %v1380_v63  ;;  %v5523_v31 = vpack.c.bf16 %v1380_v63, %v1379_v55  ;;  %v1730_v17 = vld [vmem:[#allocation4 + $0x49] sm:$0xff] }
 0x3ce   : > { %6223 = vst [vmem:[#allocation60_spill] sm:$0xff] %v5529_v23  ;;  %v1393_v55 = vmax.f32 %v1245_v53, 0.0  ;;  %v1264_v63 = vpop.f32.mrf.mxu3 }
 0x3cf   : > { %6221 = vst [vmem:[#allocation58_spill] sm:$0xff] %v5523_v31  ;;  %v1265_v31 = vadd.f32 %v5376_v46, %v1264_v63 }
 0x3d0   : > { %v1214_v61 = vpop.f32.mrf.mxu0  ;;  %1646 = vst.msk [vmem:[#allocation4 + $0xf1] sm:$0xff] %vm757_vm0, %v1393_v55 }
 0x3d1   : > { %v1215_v2 = vadd.f32 %v5376_v46, %v1214_v61  ;;  %v1762_v61 = vld [vmem:[#allocation2 + $0x60] sm:$0xff]  ;;  %v1401_v5 = vmax.f32 %v1265_v31, 0.0 }
 0x3d2   : > { %v2364_v23 = vpack.c.bf16 %v1763_v48, %v1762_v61 }
 0x3d3   : > { %v1381_v57 = vmax.f32 %v1215_v2, 0.0  ;;  %1654 = vst.msk [vmem:[#allocation4 + $0x151] sm:$0xff] %vm757_vm0, %v1401_v5  ;;  %v1246_v53 = vpop.f32.mrf.mxu2 }
 0x3d4   : > { %v5533_v12 = vpop.f32.mrf.mxu1  ;;  %v1667_v29 = vld [vmem:[#allocation4 + $0x50] sm:$0xff] }
 0x3d5   : > { %v1731_v52 = vld [vmem:[#allocation4 + $0x51] sm:$0xff]  ;;  %1634 = vst.msk [vmem:[#allocation4 + $0x61] sm:$0xff] %vm757_vm0, %v1381_v57  ;;  %v5537_v62 = vpack.c.bf16 %v1667_v29, %v1666_v38 }
 0x3d6   : > { %v2162_v1 = vpack.c.bf16 %v1731_v52, %v1730_v17  ;;  %v1247_v17 = vadd.f32 %v5376_v46, %v1246_v53  ;;  %v1266_v29 = vpop.f32.mrf.mxu3 }
 0x3d7   : > { %4182 = vmatmul.msk.bf16.gmra.mxu2 %vm757_vm0, %v5537_v62  ;;  %4230 = vmatmul.msk.bf16.gmra.mxu1 %vm757_vm0, %v2364_v23  ;;  %v1267_v31 = vadd.f32 %v5376_v46, %v1266_v29 }
 0x3d8   : > { %4206 = vmatmul.msk.bf16.gmra.mxu3 %vm757_vm0, %v2162_v1  ;;  %v1216_v2 = vpop.f32.mrf.mxu0  ;;  %v1394_v48 = vmax.f32 %v1247_v17, 0.0 }
 0x3d9   : > { %v1217_v38 = vadd.f32 %v5376_v46, %v1216_v2  ;;  %v1402_v61 = vmax.f32 %v1267_v31, 0.0 }
 0x3da   : > { %v5553_v23 = vpack.c.bf16 %v1394_v48, %v1393_v55  ;;  %1647 = vst.msk [vmem:[#allocation4 + $0xf9] sm:$0xff] %vm757_vm0, %v1394_v48 }
 0x3db   : > { %v1382_v63 = vmax.f32 %v1217_v38, 0.0  ;;  %1655 = vst.msk [vmem:[#allocation4 + $0x159] sm:$0xff] %vm757_vm0, %v1402_v61  ;;  %v5557_v2 = vpack.c.bf16 %v1402_v61, %v1401_v5  ;;  %v1249_v53 = vpop.f32.mrf.mxu2 }
 0x3dc   : > { %v5547_v52 = vpop.f32.mrf.mxu1  ;;  %6225 = vst [vmem:[#allocation62_spill] sm:$0xff] %v5553_v23  ;;  %v1250_v38 = vadd.f32 %v5376_v46, %v1249_v53  ;;  %v1668_v17 = vld [vmem:[#allocation4 + $0x60] sm:$0xff] }
 0x3dd   : > { %1635 = vst.msk [vmem:[#allocation4 + $0x69] sm:$0xff] %vm757_vm0, %v1382_v63  ;;  %v5551_v1 = vpack.c.bf16 %v1382_v63, %v1381_v57  ;;  %v1732_v63 = vld [vmem:[#allocation4 + $0x61] sm:$0xff] }
 0x3de   : > { %6226 = vst [vmem:[#allocation63_spill] sm:$0xff] %v5557_v2  ;;  %v1395_v39 = vmax.f32 %v1250_v38, 0.0  ;;  %v1269_v29 = vpop.f32.mrf.mxu3  ;;  %v1735_v2 = vld [vmem:[#allocation4 + $0x81] sm:$0xff] }
 0x3df   : > { %6224 = vst [vmem:[#allocation61_spill] sm:$0xff] %v5551_v1  ;;  %v1270_v23 = vadd.f32 %v5376_v46, %v1269_v29  ;;  %v1764_v1 = vld [vmem:[#allocation2 + $0x78] sm:$0xff] }
 0x3e0   : > { %1648 = vst.msk [vmem:[#allocation4 + $0x109] sm:$0xff] %vm757_vm0, %v1395_v39  ;;  %v2365_v5 = vpack.c.bf16 %v1765_v22, %v1764_v1 }
 0x3e1   : > { %v1403_v61 = vmax.f32 %v1270_v23, 0.0 }
 0x3e3   : > { %1656 = vst.msk [vmem:[#allocation4 + $0x169] sm:$0xff] %vm757_vm0, %v1403_v61  ;;  %v1251_v53 = vpop.f32.mrf.mxu2 }
 0x3e4   : > { %v5560_v7 = vpop.f32.mrf.mxu1  ;;  %v1669_v57 = vld [vmem:[#allocation4 + $0x68] sm:$0xff]  ;;  %v1252_v38 = vadd.f32 %v5376_v46, %v1251_v53  ;;  %v1671_v53 = vld [vmem:[#allocation4 + $0x80] sm:$0xff] }
 0x3e5   : > { %v1733_v55 = vld [vmem:[#allocation4 + $0x69] sm:$0xff]  ;;  %v5563_v48 = vpack.c.bf16 %v1669_v57, %v1668_v17 }
 0x3e6   : > { %v2163_v31 = vpack.c.bf16 %v1733_v55, %v1732_v63  ;;  %v1396_v17 = vmax.f32 %v1252_v38, 0.0  ;;  %v1271_v29 = vpop.f32.mrf.mxu3  ;;  %v1734_v38 = vld [vmem:[#allocation4 + $0x79] sm:$0xff] }
 0x3e7   : > { %4183 = vmatmul.msk.bf16.gmra.mxu2 %vm757_vm0, %v5563_v48  ;;  %4231 = vmatmul.msk.bf16.gmra.mxu1 %vm757_vm0, %v2365_v5  ;;  %v1272_v63 = vadd.f32 %v5376_v46, %v1271_v29 }
 0x3e8   : > { %4207 = vmatmul.msk.bf16.gmra.mxu3 %vm757_vm0, %v2163_v31  ;;  %1649 = vst.msk [vmem:[#allocation4 + $0x111] sm:$0xff] %vm757_vm0, %v1396_v17  ;;  %v5576_v22 = vpack.c.bf16 %v1396_v17, %v1395_v39  ;;  %v1670_v31 = vld [vmem:[#allocation4 + $0x78] sm:$0xff] }
 0x3e9   : > { %v1404_v1 = vmax.f32 %v1272_v63, 0.0  ;;  %v5585_v17 = vpack.c.bf16 %v1671_v53, %v1670_v31  ;;  %v2164_v63 = vpack.c.bf16 %v1735_v2, %v1734_v38 }
 0x3ea   : > { %6227 = vst [vmem:[#allocation64_spill] sm:$0xff] %v5576_v22  ;;  %v1766_v22 = vld [vmem:[#allocation2 + $0x90] sm:$0xff] }
 0x3eb   : > { %1657 = vst.msk [vmem:[#allocation4 + $0x171] sm:$0xff] %vm757_vm0, %v1404_v1  ;;  %v5579_v23 = vpack.c.bf16 %v1404_v1, %v1403_v61  ;;  %v1254_v55 = vpop.f32.mrf.mxu2  ;;  %v2366_v61 = vpack.c.bf16 %v1767_v30, %v1766_v22 }
 0x3ec   : > { %v5572_v57 = vpop.f32.mrf.mxu1  ;;  %v1255_v5 = vadd.f32 %v5376_v46, %v1254_v55 }
 0x3ed   : > { %6228 = vst [vmem:[#allocation65_spill] sm:$0xff] %v5579_v23  ;;  %v1737_v23 = vld [vmem:[#allocation4 + $0x99] sm:$0xff] }
 0x3ee   : > { %v1397_v32 = vmax.f32 %v1255_v5, 0.0  ;;  %v1274_v60 = vpop.f32.mrf.mxu3 }
 0x3ef   : > { %v1275_v39 = vadd.f32 %v5376_v46, %v1274_v60 }
 0x3f0   : > { %1650 = vst.msk [vmem:[#allocation4 + $0x121] sm:$0xff] %vm757_vm0, %v1397_v32 }
 0x3f1   : > { %v1405_v1 = vmax.f32 %v1275_v39, 0.0 }
 0x3f3   : > { %1658 = vst.msk [vmem:[#allocation4 + $0x181] sm:$0xff] %vm757_vm0, %v1405_v1  ;;  %v1256_v55 = vpop.f32.mrf.mxu2 }
 0x3f4   : > { %v5582_v29 = vpop.f32.mrf.mxu1  ;;  %v1257_v60 = vadd.f32 %v5376_v46, %v1256_v55  ;;  %v1673_v55 = vld [vmem:[#allocation4 + $0x98] sm:$0xff] }
 0x3f6   : > { %v1398_v31 = vmax.f32 %v1257_v60, 0.0  ;;  %v1276_v5 = vpop.f32.mrf.mxu3  ;;  %v1736_v60 = vld [vmem:[#allocation4 + $0x91] sm:$0xff] }
 0x3f7   : > { %4184 = vmatmul.msk.bf16.gmra.mxu2 %vm757_vm0, %v5585_v17  ;;  %4232 = vmatmul.msk.bf16.gmra.mxu1 %vm757_vm0, %v2366_v61  ;;  %v1277_v53 = vadd.f32 %v5376_v46, %v1276_v5 }
 0x3f8   : > { %4208 = vmatmul.msk.bf16.gmra.mxu3 %vm757_vm0, %v2164_v63  ;;  %1651 = vst.msk [vmem:[#allocation4 + $0x129] sm:$0xff] %vm757_vm0, %v1398_v31  ;;  %v5598_v30 = vpack.c.bf16 %v1398_v31, %v1397_v32  ;;  %v1672_v63 = vld [vmem:[#allocation4 + $0x90] sm:$0xff]  ;;  %v2165_v32 = vpack.c.bf16 %v1737_v23, %v1736_v60  ;;  %v1768_v31 = vld [vmem:[#allocation2 + $0xa8] sm:$0xff] }
 0x3f9   : > { %v1406_v22 = vmax.f32 %v1277_v53, 0.0  ;;  %v5606_v5 = vpack.c.bf16 %v1673_v55, %v1672_v63  ;;  %v2367_v53 = vpack.c.bf16 %v1769_v21, %v1768_v31  ;;  %v1738_v63 = vld [vmem:[#allocation4 + $0xa9] sm:$0xff]  ;;  %v1771_v23 = vld [vmem:[#allocation2 + $0xc8] sm:$0xff] }
 0x3fa   : > { %6229 = vst [vmem:[#allocation66_spill] sm:$0xff] %v5598_v30  ;;  %v1770_v31 = vld [vmem:[#allocation2 + $0xc0] sm:$0xff] }
 0x3fb   : > { %1659 = vst.msk [vmem:[#allocation4 + $0x189] sm:$0xff] %vm757_vm0, %v1406_v22  ;;  %v5601_v38 = vpack.c.bf16 %v1406_v22, %v1405_v1  ;;  %v2079_v39 = vpop.f32.mrf.mxu2  ;;  %v4443_v1 = vld [vmem:[#allocation9 + $0x50] sm:$0xff]  ;;  %v1741_v30 = vld [vmem:[#allocation4 + $0xc9] sm:$0xff] }
 0x3fc   : > { %v5594_v2 = vpop.f32.mrf.mxu1  ;;  %v2080_v61 = vadd.f32 %v2079_v39, %v5363_v8  ;;  %v4441_v8 = vld [vmem:[#allocation9 + $0x40] sm:$0xff]  ;;  %2853 = vmatpush.bf16.msra.mxu3 %v4443_v1 }
 0x3fd   : > { %6230 = vst [vmem:[#allocation67_spill] sm:$0xff] %v5601_v38  ;;  %2651 = vmatpush.bf16.msra.mxu2 %v4441_v8  ;;  %v1674_v39 = vld [vmem:[#allocation4 + $0xa8] sm:$0xff]  ;;  %v1676_v8 = vld [vmem:[#allocation4 + $0xc0] sm:$0xff] }
 0x3fe   : > { %v2249_v47 = vpop.f32.mrf.mxu3  ;;  %v1677_v1 = vld [vmem:[#allocation4 + $0xc8] sm:$0xff] }
 0x3ff   : > { %v2329_v46 = vadd.f32 %v2249_v47, %v2080_v61  ;;  %v1675_v47 = vld [vmem:[#allocation4 + $0xb0] sm:$0xff]  ;;  %v1740_v38 = vld [vmem:[#allocation4 + $0xc1] sm:$0xff] }
 0x400   : > { %v1739_v61 = vld [vmem:[#allocation4 + $0xb1] sm:$0xff]  ;;  %v5616_v21 = vpack.c.bf16 %v1675_v47, %v1674_v39  ;;  %v5626_v47 = vpack.c.bf16 %v1677_v1, %v1676_v8  ;;  %v1743_v8 = vld [vmem:[#allocation4 + $0xe1] sm:$0xff] }
 0x401   : > { %v2166_v60 = vpack.c.bf16 %v1739_v61, %v1738_v63  ;;  %v2167_v63 = vpack.c.bf16 %v1741_v30, %v1740_v38  ;;  %v1772_v61 = vld [vmem:[#allocation2 + $0xd8] sm:$0xff] }
 0x402   : > { %6234 = vst [vmem:[#allocation71_spill] sm:$0xff] %v5616_v21  ;;  %v1775_v30 = vld [vmem:[#allocation2 + $0xf8] sm:$0xff] }
 0x403   : > { %6237 = vst [vmem:[#allocation74_spill] sm:$0xff] %v5626_v47 }
 0x404   : > { %v5604_v11 = vpop.f32.mrf.mxu1 }
 0x405   : > { %6231 = vst [vmem:[#allocation68_spill] sm:$0xff] %v5604_v11  ;;  %v1777_v11 = vld [vmem:[#allocation2 + $0x110] sm:$0xff] }
 0x407   : > { %4185 = vmatmul.msk.bf16.gmra.mxu2 %vm757_vm0, %v5606_v5  ;;  %4233 = vmatmul.msk.bf16.gmra.mxu1 %vm757_vm0, %v2367_v53 }
 0x408   : > { %4209 = vmatmul.msk.bf16.gmra.mxu3 %vm757_vm0, %v2165_v32  ;;  %v2368_v32 = vpack.c.bf16 %v1771_v23, %v1770_v31  ;;  %v1678_v31 = vld [vmem:[#allocation4 + $0xd8] sm:$0xff] }
 0x40c   : > { %v5612_v22 = vpop.f32.mrf.mxu1 }
 0x40d   : > { %6232 = vst [vmem:[#allocation69_spill] sm:$0xff] %v5612_v22  ;;  %v1773_v22 = vld [vmem:[#allocation2 + $0xe0] sm:$0xff] }
 0x40e   : > { %v2369_v23 = vpack.c.bf16 %v1773_v22, %v1772_v61  ;;  %v1774_v61 = vld [vmem:[#allocation2 + $0xf0] sm:$0xff] }
 0x414   : > { %v5614_v55 = vpop.f32.mrf.mxu1 }
 0x415   : > { %6233 = vst [vmem:[#allocation70_spill] sm:$0xff] %v5614_v55 }
 0x417   : > { %4186 = vmatmul.msk.bf16.gmra.mxu2 %vm757_vm0, %v5616_v21  ;;  %4234 = vmatmul.msk.bf16.gmra.mxu1 %vm757_vm0, %v2368_v32  ;;  %v5634_v32 = vpop.f32.mrf.mxu2 }
 0x418   : > { %4210 = vmatmul.msk.bf16.gmra.mxu3 %vm757_vm0, %v2166_v60  ;;  %6239 = vst [vmem:[#allocation76_spill] sm:$0xff] %v5634_v32 }
 0x41c   : > { %v5622_v53 = vpop.f32.mrf.mxu1 }
 0x41d   : > { %6235 = vst [vmem:[#allocation72_spill] sm:$0xff] %v5622_v53  ;;  %v5636_v53 = vpop.f32.mrf.mxu3 }
 0x41e   : > { %6240 = vst [vmem:[#allocation77_spill] sm:$0xff] %v5636_v53 }
 0x424   : > { %v2451_v55 = vpop.f32.mrf.mxu1 }
 0x425   : > { %v5624_v39 = vadd.f32 %v2451_v55, %v2329_v46  ;;  %v1679_v46 = vld [vmem:[#allocation4 + $0xe0] sm:$0xff] }
 0x426   : > { %v1742_v55 = vld [vmem:[#allocation4 + $0xd9] sm:$0xff]  ;;  %v5638_v22 = vpack.c.bf16 %v1679_v46, %v1678_v31  ;;  %v1680_v31 = vld [vmem:[#allocation4 + $0xf0] sm:$0xff] }
 0x427   : > { %6236 = vst [vmem:[#allocation73_spill] sm:$0xff] %v5624_v39  ;;  %4187 = vmatmul.msk.bf16.gmra.mxu2 %vm757_vm0, %v5626_v47  ;;  %4235 = vmatmul.msk.bf16.gmra.mxu1 %vm757_vm0, %v2369_v23  ;;  %v2168_v1 = vpack.c.bf16 %v1743_v8, %v1742_v55  ;;  %v2370_v39 = vpack.c.bf16 %v1775_v30, %v1774_v61  ;;  %v1681_v8 = vld [vmem:[#allocation4 + $0xf8] sm:$0xff] }
 0x428   : > { %4211 = vmatmul.msk.bf16.gmra.mxu3 %vm757_vm0, %v2167_v63  ;;  %6241 = vst [vmem:[#allocation78_spill] sm:$0xff] %v5638_v22  ;;  %v1744_v30 = vld [vmem:[#allocation4 + $0xf1] sm:$0xff]  ;;  %v1745_v61 = vld [vmem:[#allocation4 + $0xf9] sm:$0xff] }
 0x429   : > { %v2169_v36 = vpack.c.bf16 %v1745_v61, %v1744_v30 }
 0x42c   : > { %v5632_v60 = vpop.f32.mrf.mxu1 }
 0x42d   : > { %6238 = vst [vmem:[#allocation75_spill] sm:$0xff] %v5632_v60 }
 0x434   : > { %v2456_v38 = vpop.f32.mrf.mxu1 }
 0x437   : > { %4188 = vmatmul.msk.bf16.gmra.mxu2 %vm757_vm0, %v5638_v22  ;;  %4236 = vmatmul.msk.bf16.gmra.mxu1 %vm757_vm0, %v2370_v39  ;;  %v5648_v39 = vpack.c.bf16 %v1681_v8, %v1680_v31  ;;  %v1682_v31 = vld [vmem:[#allocation4 + $0x108] sm:$0xff]  ;;  %v1747_v8 = vld [vmem:[#allocation4 + $0x111] sm:$0xff] }
 0x438   : > { %4212 = vmatmul.msk.bf16.gmra.mxu3 %vm757_vm0, %v2168_v1 }
 0x43a   : > { %v2084_v63 = vpop.f32.mrf.mxu2 }
 0x43b   : > { %v2254_v23 = vpop.f32.mrf.mxu3  ;;  %v2085_v60 = vadd.f32 %v2084_v63, %v5380_v13  ;;  %v2371_v13 = vpack.c.bf16 %v1777_v11, %v1776_v3  ;;  %v1683_v11 = vld [vmem:[#allocation4 + $0x110] sm:$0xff] }
 0x43c   : > { %v2458_v32 = vpop.f32.mrf.mxu1 }
 0x43d   : > { %v2331_v53 = vadd.f32 %v2254_v23, %v2085_v60 }
 0x43f   : > { %v5645_v47 = vadd.f32 %v2456_v38, %v2331_v53 }
 0x442   : > { %v2086_v46 = vpop.f32.mrf.mxu2 }
 0x443   : > { %v2256_v55 = vpop.f32.mrf.mxu3  ;;  %v2087_v22 = vadd.f32 %v2086_v46, %v5386_v20 }
 0x444   : > { %v2461_v21 = vpop.f32.mrf.mxu1 }
 0x445   : > { %v2332_v1 = vadd.f32 %v2256_v55, %v2087_v22  ;;  %v1746_v55 = vld [vmem:[#allocation4 + $0x109] sm:$0xff] }
 0x447   : > { %4189 = vmatmul.msk.bf16.gmra.mxu2 %vm757_vm0, %v5648_v39  ;;  %v5653_v53 = vadd.f32 %v2458_v32, %v2332_v1  ;;  %4237 = vmatmul.msk.bf16.gmra.mxu1 %vm757_vm0, %v2371_v13  ;;  %v1779_v32 = vld [vmem:[#allocation2 + $0x128] sm:$0xff]  ;;  %v5660_v1 = vpack.c.bf16 %v1683_v11, %v1682_v31  ;;  %v2170_v13 = vpack.c.bf16 %v1747_v8, %v1746_v55  ;;  %v1685_v11 = vld [vmem:[#allocation4 + $0x128] sm:$0xff] }
 0x448   : > { %4213 = vmatmul.msk.bf16.gmra.mxu3 %vm757_vm0, %v2169_v36  ;;  %v1748_v55 = vld [vmem:[#allocation4 + $0x121] sm:$0xff]  ;;  %v1749_v8 = vld [vmem:[#allocation4 + $0x129] sm:$0xff] }
 0x449   : > { %6242 = vst [vmem:[#allocation79_spill] sm:$0xff] %v5653_v53  ;;  %v1778_v53 = vld [vmem:[#allocation2 + $0x120] sm:$0xff] }
 0x44a   : > { %v2089_v60 = vpop.f32.mrf.mxu2 }
 0x44b   : > { %v2259_v38 = vpop.f32.mrf.mxu3  ;;  %v2090_v20 = vadd.f32 %v2089_v60, %v5397_v56  ;;  %v2372_v56 = vpack.c.bf16 %v1779_v32, %v1778_v53 }
 0x44c   : > { %v2463_v63 = vpop.f32.mrf.mxu1 }
 0x44d   : > { %v2333_v22 = vadd.f32 %v2259_v38, %v2090_v20 }
 0x44f   : > { %v5657_v23 = vadd.f32 %v2461_v21, %v2333_v22 }
 0x452   : > { %v2091_v46 = vpop.f32.mrf.mxu2 }
 0x453   : > { %v2261_v3 = vpop.f32.mrf.mxu3  ;;  %v2092_v36 = vadd.f32 %v2091_v46, %v5403_v41  ;;  %v1684_v46 = vld [vmem:[#allocation4 + $0x120] sm:$0xff] }
 0x454   : > { %v2466_v61 = vpop.f32.mrf.mxu1 }
 0x455   : > { %v2334_v30 = vadd.f32 %v2261_v3, %v2092_v36 }
 0x457   : > { %4190 = vmatmul.msk.bf16.gmra.mxu2 %vm757_vm0, %v5660_v1  ;;  %v5665_v21 = vadd.f32 %v2463_v63, %v2334_v30  ;;  %4238 = vmatmul.msk.bf16.gmra.mxu1 %vm757_vm0, %v2372_v56  ;;  %v1781_v63 = vld [vmem:[#allocation2 + $0x140] sm:$0xff]  ;;  %v2171_v56 = vpack.c.bf16 %v1749_v8, %v1748_v55  ;;  %v1750_v55 = vld [vmem:[#allocation4 + $0x139] sm:$0xff]  ;;  %v1751_v8 = vld [vmem:[#allocation4 + $0x141] sm:$0xff] }
 0x458   : > { %4214 = vmatmul.msk.bf16.gmra.mxu3 %vm757_vm0, %v2170_v13  ;;  %v5672_v13 = vpack.c.bf16 %v1685_v11, %v1684_v46  ;;  %v1687_v11 = vld [vmem:[#allocation4 + $0x140] sm:$0xff] }
 0x459   : > { %6243 = vst [vmem:[#allocation80_spill] sm:$0xff] %v5665_v21  ;;  %v1780_v21 = vld [vmem:[#allocation2 + $0x138] sm:$0xff] }
 0x45a   : > { %v2094_v60 = vpop.f32.mrf.mxu2 }
 0x45b   : > { %v2264_v38 = vpop.f32.mrf.mxu3  ;;  %v2095_v41 = vadd.f32 %v2094_v60, %v5414_v14  ;;  %v2373_v14 = vpack.c.bf16 %v1781_v63, %v1780_v21 }
 0x45c   : > { %v2468_v22 = vpop.f32.mrf.mxu1 }
 0x45d   : > { %v2335_v20 = vadd.f32 %v2264_v38, %v2095_v41 }
 0x45f   : > { %v5669_v31 = vadd.f32 %v2466_v61, %v2335_v20 }
 0x462   : > { %v2096_v3 = vpop.f32.mrf.mxu2 }
 0x463   : > { %v2266_v53 = vpop.f32.mrf.mxu3  ;;  %v2097_v36 = vadd.f32 %v2096_v3, %v5420_v37  ;;  %v1686_v3 = vld [vmem:[#allocation4 + $0x138] sm:$0xff] }
 0x464   : > { %v2471_v30 = vpop.f32.mrf.mxu1 }
 0x465   : > { %v2336_v32 = vadd.f32 %v2266_v53, %v2097_v36 }
 0x467   : > { %4191 = vmatmul.msk.bf16.gmra.mxu2 %vm757_vm0, %v5672_v13  ;;  %v5677_v61 = vadd.f32 %v2468_v22, %v2336_v32  ;;  %4239 = vmatmul.msk.bf16.gmra.mxu1 %vm757_vm0, %v2373_v14  ;;  %v1783_v22 = vld [vmem:[#allocation2 + $0x158] sm:$0xff]  ;;  %v2172_v14 = vpack.c.bf16 %v1751_v8, %v1750_v55  ;;  %v1689_v55 = vld [vmem:[#allocation4 + $0x158] sm:$0xff] }
 0x468   : > { %4215 = vmatmul.msk.bf16.gmra.mxu3 %vm757_vm0, %v2171_v56  ;;  %v5684_v56 = vpack.c.bf16 %v1687_v11, %v1686_v3  ;;  %v4446_v3 = vld [vmem:[#allocation9 + $0x68] sm:$0xff] }
 0x469   : > { %6244 = vst [vmem:[#allocation81_spill] sm:$0xff] %v5677_v61  ;;  %v1782_v61 = vld [vmem:[#allocation2 + $0x150] sm:$0xff]  ;;  %3054 = vmatpush.bf16.msrb.mxu1 %v4446_v3  ;;  %v1752_v8 = vld [vmem:[#allocation4 + $0x151] sm:$0xff] }
 0x46a   : > { %v2099_v60 = vpop.f32.mrf.mxu2 }
 0x46b   : > { %v2269_v38 = vpop.f32.mrf.mxu3  ;;  %v2100_v37 = vadd.f32 %v2099_v60, %v5429_v16  ;;  %v2374_v16 = vpack.c.bf16 %v1783_v22, %v1782_v61  ;;  %v1688_v61 = vld [vmem:[#allocation4 + $0x150] sm:$0xff]  ;;  %v1785_v22 = vld [vmem:[#allocation2 + $0x170] sm:$0xff] }
 0x46c   : > { %v2473_v20 = vpop.f32.mrf.mxu1 }
 0x46d   : > { %v2337_v41 = vadd.f32 %v2269_v38, %v2100_v37 }
 0x46f   : > { %v5681_v46 = vadd.f32 %v2471_v30, %v2337_v41 }
 0x472   : > { %v2101_v53 = vpop.f32.mrf.mxu2 }
 0x473   : > { %v2271_v21 = vpop.f32.mrf.mxu3  ;;  %v2102_v36 = vadd.f32 %v2101_v53, %v5435_v58 }
 0x474   : > { %v2476_v32 = vpop.f32.mrf.mxu1 }
 0x475   : > { %v2338_v63 = vadd.f32 %v2271_v21, %v2102_v36  ;;  %v1753_v36 = vld [vmem:[#allocation4 + $0x159] sm:$0xff] }
 0x477   : > { %4192 = vmatmul.msk.bf16.gmra.mxu2 %vm757_vm0, %v5684_v56  ;;  %v5689_v30 = vadd.f32 %v2473_v20, %v2338_v63  ;;  %4240 = vmatmul.msk.bf16.gmra.mxu1 %vm757_vm0, %v2374_v16  ;;  %v4445_v63 = vld [vmem:[#allocation9 + $0x60] sm:$0xff] }
 0x478   : > { %4216 = vmatmul.msk.bf16.gmra.mxu3 %vm757_vm0, %v2172_v14  ;;  %3055 = vmatpush.bf16.msrb.mxu1 %v4445_v63  ;;  %v1755_v63 = vld [vmem:[#allocation4 + $0x171] sm:$0xff] }
 0x479   : > { %6245 = vst [vmem:[#allocation82_spill] sm:$0xff] %v5689_v30  ;;  %v5696_v30 = vpack.c.bf16 %v1689_v55, %v1688_v61 }
 0x47a   : > { %v2104_v60 = vpop.f32.mrf.mxu2 }
 0x47b   : > { %v2274_v38 = vpop.f32.mrf.mxu3  ;;  %v2105_v58 = vadd.f32 %v2104_v60, %v5444_v34  ;;  %v2173_v34 = vpack.c.bf16 %v1753_v36, %v1752_v8  ;;  %v1784_v60 = vld [vmem:[#allocation2 + $0x168] sm:$0xff]  ;;  %v1690_v8 = vld [vmem:[#allocation4 + $0x168] sm:$0xff] }
 0x47c   : > { %v2478_v41 = vpop.f32.mrf.mxu1 }
 0x47d   : > { %v2339_v37 = vadd.f32 %v2274_v38, %v2105_v58  ;;  %v2375_v38 = vpack.c.bf16 %v1785_v22, %v1784_v60  ;;  %v4450_v58 = vld [vmem:[#allocation9 + $0x88] sm:$0xff] }
 0x47e   : > { %3458 = vmatpush.bf16.msrb.mxu3 %v4450_v58  ;;  %v1691_v22 = vld [vmem:[#allocation4 + $0x170] sm:$0xff] }
 0x47f   : > { %v5693_v53 = vadd.f32 %v2476_v32, %v2339_v37  ;;  %v1786_v58 = vld [vmem:[#allocation2 + $0x180] sm:$0xff] }
 0x482   : > { %v2106_v21 = vpop.f32.mrf.mxu2 }
 0x483   : > { %v2276_v11 = vpop.f32.mrf.mxu3  ;;  %v2107_v20 = vadd.f32 %v2106_v21, %v5449_v18  ;;  %v4448_v18 = vld [vmem:[#allocation9 + $0x78] sm:$0xff] }
 0x484   : > { %v2481_v16 = vpop.f32.mrf.mxu1  ;;  %3256 = vmatpush.bf16.msrb.mxu2 %v4448_v18 }
 0x485   : > { %v2340_v14 = vadd.f32 %v2276_v11, %v2107_v20 }
 0x487   : > { %4193 = vmatmul.msk.bf16.gmra.mxu2 %vm757_vm0, %v5696_v30  ;;  %v5701_v32 = vadd.f32 %v2478_v41, %v2340_v14  ;;  %4241 = vmatmul.msk.bf16.gmra.mxu1 %vm757_vm0, %v2375_v38  ;;  %v1754_v41 = vld [vmem:[#allocation4 + $0x169] sm:$0xff] }
 0x488   : > { %4217 = vmatmul.msk.bf16.gmra.mxu3 %vm757_vm0, %v2173_v34  ;;  %v1787_v34 = vld [vmem:[#allocation2 + $0x188] sm:$0xff]  ;;  %v2174_v18 = vpack.c.bf16 %v1755_v63, %v1754_v41 }
 0x489   : > { %6246 = vst [vmem:[#allocation83_spill] sm:$0xff] %v5701_v32  ;;  %v5708_v32 = vpack.c.bf16 %v1691_v22, %v1690_v8 }
 0x48a   : > { %v2109_v37 = vpop.f32.mrf.mxu2 }
 0x48b   : > { %v2279_v3 = vpop.f32.mrf.mxu3  ;;  %v2110_v61 = vadd.f32 %v2109_v37, %v5457_v49  ;;  %v2376_v49 = vpack.c.bf16 %v1787_v34, %v1786_v58 }
 0x48c   : > { %v2483_v11 = vpop.f32.mrf.mxu1 }
 0x48d   : > { %v2341_v21 = vadd.f32 %v2279_v3, %v2110_v61 }
 0x48f   : > { %v5705_v55 = vadd.f32 %v2481_v16, %v2341_v21 }
 0x492   : > { %v2111_v36 = vpop.f32.mrf.mxu2 }
 0x493   : > { %v2281_v20 = vpop.f32.mrf.mxu3  ;;  %v2112_v14 = vadd.f32 %v2111_v36, %v5462_v9 }
 0x494   : > { %v2486_v38 = vpop.f32.mrf.mxu1 }
 0x495   : > { %v2342_v60 = vadd.f32 %v2281_v20, %v2112_v14 }
 0x497   : > { %4194 = vmatmul.msk.bf16.gmra.mxu2 %vm757_vm0, %v5708_v32  ;;  %v5713_v16 = vadd.f32 %v2483_v11, %v2342_v60  ;;  %4242 = vmatmul.msk.bf16.gmra.mxu1 %vm757_vm0, %v2376_v49 }
 0x498   : > { %4218 = vmatmul.msk.bf16.gmra.mxu3 %vm757_vm0, %v2174_v18 }
 0x49a   : > { %v2114_v37 = vpop.f32.mrf.mxu2 }
 0x49b   : > { %v2284_v3 = vpop.f32.mrf.mxu3  ;;  %v2115_v9 = vadd.f32 %v2114_v37, %v5468_v6 }
 0x49c   : > { %v2488_v21 = vpop.f32.mrf.mxu1 }
 0x49d   : > { %v2343_v61 = vadd.f32 %v2284_v3, %v2115_v9 }
 0x49f   : > { %v5717_v8 = vadd.f32 %v2486_v38, %v2343_v61 }
 0x4a2   : > { %v2116_v36 = vpop.f32.mrf.mxu2 }
 0x4a3   : > { %v2286_v20 = vpop.f32.mrf.mxu3  ;;  %v2117_v22 = vadd.f32 %v2116_v36, %v5472_v50 }
 0x4a4   : > { %v2491_v63 = vpop.f32.mrf.mxu1 }
 0x4a5   : > { %v2344_v41 = vadd.f32 %v2286_v20, %v2117_v22 }
 0x4a7   : > { %4251 = vmatmul.msk.bf16.vlgmr.msra.gmra.mxu2 %vm757_vm0, %v5038_v19  ;;  %v5724_v11 = vadd.f32 %v2488_v21, %v2344_v41  ;;  %4299 = vmatmul.msk.bf16.vlgmr.msrb.gmra.mxu1 %vm757_vm0, %v5491_v26 }
 0x4a8   : > { %4275 = vmatmul.msk.bf16.vlgmr.msra.gmra.mxu3 %vm757_vm0, %v5136_v33 }
 0x4aa   : > { %v2119_v6 = vpop.f32.mrf.mxu2 }
 0x4ab   : > { %v2289_v14 = vpop.f32.mrf.mxu3  ;;  %v2120_v34 = vadd.f32 %v2119_v6, %v5477_v25 }
 0x4ac   : > { %v2493_v38 = vpop.f32.mrf.mxu1 }
 0x4ad   : > { %v2345_v60 = vadd.f32 %v2289_v14, %v2120_v34 }
 0x4af   : > { %v5729_v50 = vadd.f32 %v2491_v63, %v2345_v60 }
 0x4b2   : > { %v2121_v18 = vpop.f32.mrf.mxu2 }
 0x4b3   : > { %v2291_v58 = vpop.f32.mrf.mxu3  ;;  %v2122_v19 = vadd.f32 %v2121_v18, %v5482_v42 }
 0x4b4   : > { %v2496_v37 = vpop.f32.mrf.mxu1 }
 0x4b5   : > { %v2346_v49 = vadd.f32 %v2291_v58, %v2122_v19 }
 0x4b7   : > { %4252 = vmatmul.msk.bf16.gmra.mxu2 %vm757_vm0, %v5044_v27  ;;  %v5736_v33 = vadd.f32 %v2493_v38, %v2346_v49  ;;  %4300 = vmatmul.msk.bf16.gmra.mxu1 %vm757_vm0, %v5509_v28 }
 0x4b8   : > { %4276 = vmatmul.msk.bf16.gmra.mxu3 %vm757_vm0, %v5144_v44 }
 0x4ba   : > { %v2124_v25 = vpop.f32.mrf.mxu2 }
 0x4bb   : > { %v2294_v26 = vpop.f32.mrf.mxu3  ;;  %v2125_v3 = vadd.f32 %v2124_v25, %v5488_v45 }
 0x4bc   : > { %v2498_v61 = vpop.f32.mrf.mxu1 }
 0x4bd   : > { %v2347_v9 = vadd.f32 %v2294_v26, %v2125_v3 }
 0x4bf   : > { %v5741_v42 = vadd.f32 %v2496_v37, %v2347_v9 }
 0x4c2   : > { %v2126_v21 = vpop.f32.mrf.mxu2 }
 0x4c3   : > { %v2296_v36 = vpop.f32.mrf.mxu3  ;;  %v2127_v27 = vadd.f32 %v2126_v21, %v5498_v4 }
 0x4c4   : > { %v2501_v22 = vpop.f32.mrf.mxu1 }
 0x4c5   : > { %v2348_v20 = vadd.f32 %v2296_v36, %v2127_v27 }
 0x4c7   : > { %4253 = vmatmul.msk.bf16.gmra.mxu2 %vm757_vm0, %v5050_v35  ;;  %v5748_v44 = vadd.f32 %v2498_v61, %v2348_v20  ;;  %4301 = vmatmul.msk.bf16.gmra.mxu1 %vm757_vm0, %v5537_v62 }
 0x4c8   : > { %4277 = vmatmul.msk.bf16.gmra.mxu3 %vm757_vm0, %v5152_v54 }
 0x4ca   : > { %v2129_v45 = vpop.f32.mrf.mxu2 }
 0x4cb   : > { %v2299_v28 = vpop.f32.mrf.mxu3  ;;  %v2130_v41 = vadd.f32 %v2129_v45, %v5506_v40 }
 0x4cc   : > { %v2503_v6 = vpop.f32.mrf.mxu1 }
 0x4cd   : > { %v2349_v63 = vadd.f32 %v2299_v28, %v2130_v41 }
 0x4cf   : > { %v5753_v4 = vadd.f32 %v2501_v22, %v2349_v63 }
 0x4d2   : > { %v2131_v14 = vpop.f32.mrf.mxu2 }
 0x4d3   : > { %v2301_v34 = vpop.f32.mrf.mxu3  ;;  %v2132_v35 = vadd.f32 %v2131_v14, %v5520_v15 }
 0x4d4   : > { %v2506_v38 = vpop.f32.mrf.mxu1 }
 0x4d5   : > { %v2350_v60 = vadd.f32 %v2301_v34, %v2132_v35  ;;  %v6248_v34 = vld [vmem:[#allocation25_spill] sm:$0xff]  ;;  %v6249_v35 = vld [vmem:[#allocation71_spill] sm:$0xff] }
 0x4d7   : > { %4254 = vmatmul.msk.bf16.gmra.mxu2 %vm757_vm0, %v5056_v43  ;;  %v5760_v54 = vadd.f32 %v2503_v6, %v2350_v60  ;;  %4302 = vmatmul.msk.bf16.gmra.mxu1 %vm757_vm0, %v5563_v48  ;;  %v4449_v60 = vld [vmem:[#allocation9 + $0x80] sm:$0xff] }
 0x4d8   : > { %4278 = vmatmul.msk.bf16.gmra.mxu3 %vm757_vm0, %v5160_v0 }
 0x4d9   : > { %3459 = vmatpush.bf16.msrb.mxu3 %v4449_v60 }
 0x4da   : > { %v2134_v40 = vpop.f32.mrf.mxu2 }
 0x4db   : > { %v2304_v62 = vpop.f32.mrf.mxu3  ;;  %v2135_v18 = vadd.f32 %v2134_v40, %v5533_v12 }
 0x4dc   : > { %v2508_v19 = vpop.f32.mrf.mxu1 }
 0x4dd   : > { %v2351_v58 = vadd.f32 %v2304_v62, %v2135_v18 }
 0x4df   : > { %v5765_v15 = vadd.f32 %v2506_v38, %v2351_v58 }
 0x4e2   : > { %v2136_v49 = vpop.f32.mrf.mxu2 }
 0x4e3   : > { %v2306_v37 = vpop.f32.mrf.mxu3  ;;  %v2137_v43 = vadd.f32 %v2136_v49, %v5547_v52 }
 0x4e4   : > { %v2511_v26 = vpop.f32.mrf.mxu1 }
 0x4e5   : > { %v2352_v25 = vadd.f32 %v2306_v37, %v2137_v43  ;;  %v6251_v43 = vld [vmem:[#allocation69_spill] sm:$0xff] }
 0x4e7   : > { %4255 = vmatmul.msk.bf16.gmra.mxu2 %vm757_vm0, %v5062_v51  ;;  %v5772_v0 = vadd.f32 %v2508_v19, %v2352_v25  ;;  %4303 = vmatmul.msk.bf16.gmra.mxu1 %vm757_vm0, %v5585_v17 }
 0x4e8   : > { %4279 = vmatmul.msk.bf16.gmra.mxu3 %vm757_vm0, %v5168_v10 }
 0x4ea   : > { %v2139_v12 = vpop.f32.mrf.mxu2 }
 0x4eb   : > { %v2309_v48 = vpop.f32.mrf.mxu3  ;;  %v2140_v3 = vadd.f32 %v2139_v12, %v5560_v7 }
 0x4ec   : > { %v2513_v61 = vpop.f32.mrf.mxu1 }
 0x4ed   : > { %v2353_v9 = vadd.f32 %v2309_v48, %v2140_v3  ;;  %v6252_v48 = vld [vmem:[#allocation16_spill] sm:$0xff]  ;;  %v6253_v3 = vld [vmem:[#allocation26_spill] sm:$0xff] }
 0x4ef   : > { %v5777_v52 = vadd.f32 %v2511_v26, %v2353_v9 }
 0x4f2   : > { %v2141_v21 = vpop.f32.mrf.mxu2 }
 0x4f3   : > { %v2311_v36 = vpop.f32.mrf.mxu3  ;;  %v2142_v51 = vadd.f32 %v2141_v21, %v5572_v57 }
 0x4f4   : > { %v2516_v20 = vpop.f32.mrf.mxu1 }
 0x4f5   : > { %v2354_v27 = vadd.f32 %v2311_v36, %v2142_v51  ;;  %v6255_v51 = vld [vmem:[#allocation70_spill] sm:$0xff] }
 0x4f7   : > { %4256 = vmatmul.msk.bf16.gmra.mxu2 %vm757_vm0, %v5068_v59  ;;  %v5784_v10 = vadd.f32 %v2513_v61, %v2354_v27  ;;  %4304 = vmatmul.msk.bf16.gmra.mxu1 %vm757_vm0, %v5606_v5  ;;  %v6254_v61 = vld [vmem:[#allocation74_spill] sm:$0xff] }
 0x4f8   : > { %4280 = vmatmul.msk.bf16.gmra.mxu3 %vm757_vm0, %v5176_v24  ;;  %v6247_v24 = vld [vmem:[#allocation15_spill] sm:$0xff] }
 0x4fa   : > { %v2144_v7 = vpop.f32.mrf.mxu2 }
 0x4fb   : > { %v2314_v17 = vpop.f32.mrf.mxu3  ;;  %v2145_v22 = vadd.f32 %v2144_v7, %v5582_v29  ;;  %v4447_v29 = vld [vmem:[#allocation9 + $0x70] sm:$0xff] }
 0x4fc   : > { %v2518_v28 = vpop.f32.mrf.mxu1  ;;  %3257 = vmatpush.bf16.msrb.mxu2 %v4447_v29  ;;  %v6261_v29 = vld [vmem:[#allocation76_spill] sm:$0xff] }
 0x4fd   : > { %v2355_v45 = vadd.f32 %v2314_v17, %v2145_v22 }
 0x4ff   : > { %v5789_v57 = vadd.f32 %v2516_v20, %v2355_v45 }
 0x502   : > { %v2146_v41 = vpop.f32.mrf.mxu2 }
 0x503   : > { %v2316_v63 = vpop.f32.mrf.mxu3  ;;  %v2147_v59 = vadd.f32 %v2146_v41, %v5594_v2  ;;  %v6250_v2 = vld [vmem:[#allocation68_spill] sm:$0xff] }
 0x504   : > { %v2521_v14 = vpop.f32.mrf.mxu1 }
 0x505   : > { %v2356_v6 = vadd.f32 %v2316_v63, %v2147_v59 }
 0x507   : > { %4257 = vmatmul.msk.bf16.gmra.mxu2 %vm757_vm0, %v6247_v24  ;;  %v5796_v5 = vadd.f32 %v2518_v28, %v2356_v6  ;;  %4305 = vmatmul.msk.bf16.gmra.mxu1 %vm757_vm0, %v6249_v35  ;;  %v6256_v28 = vld [vmem:[#allocation72_spill] sm:$0xff]  ;;  %v6257_v6 = vld [vmem:[#allocation17_spill] sm:$0xff]  ;;  %v6260_v35 = vld [vmem:[#allocation47_spill] sm:$0xff] }
 0x508   : > { %4281 = vmatmul.msk.bf16.gmra.mxu3 %vm757_vm0, %v6248_v34  ;;  %v6259_v34 = vld [vmem:[#allocation78_spill] sm:$0xff]  ;;  %v2082_v60 = vadd.f32 %v6261_v29, %v6260_v35  ;;  %v6268_v29 = vld [vmem:[#allocation19_spill] sm:$0xff] }
 0x50a   : > { %v2149_v38 = vpop.f32.mrf.mxu2 }
 0x50b   : > { %v2319_v40 = vpop.f32.mrf.mxu3  ;;  %v2150_v62 = vadd.f32 %v2149_v38, %v6250_v2  ;;  %v6262_v2 = vld [vmem:[#allocation73_spill] sm:$0xff] }
 0x50c   : > { %v2523_v58 = vpop.f32.mrf.mxu1 }
 0x50d   : > { %v2357_v18 = vadd.f32 %v2319_v40, %v2150_v62 }
 0x50f   : > { %v5801_v19 = vadd.f32 %v2521_v14, %v2357_v18  ;;  %v6258_v14 = vld [vmem:[#allocation27_spill] sm:$0xff]  ;;  %v6263_v18 = vld [vmem:[#allocation77_spill] sm:$0xff] }
 0x512   : > { %v2151_v49 = vpop.f32.mrf.mxu2 }
 0x513   : > { %v2321_v37 = vpop.f32.mrf.mxu3  ;;  %v2152_v25 = vadd.f32 %v2151_v49, %v6251_v43 }
 0x514   : > { %v2526_v12 = vpop.f32.mrf.mxu1 }
 0x515   : > { %v2358_v26 = vadd.f32 %v2321_v37, %v2152_v25  ;;  %v6264_v25 = vld [vmem:[#allocation75_spill] sm:$0xff] }
 0x517   : > { %4258 = vmatmul.msk.bf16.gmra.mxu2 %vm757_vm0, %v6252_v48  ;;  %v5808_v9 = vadd.f32 %v2523_v58, %v2358_v26  ;;  %4306 = vmatmul.msk.bf16.gmra.mxu1 %vm757_vm0, %v6254_v61  ;;  %v2330_v58 = vadd.f32 %v6263_v18, %v2082_v60  ;;  %v6269_v60 = vld [vmem:[#allocation29_spill] sm:$0xff] }
 0x518   : > { %4282 = vmatmul.msk.bf16.gmra.mxu3 %vm757_vm0, %v6253_v3 }
 0x519   : > { %v2532_v26 = vadd.f32 %v6264_v25, %v2330_v58 }
 0x51a   : > { %v2154_v21 = vpop.f32.mrf.mxu2 }
 0x51b   : > { %v2324_v36 = vpop.f32.mrf.mxu3  ;;  %v2155_v27 = vadd.f32 %v2154_v21, %v6255_v51  ;;  %v6266_v51 = vld [vmem:[#allocation28_spill] sm:$0xff] }
 0x51c   : > { %v2528_v7 = vpop.f32.mrf.mxu1 }
 0x51d   : > { %v2359_v20 = vadd.f32 %v2324_v36, %v2155_v27  ;;  %v6265_v36 = vld [vmem:[#allocation18_spill] sm:$0xff] }
 0x51f   : > { %v5813_v17 = vadd.f32 %v2526_v12, %v2359_v20 }
 0x522   : > { %v2156_v22 = vpop.f32.mrf.mxu2 }
 0x523   : > { %v2326_v45 = vpop.f32.mrf.mxu3  ;;  %v2157_v41 = vadd.f32 %v2156_v22, %v6256_v28 }
 0x524   : > { %v3057_v59 = vpop.f32.mrf.mxu1 }
 0x525   : > { %v2360_v63 = vadd.f32 %v2326_v45, %v2157_v41 }
 0x527   : > { %4259 = vmatmul.msk.bf16.gmra.mxu2 %vm757_vm0, %v6257_v6  ;;  %v5820_v24 = vadd.f32 %v2528_v7, %v2360_v63  ;;  %4307 = vmatmul.msk.bf16.gmra.mxu1 %vm757_vm0, %v6259_v34  ;;  %v6267_v6 = vld [vmem:[#allocation79_spill] sm:$0xff] }
 0x528   : > { %4283 = vmatmul.msk.bf16.gmra.mxu3 %vm757_vm0, %v6258_v14 }
 0x52a   : > { %v2653_v38 = vpop.f32.mrf.mxu2 }
 0x52b   : > { %v2855_v40 = vpop.f32.mrf.mxu3  ;;  %v2733_v62 = vadd.f32 %v2653_v38, %v6262_v2 }
 0x52c   : > { %v3059_v37 = vpop.f32.mrf.mxu1 }
 0x52d   : > { %v2935_v49 = vadd.f32 %v2855_v40, %v2733_v62 }
 0x52f   : > { %v5828_v43 = vadd.f32 %v3057_v59, %v2935_v49 }
 0x532   : > { %v2655_v12 = vpop.f32.mrf.mxu2 }
 0x533   : > { %v2857_v48 = vpop.f32.mrf.mxu3  ;;  %v2734_v3 = vadd.f32 %v2655_v12, %v2532_v26  ;;  %v6271_v12 = vld [vmem:[#allocation20_spill] sm:$0xff] }
 0x534   : > { %v3062_v21 = vpop.f32.mrf.mxu1 }
 0x535   : > { %v2936_v61 = vadd.f32 %v2857_v48, %v2734_v3  ;;  %v6272_v48 = vld [vmem:[#allocation30_spill] sm:$0xff] }
 0x537   : > { %4260 = vmatmul.msk.bf16.gmra.mxu2 %vm757_vm0, %v6265_v36  ;;  %v5835_v27 = vadd.f32 %v3059_v37, %v2936_v61  ;;  %4308 = vmatmul.msk.bf16.gmra.mxu1 %vm757_vm0, %v5648_v39  ;;  %v6270_v37 = vld [vmem:[#allocation80_spill] sm:$0xff] }
 0x538   : > { %4284 = vmatmul.msk.bf16.gmra.mxu3 %vm757_vm0, %v6266_v51 }
 0x53a   : > { %v2658_v20 = vpop.f32.mrf.mxu2 }
 0x53b   : > { %v2860_v7 = vpop.f32.mrf.mxu3  ;;  %v2735_v22 = vadd.f32 %v2658_v20, %v5645_v47 }
 0x53c   : > { %v3064_v28 = vpop.f32.mrf.mxu1 }
 0x53d   : > { %v2937_v45 = vadd.f32 %v2860_v7, %v2735_v22  ;;  %v6273_v22 = vld [vmem:[#allocation81_spill] sm:$0xff] }
 0x53f   : > { %v5840_v41 = vadd.f32 %v3062_v21, %v2937_v45 }
 0x542   : > { %v2660_v63 = vpop.f32.mrf.mxu2 }
 0x543   : > { %v2862_v59 = vpop.f32.mrf.mxu3  ;;  %v2736_v14 = vadd.f32 %v2660_v63, %v6267_v6  ;;  %v6275_v6 = vld [vmem:[#allocation31_spill] sm:$0xff] }
 0x544   : > { %v3067_v35 = vpop.f32.mrf.mxu1 }
 0x545   : > { %v2938_v34 = vadd.f32 %v2862_v59, %v2736_v14  ;;  %v6274_v59 = vld [vmem:[#allocation21_spill] sm:$0xff] }
 0x547   : > { %4261 = vmatmul.msk.bf16.gmra.mxu2 %vm757_vm0, %v6268_v29  ;;  %v5847_v39 = vadd.f32 %v3064_v28, %v2938_v34  ;;  %4309 = vmatmul.msk.bf16.gmra.mxu1 %vm757_vm0, %v5660_v1 }
 0x548   : > { %4285 = vmatmul.msk.bf16.gmra.mxu3 %vm757_vm0, %v6269_v60 }
 0x54a   : > { %v2663_v47 = vpop.f32.mrf.mxu2 }
 0x54b   : > { %v2865_v38 = vpop.f32.mrf.mxu3  ;;  %v2737_v40 = vadd.f32 %v2663_v47, %v5657_v23  ;;  %v6276_v47 = vld [vmem:[#allocation82_spill] sm:$0xff] }
 0x54c   : > { %v3069_v18 = vpop.f32.mrf.mxu1 }
 0x54d   : > { %v2939_v2 = vadd.f32 %v2865_v38, %v2737_v40 }
 0x54f   : > { %v5852_v62 = vadd.f32 %v3067_v35, %v2939_v2  ;;  %v6277_v2 = vld [vmem:[#allocation22_spill] sm:$0xff] }
 0x552   : > { %v2665_v58 = vpop.f32.mrf.mxu2 }
 0x553   : > { %v2867_v49 = vpop.f32.mrf.mxu3  ;;  %v2738_v25 = vadd.f32 %v2665_v58, %v6270_v37 }
 0x554   : > { %v3072_v21 = vpop.f32.mrf.mxu1 }
 0x555   : > { %v2940_v26 = vadd.f32 %v2867_v49, %v2738_v25 }
 0x557   : > { %4262 = vmatmul.msk.bf16.gmra.mxu2 %vm757_vm0, %v6271_v12  ;;  %v5859_v1 = vadd.f32 %v3069_v18, %v2940_v26  ;;  %4310 = vmatmul.msk.bf16.gmra.mxu1 %vm757_vm0, %v5672_v13  ;;  %v6278_v18 = vld [vmem:[#allocation32_spill] sm:$0xff]  ;;  %v6279_v26 = vld [vmem:[#allocation83_spill] sm:$0xff] }
 0x558   : > { %4286 = vmatmul.msk.bf16.gmra.mxu3 %vm757_vm0, %v6272_v48 }
 0x55a   : > { %v2668_v23 = vpop.f32.mrf.mxu2 }
 0x55b   : > { %v2870_v3 = vpop.f32.mrf.mxu3  ;;  %v2739_v61 = vadd.f32 %v2668_v23, %v5669_v31  ;;  %v6280_v23 = vld [vmem:[#allocation23_spill] sm:$0xff] }
 0x55c   : > { %v3074_v63 = vpop.f32.mrf.mxu1 }
 0x55d   : > { %v2941_v36 = vadd.f32 %v2870_v3, %v2739_v61  ;;  %v6281_v3 = vld [vmem:[#allocation33_spill] sm:$0xff] }
 0x55f   : > { %v5864_v51 = vadd.f32 %v3072_v21, %v2941_v36 }
 0x562   : > { %v2670_v20 = vpop.f32.mrf.mxu2 }
 0x563   : > { %v2872_v7 = vpop.f32.mrf.mxu3  ;;  %v2740_v45 = vadd.f32 %v2670_v20, %v6273_v22  ;;  %v1818_v22 = vld [vmem:[#allocation4 + $0x180] sm:$0xff] }
 0x565   : > { %v2942_v28 = vadd.f32 %v2872_v7, %v2740_v45  ;;  %v1819_v45 = vld [vmem:[#allocation4 + $0x188] sm:$0xff] }
 0x567   : > { %4263 = vmatmul.msk.bf16.gmra.mxu2 %vm757_vm0, %v6274_v59  ;;  %v5871_v13 = vadd.f32 %v3074_v63, %v2942_v28  ;;  %4311 = vmatmul.msk.bf16.gmra.mxu1 %vm757_vm0, %v5684_v56  ;;  %v2982_v63 = vpack.c.bf16 %v1819_v45, %v1818_v22  ;;  %v6282_v59 = vld [vmem:[#allocation24_spill] sm:$0xff] }
 0x568   : > { %4287 = vmatmul.msk.bf16.gmra.mxu3 %vm757_vm0, %v6275_v6  ;;  %v6283_v6 = vld [vmem:[#allocation34_spill] sm:$0xff] }
 0x56a   : > { %v2673_v31 = vpop.f32.mrf.mxu2 }
 0x56b   : > { %v2875_v14 = vpop.f32.mrf.mxu3  ;;  %v2741_v34 = vadd.f32 %v2673_v31, %v5681_v46 }
 0x56d   : > { %v5876_v35 = vadd.f32 %v2875_v14, %v2741_v34 }
 0x572   : > { %v2675_v29 = vpop.f32.mrf.mxu2 }
 0x573   : > { %v2877_v60 = vpop.f32.mrf.mxu3  ;;  %v2742_v38 = vadd.f32 %v2675_v29, %v6276_v47  ;;  %v6284_v47 = vld [vmem:[#allocation35_spill] sm:$0xff] }
 0x575   : > { %v5879_v40 = vadd.f32 %v2877_v60, %v2742_v38  ;;  %v6285_v38 = vld [vmem:[#allocation56_spill] sm:$0xff] }
 0x577   : > { %4264 = vmatmul.msk.bf16.gmra.mxu2 %vm757_vm0, %v6277_v2  ;;  %4312 = vmatmul.msk.bf16.gmra.mxu1 %vm757_vm0, %v5696_v30 }
 0x578   : > { %4288 = vmatmul.msk.bf16.gmra.mxu3 %vm757_vm0, %v6278_v18 }
 0x57a   : > { %v2678_v56 = vpop.f32.mrf.mxu2 }
 0x57b   : > { %v2880_v58 = vpop.f32.mrf.mxu3  ;;  %v2743_v46 = vadd.f32 %v2678_v56, %v5693_v53 }
 0x57d   : > { %v5888_v49 = vadd.f32 %v2880_v58, %v2743_v46 }
 0x582   : > { %v2680_v37 = vpop.f32.mrf.mxu2 }
 0x583   : > { %v2882_v25 = vpop.f32.mrf.mxu3  ;;  %v2744_v12 = vadd.f32 %v2680_v37, %v6279_v26  ;;  %v6287_v26 = vld [vmem:[#allocation57_spill] sm:$0xff] }
 0x585   : > { %v5891_v48 = vadd.f32 %v2882_v25, %v2744_v12 }
 0x587   : > { %4265 = vmatmul.msk.bf16.gmra.mxu2 %vm757_vm0, %v6280_v23  ;;  %4313 = vmatmul.msk.bf16.gmra.mxu1 %vm757_vm0, %v5708_v32 }
 0x588   : > { %4289 = vmatmul.msk.bf16.gmra.mxu3 %vm757_vm0, %v6281_v3 }
 0x58a   : > { %v2683_v30 = vpop.f32.mrf.mxu2 }
 0x58b   : > { %v2885_v61 = vpop.f32.mrf.mxu3  ;;  %v2745_v53 = vadd.f32 %v2683_v30, %v5705_v55 }
 0x58d   : > { %v5900_v21 = vadd.f32 %v2885_v61, %v2745_v53 }
 0x592   : > { %v2685_v36 = vpop.f32.mrf.mxu2 }
 0x593   : > { %v2887_v20 = vpop.f32.mrf.mxu3  ;;  %v2746_v7 = vadd.f32 %v2685_v36, %v5713_v16 }
 0x595   : > { %v5903_v28 = vadd.f32 %v2887_v20, %v2746_v7  ;;  %v6289_v20 = vld [vmem:[#allocation58_spill] sm:$0xff] }
 0x597   : > { %4266 = vmatmul.msk.bf16.gmra.mxu2 %vm757_vm0, %v6282_v59  ;;  %4314 = vmatmul.msk.bf16.gmra.mxu1 %vm757_vm0, %v2982_v63 }
 0x598   : > { %4290 = vmatmul.msk.bf16.gmra.mxu3 %vm757_vm0, %v6283_v6 }
 0x59a   : > { %v2688_v32 = vpop.f32.mrf.mxu2 }
 0x59b   : > { %v2890_v55 = vpop.f32.mrf.mxu3  ;;  %v2747_v31 = vadd.f32 %v2688_v32, %v5717_v8 }
 0x59d   : > { %v5911_v14 = vadd.f32 %v2890_v55, %v2747_v31  ;;  %v6291_v55 = vld [vmem:[#allocation61_spill] sm:$0xff] }
 0x5a2   : > { %v2690_v16 = vpop.f32.mrf.mxu2 }
 0x5a3   : > { %v2892_v34 = vpop.f32.mrf.mxu3  ;;  %v2748_v29 = vadd.f32 %v2690_v16, %v5724_v11  ;;  %v6286_v11 = vld [vmem:[#allocation36_spill] sm:$0xff] }
 0x5a5   : > { %v5914_v60 = vadd.f32 %v2892_v34, %v2748_v29 }
 0x5a7   : > { %4323 = vmatmul.msk.bf16.vlgmr.msrb.gmra.mxu2 %vm757_vm0, %v6284_v47 }
 0x5a8   : > { %4347 = vmatmul.msk.bf16.vlgmr.msrb.gmra.mxu3 %vm757_vm0, %v6285_v38 }
 0x5aa   : > { %v2693_v2 = vpop.f32.mrf.mxu2 }
 0x5ab   : > { %v2895_v18 = vpop.f32.mrf.mxu3  ;;  %v2749_v56 = vadd.f32 %v2693_v2, %v5729_v50 }
 0x5ad   : > { %v5921_v58 = vadd.f32 %v2895_v18, %v2749_v56  ;;  %v6293_v18 = vld [vmem:[#allocation38_spill] sm:$0xff] }
 0x5b2   : > { %v2695_v8 = vpop.f32.mrf.mxu2 }
 0x5b3   : > { %v2897_v46 = vpop.f32.mrf.mxu3  ;;  %v2750_v37 = vadd.f32 %v2695_v8, %v5736_v33  ;;  %v6288_v33 = vld [vmem:[#allocation37_spill] sm:$0xff] }
 0x5b5   : > { %v5924_v25 = vadd.f32 %v2897_v46, %v2750_v37 }
 0x5b7   : > { %4324 = vmatmul.msk.bf16.gmra.mxu2 %vm757_vm0, %v6286_v11 }
 0x5b8   : > { %4348 = vmatmul.msk.bf16.gmra.mxu3 %vm757_vm0, %v6287_v26 }
 0x5ba   : > { %v2698_v12 = vpop.f32.mrf.mxu2 }
 0x5bb   : > { %v2900_v23 = vpop.f32.mrf.mxu3  ;;  %v2751_v3 = vadd.f32 %v2698_v12, %v5741_v42 }
 0x5bd   : > { %v5931_v30 = vadd.f32 %v2900_v23, %v2751_v3  ;;  %v6295_v23 = vld [vmem:[#allocation40_spill] sm:$0xff] }
 0x5c2   : > { %v2700_v50 = vpop.f32.mrf.mxu2 }
 0x5c3   : > { %v2902_v61 = vpop.f32.mrf.mxu3  ;;  %v2752_v53 = vadd.f32 %v2700_v50, %v5748_v44  ;;  %v6290_v44 = vld [vmem:[#allocation39_spill] sm:$0xff] }
 0x5c5   : > { %v5934_v36 = vadd.f32 %v2902_v61, %v2752_v53 }
 0x5c7   : > { %4325 = vmatmul.msk.bf16.gmra.mxu2 %vm757_vm0, %v6288_v33 }
 0x5c8   : > { %4349 = vmatmul.msk.bf16.gmra.mxu3 %vm757_vm0, %v6289_v20 }
 0x5ca   : > { %v2703_v7 = vpop.f32.mrf.mxu2 }
 0x5cb   : > { %v2905_v22 = vpop.f32.mrf.mxu3  ;;  %v2753_v45 = vadd.f32 %v2703_v7, %v5753_v4 }
 0x5cd   : > { %v5941_v63 = vadd.f32 %v2905_v22, %v2753_v45  ;;  %v6297_v22 = vld [vmem:[#allocation42_spill] sm:$0xff] }
 0x5d2   : > { %v2705_v42 = vpop.f32.mrf.mxu2 }
 0x5d3   : > { %v2907_v59 = vpop.f32.mrf.mxu3  ;;  %v2754_v6 = vadd.f32 %v2705_v42, %v5760_v54  ;;  %v6292_v54 = vld [vmem:[#allocation41_spill] sm:$0xff] }
 0x5d5   : > { %v5944_v32 = vadd.f32 %v2907_v59, %v2754_v6 }
 0x5d7   : > { %4326 = vmatmul.msk.bf16.gmra.mxu2 %vm757_vm0, %v6290_v44 }
 0x5d8   : > { %4350 = vmatmul.msk.bf16.gmra.mxu3 %vm757_vm0, %v6291_v55 }
 0x5da   : > { %v2708_v31 = vpop.f32.mrf.mxu2 }
 0x5db   : > { %v2910_v16 = vpop.f32.mrf.mxu3  ;;  %v2755_v34 = vadd.f32 %v2708_v31, %v5765_v15 }
 0x5dd   : > { %v5951_v29 = vadd.f32 %v2910_v16, %v2755_v34  ;;  %v6299_v16 = vld [vmem:[#allocation44_spill] sm:$0xff] }
 0x5e2   : > { %v2710_v4 = vpop.f32.mrf.mxu2 }
 0x5e3   : > { %v2912_v47 = vpop.f32.mrf.mxu3  ;;  %v2756_v38 = vadd.f32 %v2710_v4, %v5772_v0  ;;  %v6294_v0 = vld [vmem:[#allocation43_spill] sm:$0xff] }
 0x5e5   : > { %v5954_v2 = vadd.f32 %v2912_v47, %v2756_v38 }
 0x5e7   : > { %4327 = vmatmul.msk.bf16.gmra.mxu2 %vm757_vm0, %v6292_v54 }
 0x5e8   : > { %4351 = vmatmul.msk.bf16.gmra.mxu3 %vm757_vm0, %v6293_v18 }
 0x5ea   : > { %v2713_v56 = vpop.f32.mrf.mxu2 }
 0x5eb   : > { %v2915_v8 = vpop.f32.mrf.mxu3  ;;  %v2757_v46 = vadd.f32 %v2713_v56, %v5777_v52  ;;  %v6300_v56 = vld [vmem:[#allocation48_spill] sm:$0xff] }
 0x5ed   : > { %v5961_v37 = vadd.f32 %v2915_v8, %v2757_v46  ;;  %v6301_v8 = vld [vmem:[#allocation59_spill] sm:$0xff] }
 0x5f2   : > { %v2715_v15 = vpop.f32.mrf.mxu2 }
 0x5f3   : > { %v2917_v11 = vpop.f32.mrf.mxu3  ;;  %v2758_v26 = vadd.f32 %v2715_v15, %v5784_v10  ;;  %v6296_v10 = vld [vmem:[#allocation45_spill] sm:$0xff] }
 0x5f5   : > { %v5964_v12 = vadd.f32 %v2917_v11, %v2758_v26  ;;  %v6001_v26 = vld [vmem:[#allocation10] ss:$0 sm:$0xff] }
 0x5f7   : > { %4328 = vmatmul.msk.bf16.gmra.mxu2 %vm757_vm0, %v6294_v0 }
 0x5f8   : > { %4352 = vmatmul.msk.bf16.gmra.mxu3 %vm757_vm0, %v6295_v23 }
 0x5fa   : > { %v2718_v3 = vpop.f32.mrf.mxu2 }
 0x5fb   : > { %v2920_v50 = vpop.f32.mrf.mxu3  ;;  %v2759_v61 = vadd.f32 %v2718_v3, %v5789_v57 }
 0x5fd   : > { %v5971_v53 = vadd.f32 %v2920_v50, %v2759_v61 }
 0x602   : > { %v2720_v52 = vpop.f32.mrf.mxu2 }
 0x603   : > { %v2922_v33 = vpop.f32.mrf.mxu3  ;;  %v2760_v20 = vadd.f32 %v2720_v52, %v5796_v5  ;;  %v6298_v5 = vld [vmem:[#allocation46_spill] sm:$0xff] }
 0x605   : > { %v5974_v7 = vadd.f32 %v2922_v33, %v2760_v20  ;;  %v6302_v33 = vld [vmem:[#allocation49_spill] sm:$0xff]  ;;  %v6303_v20 = vld [vmem:[#allocation62_spill] sm:$0xff] }
 0x607   : > { %4329 = vmatmul.msk.bf16.gmra.mxu2 %vm757_vm0, %v6296_v10  ;;  %v3077_v10 = vpop.f32.mrf.mxu1 }
 0x608   : > { %4353 = vmatmul.msk.bf16.gmra.mxu3 %vm757_vm0, %v6297_v22 }
 0x60a   : > { %v2723_v45 = vpop.f32.mrf.mxu2 }
 0x60b   : > { %v2925_v42 = vpop.f32.mrf.mxu3  ;;  %v2761_v59 = vadd.f32 %v2723_v45, %v5801_v19 }
 0x60d   : > { %v5981_v6 = vadd.f32 %v2925_v42, %v2761_v59 }
 0x612   : > { %v2725_v57 = vpop.f32.mrf.mxu2 }
 0x613   : > { %v2927_v44 = vpop.f32.mrf.mxu3  ;;  %v2762_v55 = vadd.f32 %v2725_v57, %v5808_v9 }
 0x615   : > { %v5984_v31 = vadd.f32 %v2927_v44, %v2762_v55 }
 0x617   : > { %4330 = vmatmul.msk.bf16.gmra.mxu2 %vm757_vm0, %v6298_v5 }
 0x618   : > { %4354 = vmatmul.msk.bf16.gmra.mxu3 %vm757_vm0, %v6299_v16 }
 0x61a   : > { %v2728_v34 = vpop.f32.mrf.mxu2 }
 0x61b   : > { %v2930_v4 = vpop.f32.mrf.mxu3  ;;  %v2763_v47 = vadd.f32 %v2728_v34, %v5813_v17  ;;  %v3079_v34 = vpop.f32.mrf.mxu1 }
 0x61d   : > { %v5991_v19 = vadd.f32 %v2930_v4, %v2763_v47 }
 0x622   : > { %v2730_v38 = vpop.f32.mrf.mxu2 }
 0x623   : > { %v2932_v54 = vpop.f32.mrf.mxu3  ;;  %v2764_v18 = vadd.f32 %v2730_v38, %v5820_v24 }
 0x625   : > { %v5994_v9 = vadd.f32 %v2932_v54, %v2764_v18  ;;  %v6304_v18 = vld [vmem:[#allocation50_spill] sm:$0xff] }
 0x627   : > { %4331 = vmatmul.msk.bf16.gmra.mxu2 %vm757_vm0, %v6300_v56 }
 0x628   : > { %4355 = vmatmul.msk.bf16.gmra.mxu3 %vm757_vm0, %v6301_v8 }
 0x62a   : > { %v3259_v46 = vpop.f32.mrf.mxu2 }
 0x62b   : > { %v3461_v15 = vpop.f32.mrf.mxu3  ;;  %v3339_v11 = vadd.f32 %v3259_v46, %v5828_v43 }
 0x62d   : > { %v3541_v17 = vadd.f32 %v3461_v15, %v3339_v11 }
 0x62f   : > { %v3577_v0 = vadd.f32 %v6001_v26, %v3541_v17  ;;  %v3082_v17 = vpop.f32.mrf.mxu1 }
 0x631   : > { %v3609_v23 = vmax.f32 %v3577_v0, 0.0 }
 0x632   : > { %v3261_v24 = vpop.f32.mrf.mxu2 }
 0x633   : > { %v3463_v3 = vpop.f32.mrf.mxu3  ;;  %v3641_v50 = vpack.c.bf16 %v3609_v23, %v3609_v23  ;;  %v3340_v43 = vadd.f32 %v3261_v24, %v5835_v27 }
 0x635   : > { %3674 = vst.msk [vmem:[%s6008_s28] sm:$0xf] %vm3673_vm2, %v3641_v50  ;;  %v3542_v61 = vadd.f32 %v3463_v3, %v3340_v43 }
 0x637   : > { %v3578_v52 = vadd.f32 %v6001_v26, %v3542_v61  ;;  %4332 = vmatmul.msk.bf16.gmra.mxu2 %vm757_vm0, %v6302_v33 }
 0x638   : > { %4356 = vmatmul.msk.bf16.gmra.mxu3 %vm757_vm0, %v6303_v20  ;;  %v6307_v20 = vld [vmem:[#allocation66_spill] sm:$0xff] }
 0x639   : > { %v3610_v22 = vmax.f32 %v3578_v52, 0.0  ;;  %v3084_v52 = vpop.f32.mrf.mxu1 }
 0x63a   : > { %v3264_v45 = vpop.f32.mrf.mxu2 }
 0x63b   : > { %v3466_v42 = vpop.f32.mrf.mxu3  ;;  %v3642_v59 = vpack.c.bf16 %v3610_v22, %v3610_v22  ;;  %v3341_v57 = vadd.f32 %v3264_v45, %v5840_v41  ;;  %v6305_v41 = vld [vmem:[#allocation64_spill] sm:$0xff] }
 0x63d   : > { %3675 = vst.msk [vmem:[%s6008_s28 + $0x4] sm:$0xf] %vm3673_vm2, %v3642_v59  ;;  %v3543_v27 = vadd.f32 %v3466_v42, %v3341_v57 }
 0x63f   : > { %v3579_v44 = vadd.f32 %v6001_v26, %v3543_v27 }
 0x641   : > { %v3611_v55 = vmax.f32 %v3579_v44, 0.0  ;;  %v3087_v44 = vpop.f32.mrf.mxu1 }
 0x642   : > { %v3266_v5 = vpop.f32.mrf.mxu2 }
 0x643   : > { %v3468_v16 = vpop.f32.mrf.mxu3  ;;  %v3643_v4 = vpack.c.bf16 %v3611_v55, %v3611_v55  ;;  %v3342_v47 = vadd.f32 %v3266_v5, %v5847_v39 }
 0x645   : > { %3676 = vst.msk [vmem:[%s6008_s28 + $0x8] sm:$0xf] %vm3673_vm2, %v3643_v4  ;;  %v3544_v38 = vadd.f32 %v3468_v16, %v3342_v47 }
 0x647   : > { %v3580_v54 = vadd.f32 %v6001_v26, %v3544_v38  ;;  %4333 = vmatmul.msk.bf16.gmra.mxu2 %vm757_vm0, %v6304_v18  ;;  %v6308_v18 = vld [vmem:[#allocation52_spill] sm:$0xff] }
 0x648   : > { %4357 = vmatmul.msk.bf16.gmra.mxu3 %vm757_vm0, %v6305_v41 }
 0x649   : > { %v3612_v56 = vmax.f32 %v3580_v54, 0.0 }
 0x64a   : > { %v3269_v8 = vpop.f32.mrf.mxu2 }
 0x64b   : > { %v3471_v46 = vpop.f32.mrf.mxu3  ;;  %v3644_v15 = vpack.c.bf16 %v3612_v56, %v3612_v56  ;;  %v3343_v11 = vadd.f32 %v3269_v8, %v5852_v62  ;;  %v6306_v62 = vld [vmem:[#allocation51_spill] sm:$0xff]  ;;  %v3145_v56 = vadd.f32 %v3077_v10, %v5876_v35 }
 0x64d   : > { %3677 = vst.msk [vmem:[%s6008_s28 + $0xc] sm:$0xf] %vm3673_vm2, %v3644_v15  ;;  %v3545_v39 = vadd.f32 %v3471_v46, %v3343_v11  ;;  %v3089_v15 = vpop.f32.mrf.mxu1 }
 0x64f   : > { %v3581_v0 = vadd.f32 %v6001_v26, %v3545_v39 }
 0x651   : > { %v3613_v23 = vmax.f32 %v3581_v0, 0.0 }
 0x652   : > { %v3271_v24 = vpop.f32.mrf.mxu2 }
 0x653   : > { %v3473_v3 = vpop.f32.mrf.mxu3  ;;  %v3645_v50 = vpack.c.bf16 %v3613_v23, %v3613_v23  ;;  %v3344_v43 = vadd.f32 %v3271_v24, %v5859_v1  ;;  %v3146_v24 = vadd.f32 %v3079_v34, %v5879_v40  ;;  %v3147_v40 = vadd.f32 %v3082_v17, %v5888_v49 }
 0x655   : > { %3678 = vst.msk [vmem:[%s6008_s28 + $0x10] sm:$0xf] %vm3673_vm2, %v3645_v50  ;;  %v3546_v61 = vadd.f32 %v3473_v3, %v3344_v43  ;;  %v3092_v35 = vpop.f32.mrf.mxu1 }
 0x657   : > { %v3582_v33 = vadd.f32 %v6001_v26, %v3546_v61  ;;  %4334 = vmatmul.msk.bf16.gmra.mxu2 %vm757_vm0, %v6306_v62  ;;  %v6310_v62 = vld [vmem:[#allocation53_spill] sm:$0xff] }
 0x658   : > { %4358 = vmatmul.msk.bf16.gmra.mxu3 %vm757_vm0, %v6307_v20  ;;  %v6311_v20 = vld [vmem:[#allocation63_spill] sm:$0xff] }
 0x659   : > { %v3614_v22 = vmax.f32 %v3582_v33, 0.0 }
 0x65a   : > { %v3274_v45 = vpop.f32.mrf.mxu2 }
 0x65b   : > { %v3476_v42 = vpop.f32.mrf.mxu3  ;;  %v3646_v59 = vpack.c.bf16 %v3614_v22, %v3614_v22  ;;  %v3345_v57 = vadd.f32 %v3274_v45, %v5864_v51  ;;  %v6309_v51 = vld [vmem:[#allocation60_spill] sm:$0xff] }
 0x65d   : > { %3679 = vst.msk [vmem:[%s6008_s28 + $0x14] sm:$0xf] %vm3673_vm2, %v3646_v59  ;;  %v3547_v1 = vadd.f32 %v3476_v42, %v3345_v57 }
 0x65f   : > { %v3583_v27 = vadd.f32 %v6001_v26, %v3547_v1  ;;  %v3094_v1 = vpop.f32.mrf.mxu1 }
 0x661   : > { %v3615_v55 = vmax.f32 %v3583_v27, 0.0 }
 0x662   : > { %v3276_v5 = vpop.f32.mrf.mxu2 }
 0x663   : > { %v3478_v16 = vpop.f32.mrf.mxu3  ;;  %v3647_v4 = vpack.c.bf16 %v3615_v55, %v3615_v55  ;;  %v3346_v47 = vadd.f32 %v3276_v5, %v5871_v13  ;;  %v3148_v5 = vadd.f32 %v3084_v52, %v5891_v48  ;;  %v3149_v48 = vadd.f32 %v3087_v44, %v5900_v21 }
 0x665   : > { %3680 = vst.msk [vmem:[%s6008_s28 + $0x18] sm:$0xf] %vm3673_vm2, %v3647_v4  ;;  %v3548_v38 = vadd.f32 %v3478_v16, %v3346_v47 }
 0x667   : > { %v3584_v54 = vadd.f32 %v6001_v26, %v3548_v38  ;;  %4335 = vmatmul.msk.bf16.gmra.mxu2 %vm757_vm0, %v6308_v18  ;;  %v6313_v18 = vld [vmem:[#allocation65_spill] sm:$0xff] }
 0x668   : > { %4359 = vmatmul.msk.bf16.gmra.mxu3 %vm757_vm0, %v6309_v51  ;;  %v3097_v51 = vpop.f32.mrf.mxu1 }
 0x669   : > { %v3616_v41 = vmax.f32 %v3584_v54, 0.0  ;;  %v6312_v54 = vld [vmem:[#allocation54_spill] sm:$0xff] }
 0x66a   : > { %v3279_v8 = vpop.f32.mrf.mxu2 }
 0x66b   : > { %v3481_v46 = vpop.f32.mrf.mxu3  ;;  %v3648_v11 = vpack.c.bf16 %v3616_v41, %v3616_v41  ;;  %v3347_v13 = vadd.f32 %v3279_v8, %v3145_v56 }
 0x66d   : > { %3681 = vst.msk [vmem:[%s6008_s28 + $0x1c] sm:$0xf] %vm3673_vm2, %v3648_v11  ;;  %v3549_v39 = vadd.f32 %v3481_v46, %v3347_v13 }
 0x66f   : > { %v3585_v0 = vadd.f32 %v6001_v26, %v3549_v39 }
 0x671   : > { %v3617_v23 = vmax.f32 %v3585_v0, 0.0  ;;  %v3150_v0 = vadd.f32 %v3089_v15, %v5903_v28  ;;  %v3151_v28 = vadd.f32 %v3092_v35, %v5911_v14 }
 0x672   : > { %v3281_v3 = vpop.f32.mrf.mxu2 }
 0x673   : > { %v3483_v50 = vpop.f32.mrf.mxu3  ;;  %v3649_v43 = vpack.c.bf16 %v3617_v23, %v3617_v23  ;;  %v3348_v61 = vadd.f32 %v3281_v3, %v3146_v24  ;;  %v3099_v3 = vpop.f32.mrf.mxu1 }
 0x675   : > { %3682 = vst.msk [vmem:[%s6008_s28 + $0x20] sm:$0xf] %vm3673_vm2, %v3649_v43  ;;  %v3550_v10 = vadd.f32 %v3483_v50, %v3348_v61  ;;  %v6314_v61 = vld [vmem:[#allocation55_spill] sm:$0xff] }
 0x677   : > { %v3586_v33 = vadd.f32 %v6001_v26, %v3550_v10  ;;  %4336 = vmatmul.msk.bf16.gmra.mxu2 %vm757_vm0, %v6310_v62  ;;  %v6315_v10 = vld [vmem:[#allocation67_spill] sm:$0xff] }
 0x678   : > { %4360 = vmatmul.msk.bf16.gmra.mxu3 %vm757_vm0, %v6311_v20 }
 0x679   : > { %v3618_v22 = vmax.f32 %v3586_v33, 0.0 }
 0x67a   : > { %v3284_v34 = vpop.f32.mrf.mxu2 }
 0x67b   : > { %v3486_v45 = vpop.f32.mrf.mxu3  ;;  %v3650_v42 = vpack.c.bf16 %v3618_v22, %v3618_v22  ;;  %v3349_v59 = vadd.f32 %v3284_v34, %v3147_v40  ;;  %v3102_v40 = vpop.f32.mrf.mxu1 }
 0x67d   : > { %3683 = vst.msk [vmem:[%s6008_s28 + $0x24] sm:$0xf] %vm3673_vm2, %v3650_v42  ;;  %v3551_v57 = vadd.f32 %v3486_v45, %v3349_v59  ;;  %v3152_v59 = vadd.f32 %v3094_v1, %v5914_v60 }
 0x67f   : > { %v3587_v27 = vadd.f32 %v6001_v26, %v3551_v57 }
 0x681   : > { %v3619_v55 = vmax.f32 %v3587_v27, 0.0 }
 0x682   : > { %v3286_v16 = vpop.f32.mrf.mxu2 }
 0x683   : > { %v3488_v4 = vpop.f32.mrf.mxu3  ;;  %v3651_v47 = vpack.c.bf16 %v3619_v55, %v3619_v55  ;;  %v3350_v38 = vadd.f32 %v3286_v16, %v3148_v5  ;;  %v3104_v35 = vpop.f32.mrf.mxu1 }
 0x685   : > { %3684 = vst.msk [vmem:[%s6008_s28 + $0x28] sm:$0xf] %vm3673_vm2, %v3651_v47  ;;  %v3552_v49 = vadd.f32 %v3488_v4, %v3350_v38  ;;  %v3153_v47 = vadd.f32 %v3097_v51, %v5921_v58 }
 0x687   : > { %v3588_v17 = vadd.f32 %v6001_v26, %v3552_v49  ;;  %4337 = vmatmul.msk.bf16.gmra.mxu2 %vm757_vm0, %v6312_v54 }
 0x688   : > { %4361 = vmatmul.msk.bf16.gmra.mxu3 %vm757_vm0, %v6313_v18 }
 0x689   : > { %v3620_v41 = vmax.f32 %v3588_v17, 0.0 }
 0x68a   : > { %v3289_v52 = vpop.f32.mrf.mxu2 }
 0x68b   : > { %v3491_v56 = vpop.f32.mrf.mxu3  ;;  %v3652_v8 = vpack.c.bf16 %v3620_v41, %v3620_v41  ;;  %v3351_v46 = vadd.f32 %v3289_v52, %v3149_v48  ;;  %v3107_v18 = vpop.f32.mrf.mxu1  ;;  %v3154_v48 = vadd.f32 %v3099_v3, %v5924_v25 }
 0x68d   : > { %3685 = vst.msk [vmem:[%s6008_s28 + $0x2c] sm:$0xf] %vm3673_vm2, %v3652_v8  ;;  %v3553_v11 = vadd.f32 %v3491_v56, %v3351_v46 }
 0x68f   : > { %v3589_v13 = vadd.f32 %v6001_v26, %v3553_v11 }
 0x691   : > { %v3621_v39 = vmax.f32 %v3589_v13, 0.0  ;;  %v3155_v13 = vadd.f32 %v3102_v40, %v5931_v30 }
 0x692   : > { %v3291_v23 = vpop.f32.mrf.mxu2 }
 0x693   : > { %v3493_v24 = vpop.f32.mrf.mxu3  ;;  %v3653_v50 = vpack.c.bf16 %v3621_v39, %v3621_v39  ;;  %v3352_v43 = vadd.f32 %v3291_v23, %v3150_v0  ;;  %v3109_v23 = vpop.f32.mrf.mxu1 }
 0x695   : > { %3686 = vst.msk [vmem:[%s6008_s28 + $0x30] sm:$0xf] %vm3673_vm2, %v3653_v50  ;;  %v3554_v21 = vadd.f32 %v3493_v24, %v3352_v43 }
 0x697   : > { %v3590_v44 = vadd.f32 %v6001_v26, %v3554_v21  ;;  %4338 = vmatmul.msk.bf16.gmra.mxu2 %vm757_vm0, %v6314_v61  ;;  %v3156_v21 = vadd.f32 %v3104_v35, %v5934_v36 }
 0x698   : > { %4362 = vmatmul.msk.bf16.gmra.mxu3 %vm757_vm0, %v6315_v10 }
 0x699   : > { %v3622_v33 = vmax.f32 %v3590_v44, 0.0 }
 0x69a   : > { %v3294_v15 = vpop.f32.mrf.mxu2 }
 0x69b   : > { %v3496_v62 = vpop.f32.mrf.mxu3  ;;  %v3654_v20 = vpack.c.bf16 %v3622_v33, %v3622_v33  ;;  %v3353_v22 = vadd.f32 %v3294_v15, %v3151_v28  ;;  %v3112_v30 = vpop.f32.mrf.mxu1 }
 0x69d   : > { %3687 = vst.msk [vmem:[%s6008_s28 + $0x34] sm:$0xf] %vm3673_vm2, %v3654_v20  ;;  %v3555_v34 = vadd.f32 %v3496_v62, %v3353_v22  ;;  %v3157_v20 = vadd.f32 %v3107_v18, %v5941_v63 }
 0x69f   : > { %v3591_v45 = vadd.f32 %v6001_v26, %v3555_v34 }
 0x6a1   : > { %v3623_v42 = vmax.f32 %v3591_v45, 0.0 }
 0x6a2   : > { %v3296_v57 = vpop.f32.mrf.mxu2 }
 0x6a3   : > { %v3498_v27 = vpop.f32.mrf.mxu3  ;;  %v3655_v55 = vpack.c.bf16 %v3623_v42, %v3623_v42  ;;  %v3354_v5 = vadd.f32 %v3296_v57, %v3152_v59  ;;  %v3114_v42 = vpop.f32.mrf.mxu1 }
 0x6a5   : > { %3688 = vst.msk [vmem:[%s6008_s28 + $0x38] sm:$0xf] %vm3673_vm2, %v3655_v55  ;;  %v3556_v14 = vadd.f32 %v3498_v27, %v3354_v5  ;;  %v3158_v27 = vadd.f32 %v3109_v23, %v5944_v32 }
 0x6a7   : > { %v3592_v16 = vadd.f32 %v6001_v26, %v3556_v14 }
 0x6a9   : > { %v3624_v4 = vmax.f32 %v3592_v16, 0.0 }
 0x6aa   : > { %v3299_v38 = vpop.f32.mrf.mxu2 }
 0x6ab   : > { %v3501_v49 = vpop.f32.mrf.mxu3  ;;  %v3656_v17 = vpack.c.bf16 %v3624_v4, %v3624_v4  ;;  %v3355_v54 = vadd.f32 %v3299_v38, %v3153_v47  ;;  %v3117_v4 = vpop.f32.mrf.mxu1  ;;  %v3159_v38 = vadd.f32 %v3112_v30, %v5951_v29 }
 0x6ad   : > { %3689 = vst.msk [vmem:[%s6008_s28 + $0x3c] sm:$0xf] %vm3673_vm2, %v3656_v17  ;;  %v3557_v60 = vadd.f32 %v3501_v49, %v3355_v54 }
 0x6af   : > { %v3593_v1 = vadd.f32 %v6001_v26, %v3557_v60 }
 0x6b1   : > { %v3625_v41 = vmax.f32 %v3593_v1, 0.0 }
 0x6b2   : > { %v3301_v52 = vpop.f32.mrf.mxu2 }
 0x6b3   : > { %v3503_v56 = vpop.f32.mrf.mxu3  ;;  %v3657_v8 = vpack.c.bf16 %v3625_v41, %v3625_v41  ;;  %v3356_v46 = vadd.f32 %v3301_v52, %v3154_v48  ;;  %v3160_v41 = vadd.f32 %v3114_v42, %v5954_v2 }
 0x6b5   : > { %3690 = vst.msk [vmem:[%s6008_s28 + $0x40] sm:$0xf] %vm3673_vm2, %v3657_v8  ;;  %v3558_v58 = vadd.f32 %v3503_v56, %v3356_v46  ;;  %v3119_v56 = vpop.f32.mrf.mxu1 }
 0x6b7   : > { %v3594_v51 = vadd.f32 %v6001_v26, %v3558_v58 }
 0x6b9   : > { %v3626_v11 = vmax.f32 %v3594_v51, 0.0 }
 0x6ba   : > { %v3304_v39 = vpop.f32.mrf.mxu2 }
 0x6bb   : > { %v3506_v0 = vpop.f32.mrf.mxu3  ;;  %v3658_v24 = vpack.c.bf16 %v3626_v11, %v3626_v11  ;;  %v3357_v50 = vadd.f32 %v3304_v39, %v3155_v13  ;;  %v3161_v11 = vadd.f32 %v3117_v4, %v5961_v37 }
 0x6bd   : > { %3691 = vst.msk [vmem:[%s6008_s28 + $0x44] sm:$0xf] %vm3673_vm2, %v3658_v24  ;;  %v3559_v25 = vadd.f32 %v3506_v0, %v3357_v50  ;;  %v3122_v2 = vpop.f32.mrf.mxu1 }
 0x6bf   : > { %v3595_v3 = vadd.f32 %v6001_v26, %v3559_v25 }
 0x6c1   : > { %v3627_v43 = vmax.f32 %v3595_v3, 0.0  ;;  %v3162_v3 = vadd.f32 %v3119_v56, %v5964_v12 }
 0x6c2   : > { %v3306_v44 = vpop.f32.mrf.mxu2 }
 0x6c3   : > { %v3508_v61 = vpop.f32.mrf.mxu3  ;;  %v3659_v10 = vpack.c.bf16 %v3627_v43, %v3627_v43  ;;  %v3358_v33 = vadd.f32 %v3306_v44, %v3156_v21 }
 0x6c5   : > { %3692 = vst.msk [vmem:[%s6008_s28 + $0x48] sm:$0xf] %vm3673_vm2, %v3659_v10  ;;  %v3560_v28 = vadd.f32 %v3508_v61, %v3358_v33  ;;  %v3124_v10 = vpop.f32.mrf.mxu1 }
 0x6c7   : > { %v3596_v15 = vadd.f32 %v6001_v26, %v3560_v28  ;;  %v3163_v28 = vadd.f32 %v3122_v2, %v5971_v53 }
 0x6c9   : > { %v3628_v62 = vmax.f32 %v3596_v15, 0.0 }
 0x6ca   : > { %v3309_v22 = vpop.f32.mrf.mxu2 }
 0x6cb   : > { %v3511_v40 = vpop.f32.mrf.mxu3  ;;  %v3660_v34 = vpack.c.bf16 %v3628_v62, %v3628_v62  ;;  %v3359_v45 = vadd.f32 %v3309_v22, %v3157_v20 }
 0x6cd   : > { %3693 = vst.msk [vmem:[%s6008_s28 + $0x4c] sm:$0xf] %vm3673_vm2, %v3660_v34  ;;  %v3561_v36 = vadd.f32 %v3511_v40, %v3359_v45  ;;  %v3127_v34 = vpop.f32.mrf.mxu1 }
 0x6cf   : > { %v3597_v59 = vadd.f32 %v6001_v26, %v3561_v36  ;;  %v3164_v36 = vadd.f32 %v3124_v10, %v5974_v7 }
 0x6d1   : > { %v3629_v57 = vmax.f32 %v3597_v59, 0.0 }
 0x6d2   : > { %v3311_v55 = vpop.f32.mrf.mxu2 }
 0x6d3   : > { %v3513_v5 = vpop.f32.mrf.mxu3  ;;  %v3661_v14 = vpack.c.bf16 %v3629_v57, %v3629_v57  ;;  %v3360_v35 = vadd.f32 %v3311_v55, %v3158_v27 }
 0x6d5   : > { %3694 = vst.msk [vmem:[%s6008_s28 + $0x50] sm:$0xf] %vm3673_vm2, %v3661_v14  ;;  %v3562_v63 = vadd.f32 %v3513_v5, %v3360_v35  ;;  %v3165_v14 = vadd.f32 %v3127_v34, %v5981_v6 }
 0x6d7   : > { %v3598_v16 = vadd.f32 %v6001_v26, %v3562_v63 }
 0x6d9   : > { %v3630_v47 = vmax.f32 %v3598_v16, 0.0 }
 0x6da   : > { %v3314_v49 = vpop.f32.mrf.mxu2 }
 0x6db   : > { %v3516_v17 = vpop.f32.mrf.mxu3  ;;  %v3662_v54 = vpack.c.bf16 %v3630_v47, %v3630_v47  ;;  %v3361_v60 = vadd.f32 %v3314_v49, %v3159_v38  ;;  %v3129_v47 = vpop.f32.mrf.mxu1 }
 0x6dd   : > { %3695 = vst.msk [vmem:[%s6008_s28 + $0x54] sm:$0xf] %vm3673_vm2, %v3662_v54  ;;  %v3563_v32 = vadd.f32 %v3516_v17, %v3361_v60  ;;  %v3166_v17 = vadd.f32 %v3129_v47, %v5984_v31 }
 0x6df   : > { %v3599_v1 = vadd.f32 %v6001_v26, %v3563_v32 }
 0x6e1   : > { %v3631_v18 = vmax.f32 %v3599_v1, 0.0 }
 0x6e2   : > { %v3316_v48 = vpop.f32.mrf.mxu2 }
 0x6e3   : > { %v3518_v52 = vpop.f32.mrf.mxu3  ;;  %v3663_v8 = vpack.c.bf16 %v3631_v18, %v3631_v18  ;;  %v3362_v46 = vadd.f32 %v3316_v48, %v3160_v41  ;;  %v3132_v18 = vpop.f32.mrf.mxu1 }
 0x6e5   : > { %3696 = vst.msk [vmem:[%s6008_s28 + $0x58] sm:$0xf] %vm3673_vm2, %v3663_v8  ;;  %v3564_v29 = vadd.f32 %v3518_v52, %v3362_v46  ;;  %v3167_v52 = vadd.f32 %v3132_v18, %v5991_v19 }
 0x6e7   : > { %v3600_v58 = vadd.f32 %v6001_v26, %v3564_v29 }
 0x6e9   : > { %v3632_v51 = vmax.f32 %v3600_v58, 0.0 }
 0x6ea   : > { %v3319_v13 = vpop.f32.mrf.mxu2 }
 0x6eb   : > { %v3521_v39 = vpop.f32.mrf.mxu3  ;;  %v3664_v0 = vpack.c.bf16 %v3632_v51, %v3632_v51  ;;  %v3363_v23 = vadd.f32 %v3319_v13, %v3161_v11  ;;  %v3134_v51 = vpop.f32.mrf.mxu1 }
 0x6ec   : > { %v3168_v13 = vadd.f32 %v3134_v51, %v5994_v9 }
 0x6ed   : > { %3697 = vst.msk [vmem:[%s6008_s28 + $0x5c] sm:$0xf] %vm3673_vm2, %v3664_v0  ;;  %v3565_v24 = vadd.f32 %v3521_v39, %v3363_v23 }
 0x6ef   : > { %v3601_v50 = vadd.f32 %v6001_v26, %v3565_v24 }
 0x6f1   : > { %v3633_v25 = vmax.f32 %v3601_v50, 0.0 }
 0x6f2   : > { %v3321_v43 = vpop.f32.mrf.mxu2 }
 0x6f3   : > { %v3523_v21 = vpop.f32.mrf.mxu3  ;;  %v3665_v44 = vpack.c.bf16 %v3633_v25, %v3633_v25  ;;  %v3364_v61 = vadd.f32 %v3321_v43, %v3162_v3 }
 0x6f5   : > { %3698 = vst.msk [vmem:[%s6008_s28 + $0x60] sm:$0xf] %vm3673_vm2, %v3665_v44  ;;  %v3566_v37 = vadd.f32 %v3523_v21, %v3364_v61 }
 0x6f7   : > { %v3602_v33 = vadd.f32 %v6001_v26, %v3566_v37 }
 0x6f9   : > { %v3634_v30 = vmax.f32 %v3602_v33, 0.0 }
 0x6fa   : > { %v3324_v15 = vpop.f32.mrf.mxu2 }
 0x6fb   : > { %v3526_v62 = vpop.f32.mrf.mxu3  ;;  %v3666_v20 = vpack.c.bf16 %v3634_v30, %v3634_v30  ;;  %v3365_v22 = vadd.f32 %v3324_v15, %v3163_v28 }
 0x6fd   : > { %3699 = vst.msk [vmem:[%s6008_s28 + $0x64] sm:$0xf] %vm3673_vm2, %v3666_v20  ;;  %v3567_v12 = vadd.f32 %v3526_v62, %v3365_v22 }
 0x6ff   : > { %v3603_v40 = vadd.f32 %v6001_v26, %v3567_v12 }
 0x701   : > { %v3635_v45 = vmax.f32 %v3603_v40, 0.0 }
 0x702   : > { %v3326_v42 = vpop.f32.mrf.mxu2 }
 0x703   : > { %v3528_v59 = vpop.f32.mrf.mxu3  ;;  %v3667_v57 = vpack.c.bf16 %v3635_v45, %v3635_v45  ;;  %v3366_v27 = vadd.f32 %v3326_v42, %v3164_v36 }
 0x705   : > { %3700 = vst.msk [vmem:[%s6008_s28 + $0x68] sm:$0xf] %vm3673_vm2, %v3667_v57  ;;  %v3568_v53 = vadd.f32 %v3528_v59, %v3366_v27 }
 0x707   : > { %v3604_v55 = vadd.f32 %v6001_v26, %v3568_v53 }
 0x709   : > { %v3636_v5 = vmax.f32 %v3604_v55, 0.0 }
 0x70a   : > { %v3329_v35 = vpop.f32.mrf.mxu2 }
 0x70b   : > { %v3531_v63 = vpop.f32.mrf.mxu3  ;;  %v3668_v16 = vpack.c.bf16 %v3636_v5, %v3636_v5  ;;  %v3367_v4 = vadd.f32 %v3329_v35, %v3165_v14 }
 0x70d   : > { %3701 = vst.msk [vmem:[%s6008_s28 + $0x6c] sm:$0xf] %vm3673_vm2, %v3668_v16  ;;  %v3569_v7 = vadd.f32 %v3531_v63, %v3367_v4 }
 0x70f   : > { %v3605_v38 = vadd.f32 %v6001_v26, %v3569_v7 }
 0x711   : > { %v3637_v49 = vmax.f32 %v3605_v38, 0.0 }
 0x712   : > { %v3331_v54 = vpop.f32.mrf.mxu2 }
 0x713   : > { %v3533_v60 = vpop.f32.mrf.mxu3  ;;  %v3669_v32 = vpack.c.bf16 %v3637_v49, %v3637_v49  ;;  %v3368_v1 = vadd.f32 %v3331_v54, %v3166_v17 }
 0x715   : > { %3702 = vst.msk [vmem:[%s6008_s28 + $0x70] sm:$0xf] %vm3673_vm2, %v3669_v32  ;;  %v3570_v6 = vadd.f32 %v3533_v60, %v3368_v1 }
 0x717   : > { %v3606_v41 = vadd.f32 %v6001_v26, %v3570_v6 }
 0x719   : > { %v3638_v48 = vmax.f32 %v3606_v41, 0.0 }
 0x71a   : > { %v3334_v56 = vpop.f32.mrf.mxu2 }
 0x71b   : > { %v3536_v8 = vpop.f32.mrf.mxu3  ;;  %v3670_v46 = vpack.c.bf16 %v3638_v48, %v3638_v48  ;;  %v3369_v29 = vadd.f32 %v3334_v56, %v3167_v52 }
 0x71d   : > { %3703 = vst.msk [vmem:[%s6008_s28 + $0x74] sm:$0xf] %vm3673_vm2, %v3670_v46  ;;  %v3571_v31 = vadd.f32 %v3536_v8, %v3369_v29 }
 0x71f   : > { %v3607_v58 = vadd.f32 %v6001_v26, %v3571_v31 }
 0x721   : > { %v3639_v11 = vmax.f32 %v3607_v58, 0.0 }
 0x722   : > { %v3336_v39 = vpop.f32.mrf.mxu2 }
 0x723   : > { %v3671_v0 = vpack.c.bf16 %v3639_v11, %v3639_v11  ;;  %v3370_v23 = vadd.f32 %v3336_v39, %v3168_v13  ;;  %v3538_v2 = vpop.f32.mrf.mxu3 }
 0x725   : > { %3704 = vst.msk [vmem:[%s6008_s28 + $0x78] sm:$0xf] %vm3673_vm2, %v3671_v0  ;;  %v3572_v19 = vadd.f32 %v3538_v2, %v3370_v23 }
 0x727   : > { %v3608_v24 = vadd.f32 %v6001_v26, %v3572_v19 }
 0x729   : > { %v3640_v50 = vmax.f32 %v3608_v24, 0.0 }
 0x72b   : > { %v3672_v25 = vpack.c.bf16 %v3640_v50, %v3640_v50 }
 0x72d   : > { %3705 = vst.msk [vmem:[%s6008_s28 + $0x7c] sm:$0xf] %vm3673_vm2, %v3672_v25 }
 0x72e PF: > { %s18_s18 = sadd.s32 1, %s4650_s18  }
 0x72f   : > { %p15_p7 = scmp.ge.s32.totalorder %s18_s18, 4  }
 0x731   :  { %17 = sbr.rel (!%p15_p7) target bundleno = 3 (0x3), region = 98 }
 0x736   :  { %3727 = vsyncpa [#allocation6], 1 }
 0x737   :  { %3729 = vsyncpa [#allocation6 + $0x1], 1 }
 0x738   :  { %3730 = vsyncpa [#allocation8], 1 }
 0x739   :  { %3731 = vsyncpa [#allocation11], 1 }

// kernel: cnn_forward.3
= control target key start
LH: loop header
LB: loop body
LE: loop exit
PB: predicated region body
PF: predicated region fallthrough
CT: control target
= control target key end

     0   :  { %8 = vsyncpa [#allocation3], 0  ;;  %s13452_s12 = smov 0   ;;  %s15847_s0 = inlined_call_operand.vmem [shape: bf16[2,16384], index: 0, kind: input, shape index: {}]   ;;  %s15848_s1 = inlined_call_operand.vmem [shape: bf16[16384,200], index: 1, kind: input, shape index: {}]   ;;  %s15849_s2 = inlined_call_operand.vmem [shape: f32[1,200], index: 2, kind: input, shape index: {}]   ;;  %s15850_s3 = inlined_call_operand.hbm [shape: f32[2,200], index: 3, kind: output, shape index: {}]  }
   0x1 LB: > { %s13458_s13 = sadd.s32 4294967295, %s13428_s12   ;;  %p8234_p0 = scmp.ge.s32.totalorder %s13428_s12, 1  ;;  %s13428_s12 = sphi %s13452_s12, %s14_s12  }
   0x2   : > { %p145_p1 = scmp.lt.s32.totalorder %s13428_s12, 3 }
   0x4   : > { %p146_p2 = pnand %p8234_p0, %p145_p1 }
   0x6   : > { %149 = sbr.rel (%p146_p2) target bundleno = 1209 (0x4b9), region = 32 }
   0xb   : > { %s8235_s14 = sshll.u32 %s13458_s13, 6  ;;  %s8236_s15 = sshll.u32 %s13458_s13, 10 }
   0xc   : > { %p170_p3 = scmp.lt.s32.totalorder %s8235_s14, 127  ;;  %p175_p4 = scmp.lt.s32.totalorder %s8236_s15, 2047 }
   0xd   : > { %p8239_p5 = scmp.ne.s32.totalorder %s13458_s13, 0 }
   0xe   : > { %s15918_s14 = smov (!%p170_p3, %s8235_s14), 127  ;;  %s15920_s15 = smov (!%p175_p4, %s8236_s15), 2047 }
   0xf   : > { %s13467_s18 = scalar_lea.vmem %s15847_s0, %s15918_s14  ;;  %s12341_s19 = sshll.u32 %s15920_s15, 3 }
  0x10   : > { %s13472_s22 = scalar_lea.vmem %s15848_s1, %s12341_s19  ;;  %184 = sbr.rel (%p8239_p5) target bundleno = 24 (0x18), region = 36 }
  0x15   : > { %vm185_vm0 = vcmask 1041408   ;;  %vm186_vm1 = vcmask 584706   ;;  %v13430_v0 = vmov 0.0  }
  0x16   : > { %vm187_vm2 = vmor %vm186_vm1, %vm185_vm0 }
  0x17   : > { %188 = vst.msk [vmem:[#allocation2] sm:$0xf] %vm187_vm2, %v13430_v0 }
  0x18 PF: > { %v8298_v1 = vld [vmem:[%s13472_s22 + $0x70] sm:$0xf]  ;;  %v12357_v2 = vld [vmem:[%s13472_s22 + $0x74] sm:$0xf0]  ;;  %v8290_v12 = vld [vmem:[%s13472_s22 + $0x60] sm:$0xf] }
  0x19   : > { %v8362_v3 = vld [vmem:[%s13472_s22 + $0xf0] sm:$0xf]  ;;  %v8299_v4 = vor.u32 %v12357_v2, %v8298_v1  ;;  %v12373_v5 = vld [vmem:[%s13472_s22 + $0xf4] sm:$0xf0]  ;;  %v12355_v14 = vld [vmem:[%s13472_s22 + $0x64] sm:$0xf0] }
  0x1a   : > { %v8426_v6 = vld [vmem:[%s13472_s22 + $0x170] sm:$0xf]  ;;  %v12389_v7 = vld [vmem:[%s13472_s22 + $0x174] sm:$0xf0]  ;;  %v8363_v8 = vor.u32 %v12373_v5, %v8362_v3  ;;  %v8354_v15 = vld [vmem:[%s13472_s22 + $0xe0] sm:$0xf]  ;;  %v8291_v17 = vor.u32 %v12355_v14, %v8290_v12 }
  0x1b   : > { %v8427_v9 = vor.u32 %v12389_v7, %v8426_v6  ;;  %v8490_v10 = vld [vmem:[%s13472_s22 + $0x1f0] sm:$0xf]  ;;  %v12405_v11 = vld [vmem:[%s13472_s22 + $0x1f4] sm:$0xf0]  ;;  %6486 = vmatpush.bf16.msra.mxu0 %v8299_v4  ;;  %v12371_v16 = vld [vmem:[%s13472_s22 + $0xe4] sm:$0xf0] }
  0x1c   : > { %v8491_v13 = vor.u32 %v12405_v11, %v8490_v10  ;;  %6499 = vmatpush.bf16.msra.mxu1 %v8363_v8  ;;  %v8355_v18 = vor.u32 %v12371_v16, %v8354_v15  ;;  %v8418_v19 = vld [vmem:[%s13472_s22 + $0x160] sm:$0xf]  ;;  %v12387_v20 = vld [vmem:[%s13472_s22 + $0x164] sm:$0xf0]  ;;  %v8282_v24 = vld [vmem:[%s13472_s22 + $0x50] sm:$0xf] }
  0x1d   : > { %6512 = vmatpush.bf16.msra.mxu2 %v8427_v9  ;;  %v8482_v21 = vld [vmem:[%s13472_s22 + $0x1e0] sm:$0xf]  ;;  %v8419_v22 = vor.u32 %v12387_v20, %v8418_v19  ;;  %v12403_v23 = vld [vmem:[%s13472_s22 + $0x1e4] sm:$0xf0]  ;;  %v12353_v25 = vld [vmem:[%s13472_s22 + $0x54] sm:$0xf0] }
  0x1e   : > { %6525 = vmatpush.bf16.msra.mxu3 %v8491_v13  ;;  %v8483_v26 = vor.u32 %v12403_v23, %v8482_v21  ;;  %v8346_v27 = vld [vmem:[%s13472_s22 + $0xd0] sm:$0xf]  ;;  %v12369_v28 = vld [vmem:[%s13472_s22 + $0xd4] sm:$0xf0]  ;;  %v8283_v30 = vor.u32 %v12353_v25, %v8282_v24  ;;  %v8274_v36 = vld [vmem:[%s13472_s22 + $0x40] sm:$0xf] }
  0x1f   : > { %v8410_v29 = vld [vmem:[%s13472_s22 + $0x150] sm:$0xf]  ;;  %6487 = vmatpush.bf16.msra.mxu0 %v8291_v17  ;;  %v12385_v31 = vld [vmem:[%s13472_s22 + $0x154] sm:$0xf0]  ;;  %v8347_v34 = vor.u32 %v12369_v28, %v8346_v27  ;;  %v12351_v37 = vld [vmem:[%s13472_s22 + $0x44] sm:$0xf0] }
  0x20   : > { %v8474_v32 = vld [vmem:[%s13472_s22 + $0x1d0] sm:$0xf]  ;;  %v12401_v33 = vld [vmem:[%s13472_s22 + $0x1d4] sm:$0xf0]  ;;  %6500 = vmatpush.bf16.msra.mxu1 %v8355_v18  ;;  %v8411_v35 = vor.u32 %v12385_v31, %v8410_v29  ;;  %v8338_v38 = vld [vmem:[%s13472_s22 + $0xc0] sm:$0xf]  ;;  %v8275_v45 = vor.u32 %v12351_v37, %v8274_v36 }
  0x21   : > { %6513 = vmatpush.bf16.msra.mxu2 %v8419_v22  ;;  %v8475_v39 = vor.u32 %v12401_v33, %v8474_v32  ;;  %v12367_v40 = vld [vmem:[%s13472_s22 + $0xc4] sm:$0xf0]  ;;  %v8402_v41 = vld [vmem:[%s13472_s22 + $0x140] sm:$0xf]  ;;  %v8266_v48 = vld [vmem:[%s13472_s22 + $0x30] sm:$0xf] }
  0x22   : > { %6526 = vmatpush.bf16.msra.mxu3 %v8483_v26  ;;  %v12383_v42 = vld [vmem:[%s13472_s22 + $0x144] sm:$0xf0]  ;;  %v8466_v43 = vld [vmem:[%s13472_s22 + $0x1c0] sm:$0xf]  ;;  %v8339_v46 = vor.u32 %v12367_v40, %v8338_v38  ;;  %v12349_v49 = vld [vmem:[%s13472_s22 + $0x34] sm:$0xf0] }
  0x23   : > { %v12399_v44 = vld [vmem:[%s13472_s22 + $0x1c4] sm:$0xf0]  ;;  %6488 = vmatpush.bf16.msra.mxu0 %v8283_v30  ;;  %v8403_v47 = vor.u32 %v12383_v42, %v8402_v41  ;;  %v8330_v50 = vld [vmem:[%s13472_s22 + $0xb0] sm:$0xf]  ;;  %v12365_v52 = vld [vmem:[%s13472_s22 + $0xb4] sm:$0xf0]  ;;  %v8267_v57 = vor.u32 %v12349_v49, %v8266_v48 }
  0x24   : > { %6501 = vmatpush.bf16.msra.mxu1 %v8347_v34  ;;  %v8467_v51 = vor.u32 %v12399_v44, %v8466_v43  ;;  %v8394_v53 = vld [vmem:[%s13472_s22 + $0x130] sm:$0xf]  ;;  %v12381_v54 = vld [vmem:[%s13472_s22 + $0x134] sm:$0xf0]  ;;  %v8331_v58 = vor.u32 %v12365_v52, %v8330_v50  ;;  %v8258_v60 = vld [vmem:[%s13472_s22 + $0x20] sm:$0xf] }
  0x25   : > { %6514 = vmatpush.bf16.msra.mxu2 %v8411_v35  ;;  %v8458_v55 = vld [vmem:[%s13472_s22 + $0x1b0] sm:$0xf]  ;;  %v12397_v56 = vld [vmem:[%s13472_s22 + $0x1b4] sm:$0xf0]  ;;  %v8395_v59 = vor.u32 %v12381_v54, %v8394_v53  ;;  %v12347_v61 = vld [vmem:[%s13472_s22 + $0x24] sm:$0xf0] }
  0x26   : > { %6527 = vmatpush.bf16.msra.mxu3 %v8475_v39  ;;  %v8322_v62 = vld [vmem:[%s13472_s22 + $0xa0] sm:$0xf]  ;;  %v8459_v63 = vor.u32 %v12397_v56, %v8458_v55  ;;  %v12363_v0 = vld [vmem:[%s13472_s22 + $0xa4] sm:$0xf0]  ;;  %v8259_v5 = vor.u32 %v12347_v61, %v8258_v60  ;;  %v8250_v8 = vld [vmem:[%s13472_s22 + $0x10] sm:$0xf] }
  0x27   : > { %6489 = vmatpush.bf16.msra.mxu0 %v8275_v45  ;;  %v8386_v1 = vld [vmem:[%s13472_s22 + $0x120] sm:$0xf]  ;;  %v12379_v2 = vld [vmem:[%s13472_s22 + $0x124] sm:$0xf0]  ;;  %v8323_v6 = vor.u32 %v12363_v0, %v8322_v62  ;;  %v12345_v9 = vld [vmem:[%s13472_s22 + $0x14] sm:$0xf0] }
  0x28   : > { %6502 = vmatpush.bf16.msra.mxu1 %v8339_v46  ;;  %v8450_v3 = vld [vmem:[%s13472_s22 + $0x1a0] sm:$0xf]  ;;  %v12395_v4 = vld [vmem:[%s13472_s22 + $0x1a4] sm:$0xf0]  ;;  %v8387_v7 = vor.u32 %v12379_v2, %v8386_v1  ;;  %v8314_v10 = vld [vmem:[%s13472_s22 + $0x90] sm:$0xf]  ;;  %v8251_v17 = vor.u32 %v12345_v9, %v8250_v8 }
  0x29   : > { %6515 = vmatpush.bf16.msra.mxu2 %v8403_v47  ;;  %v8451_v11 = vor.u32 %v12395_v4, %v8450_v3  ;;  %v12361_v12 = vld [vmem:[%s13472_s22 + $0x94] sm:$0xf0]  ;;  %v8378_v13 = vld [vmem:[%s13472_s22 + $0x110] sm:$0xf]  ;;  %v8242_v18 = vld [vmem:[%s13472_s22] sm:$0xf] }
  0x2a   : > { %6528 = vmatpush.bf16.msra.mxu3 %v8467_v51  ;;  %v12377_v14 = vld [vmem:[%s13472_s22 + $0x114] sm:$0xf0]  ;;  %v8442_v15 = vld [vmem:[%s13472_s22 + $0x190] sm:$0xf]  ;;  %v12343_v19 = vld [vmem:[%s13472_s22 + $0x4] sm:$0xf0]  ;;  %v8315_v20 = vor.u32 %v12361_v12, %v8314_v10 }
  0x2b   : > { %6490 = vmatpush.bf16.msra.mxu0 %v8267_v57  ;;  %v12393_v16 = vld [vmem:[%s13472_s22 + $0x194] sm:$0xf0]  ;;  %v8379_v21 = vor.u32 %v12377_v14, %v8378_v13  ;;  %v8306_v22 = vld [vmem:[%s13472_s22 + $0x80] sm:$0xf]  ;;  %v12359_v23 = vld [vmem:[%s13472_s22 + $0x84] sm:$0xf0]  ;;  %v8243_v32 = vor.u32 %v12343_v19, %v8242_v18 }
  0x2c   : > { %6503 = vmatpush.bf16.msra.mxu1 %v8331_v58  ;;  %v8370_v24 = vld [vmem:[%s13472_s22 + $0x100] sm:$0xf]  ;;  %v8443_v25 = vor.u32 %v12393_v16, %v8442_v15  ;;  %v12375_v26 = vld [vmem:[%s13472_s22 + $0x104] sm:$0xf0]  ;;  %v8554_v29 = vld [vmem:[%s13472_s22 + $0x270] sm:$0xf]  ;;  %v8307_v36 = vor.u32 %v12359_v23, %v8306_v22 }
  0x2d   : > { %6516 = vmatpush.bf16.msra.mxu2 %v8395_v59  ;;  %v8434_v27 = vld [vmem:[%s13472_s22 + $0x180] sm:$0xf]  ;;  %v12391_v28 = vld [vmem:[%s13472_s22 + $0x184] sm:$0xf0]  ;;  %v12421_v30 = vld [vmem:[%s13472_s22 + $0x274] sm:$0xf0]  ;;  %v8371_v37 = vor.u32 %v12375_v26, %v8370_v24 }
  0x2e   : > { %6529 = vmatpush.bf16.msra.mxu3 %v8459_v63  ;;  %v8618_v31 = vld [vmem:[%s13472_s22 + $0x2f0] sm:$0xf]  ;;  %v12437_v33 = vld [vmem:[%s13472_s22 + $0x2f4] sm:$0xf0]  ;;  %v8435_v40 = vor.u32 %v12391_v28, %v8434_v27  ;;  %v8555_v41 = vor.u32 %v12421_v30, %v8554_v29  ;;  %v8546_v44 = vld [vmem:[%s13472_s22 + $0x260] sm:$0xf] }
  0x2f   : > { %6491 = vmatpush.bf16.msra.mxu0 %v8259_v5  ;;  %v8682_v34 = vld [vmem:[%s13472_s22 + $0x370] sm:$0xf]  ;;  %v12453_v35 = vld [vmem:[%s13472_s22 + $0x374] sm:$0xf0]  ;;  %v8619_v42 = vor.u32 %v12437_v33, %v8618_v31  ;;  %v12419_v45 = vld [vmem:[%s13472_s22 + $0x264] sm:$0xf0] }
  0x30   : > { %6504 = vmatpush.bf16.msra.mxu1 %v8323_v6  ;;  %v8746_v38 = vld [vmem:[%s13472_s22 + $0x3f0] sm:$0xf]  ;;  %v12469_v39 = vld [vmem:[%s13472_s22 + $0x3f4] sm:$0xf0]  ;;  %v8683_v43 = vor.u32 %v12453_v35, %v8682_v34  ;;  %v8610_v46 = vld [vmem:[%s13472_s22 + $0x2e0] sm:$0xf]  ;;  %v8547_v53 = vor.u32 %v12419_v45, %v8546_v44 }
  0x31   : > { %6517 = vmatpush.bf16.msra.mxu2 %v8387_v7  ;;  %v8747_v47 = vor.u32 %v12469_v39, %v8746_v38  ;;  %v12435_v48 = vld [vmem:[%s13472_s22 + $0x2e4] sm:$0xf0]  ;;  %v8674_v49 = vld [vmem:[%s13472_s22 + $0x360] sm:$0xf]  ;;  %v8538_v54 = vld [vmem:[%s13472_s22 + $0x250] sm:$0xf] }
  0x32   : > { %6530 = vmatpush.bf16.msra.mxu3 %v8451_v11  ;;  %v12451_v50 = vld [vmem:[%s13472_s22 + $0x364] sm:$0xf0]  ;;  %v8738_v51 = vld [vmem:[%s13472_s22 + $0x3e0] sm:$0xf]  ;;  %v12417_v55 = vld [vmem:[%s13472_s22 + $0x254] sm:$0xf0]  ;;  %v8611_v56 = vor.u32 %v12435_v48, %v8610_v46 }
  0x33   : > { %6492 = vmatpush.bf16.msra.mxu0 %v8251_v17  ;;  %v12467_v52 = vld [vmem:[%s13472_s22 + $0x3e4] sm:$0xf0]  ;;  %v8675_v57 = vor.u32 %v12451_v50, %v8674_v49  ;;  %v8602_v58 = vld [vmem:[%s13472_s22 + $0x2d0] sm:$0xf]  ;;  %v12433_v59 = vld [vmem:[%s13472_s22 + $0x2d4] sm:$0xf0]  ;;  %v8539_v2 = vor.u32 %v12417_v55, %v8538_v54 }
  0x34   : > { %6505 = vmatpush.bf16.msra.mxu1 %v8315_v20  ;;  %v190_v60 = vld [vmem:[%s13467_s18] sm:$0xff]  ;;  %v8739_v61 = vor.u32 %v12467_v52, %v8738_v51  ;;  %v8666_v62 = vld [vmem:[%s13472_s22 + $0x350] sm:$0xf]  ;;  %v12449_v63 = vld [vmem:[%s13472_s22 + $0x354] sm:$0xf0]  ;;  %v8603_v3 = vor.u32 %v12433_v59, %v8602_v58  ;;  %vm8153_vm3 = vcmask 1041408  }
  0x35   : > { %6518 = vmatpush.bf16.msra.mxu2 %v8379_v21  ;;  %1223 = vst [vmem:[#allocation1] ss:$9 sm:$0xff] %v190_v60  ;;  %v8730_v0 = vld [vmem:[%s13472_s22 + $0x3d0] sm:$0xf]  ;;  %v12465_v1 = vld [vmem:[%s13472_s22 + $0x3d4] sm:$0xf0]  ;;  %v8667_v4 = vor.u32 %v12449_v63, %v8666_v62 }
  0x36   : > { %6531 = vmatpush.bf16.msra.mxu3 %v8443_v25  ;;  %v8530_v5 = vld [vmem:[%s13472_s22 + $0x240] sm:$0xf]  ;;  %v12415_v6 = vld [vmem:[%s13472_s22 + $0x244] sm:$0xf0]  ;;  %v8731_v8 = vor.u32 %v12465_v1, %v8730_v0  ;;  %v8522_v14 = vld [vmem:[%s13472_s22 + $0x230] sm:$0xf] }
  0x37   : > { %6493 = vmatpush.bf16.msra.mxu0 %v8243_v32  ;;  %v8594_v7 = vld [vmem:[%s13472_s22 + $0x2c0] sm:$0xf]  ;;  %v12431_v9 = vld [vmem:[%s13472_s22 + $0x2c4] sm:$0xf0]  ;;  %v8531_v15 = vor.u32 %v12415_v6, %v8530_v5  ;;  %v12413_v16 = vld [vmem:[%s13472_s22 + $0x234] sm:$0xf0] }
  0x38   : > { %6506 = vmatpush.bf16.msra.mxu1 %v8307_v36  ;;  %v8658_v10 = vld [vmem:[%s13472_s22 + $0x340] sm:$0xf]  ;;  %v12447_v11 = vld [vmem:[%s13472_s22 + $0x344] sm:$0xf0]  ;;  %v8586_v17 = vld [vmem:[%s13472_s22 + $0x2b0] sm:$0xf]  ;;  %v8595_v19 = vor.u32 %v12431_v9, %v8594_v7  ;;  %v8523_v30 = vor.u32 %v12413_v16, %v8522_v14 }
  0x39   : > { %6519 = vmatpush.bf16.msra.mxu2 %v8371_v37  ;;  %v8722_v12 = vld [vmem:[%s13472_s22 + $0x3c0] sm:$0xf]  ;;  %v12463_v13 = vld [vmem:[%s13472_s22 + $0x3c4] sm:$0xf0]  ;;  %v12429_v18 = vld [vmem:[%s13472_s22 + $0x2b4] sm:$0xf0]  ;;  %v8659_v20 = vor.u32 %v12447_v11, %v8658_v10 }
  0x3a   : > { %6532 = vmatpush.bf16.msra.mxu3 %v8435_v40  ;;  %v8723_v24 = vor.u32 %v12463_v13, %v8722_v12  ;;  %v8650_v25 = vld [vmem:[%s13472_s22 + $0x330] sm:$0xf]  ;;  %v12445_v26 = vld [vmem:[%s13472_s22 + $0x334] sm:$0xf0]  ;;  %v8587_v31 = vor.u32 %v12429_v18, %v8586_v17  ;;  %v8514_v33 = vld [vmem:[%s13472_s22 + $0x220] sm:$0xf] }
  0x3b   : > { %6538 = vmatpush.bf16.msrb.mxu0 %v8555_v41  ;;  %v8714_v28 = vld [vmem:[%s13472_s22 + $0x3b0] sm:$0xf]  ;;  %v12461_v29 = vld [vmem:[%s13472_s22 + $0x3b4] sm:$0xf0]  ;;  %v8651_v32 = vor.u32 %v12445_v26, %v8650_v25  ;;  %v12411_v34 = vld [vmem:[%s13472_s22 + $0x224] sm:$0xf0] }
  0x3c   : > { %6551 = vmatpush.bf16.msrb.mxu1 %v8619_v42  ;;  %v13576_v21 = vld [vmem:[#allocation1 + $0x12] sm:$0xff]  ;;  %v13578_v22 = vld [vmem:[#allocation1] sm:$0xff]  ;;  %v13585_v27 = vld [vmem:[#allocation1 + $0x9] sm:$0xff]  ;;  %v8715_v36 = vor.u32 %v12461_v29, %v8714_v28  ;;  %v8515_v42 = vor.u32 %v12411_v34, %v8514_v33  ;;  %vm8157_vm4 = vcmask 584706   ;;  %p12336_p6 = scmp.ne.s32.totalorder %s13458_s13, 1 }
  0x3d   : > { %6564 = vmatpush.bf16.msrb.mxu2 %v8683_v43  ;;  %v13580_v23 = vld [vmem:[#allocation1 + $0x1b] sm:$0xff]  ;;  %6494 = vmatmul.bf16.vlgmr.msra.gmra.mxu0 %v13578_v22  ;;  %v12427_v37 = vld [vmem:[%s13472_s22 + $0x2a4] sm:$0xf0]  ;;  %v8506_v43 = vld [vmem:[%s13472_s22 + $0x210] sm:$0xf] }
  0x3e   : > { %6577 = vmatpush.bf16.msrb.mxu3 %v8747_v47  ;;  %6520 = vmatmul.bf16.vlgmr.msra.gmra.mxu2 %v13576_v21  ;;  %v8578_v35 = vld [vmem:[%s13472_s22 + $0x2a0] sm:$0xf]  ;;  %v12443_v39 = vld [vmem:[%s13472_s22 + $0x324] sm:$0xf0]  ;;  %v12409_v46 = vld [vmem:[%s13472_s22 + $0x214] sm:$0xf0] }
  0x3f   : > { %6539 = vmatpush.bf16.msrb.mxu0 %v8547_v53  ;;  %6533 = vmatmul.bf16.vlgmr.msra.gmra.mxu3 %v13580_v23  ;;  %v8642_v38 = vld [vmem:[%s13472_s22 + $0x320] sm:$0xf]  ;;  %v12459_v41 = vld [vmem:[%s13472_s22 + $0x3a4] sm:$0xf0]  ;;  %v8579_v44 = vor.u32 %v12427_v37, %v8578_v35  ;;  %v8570_v47 = vld [vmem:[%s13472_s22 + $0x290] sm:$0xf] }
  0x40   : > { %6552 = vmatpush.bf16.msrb.mxu1 %v8611_v56  ;;  %v8706_v40 = vld [vmem:[%s13472_s22 + $0x3a0] sm:$0xf]  ;;  %v8643_v45 = vor.u32 %v12443_v39, %v8642_v38  ;;  %v12425_v48 = vld [vmem:[%s13472_s22 + $0x294] sm:$0xf0]  ;;  %v8634_v50 = vld [vmem:[%s13472_s22 + $0x310] sm:$0xf]  ;;  %v8507_v56 = vor.u32 %v12409_v46, %v8506_v43 }
  0x41   : > { %6565 = vmatpush.bf16.msrb.mxu2 %v8675_v57  ;;  %6507 = vmatmul.bf16.vlgmr.msra.gmra.mxu1 %v13585_v27  ;;  %v8707_v49 = vor.u32 %v12459_v41, %v8706_v40  ;;  %v12441_v51 = vld [vmem:[%s13472_s22 + $0x314] sm:$0xf0]  ;;  %v8698_v52 = vld [vmem:[%s13472_s22 + $0x390] sm:$0xf]  ;;  %v8498_v54 = vld [vmem:[%s13472_s22 + $0x200] sm:$0xf]  ;;  %v8571_v63 = vor.u32 %v12425_v48, %v8570_v47 }
  0x42   : > { %6578 = vmatpush.bf16.msrb.mxu3 %v8739_v61  ;;  %v12457_v53 = vld [vmem:[%s13472_s22 + $0x394] sm:$0xf0]  ;;  %v12407_v55 = vld [vmem:[%s13472_s22 + $0x204] sm:$0xf0]  ;;  %v8562_v57 = vld [vmem:[%s13472_s22 + $0x280] sm:$0xf]  ;;  %v8635_v0 = vor.u32 %v12441_v51, %v8634_v50 }
  0x43   : > { %6540 = vmatpush.bf16.msrb.mxu0 %v8539_v2  ;;  %v12423_v58 = vld [vmem:[%s13472_s22 + $0x284] sm:$0xf0]  ;;  %v8626_v59 = vld [vmem:[%s13472_s22 + $0x300] sm:$0xf]  ;;  %v13614_v61 = vld [vmem:[#allocation1 + $0x36] sm:$0xff]  ;;  %v8499_v10 = vor.u32 %v12407_v55, %v8498_v54 }
  0x44   : > { %6553 = vmatpush.bf16.msrb.mxu1 %v8603_v3  ;;  %v12439_v60 = vld [vmem:[%s13472_s22 + $0x304] sm:$0xf0]  ;;  %v13619_v2 = vld [vmem:[#allocation1 + $0x3f] sm:$0xff]  ;;  %v13621_v3 = vld [vmem:[#allocation1 + $0x2d] sm:$0xff]  ;;  %v8563_v14 = vor.u32 %v12423_v58, %v8562_v57 }
  0x45   : > { %6566 = vmatpush.bf16.msrb.mxu2 %v8667_v4  ;;  %v191_v62 = vld [vmem:[%s13467_s18 + $0x8] sm:$0xff]  ;;  %v8699_v4 = vor.u32 %v12457_v53, %v8698_v52  ;;  %v8690_v5 = vld [vmem:[%s13472_s22 + $0x380] sm:$0xf]  ;;  %v8810_v7 = vld [vmem:[%s13472_s22 + $0x470] sm:$0xf] }
  0x46   : > { %6579 = vmatpush.bf16.msrb.mxu3 %v8731_v8  ;;  %v13617_v1 = vld [vmem:[#allocation1 + $0x24] sm:$0xff]  ;;  %v12485_v8 = vld [vmem:[%s13472_s22 + $0x474] sm:$0xf0]  ;;  %v8874_v9 = vld [vmem:[%s13472_s22 + $0x4f0] sm:$0xf] }
  0x47   : > { %6541 = vmatpush.bf16.msrb.mxu0 %v8531_v15  ;;  %v12455_v6 = vld [vmem:[%s13472_s22 + $0x384] sm:$0xf0]  ;;  %1233 = vst [vmem:[#allocation1] ss:$9 sm:$0xff] %v191_v62  ;;  %v12501_v11 = vld [vmem:[%s13472_s22 + $0x4f4] sm:$0xf0]  ;;  %v8627_v15 = vor.u32 %v12439_v60, %v8626_v59  ;;  %vm8158_vm5 = vmor %vm8157_vm4, %vm8153_vm3 }
  0x48   : > { %6554 = vmatpush.bf16.msrb.mxu1 %v8595_v19  ;;  %v8938_v12 = vld [vmem:[%s13472_s22 + $0x570] sm:$0xf]  ;;  %v12517_v13 = vld [vmem:[%s13472_s22 + $0x574] sm:$0xf0]  ;;  %v8691_v18 = vor.u32 %v12455_v6, %v8690_v5  ;;  %v8811_v19 = vor.u32 %v12485_v8, %v8810_v7  ;;  %v8802_v25 = vld [vmem:[%s13472_s22 + $0x460] sm:$0xf] }
  0x49   : > { %6567 = vmatpush.bf16.msrb.mxu2 %v8659_v20  ;;  %v9002_v16 = vld [vmem:[%s13472_s22 + $0x5f0] sm:$0xf]  ;;  %v12533_v17 = vld [vmem:[%s13472_s22 + $0x5f4] sm:$0xf0]  ;;  %v8875_v20 = vor.u32 %v12501_v11, %v8874_v9  ;;  %v12483_v26 = vld [vmem:[%s13472_s22 + $0x464] sm:$0xf0] }
  0x4a   : > { %6580 = vmatpush.bf16.msrb.mxu3 %v8723_v24  ;;  %v8939_v24 = vor.u32 %v12517_v13, %v8938_v12  ;;  %v8866_v28 = vld [vmem:[%s13472_s22 + $0x4e0] sm:$0xf]  ;;  %v9003_v29 = vor.u32 %v12533_v17, %v9002_v16  ;;  %v12531_v34 = vld [vmem:[%s13472_s22 + $0x5e4] sm:$0xf0]  ;;  %v8803_v35 = vor.u32 %v12483_v26, %v8802_v25  ;;  %v8794_v38 = vld [vmem:[%s13472_s22 + $0x450] sm:$0xf] }
  0x4b   : > { %6542 = vmatpush.bf16.msrb.mxu0 %v8523_v30  ;;  %v12499_v30 = vld [vmem:[%s13472_s22 + $0x4e4] sm:$0xf0]  ;;  %v8994_v33 = vld [vmem:[%s13472_s22 + $0x5e0] sm:$0xf]  ;;  %v12481_v39 = vld [vmem:[%s13472_s22 + $0x454] sm:$0xf0] }
  0x4c   : > { %6555 = vmatpush.bf16.msrb.mxu1 %v8587_v31  ;;  %v8930_v31 = vld [vmem:[%s13472_s22 + $0x560] sm:$0xf]  ;;  %v8858_v40 = vld [vmem:[%s13472_s22 + $0x4d0] sm:$0xf]  ;;  %v8995_v41 = vor.u32 %v12531_v34, %v8994_v33  ;;  %v12529_v46 = vld [vmem:[%s13472_s22 + $0x5d4] sm:$0xf0]  ;;  %v8795_v47 = vor.u32 %v12481_v39, %v8794_v38 }
  0x4d   : > { %6568 = vmatpush.bf16.msrb.mxu2 %v8651_v32  ;;  %v12515_v32 = vld [vmem:[%s13472_s22 + $0x564] sm:$0xf0]  ;;  %v8922_v43 = vld [vmem:[%s13472_s22 + $0x550] sm:$0xf]  ;;  %v8786_v50 = vld [vmem:[%s13472_s22 + $0x440] sm:$0xf] }
  0x4e   : > { %6581 = vmatpush.bf16.msrb.mxu3 %v8715_v36  ;;  %v8867_v36 = vor.u32 %v12499_v30, %v8866_v28  ;;  %v8931_v37 = vor.u32 %v12515_v32, %v8930_v31  ;;  %v12479_v51 = vld [vmem:[%s13472_s22 + $0x444] sm:$0xf0]  ;;  %v8850_v52 = vld [vmem:[%s13472_s22 + $0x4c0] sm:$0xf]  ;;  %v12493_v6 = vld [vmem:[%s13472_s22 + $0x4b4] sm:$0xf0] }
  0x4f   : > { %6543 = vmatpush.bf16.msrb.mxu0 %v8515_v42  ;;  %v12497_v42 = vld [vmem:[%s13472_s22 + $0x4d4] sm:$0xf0]  ;;  %v12495_v54 = vld [vmem:[%s13472_s22 + $0x4c4] sm:$0xf0]  ;;  %v8914_v55 = vld [vmem:[%s13472_s22 + $0x540] sm:$0xf]  ;;  %v8787_v59 = vor.u32 %v12479_v51, %v8786_v50 }
  0x50   : > { %6556 = vmatpush.bf16.msrb.mxu1 %v8579_v44  ;;  %v12513_v44 = vld [vmem:[%s13472_s22 + $0x554] sm:$0xf0]  ;;  %v8859_v48 = vor.u32 %v12497_v42, %v8858_v40  ;;  %v8978_v57 = vld [vmem:[%s13472_s22 + $0x5c0] sm:$0xf]  ;;  %v12527_v58 = vld [vmem:[%s13472_s22 + $0x5c4] sm:$0xf0]  ;;  %v8851_v60 = vor.u32 %v12495_v54, %v8850_v52 }
  0x51   : > { %6569 = vmatpush.bf16.msrb.mxu2 %v8643_v45  ;;  %v8986_v45 = vld [vmem:[%s13472_s22 + $0x5d0] sm:$0xf]  ;;  %v8979_v5 = vor.u32 %v12527_v58, %v8978_v57  ;;  %v12509_v8 = vld [vmem:[%s13472_s22 + $0x534] sm:$0xf0]  ;;  %v8834_v16 = vld [vmem:[%s13472_s22 + $0x4a0] sm:$0xf] }
  0x52   : > { %6582 = vmatpush.bf16.msrb.mxu3 %v8707_v49  ;;  %v8923_v49 = vor.u32 %v12513_v44, %v8922_v43  ;;  %v8987_v53 = vor.u32 %v12529_v46, %v8986_v45  ;;  %v8906_v7 = vld [vmem:[%s13472_s22 + $0x530] sm:$0xf]  ;;  %v12523_v25 = vld [vmem:[%s13472_s22 + $0x5a4] sm:$0xf0]  ;;  %v12473_v31 = vld [vmem:[%s13472_s22 + $0x414] sm:$0xf0] }
  0x53   : > { %6544 = vmatpush.bf16.msrb.mxu0 %v8507_v56  ;;  %v12511_v56 = vld [vmem:[%s13472_s22 + $0x544] sm:$0xf0]  ;;  %v8970_v9 = vld [vmem:[%s13472_s22 + $0x5b0] sm:$0xf]  ;;  %v8907_v13 = vor.u32 %v12509_v8, %v8906_v7  ;;  %v12489_v34 = vld [vmem:[%s13472_s22 + $0x494] sm:$0xf0] }
  0x54   : > { %6557 = vmatpush.bf16.msrb.mxu1 %v8571_v63  ;;  %v8915_v62 = vor.u32 %v12511_v56, %v8914_v55  ;;  %v8778_v63 = vld [vmem:[%s13472_s22 + $0x430] sm:$0xf]  ;;  %v12521_v38 = vld [vmem:[%s13472_s22 + $0x594] sm:$0xf0]  ;;  %v8754_v40 = vld [vmem:[%s13472_s22 + $0x400] sm:$0xf] }
  0x55   : > { %6570 = vmatpush.bf16.msrb.mxu2 %v8635_v0  ;;  %v12477_v0 = vld [vmem:[%s13472_s22 + $0x434] sm:$0xf0]  ;;  %v8762_v30 = vld [vmem:[%s13472_s22 + $0x410] sm:$0xf]  ;;  %v8818_v44 = vld [vmem:[%s13472_s22 + $0x480] sm:$0xf] }
  0x56   : > { %6583 = vmatpush.bf16.msrb.mxu3 %v8699_v4  ;;  %v8842_v4 = vld [vmem:[%s13472_s22 + $0x4b0] sm:$0xf]  ;;  %v8779_v11 = vor.u32 %v12477_v0, %v8778_v63  ;;  %v8763_v39 = vor.u32 %v12473_v31, %v8762_v30  ;;  %v12487_v45 = vld [vmem:[%s13472_s22 + $0x484] sm:$0xf0]  ;;  %v8882_v46 = vld [vmem:[%s13472_s22 + $0x500] sm:$0xf] }
  0x57   : > { %6545 = vmatpush.bf16.msrb.mxu0 %v8499_v10  ;;  %v12525_v10 = vld [vmem:[%s13472_s22 + $0x5b4] sm:$0xf0]  ;;  %v8843_v12 = vor.u32 %v12493_v6, %v8842_v4  ;;  %v8826_v32 = vld [vmem:[%s13472_s22 + $0x490] sm:$0xf]  ;;  %v12519_v50 = vld [vmem:[%s13472_s22 + $0x584] sm:$0xf0]  ;;  %v8819_v58 = vor.u32 %v12487_v45, %v8818_v44 }
  0x58   : > { %6558 = vmatpush.bf16.msrb.mxu1 %v8563_v14  ;;  %v8770_v14 = vld [vmem:[%s13472_s22 + $0x420] sm:$0xf]  ;;  %v8971_v17 = vor.u32 %v12525_v10, %v8970_v9  ;;  %v8827_v42 = vor.u32 %v12489_v34, %v8826_v32  ;;  %v9066_v51 = vld [vmem:[%s13472_s22 + $0x670] sm:$0xf]  ;;  %v12549_v52 = vld [vmem:[%s13472_s22 + $0x674] sm:$0xf0] }
  0x59   : > { %6571 = vmatpush.bf16.msrb.mxu2 %v8627_v15  ;;  %v12475_v15 = vld [vmem:[%s13472_s22 + $0x424] sm:$0xf0]  ;;  %v12565_v55 = vld [vmem:[%s13472_s22 + $0x6f4] sm:$0xf0]  ;;  %v9194_v56 = vld [vmem:[%s13472_s22 + $0x770] sm:$0xf]  ;;  %v9067_v0 = vor.u32 %v12549_v52, %v9066_v51 }
  0x5a   : > { %6584 = vmatpush.bf16.msrb.mxu3 %v8691_v18  ;;  %6546 = vmatmul.bf16.vlgmr.msrb.gmra.mxu0 %v13617_v1  ;;  %v12491_v18 = vld [vmem:[%s13472_s22 + $0x4a4] sm:$0xf0]  ;;  %v8771_v26 = vor.u32 %v12475_v15, %v8770_v14  ;;  %v12581_v57 = vld [vmem:[%s13472_s22 + $0x774] sm:$0xf0]  ;;  %v9058_v6 = vld [vmem:[%s13472_s22 + $0x660] sm:$0xf] }
  0x5b   : > { %6590 = vmatpush.bf16.msra.mxu0 %v8811_v19  ;;  %6559 = vmatmul.bf16.vlgmr.msrb.gmra.mxu1 %v13621_v3  ;;  %v8898_v19 = vld [vmem:[%s13472_s22 + $0x520] sm:$0xf]  ;;  %v8835_v28 = vor.u32 %v12491_v18, %v8834_v16  ;;  %v12547_v7 = vld [vmem:[%s13472_s22 + $0x664] sm:$0xf0]  ;;  %v13711_v16 = vld [vmem:[#allocation1 + $0x12] sm:$0xff] }
  0x5c   : > { %6603 = vmatpush.bf16.msra.mxu1 %v8875_v20  ;;  %6572 = vmatmul.bf16.vlgmr.msrb.gmra.mxu2 %v13614_v61  ;;  %v12507_v20 = vld [vmem:[%s13472_s22 + $0x524] sm:$0xf0]  ;;  %v9122_v8 = vld [vmem:[%s13472_s22 + $0x6e0] sm:$0xf]  ;;  %v12561_v30 = vld [vmem:[%s13472_s22 + $0x6d4] sm:$0xf0] }
  0x5d   : > { %6616 = vmatpush.bf16.msra.mxu2 %v8939_v24  ;;  %6585 = vmatmul.bf16.vlgmr.msrb.gmra.mxu3 %v13619_v2  ;;  %v8962_v24 = vld [vmem:[%s13472_s22 + $0x5a0] sm:$0xf]  ;;  %v12563_v10 = vld [vmem:[%s13472_s22 + $0x6e4] sm:$0xf0]  ;;  %v9178_v31 = vld [vmem:[%s13472_s22 + $0x750] sm:$0xf] }
  0x5e   : > { %6629 = vmatpush.bf16.msra.mxu3 %v9003_v29  ;;  %v8899_v29 = vor.u32 %v12507_v20, %v8898_v19  ;;  %v8963_v33 = vor.u32 %v12523_v25, %v8962_v24  ;;  %v9250_v14 = vld [vmem:[%s13472_s22 + $0x7e0] sm:$0xf]  ;;  %v12595_v15 = vld [vmem:[%s13472_s22 + $0x7e4] sm:$0xf0]  ;;  %v9059_v19 = vor.u32 %v12547_v7, %v9058_v6  ;;  %v9123_v20 = vor.u32 %v12563_v10, %v9122_v8  ;;  %v9050_v25 = vld [vmem:[%s13472_s22 + $0x650] sm:$0xf] }
  0x5f   : > { %6591 = vmatpush.bf16.msra.mxu0 %v8803_v35  ;;  %v8890_v35 = vld [vmem:[%s13472_s22 + $0x510] sm:$0xf]  ;;  %v13715_v18 = vld [vmem:[#allocation1 + $0x1b] sm:$0xff]  ;;  %v12575_v44 = vld [vmem:[%s13472_s22 + $0x744] sm:$0xf0] }
  0x60   : > { %6604 = vmatpush.bf16.msra.mxu1 %v8867_v36  ;;  %v12505_v36 = vld [vmem:[%s13472_s22 + $0x514] sm:$0xf0]  ;;  %v9234_v45 = vld [vmem:[%s13472_s22 + $0x7c0] sm:$0xf]  ;;  %v9098_v52 = vld [vmem:[%s13472_s22 + $0x6b0] sm:$0xf] }
  0x61   : > { %6617 = vmatpush.bf16.msra.mxu2 %v8931_v37  ;;  %v8954_v37 = vld [vmem:[%s13472_s22 + $0x590] sm:$0xf]  ;;  %v8891_v43 = vor.u32 %v12505_v36, %v8890_v35  ;;  %v12577_v32 = vld [vmem:[%s13472_s22 + $0x754] sm:$0xf0]  ;;  %v12555_v6 = vld [vmem:[%s13472_s22 + $0x6a4] sm:$0xf0] }
  0x62   : > { %6630 = vmatpush.bf16.msra.mxu3 %v8995_v41  ;;  %v12471_v41 = vld [vmem:[%s13472_s22 + $0x404] sm:$0xf0]  ;;  %v12593_v34 = vld [vmem:[%s13472_s22 + $0x7d4] sm:$0xf0]  ;;  %v9154_v7 = vld [vmem:[%s13472_s22 + $0x720] sm:$0xf] }
  0x63   : > { %6592 = vmatpush.bf16.msra.mxu0 %v8795_v47  ;;  %v8955_v47 = vor.u32 %v12521_v38, %v8954_v37  ;;  %v8755_v54 = vor.u32 %v12471_v41, %v8754_v40  ;;  %v9179_v37 = vor.u32 %v12577_v32, %v9178_v31  ;;  %v9042_v38 = vld [vmem:[%s13472_s22 + $0x640] sm:$0xf]  ;;  %v12541_v51 = vld [vmem:[%s13472_s22 + $0x634] sm:$0xf0]  ;;  %v12571_v8 = vld [vmem:[%s13472_s22 + $0x724] sm:$0xf0] }
  0x64   : > { %6605 = vmatpush.bf16.msra.mxu1 %v8859_v48  ;;  %v12503_v48 = vld [vmem:[%s13472_s22 + $0x504] sm:$0xf0]  ;;  %v9106_v40 = vld [vmem:[%s13472_s22 + $0x6c0] sm:$0xf] }
  0x65   : > { %6618 = vmatpush.bf16.msra.mxu2 %v8923_v49  ;;  %v8946_v49 = vld [vmem:[%s13472_s22 + $0x580] sm:$0xf]  ;;  %v12587_v10 = vld [vmem:[%s13472_s22 + $0x7a4] sm:$0xf0] }
  0x66   : > { %6631 = vmatpush.bf16.msra.mxu3 %v8987_v53  ;;  %v9130_v53 = vld [vmem:[%s13472_s22 + $0x6f0] sm:$0xf]  ;;  %v8947_v63 = vor.u32 %v12519_v50, %v8946_v49  ;;  %v9010_v31 = vld [vmem:[%s13472_s22 + $0x600] sm:$0xf]  ;;  %v12535_v32 = vld [vmem:[%s13472_s22 + $0x604] sm:$0xf0] }
  0x67   : > { %6593 = vmatpush.bf16.msra.mxu0 %v8787_v59  ;;  %v8883_v59 = vor.u32 %v12503_v48, %v8882_v46  ;;  %v9131_v4 = vor.u32 %v12565_v55, %v9130_v53  ;;  %v12591_v46 = vld [vmem:[%s13472_s22 + $0x7c4] sm:$0xf0]  ;;  %v9034_v50 = vld [vmem:[%s13472_s22 + $0x630] sm:$0xf] }
  0x68   : > { %6606 = vmatpush.bf16.msra.mxu1 %v8851_v60  ;;  %v9258_v60 = vld [vmem:[%s13472_s22 + $0x7f0] sm:$0xf]  ;;  %v9235_v53 = vor.u32 %v12591_v46, %v9234_v45  ;;  %v12629_v46 = vld [vmem:[%s13472_s22 + $0x8f4] sm:$0xf0] }
  0x69   : > { %6619 = vmatpush.bf16.msra.mxu2 %v8915_v62  ;;  %v12597_v62 = vld [vmem:[%s13472_s22 + $0x7f4] sm:$0xf0]  ;;  %v9162_v55 = vld [vmem:[%s13472_s22 + $0x730] sm:$0xf] }
  0x6a   : > { %6632 = vmatpush.bf16.msra.mxu3 %v8979_v5  ;;  %v9195_v5 = vor.u32 %v12581_v57, %v9194_v56  ;;  %v9259_v9 = vor.u32 %v12597_v62, %v9258_v60  ;;  %v12573_v56 = vld [vmem:[%s13472_s22 + $0x734] sm:$0xf0]  ;;  %v9226_v57 = vld [vmem:[%s13472_s22 + $0x7b0] sm:$0xf] }
  0x6b   : > { %6594 = vmatpush.bf16.msra.mxu0 %v8779_v11  ;;  %v9186_v11 = vld [vmem:[%s13472_s22 + $0x760] sm:$0xf]  ;;  %v9163_v62 = vor.u32 %v12573_v56, %v9162_v55  ;;  %v9386_v45 = vld [vmem:[%s13472_s22 + $0x8f0] sm:$0xf] }
  0x6c   : > { %6607 = vmatpush.bf16.msra.mxu1 %v8843_v12  ;;  %v12579_v12 = vld [vmem:[%s13472_s22 + $0x764] sm:$0xf0] }
  0x6d   : > { %6620 = vmatpush.bf16.msra.mxu2 %v8907_v13  ;;  %v13707_v13 = vld [vmem:[#allocation1] sm:$0xff]  ;;  %v9187_v24 = vor.u32 %v12579_v12, %v9186_v11  ;;  %v9018_v12 = vld [vmem:[%s13472_s22 + $0x610] sm:$0xf] }
  0x6e   : > { %6633 = vmatpush.bf16.msra.mxu3 %v8971_v17  ;;  %v13713_v17 = vld [vmem:[#allocation1 + $0x9] sm:$0xff] }
  0x6f   : > { %6595 = vmatpush.bf16.msra.mxu0 %v8771_v26  ;;  %v12545_v26 = vld [vmem:[%s13472_s22 + $0x654] sm:$0xf0] }
  0x70   : > { %6608 = vmatpush.bf16.msra.mxu1 %v8835_v28  ;;  %v9114_v28 = vld [vmem:[%s13472_s22 + $0x6d0] sm:$0xf]  ;;  %v9051_v35 = vor.u32 %v12545_v26, %v9050_v25 }
  0x71   : > { %6621 = vmatpush.bf16.msra.mxu2 %v8899_v29  ;;  %v9251_v29 = vor.u32 %v12595_v15, %v9250_v14  ;;  %v9115_v36 = vor.u32 %v12561_v30, %v9114_v28  ;;  %v9155_v15 = vor.u32 %v12571_v8, %v9154_v7  ;;  %v9146_v26 = vld [vmem:[%s13472_s22 + $0x710] sm:$0xf]  ;;  %v12569_v28 = vld [vmem:[%s13472_s22 + $0x714] sm:$0xf0]  ;;  %v12627_v7 = vld [vmem:[%s13472_s22 + $0x8e4] sm:$0xf0] }
  0x72   : > { %6634 = vmatpush.bf16.msra.mxu3 %v8963_v33  ;;  %v9242_v33 = vld [vmem:[%s13472_s22 + $0x7d0] sm:$0xf]  ;;  %v12585_v30 = vld [vmem:[%s13472_s22 + $0x794] sm:$0xf0]  ;;  %v9442_v8 = vld [vmem:[%s13472_s22 + $0x960] sm:$0xf] }
  0x73   : > { %6596 = vmatpush.bf16.msra.mxu0 %v8763_v39  ;;  %v12543_v39 = vld [vmem:[%s13472_s22 + $0x644] sm:$0xf0]  ;;  %v9243_v41 = vor.u32 %v12593_v34, %v9242_v33  ;;  %v9074_v34 = vld [vmem:[%s13472_s22 + $0x680] sm:$0xf] }
  0x74   : > { %6609 = vmatpush.bf16.msra.mxu1 %v8827_v42  ;;  %v12559_v42 = vld [vmem:[%s13472_s22 + $0x6c4] sm:$0xf0] }
  0x75   : > { %6622 = vmatpush.bf16.msra.mxu2 %v8891_v43  ;;  %v9170_v43 = vld [vmem:[%s13472_s22 + $0x740] sm:$0xf]  ;;  %v9107_v48 = vor.u32 %v12559_v42, %v9106_v40  ;;  %v9322_v42 = vld [vmem:[%s13472_s22 + $0x870] sm:$0xf] }
  0x76   : > { %6635 = vmatpush.bf16.msra.mxu3 %v8955_v47  ;;  %v9043_v47 = vor.u32 %v12543_v39, %v9042_v38  ;;  %v9171_v49 = vor.u32 %v12575_v44, %v9170_v43  ;;  %v9147_v39 = vor.u32 %v12569_v28, %v9146_v26  ;;  %v9202_v40 = vld [vmem:[%s13472_s22 + $0x780] sm:$0xf]  ;;  %v12613_v43 = vld [vmem:[%s13472_s22 + $0x874] sm:$0xf0]  ;;  %v9434_v28 = vld [vmem:[%s13472_s22 + $0x950] sm:$0xf] }
  0x77   : > { %6597 = vmatpush.bf16.msra.mxu0 %v8755_v54  ;;  %v12557_v54 = vld [vmem:[%s13472_s22 + $0x6b4] sm:$0xf0] }
  0x78   : > { %6610 = vmatpush.bf16.msra.mxu1 %v8819_v58  ;;  %v12589_v58 = vld [vmem:[%s13472_s22 + $0x7b4] sm:$0xf0]  ;;  %v9099_v60 = vor.u32 %v12557_v54, %v9098_v52  ;;  %v9011_v52 = vor.u32 %v12535_v32, %v9010_v31 }
  0x79   : > { %6623 = vmatpush.bf16.msra.mxu2 %v8883_v59  ;;  %v9035_v59 = vor.u32 %v12541_v51, %v9034_v50  ;;  %v13779_v50 = vld [vmem:[#allocation1 + $0x3f] sm:$0xff]  ;;  %v192_v51 = vld [vmem:[%s13467_s18 + $0x10] sm:$0xff]  ;;  %v12645_v54 = vld [vmem:[%s13472_s22 + $0x974] sm:$0xf0] }
  0x7a   : > { %6636 = vmatpush.bf16.msra.mxu3 %v8947_v63  ;;  %6598 = vmatmul.bf16.vlgmr.msra.gmra.mxu0 %v13707_v13  ;;  %v9026_v63 = vld [vmem:[%s13472_s22 + $0x620] sm:$0xf]  ;;  %v12625_v26 = vld [vmem:[%s13472_s22 + $0x8d4] sm:$0xf0] }
  0x7b   : > { %6642 = vmatpush.bf16.msrb.mxu0 %v9067_v0  ;;  %6611 = vmatmul.bf16.vlgmr.msra.gmra.mxu1 %v13713_v17  ;;  %v12539_v0 = vld [vmem:[%s13472_s22 + $0x624] sm:$0xf0]  ;;  %v12657_v31 = vld [vmem:[%s13472_s22 + $0x9d4] sm:$0xf0] }
  0x7c   : > { %6655 = vmatpush.bf16.msrb.mxu1 %v9131_v4  ;;  %6624 = vmatmul.bf16.vlgmr.msra.gmra.mxu2 %v13711_v16  ;;  %v9090_v4 = vld [vmem:[%s13472_s22 + $0x6a0] sm:$0xf]  ;;  %v9027_v11 = vor.u32 %v12539_v0, %v9026_v63 }
  0x7d   : > { %6668 = vmatpush.bf16.msrb.mxu2 %v9195_v5  ;;  %6637 = vmatmul.bf16.vlgmr.msra.gmra.mxu3 %v13715_v18  ;;  %v9227_v5 = vor.u32 %v12589_v58, %v9226_v57  ;;  %v9091_v14 = vor.u32 %v12555_v6, %v9090_v4  ;;  %v9514_v57 = vld [vmem:[%s13472_s22 + $0x9f0] sm:$0xf]  ;;  %v12661_v58 = vld [vmem:[%s13472_s22 + $0x9f4] sm:$0xf0]  ;;  %v9314_v0 = vld [vmem:[%s13472_s22 + $0x860] sm:$0xf] }
  0x7e   : > { %6681 = vmatpush.bf16.msrb.mxu3 %v9259_v9  ;;  %v9218_v9 = vld [vmem:[%s13472_s22 + $0x7a0] sm:$0xf]  ;;  %v12611_v4 = vld [vmem:[%s13472_s22 + $0x864] sm:$0xf0]  ;;  %v9515_v6 = vor.u32 %v12661_v58, %v9514_v57  ;;  %v12637_v57 = vld [vmem:[%s13472_s22 + $0x934] sm:$0xf0] }
  0x7f   : > { %6643 = vmatpush.bf16.msrb.mxu0 %v9059_v19  ;;  %v12537_v19 = vld [vmem:[%s13472_s22 + $0x614] sm:$0xf0]  ;;  %v9219_v25 = vor.u32 %v12587_v10, %v9218_v9  ;;  %v12643_v9 = vld [vmem:[%s13472_s22 + $0x964] sm:$0xf0]  ;;  %v9506_v10 = vld [vmem:[%s13472_s22 + $0x9e0] sm:$0xf] }
  0x80   : > { %6656 = vmatpush.bf16.msrb.mxu1 %v9123_v20  ;;  %v9082_v20 = vld [vmem:[%s13472_s22 + $0x690] sm:$0xf]  ;;  %v9019_v33 = vor.u32 %v12537_v19, %v9018_v12  ;;  %v9315_v12 = vor.u32 %v12611_v4, %v9314_v0  ;;  %v9282_v0 = vld [vmem:[%s13472_s22 + $0x820] sm:$0xf]  ;;  %v12603_v4 = vld [vmem:[%s13472_s22 + $0x824] sm:$0xf0] }
  0x81   : > { %6669 = vmatpush.bf16.msrb.mxu2 %v9187_v24  ;;  %v12553_v24 = vld [vmem:[%s13472_s22 + $0x694] sm:$0xf0]  ;;  %v9306_v19 = vld [vmem:[%s13472_s22 + $0x850] sm:$0xf] }
  0x82   : > { %6682 = vmatpush.bf16.msrb.mxu3 %v9251_v29  ;;  %v9210_v29 = vld [vmem:[%s13472_s22 + $0x790] sm:$0xf]  ;;  %v9083_v38 = vor.u32 %v12553_v24, %v9082_v20  ;;  %v12609_v20 = vld [vmem:[%s13472_s22 + $0x854] sm:$0xf0] }
  0x83   : > { %6644 = vmatpush.bf16.msrb.mxu0 %v9051_v35  ;;  %v12551_v35 = vld [vmem:[%s13472_s22 + $0x684] sm:$0xf0]  ;;  %v9211_v44 = vor.u32 %v12585_v30, %v9210_v29  ;;  %v9370_v24 = vld [vmem:[%s13472_s22 + $0x8d0] sm:$0xf]  ;;  %v12641_v29 = vld [vmem:[%s13472_s22 + $0x954] sm:$0xf0]  ;;  %v9307_v32 = vor.u32 %v12609_v20, %v9306_v19 }
  0x84   : > { %6657 = vmatpush.bf16.msrb.mxu1 %v9115_v36  ;;  %v9138_v36 = vld [vmem:[%s13472_s22 + $0x700] sm:$0xf]  ;;  %v9075_v55 = vor.u32 %v12551_v35, %v9074_v34  ;;  %v9498_v30 = vld [vmem:[%s13472_s22 + $0x9d0] sm:$0xf]  ;;  %v9435_v34 = vor.u32 %v12641_v29, %v9434_v28  ;;  %v12601_v20 = vld [vmem:[%s13472_s22 + $0x814] sm:$0xf0] }
  0x85   : > { %6670 = vmatpush.bf16.msrb.mxu2 %v9179_v37  ;;  %v12567_v37 = vld [vmem:[%s13472_s22 + $0x704] sm:$0xf0]  ;;  %v9298_v35 = vld [vmem:[%s13472_s22 + $0x840] sm:$0xf]  ;;  %v9482_v58 = vld [vmem:[%s13472_s22 + $0x9b0] sm:$0xf] }
  0x86   : > { %6683 = vmatpush.bf16.msrb.mxu3 %v9243_v41  ;;  %v12583_v41 = vld [vmem:[%s13472_s22 + $0x784] sm:$0xf0]  ;;  %v9139_v56 = vor.u32 %v12567_v37, %v9138_v36  ;;  %v9362_v37 = vld [vmem:[%s13472_s22 + $0x8c0] sm:$0xf]  ;;  %v9274_v19 = vld [vmem:[%s13472_s22 + $0x810] sm:$0xf] }
  0x87   : > { %6645 = vmatpush.bf16.msrb.mxu0 %v9043_v47  ;;  %v13773_v47 = vld [vmem:[#allocation1 + $0x24] sm:$0xff]  ;;  %v9402_v28 = vld [vmem:[%s13472_s22 + $0x910] sm:$0xf]  ;;  %v12633_v29 = vld [vmem:[%s13472_s22 + $0x914] sm:$0xf0] }
  0x88   : > { %6658 = vmatpush.bf16.msrb.mxu1 %v9107_v48  ;;  %v13775_v48 = vld [vmem:[#allocation1 + $0x36] sm:$0xff]  ;;  %v12607_v36 = vld [vmem:[%s13472_s22 + $0x844] sm:$0xf0] }
  0x89   : > { %6671 = vmatpush.bf16.msrb.mxu2 %v9171_v49  ;;  %v13777_v49 = vld [vmem:[#allocation1 + $0x2d] sm:$0xff] }
  0x8a   : > { %6684 = vmatpush.bf16.msrb.mxu3 %v9235_v53  ;;  %v9450_v53 = vld [vmem:[%s13472_s22 + $0x970] sm:$0xf]  ;;  %1243 = vst [vmem:[#allocation1] ss:$9 sm:$0xff] %v192_v51 }
  0x8b   : > { %6646 = vmatpush.bf16.msrb.mxu0 %v9035_v59  ;;  %v9203_v59 = vor.u32 %v12583_v41, %v9202_v40  ;;  %v9451_v63 = vor.u32 %v12645_v54, %v9450_v53  ;;  %v9426_v40 = vld [vmem:[%s13472_s22 + $0x940] sm:$0xf]  ;;  %v12639_v41 = vld [vmem:[%s13472_s22 + $0x944] sm:$0xf0]  ;;  %v9290_v51 = vld [vmem:[%s13472_s22 + $0x830] sm:$0xf] }
  0x8c   : > { %6659 = vmatpush.bf16.msrb.mxu1 %v9099_v60  ;;  %v9323_v60 = vor.u32 %v12613_v43, %v9322_v42  ;;  %v9490_v42 = vld [vmem:[%s13472_s22 + $0x9c0] sm:$0xf]  ;;  %v12655_v43 = vld [vmem:[%s13472_s22 + $0x9c4] sm:$0xf0]  ;;  %v9354_v53 = vld [vmem:[%s13472_s22 + $0x8b0] sm:$0xf] }
  0x8d   : > { %6672 = vmatpush.bf16.msrb.mxu2 %v9163_v62  ;;  %v9387_v62 = vor.u32 %v12629_v46, %v9386_v45  ;;  %v9427_v46 = vor.u32 %v12639_v41, %v9426_v40  ;;  %v9491_v54 = vor.u32 %v12655_v43, %v9490_v42  ;;  %v12631_v41 = vld [vmem:[%s13472_s22 + $0x904] sm:$0xf0]  ;;  %v9458_v42 = vld [vmem:[%s13472_s22 + $0x980] sm:$0xf] }
  0x8e   : > { %6685 = vmatpush.bf16.msrb.mxu3 %v9227_v5  ;;  %v9378_v5 = vld [vmem:[%s13472_s22 + $0x8e0] sm:$0xf]  ;;  %v12647_v43 = vld [vmem:[%s13472_s22 + $0x984] sm:$0xf0] }
  0x8f   : > { %6647 = vmatpush.bf16.msrb.mxu0 %v9027_v11  ;;  %v12659_v11 = vld [vmem:[%s13472_s22 + $0x9e4] sm:$0xf0] }
  0x90   : > { %6660 = vmatpush.bf16.msrb.mxu1 %v9091_v14  ;;  %v9379_v14 = vor.u32 %v12627_v7, %v9378_v5  ;;  %v9346_v5 = vld [vmem:[%s13472_s22 + $0x8a0] sm:$0xf]  ;;  %v12619_v7 = vld [vmem:[%s13472_s22 + $0x8a4] sm:$0xf0] }
  0x91   : > { %6673 = vmatpush.bf16.msrb.mxu2 %v9155_v15  ;;  %v9443_v15 = vor.u32 %v12643_v9, %v9442_v8  ;;  %v9410_v8 = vld [vmem:[%s13472_s22 + $0x920] sm:$0xf]  ;;  %v12635_v9 = vld [vmem:[%s13472_s22 + $0x924] sm:$0xf0] }
  0x92   : > { %6686 = vmatpush.bf16.msrb.mxu3 %v9219_v25  ;;  %v9507_v25 = vor.u32 %v12659_v11, %v9506_v10  ;;  %v9474_v10 = vld [vmem:[%s13472_s22 + $0x9a0] sm:$0xf]  ;;  %v12651_v11 = vld [vmem:[%s13472_s22 + $0x9a4] sm:$0xf0] }
  0x93   : > { %6648 = vmatpush.bf16.msrb.mxu0 %v9019_v33  ;;  %v9371_v33 = vor.u32 %v12625_v26, %v9370_v24  ;;  %v9338_v24 = vld [vmem:[%s13472_s22 + $0x890] sm:$0xf]  ;;  %v12617_v26 = vld [vmem:[%s13472_s22 + $0x894] sm:$0xf0] }
  0x94   : > { %6661 = vmatpush.bf16.msrb.mxu1 %v9083_v38  ;;  %v9499_v38 = vor.u32 %v12657_v31, %v9498_v30  ;;  %v9466_v30 = vld [vmem:[%s13472_s22 + $0x990] sm:$0xf]  ;;  %v12649_v31 = vld [vmem:[%s13472_s22 + $0x994] sm:$0xf0] }
  0x95   : > { %6674 = vmatpush.bf16.msrb.mxu2 %v9147_v39  ;;  %v12623_v39 = vld [vmem:[%s13472_s22 + $0x8c4] sm:$0xf0]  ;;  %v9467_v40 = vor.u32 %v12649_v31, %v9466_v30  ;;  %v12689_v31 = vld [vmem:[%s13472_s22 + $0xad4] sm:$0xf0] }
  0x96   : > { %6687 = vmatpush.bf16.msrb.mxu3 %v9211_v44  ;;  %v9299_v44 = vor.u32 %v12607_v36, %v9298_v35  ;;  %v9363_v45 = vor.u32 %v12623_v39, %v9362_v37  ;;  %v9339_v35 = vor.u32 %v12617_v26, %v9338_v24  ;;  %v9403_v36 = vor.u32 %v12633_v29, %v9402_v28  ;;  %v9330_v37 = vld [vmem:[%s13472_s22 + $0x880] sm:$0xf]  ;;  %v9562_v26 = vld [vmem:[%s13472_s22 + $0xa50] sm:$0xf]  ;;  %v12673_v28 = vld [vmem:[%s13472_s22 + $0xa54] sm:$0xf0] }
  0x97   : > { %6649 = vmatpush.bf16.msrb.mxu0 %v9011_v52  ;;  %v12605_v52 = vld [vmem:[%s13472_s22 + $0x834] sm:$0xf0]  ;;  %v9394_v39 = vld [vmem:[%s13472_s22 + $0x900] sm:$0xf]  ;;  %v9626_v29 = vld [vmem:[%s13472_s22 + $0xad0] sm:$0xf] }
  0x98   : > { %6662 = vmatpush.bf16.msrb.mxu1 %v9075_v55  ;;  %v12621_v55 = vld [vmem:[%s13472_s22 + $0x8b4] sm:$0xf0] }
  0x99   : > { %6675 = vmatpush.bf16.msrb.mxu2 %v9139_v56  ;;  %v9418_v56 = vld [vmem:[%s13472_s22 + $0x930] sm:$0xf] }
  0x9a   : > { %6688 = vmatpush.bf16.msrb.mxu3 %v9203_v59  ;;  %6650 = vmatmul.bf16.vlgmr.msrb.gmra.mxu0 %v13773_v47  ;;  %v12653_v59 = vld [vmem:[%s13472_s22 + $0x9b4] sm:$0xf0] }
  0x9b   : > { %6694 = vmatpush.bf16.msra.mxu0 %v9323_v60  ;;  %6663 = vmatmul.bf16.vlgmr.msrb.gmra.mxu1 %v13777_v49  ;;  %v9291_v60 = vor.u32 %v12605_v52, %v9290_v51  ;;  %v12693_v52 = vld [vmem:[%s13472_s22 + $0xaf4] sm:$0xf0] }
  0x9c   : > { %6707 = vmatpush.bf16.msra.mxu1 %v9387_v62  ;;  %6676 = vmatmul.bf16.vlgmr.msrb.gmra.mxu2 %v13775_v48  ;;  %v9355_v62 = vor.u32 %v12621_v55, %v9354_v53  ;;  %v9706_v53 = vld [vmem:[%s13472_s22 + $0xb70] sm:$0xf] }
  0x9d   : > { %6720 = vmatpush.bf16.msra.mxu2 %v9451_v63  ;;  %6689 = vmatmul.bf16.vlgmr.msrb.gmra.mxu3 %v13779_v50  ;;  %v9419_v63 = vor.u32 %v12637_v57, %v9418_v56  ;;  %v9395_v56 = vor.u32 %v12631_v41, %v9394_v39  ;;  %v9770_v57 = vld [vmem:[%s13472_s22 + $0xbf0] sm:$0xf]  ;;  %v9554_v39 = vld [vmem:[%s13472_s22 + $0xa40] sm:$0xf] }
  0x9e   : > { %6733 = vmatpush.bf16.msra.mxu3 %v9515_v6  ;;  %v9483_v6 = vor.u32 %v12653_v59, %v9482_v58  ;;  %v12725_v58 = vld [vmem:[%s13472_s22 + $0xbf4] sm:$0xf0]  ;;  %v9459_v59 = vor.u32 %v12647_v43, %v9458_v42  ;;  %v9618_v41 = vld [vmem:[%s13472_s22 + $0xac0] sm:$0xf]  ;;  %v12687_v43 = vld [vmem:[%s13472_s22 + $0xac4] sm:$0xf0] }
  0x9f   : > { %6695 = vmatpush.bf16.msra.mxu0 %v9315_v12  ;;  %v9283_v12 = vor.u32 %v12603_v4, %v9282_v0  ;;  %v9570_v0 = vld [vmem:[%s13472_s22 + $0xa60] sm:$0xf]  ;;  %v12675_v4 = vld [vmem:[%s13472_s22 + $0xa64] sm:$0xf0] }
  0xa0   : > { %6708 = vmatpush.bf16.msra.mxu1 %v9379_v14  ;;  %v9347_v14 = vor.u32 %v12619_v7, %v9346_v5  ;;  %v9634_v5 = vld [vmem:[%s13472_s22 + $0xae0] sm:$0xf]  ;;  %v12691_v7 = vld [vmem:[%s13472_s22 + $0xae4] sm:$0xf0] }
  0xa1   : > { %6721 = vmatpush.bf16.msra.mxu2 %v9443_v15  ;;  %v9411_v15 = vor.u32 %v12635_v9, %v9410_v8  ;;  %v9698_v8 = vld [vmem:[%s13472_s22 + $0xb60] sm:$0xf]  ;;  %v12707_v9 = vld [vmem:[%s13472_s22 + $0xb64] sm:$0xf0]  ;;  %v9635_v24 = vor.u32 %v12691_v7, %v9634_v5 }
  0xa2   : > { %6734 = vmatpush.bf16.msra.mxu3 %v9507_v25  ;;  %v9475_v25 = vor.u32 %v12651_v11, %v9474_v10  ;;  %v13860_v10 = vld [vmem:[#allocation1] sm:$0xff] }
  0xa3   : > { %6696 = vmatpush.bf16.msra.mxu0 %v9307_v32  ;;  %v9275_v32 = vor.u32 %v12601_v20, %v9274_v19  ;;  %v9762_v11 = vld [vmem:[%s13472_s22 + $0xbe0] sm:$0xf]  ;;  %v9571_v20 = vor.u32 %v12675_v4, %v9570_v0  ;;  %v12717_v0 = vld [vmem:[%s13472_s22 + $0xbb4] sm:$0xf0] }
  0xa4   : > { %6709 = vmatpush.bf16.msra.mxu1 %v9371_v33  ;;  %v9266_v33 = vld [vmem:[%s13472_s22 + $0x800] sm:$0xf] }
  0xa5   : > { %6722 = vmatpush.bf16.msra.mxu2 %v9435_v34  ;;  %v12599_v34 = vld [vmem:[%s13472_s22 + $0x804] sm:$0xf0]  ;;  %v13868_v19 = vld [vmem:[#allocation1 + $0x1b] sm:$0xff] }
  0xa6   : > { %6735 = vmatpush.bf16.msra.mxu3 %v9499_v38  ;;  %v12615_v38 = vld [vmem:[%s13472_s22 + $0x884] sm:$0xf0]  ;;  %v9267_v51 = vor.u32 %v12599_v34, %v9266_v33  ;;  %v12705_v33 = vld [vmem:[%s13472_s22 + $0xb54] sm:$0xf0]  ;;  %v9754_v34 = vld [vmem:[%s13472_s22 + $0xbd0] sm:$0xf] }
  0xa7   : > { %6697 = vmatpush.bf16.msra.mxu0 %v9299_v44  ;;  %v9578_v44 = vld [vmem:[%s13472_s22 + $0xa70] sm:$0xf]  ;;  %v9331_v55 = vor.u32 %v12615_v38, %v9330_v37  ;;  %v9627_v37 = vor.u32 %v12689_v31, %v9626_v29  ;;  %v9538_v7 = vld [vmem:[%s13472_s22 + $0xa20] sm:$0xf] }
  0xa8   : > { %6710 = vmatpush.bf16.msra.mxu1 %v9363_v45  ;;  %v12677_v45 = vld [vmem:[%s13472_s22 + $0xa74] sm:$0xf0]  ;;  %v9530_v29 = vld [vmem:[%s13472_s22 + $0xa10] sm:$0xf] }
  0xa9   : > { %6723 = vmatpush.bf16.msra.mxu2 %v9427_v46  ;;  %v9642_v46 = vld [vmem:[%s13472_s22 + $0xaf0] sm:$0xf] }
  0xaa   : > { %6736 = vmatpush.bf16.msra.mxu3 %v9491_v54  ;;  %v12709_v54 = vld [vmem:[%s13472_s22 + $0xb74] sm:$0xf0] }
  0xab   : > { %6698 = vmatpush.bf16.msra.mxu0 %v9291_v60  ;;  %v9579_v60 = vor.u32 %v12677_v45, %v9578_v44  ;;  %v9682_v44 = vld [vmem:[%s13472_s22 + $0xb40] sm:$0xf]  ;;  %v12703_v45 = vld [vmem:[%s13472_s22 + $0xb44] sm:$0xf0] }
  0xac   : > { %6711 = vmatpush.bf16.msra.mxu1 %v9355_v62  ;;  %v9643_v62 = vor.u32 %v12693_v52, %v9642_v46  ;;  %v9746_v46 = vld [vmem:[%s13472_s22 + $0xbc0] sm:$0xf] }
  0xad   : > { %6724 = vmatpush.bf16.msra.mxu2 %v9419_v63  ;;  %v9707_v63 = vor.u32 %v12709_v54, %v9706_v53  ;;  %v9619_v53 = vor.u32 %v12687_v43, %v9618_v41  ;;  %v9683_v54 = vor.u32 %v12703_v45, %v9682_v44  ;;  %v9522_v43 = vld [vmem:[%s13472_s22 + $0xa00] sm:$0xf]  ;;  %v12663_v44 = vld [vmem:[%s13472_s22 + $0xa04] sm:$0xf0] }
  0xae   : > { %6737 = vmatpush.bf16.msra.mxu3 %v9483_v6  ;;  %v9771_v6 = vor.u32 %v12725_v58, %v9770_v57  ;;  %v9610_v57 = vld [vmem:[%s13472_s22 + $0xab0] sm:$0xf] }
  0xaf   : > { %6699 = vmatpush.bf16.msra.mxu0 %v9283_v12  ;;  %v12723_v12 = vld [vmem:[%s13472_s22 + $0xbe4] sm:$0xf0] }
  0xb0   : > { %6712 = vmatpush.bf16.msra.mxu1 %v9347_v14  ;;  %v13864_v14 = vld [vmem:[#allocation1 + $0x12] sm:$0xff]  ;;  %v9763_v30 = vor.u32 %v12723_v12, %v9762_v11  ;;  %v12683_v12 = vld [vmem:[%s13472_s22 + $0xaa4] sm:$0xf0] }
  0xb1   : > { %6725 = vmatpush.bf16.msra.mxu2 %v9411_v15  ;;  %v13866_v15 = vld [vmem:[#allocation1 + $0x9] sm:$0xff] }
  0xb2   : > { %6738 = vmatpush.bf16.msra.mxu3 %v9475_v25  ;;  %v9699_v25 = vor.u32 %v12707_v9, %v9698_v8  ;;  %v12667_v8 = vld [vmem:[%s13472_s22 + $0xa24] sm:$0xf0]  ;;  %v9602_v9 = vld [vmem:[%s13472_s22 + $0xaa0] sm:$0xf] }
  0xb3   : > { %6700 = vmatpush.bf16.msra.mxu0 %v9275_v32  ;;  %v9690_v32 = vld [vmem:[%s13472_s22 + $0xb50] sm:$0xf]  ;;  %v9603_v31 = vor.u32 %v12683_v12, %v9602_v9  ;;  %v13932_v9 = vld [vmem:[#allocation1 + $0x3f] sm:$0xff]  ;;  %v9523_v12 = vor.u32 %v12663_v44, %v9522_v43  ;;  %v12771_v43 = vld [vmem:[%s13472_s22 + $0xd64] sm:$0xf0] }
  0xb4   : > { %6713 = vmatpush.bf16.msra.mxu1 %v9339_v35  ;;  %v12721_v35 = vld [vmem:[%s13472_s22 + $0xbd4] sm:$0xf0]  ;;  %v9691_v38 = vor.u32 %v12705_v33, %v9690_v32  ;;  %v10018_v44 = vld [vmem:[%s13472_s22 + $0xde0] sm:$0xf] }
  0xb5   : > { %6726 = vmatpush.bf16.msra.mxu2 %v9403_v36  ;;  %v9563_v36 = vor.u32 %v12673_v28, %v9562_v26  ;;  %v9755_v42 = vor.u32 %v12721_v35, %v9754_v34  ;;  %v12715_v26 = vld [vmem:[%s13472_s22 + $0xba4] sm:$0xf0]  ;;  %v9539_v28 = vor.u32 %v12667_v8, %v9538_v7  ;;  %v12665_v33 = vld [vmem:[%s13472_s22 + $0xa14] sm:$0xf0]  ;;  %v9594_v34 = vld [vmem:[%s13472_s22 + $0xa90] sm:$0xf] }
  0xb6   : > { %6739 = vmatpush.bf16.msra.mxu3 %v9467_v40  ;;  %v12671_v40 = vld [vmem:[%s13472_s22 + $0xa44] sm:$0xf0]  ;;  %v12681_v35 = vld [vmem:[%s13472_s22 + $0xa94] sm:$0xf0]  ;;  %v9531_v45 = vor.u32 %v12665_v33, %v9530_v29  ;;  %v13930_v8 = vld [vmem:[#allocation1 + $0x2d] sm:$0xff] }
  0xb7   : > { %6701 = vmatpush.bf16.msra.mxu0 %v9267_v51  ;;  %v12719_v51 = vld [vmem:[%s13472_s22 + $0xbc4] sm:$0xf0]  ;;  %v9555_v52 = vor.u32 %v12671_v40, %v9554_v39  ;;  %v12697_v39 = vld [vmem:[%s13472_s22 + $0xb14] sm:$0xf0]  ;;  %v9722_v40 = vld [vmem:[%s13472_s22 + $0xb90] sm:$0xf] }
  0xb8   : > { %6714 = vmatpush.bf16.msra.mxu1 %v9331_v55  ;;  %v9546_v55 = vld [vmem:[%s13472_s22 + $0xa30] sm:$0xf]  ;;  %v9747_v58 = vor.u32 %v12719_v51, %v9746_v46  ;;  %v9586_v46 = vld [vmem:[%s13472_s22 + $0xa80] sm:$0xf]  ;;  %v12679_v51 = vld [vmem:[%s13472_s22 + $0xa84] sm:$0xf0] }
  0xb9   : > { %6727 = vmatpush.bf16.msra.mxu2 %v9395_v56  ;;  %v12669_v56 = vld [vmem:[%s13472_s22 + $0xa34] sm:$0xf0] }
  0xba   : > { %6740 = vmatpush.bf16.msra.mxu3 %v9459_v59  ;;  %6702 = vmatmul.bf16.vlgmr.msra.gmra.mxu0 %v13860_v10  ;;  %v12685_v59 = vld [vmem:[%s13472_s22 + $0xab4] sm:$0xf0]  ;;  %v9547_v4 = vor.u32 %v12669_v56, %v9546_v55  ;;  %v9714_v56 = vld [vmem:[%s13472_s22 + $0xb80] sm:$0xf] }
  0xbb   : > { %6746 = vmatpush.bf16.msrb.mxu0 %v9579_v60  ;;  %6715 = vmatmul.bf16.vlgmr.msra.gmra.mxu1 %v13866_v15  ;;  %v9674_v60 = vld [vmem:[%s13472_s22 + $0xb30] sm:$0xf]  ;;  %v9611_v5 = vor.u32 %v12685_v59, %v9610_v57  ;;  %v12711_v57 = vld [vmem:[%s13472_s22 + $0xb84] sm:$0xf0]  ;;  %v12741_v59 = vld [vmem:[%s13472_s22 + $0xc74] sm:$0xf0] }
  0xbc   : > { %6759 = vmatpush.bf16.msrb.mxu1 %v9643_v62  ;;  %6728 = vmatmul.bf16.vlgmr.msra.gmra.mxu2 %v13864_v14  ;;  %v12701_v62 = vld [vmem:[%s13472_s22 + $0xb34] sm:$0xf0]  ;;  %v9715_v33 = vor.u32 %v12711_v57, %v9714_v56  ;;  %v9882_v57 = vld [vmem:[%s13472_s22 + $0xcd0] sm:$0xf] }
  0xbd   : > { %6772 = vmatpush.bf16.msrb.mxu2 %v9707_v63  ;;  %6741 = vmatmul.bf16.vlgmr.msra.gmra.mxu3 %v13868_v19  ;;  %v9738_v63 = vld [vmem:[%s13472_s22 + $0xbb0] sm:$0xf]  ;;  %v12737_v56 = vld [vmem:[%s13472_s22 + $0xc54] sm:$0xf0] }
  0xbe   : > { %6785 = vmatpush.bf16.msrb.mxu3 %v9771_v6  ;;  %v9675_v6 = vor.u32 %v12701_v62, %v9674_v60  ;;  %v9739_v11 = vor.u32 %v12717_v0, %v9738_v63  ;;  %v9898_v63 = vld [vmem:[%s13472_s22 + $0xcf0] sm:$0xf]  ;;  %v12757_v0 = vld [vmem:[%s13472_s22 + $0xcf4] sm:$0xf0] }
  0xbf   : > { %6747 = vmatpush.bf16.msrb.mxu0 %v9571_v20  ;;  %v9666_v20 = vld [vmem:[%s13472_s22 + $0xb20] sm:$0xf] }
  0xc0   : > { %6760 = vmatpush.bf16.msrb.mxu1 %v9635_v24  ;;  %v12699_v24 = vld [vmem:[%s13472_s22 + $0xb24] sm:$0xf0] }
  0xc1   : > { %6773 = vmatpush.bf16.msrb.mxu2 %v9699_v25  ;;  %v9730_v25 = vld [vmem:[%s13472_s22 + $0xba0] sm:$0xf]  ;;  %v9667_v32 = vor.u32 %v12699_v24, %v9666_v20  ;;  %v6521_v60 = vpop.f32.mrf.mxu2  ;;  %v9962_v20 = vld [vmem:[%s13472_s22 + $0xd70] sm:$0xf]  ;;  %v12773_v24 = vld [vmem:[%s13472_s22 + $0xd74] sm:$0xf0] }
  0xc2   : > { %6786 = vmatpush.bf16.msrb.mxu3 %v9763_v30  ;;  %v6495_v30 = vpop.f32.mrf.mxu0  ;;  %v6534_v7 = vpop.f32.mrf.mxu3 }
  0xc3   : > { %6748 = vmatpush.bf16.msrb.mxu0 %v9563_v36  ;;  %v6508_v36 = vpop.f32.mrf.mxu1 }
  0xc4   : > { %6761 = vmatpush.bf16.msrb.mxu1 %v9627_v37  ;;  %v9731_v37 = vor.u32 %v12715_v26, %v9730_v25  ;;  %v6509_v41 = vadd.f32 %v6508_v36, %v6495_v30  ;;  %v10026_v30 = vld [vmem:[%s13472_s22 + $0xdf0] sm:$0xf]  ;;  %v9963_v36 = vor.u32 %v12773_v24, %v9962_v20  ;;  %v12735_v20 = vld [vmem:[%s13472_s22 + $0xc44] sm:$0xf0]  ;;  %v9874_v24 = vld [vmem:[%s13472_s22 + $0xcc0] sm:$0xf] }
  0xc5   : > { %6774 = vmatpush.bf16.msrb.mxu2 %v9691_v38  ;;  %v9658_v38 = vld [vmem:[%s13472_s22 + $0xb10] sm:$0xf] }
  0xc6   : > { %6787 = vmatpush.bf16.msrb.mxu3 %v9755_v42  ;;  %v12713_v42 = vld [vmem:[%s13472_s22 + $0xb94] sm:$0xf0]  ;;  %v9659_v55 = vor.u32 %v12697_v39, %v9658_v38  ;;  %v12739_v38 = vld [vmem:[%s13472_s22 + $0xc64] sm:$0xf0]  ;;  %v9890_v39 = vld [vmem:[%s13472_s22 + $0xce0] sm:$0xf] }
  0xc7   : > { %6749 = vmatpush.bf16.msrb.mxu0 %v9555_v52  ;;  %v9650_v52 = vld [vmem:[%s13472_s22 + $0xb00] sm:$0xf]  ;;  %v9723_v62 = vor.u32 %v12713_v42, %v9722_v40 }
  0xc8   : > { %6762 = vmatpush.bf16.msrb.mxu1 %v9619_v53  ;;  %v12695_v53 = vld [vmem:[%s13472_s22 + $0xb04] sm:$0xf0]  ;;  %v9954_v42 = vld [vmem:[%s13472_s22 + $0xd60] sm:$0xf] }
  0xc9   : > { %6775 = vmatpush.bf16.msrb.mxu2 %v9683_v54  ;;  %v9595_v54 = vor.u32 %v12681_v35, %v9594_v34  ;;  %v9651_v29 = vor.u32 %v12695_v53, %v9650_v52  ;;  %v9899_v35 = vor.u32 %v12757_v0, %v9898_v63  ;;  %v10010_v63 = vld [vmem:[%s13472_s22 + $0xdd0] sm:$0xf]  ;;  %v12785_v0 = vld [vmem:[%s13472_s22 + $0xdd4] sm:$0xf0] }
  0xca   : > { %6788 = vmatpush.bf16.msrb.mxu3 %v9747_v58  ;;  %v9834_v58 = vld [vmem:[%s13472_s22 + $0xc70] sm:$0xf]  ;;  %v6497_v26 = vpop.f32.mrf.mxu0  ;;  %v6536_v52 = vpop.f32.mrf.mxu3 }
  0xcb   : > { %6750 = vmatpush.bf16.msrb.mxu0 %v9547_v4  ;;  %v13926_v4 = vld [vmem:[#allocation1 + $0x24] sm:$0xff]  ;;  %v9835_v34 = vor.u32 %v12741_v59, %v9834_v58  ;;  %v12753_v59 = vld [vmem:[%s13472_s22 + $0xcd4] sm:$0xf0]  ;;  %v10011_v26 = vor.u32 %v12785_v0, %v10010_v63 }
  0xcc   : > { %6763 = vmatpush.bf16.msrb.mxu1 %v9611_v5  ;;  %v13928_v5 = vld [vmem:[#allocation1 + $0x36] sm:$0xff]  ;;  %v12763_v63 = vld [vmem:[%s13472_s22 + $0xd24] sm:$0xf0] }
  0xcd   : > { %6776 = vmatpush.bf16.msrb.mxu2 %v9675_v6  ;;  %v6522_v6 = vadd.f32 %v6521_v60, %v6509_v41  ;;  %v12755_v41 = vld [vmem:[%s13472_s22 + $0xce4] sm:$0xf0]  ;;  %v9946_v60 = vld [vmem:[%s13472_s22 + $0xd50] sm:$0xf] }
  0xce   : > { %6789 = vmatpush.bf16.msrb.mxu3 %v9739_v11  ;;  %v193_v11 = vld [vmem:[%s13467_s18 + $0x18] sm:$0xff]  ;;  %v9891_v53 = vor.u32 %v12755_v41, %v9890_v39  ;;  %v9866_v39 = vld [vmem:[%s13472_s22 + $0xcb0] sm:$0xf] }
  0xcf   : > { %6751 = vmatpush.bf16.msrb.mxu0 %v9539_v28  ;;  %v13937_v25 = vadd.f32 %v6534_v7, %v6522_v6  ;;  %1253 = vst [vmem:[#allocation1] ss:$9 sm:$0xff] %v193_v11  ;;  %v9587_v28 = vor.u32 %v12679_v51, %v9586_v46  ;;  %v6523_v46 = vpop.f32.mrf.mxu2  ;;  %v9883_v7 = vor.u32 %v12753_v59, %v9882_v57  ;;  %v9858_v57 = vld [vmem:[%s13472_s22 + $0xca0] sm:$0xf] }
  0xd0   : > { %6764 = vmatpush.bf16.msrb.mxu1 %v9603_v31  ;;  %v12789_v31 = vld [vmem:[%s13472_s22 + $0xdf4] sm:$0xf0]  ;;  %v9994_v46 = vld [vmem:[%s13472_s22 + $0xdb0] sm:$0xf] }
  0xd1   : > { %6777 = vmatpush.bf16.msrb.mxu2 %v9667_v32  ;;  %v6510_v32 = vpop.f32.mrf.mxu1  ;;  %v10027_v40 = vor.u32 %v12789_v31, %v10026_v30  ;;  %v12767_v30 = vld [vmem:[%s13472_s22 + $0xd44] sm:$0xf0]  ;;  %v10002_v31 = vld [vmem:[%s13472_s22 + $0xdc0] sm:$0xf] }
  0xd2   : > { %6790 = vmatpush.bf16.msrb.mxu3 %v9731_v37  ;;  %v9826_v37 = vld [vmem:[%s13472_s22 + $0xc60] sm:$0xf]  ;;  %v12783_v32 = vld [vmem:[%s13472_s22 + $0xdc4] sm:$0xf0] }
  0xd3   : > { %6752 = vmatpush.bf16.msrb.mxu0 %v9531_v45  ;;  %v12787_v45 = vld [vmem:[%s13472_s22 + $0xde4] sm:$0xf0]  ;;  %v9827_v51 = vor.u32 %v12739_v38, %v9826_v37  ;;  %v9802_v37 = vld [vmem:[%s13472_s22 + $0xc30] sm:$0xf]  ;;  %v12733_v38 = vld [vmem:[%s13472_s22 + $0xc34] sm:$0xf0] }
  0xd4   : > { %6765 = vmatpush.bf16.msrb.mxu1 %v9595_v54  ;;  %v9955_v54 = vor.u32 %v12771_v43, %v9954_v42  ;;  %v10019_v58 = vor.u32 %v12787_v45, %v10018_v44  ;;  %v10003_v42 = vor.u32 %v12783_v32, %v10002_v31  ;;  %v12749_v43 = vld [vmem:[%s13472_s22 + $0xcb4] sm:$0xf0]  ;;  %v9930_v44 = vld [vmem:[%s13472_s22 + $0xd30] sm:$0xf] }
  0xd5   : > { %6778 = vmatpush.bf16.msrb.mxu2 %v9659_v55  ;;  %v9818_v55 = vld [vmem:[%s13472_s22 + $0xc50] sm:$0xf]  ;;  %v12765_v45 = vld [vmem:[%s13472_s22 + $0xd34] sm:$0xf0] }
  0xd6   : > { %6791 = vmatpush.bf16.msrb.mxu3 %v9723_v62  ;;  %v12769_v62 = vld [vmem:[%s13472_s22 + $0xd54] sm:$0xf0]  ;;  %v9819_v6 = vor.u32 %v12737_v56, %v9818_v55  ;;  %v9794_v55 = vld [vmem:[%s13472_s22 + $0xc20] sm:$0xf]  ;;  %v12731_v56 = vld [vmem:[%s13472_s22 + $0xc24] sm:$0xf0] }
  0xd7   : > { %6753 = vmatpush.bf16.msrb.mxu0 %v9523_v12  ;;  %v9947_v11 = vor.u32 %v12769_v62, %v9946_v60  ;;  %v9810_v12 = vld [vmem:[%s13472_s22 + $0xc40] sm:$0xf]  ;;  %v12747_v60 = vld [vmem:[%s13472_s22 + $0xca4] sm:$0xf0]  ;;  %v9850_v31 = vld [vmem:[%s13472_s22 + $0xc90] sm:$0xf] }
  0xd8   : > { %6766 = vmatpush.bf16.msrb.mxu1 %v9587_v28  ;;  %v12751_v28 = vld [vmem:[%s13472_s22 + $0xcc4] sm:$0xf0]  ;;  %v9922_v62 = vld [vmem:[%s13472_s22 + $0xd20] sm:$0xf] }
  0xd9   : > { %6779 = vmatpush.bf16.msrb.mxu2 %v9651_v29  ;;  %v9938_v29 = vld [vmem:[%s13472_s22 + $0xd40] sm:$0xf]  ;;  %v6560_v41 = vpop.f32.mrf.mxu1 }
  0xda   : > { %6792 = vmatpush.bf16.msrb.mxu3 %v9715_v33  ;;  %6754 = vmatmul.bf16.vlgmr.msrb.gmra.mxu0 %v13926_v4  ;;  %v9811_v33 = vor.u32 %v12735_v20, %v9810_v12  ;;  %v9795_v12 = vor.u32 %v12731_v56, %v9794_v55  ;;  %v10090_v56 = vld [vmem:[%s13472_s22 + $0xe70] sm:$0xf] }
  0xdb   : > { %6798 = vmatpush.bf16.msra.mxu0 %v9835_v34  ;;  %6767 = vmatmul.bf16.vlgmr.msrb.gmra.mxu1 %v13930_v8  ;;  %v6547_v34 = vpop.f32.mrf.mxu0 }
  0xdc   : > { %6811 = vmatpush.bf16.msra.mxu1 %v9899_v35  ;;  %6780 = vmatmul.bf16.vlgmr.msrb.gmra.mxu2 %v13928_v5  ;;  %v9875_v35 = vor.u32 %v12751_v28, %v9874_v24  ;;  %v9923_v28 = vor.u32 %v12763_v63, %v9922_v62  ;;  %v10218_v62 = vld [vmem:[%s13472_s22 + $0xf70] sm:$0xf]  ;;  %v12837_v63 = vld [vmem:[%s13472_s22 + $0xf74] sm:$0xf0] }
  0xdd   : > { %6824 = vmatpush.bf16.msra.mxu2 %v9963_v36  ;;  %6793 = vmatmul.bf16.vlgmr.msrb.gmra.mxu3 %v13932_v9  ;;  %v9939_v36 = vor.u32 %v12767_v30, %v9938_v29  ;;  %v9786_v29 = vld [vmem:[%s13472_s22 + $0xc10] sm:$0xf]  ;;  %v12729_v30 = vld [vmem:[%s13472_s22 + $0xc14] sm:$0xf0] }
  0xde   : > { %6837 = vmatpush.bf16.msra.mxu3 %v10027_v40  ;;  %v6548_v40 = vadd.f32 %v6547_v34, %v13937_v25  ;;  %v9867_v25 = vor.u32 %v12749_v43, %v9866_v39  ;;  %v12745_v34 = vld [vmem:[%s13472_s22 + $0xc94] sm:$0xf0]  ;;  %v9787_v39 = vor.u32 %v12729_v30, %v9786_v29  ;;  %v10082_v29 = vld [vmem:[%s13472_s22 + $0xe60] sm:$0xf]  ;;  %v12803_v30 = vld [vmem:[%s13472_s22 + $0xe64] sm:$0xf0] }
  0xdf   : > { %6799 = vmatpush.bf16.msra.mxu0 %v9827_v51  ;;  %v12781_v51 = vld [vmem:[%s13472_s22 + $0xdb4] sm:$0xf0] }
  0xe0   : > { %6812 = vmatpush.bf16.msra.mxu1 %v9891_v53  ;;  %v6561_v52 = vadd.f32 %v6560_v41, %v6548_v40  ;;  %v9803_v53 = vor.u32 %v12733_v38, %v9802_v37  ;;  %v9995_v59 = vor.u32 %v12781_v51, %v9994_v46  ;;  %v9978_v37 = vld [vmem:[%s13472_s22 + $0xd90] sm:$0xf]  ;;  %v12777_v38 = vld [vmem:[%s13472_s22 + $0xd94] sm:$0xf0]  ;;  %v9778_v40 = vld [vmem:[%s13472_s22 + $0xc00] sm:$0xf] }
  0xe1   : > { %6825 = vmatpush.bf16.msra.mxu2 %v9955_v54  ;;  %v9931_v54 = vor.u32 %v12765_v45, %v9930_v44  ;;  %v6562_v32 = vpop.f32.mrf.mxu1  ;;  %v12727_v41 = vld [vmem:[%s13472_s22 + $0xc04] sm:$0xf0]  ;;  %v9842_v44 = vld [vmem:[%s13472_s22 + $0xc80] sm:$0xf] }
  0xe2   : > { %6838 = vmatpush.bf16.msra.mxu3 %v10019_v58  ;;  %v6573_v58 = vpop.f32.mrf.mxu2  ;;  %v12743_v45 = vld [vmem:[%s13472_s22 + $0xc84] sm:$0xf0]  ;;  %v9906_v46 = vld [vmem:[%s13472_s22 + $0xd00] sm:$0xf] }
  0xe3   : > { %6800 = vmatpush.bf16.msra.mxu0 %v9819_v6  ;;  %v6574_v0 = vadd.f32 %v6573_v58, %v6561_v52  ;;  %v6586_v6 = vpop.f32.mrf.mxu3  ;;  %v6549_v24 = vpop.f32.mrf.mxu0  ;;  %v9979_v52 = vor.u32 %v12777_v38, %v9978_v37  ;;  %v10154_v58 = vld [vmem:[%s13472_s22 + $0xef0] sm:$0xf]  ;;  %v10274_v37 = vld [vmem:[%s13472_s22 + $0xfe0] sm:$0xf]  ;;  %v12851_v38 = vld [vmem:[%s13472_s22 + $0xfe4] sm:$0xf0] }
  0xe4   : > { %6813 = vmatpush.bf16.msra.mxu1 %v9883_v7  ;;  %v9986_v7 = vld [vmem:[%s13472_s22 + $0xda0] sm:$0xf] }
  0xe5   : > { %6826 = vmatpush.bf16.msra.mxu2 %v9947_v11  ;;  %v12779_v11 = vld [vmem:[%s13472_s22 + $0xda4] sm:$0xf0]  ;;  %v13986_v20 = vadd.f32 %v6586_v6, %v6574_v0  ;;  %v9843_v0 = vor.u32 %v12743_v45, %v9842_v44  ;;  %v10074_v45 = vld [vmem:[%s13472_s22 + $0xe50] sm:$0xf] }
  0xe6   : > { %6839 = vmatpush.bf16.msra.mxu3 %v10011_v26  ;;  %v9859_v26 = vor.u32 %v12747_v60, %v9858_v57  ;;  %v12805_v57 = vld [vmem:[%s13472_s22 + $0xe74] sm:$0xf0] }
  0xe7   : > { %6801 = vmatpush.bf16.msra.mxu0 %v9811_v33  ;;  %v9987_v33 = vor.u32 %v12779_v11, %v9986_v7  ;;  %v12821_v60 = vld [vmem:[%s13472_s22 + $0xef4] sm:$0xf0]  ;;  %v10282_v7 = vld [vmem:[%s13472_s22 + $0xff0] sm:$0xf]  ;;  %v10091_v24 = vor.u32 %v12805_v57, %v10090_v56 }
  0xe8   : > { %6814 = vmatpush.bf16.msra.mxu1 %v9875_v35  ;;  %v9914_v35 = vld [vmem:[%s13472_s22 + $0xd10] sm:$0xf]  ;;  %v12853_v11 = vld [vmem:[%s13472_s22 + $0xff4] sm:$0xf0] }
  0xe9   : > { %6827 = vmatpush.bf16.msra.mxu2 %v9939_v36  ;;  %v12761_v36 = vld [vmem:[%s13472_s22 + $0xd14] sm:$0xf0]  ;;  %v10283_v32 = vor.u32 %v12853_v11, %v10282_v7  ;;  %v10194_v7 = vld [vmem:[%s13472_s22 + $0xf40] sm:$0xf]  ;;  %v12831_v11 = vld [vmem:[%s13472_s22 + $0xf44] sm:$0xf0] }
  0xea   : > { %6840 = vmatpush.bf16.msra.mxu3 %v10003_v42  ;;  %v9851_v42 = vor.u32 %v12745_v34, %v9850_v31  ;;  %v9915_v43 = vor.u32 %v12761_v36, %v9914_v35  ;;  %v6575_v51 = vpop.f32.mrf.mxu2  ;;  %v10146_v31 = vld [vmem:[%s13472_s22 + $0xee0] sm:$0xf]  ;;  %v12835_v35 = vld [vmem:[%s13472_s22 + $0xf64] sm:$0xf0]  ;;  %v12849_v56 = vld [vmem:[%s13472_s22 + $0xfd4] sm:$0xf0] }
  0xeb   : > { %6802 = vmatpush.bf16.msra.mxu0 %v9803_v53  ;;  %v12759_v53 = vld [vmem:[%s13472_s22 + $0xd04] sm:$0xf0]  ;;  %v6588_v55 = vpop.f32.mrf.mxu3  ;;  %v10210_v34 = vld [vmem:[%s13472_s22 + $0xf60] sm:$0xf]  ;;  %v10138_v51 = vld [vmem:[%s13472_s22 + $0xed0] sm:$0xf] }
  0xec   : > { %6815 = vmatpush.bf16.msra.mxu1 %v9867_v25  ;;  %v9970_v25 = vld [vmem:[%s13472_s22 + $0xd80] sm:$0xf]  ;;  %v9907_v6 = vor.u32 %v12759_v53, %v9906_v46  ;;  %v10211_v44 = vor.u32 %v12835_v35, %v10210_v34  ;;  %v12801_v46 = vld [vmem:[%s13472_s22 + $0xe54] sm:$0xf0]  ;;  %v10266_v55 = vld [vmem:[%s13472_s22 + $0xfd0] sm:$0xf] }
  0xed   : > { %6828 = vmatpush.bf16.msra.mxu2 %v9931_v54  ;;  %v12775_v54 = vld [vmem:[%s13472_s22 + $0xd84] sm:$0xf0]  ;;  %v14018_v36 = vld [vmem:[#allocation1] sm:$0xff]  ;;  %v12817_v53 = vld [vmem:[%s13472_s22 + $0xed4] sm:$0xf0]  ;;  %v10075_v57 = vor.u32 %v12801_v46, %v10074_v45 }
  0xee   : > { %6841 = vmatpush.bf16.msra.mxu3 %v9995_v59  ;;  %v9779_v59 = vor.u32 %v12727_v41, %v9778_v40  ;;  %v14024_v40 = vld [vmem:[#allocation1 + $0x9] sm:$0xff]  ;;  %v14026_v41 = vld [vmem:[#allocation1 + $0x1b] sm:$0xff] }
  0xef   : > { %6803 = vmatpush.bf16.msra.mxu0 %v9795_v12  ;;  %v9971_v12 = vor.u32 %v12775_v54, %v9970_v25  ;;  %v10202_v25 = vld [vmem:[%s13472_s22 + $0xf50] sm:$0xf]  ;;  %v12833_v54 = vld [vmem:[%s13472_s22 + $0xf54] sm:$0xf0] }
  0xf0   : > { %6816 = vmatpush.bf16.msra.mxu1 %v9859_v26  ;;  %v10155_v26 = vor.u32 %v12821_v60, %v10154_v58  ;;  %v10139_v58 = vor.u32 %v12817_v53, %v10138_v51  ;;  %v10066_v60 = vld [vmem:[%s13472_s22 + $0xe40] sm:$0xf]  ;;  %v12797_v34 = vld [vmem:[%s13472_s22 + $0xe34] sm:$0xf0]  ;;  %v10122_v35 = vld [vmem:[%s13472_s22 + $0xeb0] sm:$0xf] }
  0xf1   : > { %6829 = vmatpush.bf16.msra.mxu2 %v9923_v28  ;;  %v10219_v28 = vor.u32 %v12837_v63, %v10218_v62  ;;  %v12799_v62 = vld [vmem:[%s13472_s22 + $0xe44] sm:$0xf0]  ;;  %v10130_v63 = vld [vmem:[%s13472_s22 + $0xec0] sm:$0xf]  ;;  %v12845_v45 = vld [vmem:[%s13472_s22 + $0xfb4] sm:$0xf0] }
  0xf2   : > { %6842 = vmatpush.bf16.msra.mxu3 %v9987_v33  ;;  %v12819_v33 = vld [vmem:[%s13472_s22 + $0xee4] sm:$0xf0]  ;;  %v10050_v53 = vld [vmem:[%s13472_s22 + $0xe20] sm:$0xf] }
  0xf3   : > { %6804 = vmatpush.bf16.msra.mxu0 %v9787_v39  ;;  %v14022_v39 = vld [vmem:[#allocation1 + $0x12] sm:$0xff] }
  0xf4   : > { %6817 = vmatpush.bf16.msra.mxu1 %v9851_v42  ;;  %v10083_v42 = vor.u32 %v12803_v30, %v10082_v29  ;;  %v10067_v29 = vor.u32 %v12799_v62, %v10066_v60 }
  0xf5   : > { %6830 = vmatpush.bf16.msra.mxu2 %v9915_v43  ;;  %v10147_v43 = vor.u32 %v12819_v33, %v10146_v31  ;;  %v10058_v33 = vld [vmem:[%s13472_s22 + $0xe30] sm:$0xf] }
  0xf6   : > { %6843 = vmatpush.bf16.msra.mxu3 %v9979_v52  ;;  %v10275_v52 = vor.u32 %v12851_v38, %v10274_v37  ;;  %v10059_v46 = vor.u32 %v12797_v34, %v10058_v33  ;;  %v10170_v33 = vld [vmem:[%s13472_s22 + $0xf10] sm:$0xf]  ;;  %v12825_v34 = vld [vmem:[%s13472_s22 + $0xf14] sm:$0xf0] }
  0xf7   : > { %6805 = vmatpush.bf16.msra.mxu0 %v9779_v59  ;;  %v10203_v59 = vor.u32 %v12833_v54, %v10202_v25  ;;  %v12795_v25 = vld [vmem:[%s13472_s22 + $0xe24] sm:$0xf0]  ;;  %v10114_v54 = vld [vmem:[%s13472_s22 + $0xea0] sm:$0xf] }
  0xf8   : > { %6818 = vmatpush.bf16.msra.mxu1 %v9843_v0  ;;  %v10267_v0 = vor.u32 %v12849_v56, %v10266_v55  ;;  %v6612_v30 = vpop.f32.mrf.mxu1 }
  0xf9   : > { %6831 = vmatpush.bf16.msra.mxu2 %v9907_v6  ;;  %v12815_v6 = vld [vmem:[%s13472_s22 + $0xec4] sm:$0xf0] }
  0xfa   : > { %6844 = vmatpush.bf16.msra.mxu3 %v9971_v12  ;;  %6806 = vmatmul.bf16.vlgmr.msra.gmra.mxu0 %v14018_v36  ;;  %v6599_v12 = vpop.f32.mrf.mxu0  ;;  %v10131_v31 = vor.u32 %v12815_v6, %v10130_v63  ;;  %v10242_v63 = vld [vmem:[%s13472_s22 + $0xfa0] sm:$0xf] }
  0xfb   : > { %6850 = vmatpush.bf16.msrb.mxu0 %v10091_v24  ;;  %6819 = vmatmul.bf16.vlgmr.msra.gmra.mxu1 %v14024_v40  ;;  %v10258_v24 = vld [vmem:[%s13472_s22 + $0xfc0] sm:$0xf] }
  0xfc   : > { %6863 = vmatpush.bf16.msrb.mxu1 %v10155_v26  ;;  %6832 = vmatmul.bf16.vlgmr.msra.gmra.mxu2 %v14022_v39  ;;  %v12847_v26 = vld [vmem:[%s13472_s22 + $0xfc4] sm:$0xf0] }
  0xfd   : > { %6876 = vmatpush.bf16.msrb.mxu2 %v10219_v28  ;;  %6845 = vmatmul.bf16.vlgmr.msra.gmra.mxu3 %v14026_v41  ;;  %v6600_v28 = vadd.f32 %v6599_v12, %v13986_v20  ;;  %v10259_v37 = vor.u32 %v12847_v26, %v10258_v24  ;;  %v12829_v20 = vld [vmem:[%s13472_s22 + $0xf34] sm:$0xf0] }
  0xfe   : > { %6889 = vmatpush.bf16.msrb.mxu3 %v10283_v32  ;;  %v10195_v32 = vor.u32 %v12831_v11, %v10194_v7  ;;  %v10051_v7 = vor.u32 %v12795_v25, %v10050_v53  ;;  %v10042_v11 = vld [vmem:[%s13472_s22 + $0xe10] sm:$0xf]  ;;  %v10226_v53 = vld [vmem:[%s13472_s22 + $0xf80] sm:$0xf]  ;;  %v12839_v25 = vld [vmem:[%s13472_s22 + $0xf84] sm:$0xf0] }
  0xff   : > { %6851 = vmatpush.bf16.msrb.mxu0 %v10083_v42  ;;  %v6613_v38 = vadd.f32 %v6612_v30, %v6600_v28  ;;  %v12813_v42 = vld [vmem:[%s13472_s22 + $0xeb4] sm:$0xf0]  ;;  %v6625_v56 = vpop.f32.mrf.mxu2  ;;  %v10106_v30 = vld [vmem:[%s13472_s22 + $0xe90] sm:$0xf] }
 0x100   : > { %6864 = vmatpush.bf16.msrb.mxu1 %v10147_v43  ;;  %v10186_v43 = vld [vmem:[%s13472_s22 + $0xf30] sm:$0xf]  ;;  %v10123_v51 = vor.u32 %v12813_v42, %v10122_v35  ;;  %v6638_v62 = vpop.f32.mrf.mxu3  ;;  %v6614_v12 = vpop.f32.mrf.mxu1  ;;  %v12791_v42 = vld [vmem:[%s13472_s22 + $0xe04] sm:$0xf0] }
 0x101   : > { %6877 = vmatpush.bf16.msrb.mxu2 %v10211_v44  ;;  %v10250_v44 = vld [vmem:[%s13472_s22 + $0xfb0] sm:$0xf]  ;;  %v6626_v60 = vadd.f32 %v6625_v56, %v6613_v38  ;;  %v10034_v38 = vld [vmem:[%s13472_s22 + $0xe00] sm:$0xf] }
 0x102   : > { %6890 = vmatpush.bf16.msrb.mxu3 %v10275_v52  ;;  %v10187_v52 = vor.u32 %v12829_v20, %v10186_v43  ;;  %v10251_v55 = vor.u32 %v12845_v45, %v10250_v44  ;;  %v6601_v6 = vpop.f32.mrf.mxu0  ;;  %v10234_v35 = vld [vmem:[%s13472_s22 + $0xf90] sm:$0xf]  ;;  %v10098_v20 = vld [vmem:[%s13472_s22 + $0xe80] sm:$0xf]  ;;  %v12807_v44 = vld [vmem:[%s13472_s22 + $0xe84] sm:$0xf0] }
 0x103   : > { %6852 = vmatpush.bf16.msrb.mxu0 %v10075_v57  ;;  %v12811_v57 = vld [vmem:[%s13472_s22 + $0xea4] sm:$0xf0]  ;;  %v14066_v24 = vadd.f32 %v6638_v62, %v6626_v60  ;;  %v10162_v45 = vld [vmem:[%s13472_s22 + $0xf00] sm:$0xf]  ;;  %v14089_v60 = vld [vmem:[#allocation1 + $0x36] sm:$0xff] }
 0x104   : > { %6865 = vmatpush.bf16.msrb.mxu1 %v10139_v58  ;;  %v10178_v58 = vld [vmem:[%s13472_s22 + $0xf20] sm:$0xf]  ;;  %v10115_v26 = vor.u32 %v12811_v57, %v10114_v54  ;;  %v10346_v54 = vld [vmem:[%s13472_s22 + $0x1070] sm:$0xf] }
 0x105   : > { %6878 = vmatpush.bf16.msrb.mxu2 %v10203_v59  ;;  %v12827_v59 = vld [vmem:[%s13472_s22 + $0xf24] sm:$0xf0]  ;;  %v10410_v57 = vld [vmem:[%s13472_s22 + $0x10f0] sm:$0xf] }
 0x106   : > { %6891 = vmatpush.bf16.msrb.mxu3 %v10267_v0  ;;  %v12843_v0 = vld [vmem:[%s13472_s22 + $0xfa4] sm:$0xf0]  ;;  %v10179_v28 = vor.u32 %v12827_v59, %v10178_v58  ;;  %v12885_v58 = vld [vmem:[%s13472_s22 + $0x10f4] sm:$0xf0]  ;;  %v10474_v12 = vld [vmem:[%s13472_s22 + $0x1170] sm:$0xf] }
 0x107   : > { %6853 = vmatpush.bf16.msrb.mxu0 %v10067_v29  ;;  %v12793_v29 = vld [vmem:[%s13472_s22 + $0xe14] sm:$0xf0]  ;;  %v14087_v59 = vld [vmem:[#allocation1 + $0x24] sm:$0xff]  ;;  %v6627_v62 = vpop.f32.mrf.mxu2 }
 0x108   : > { %6866 = vmatpush.bf16.msrb.mxu1 %v10131_v31  ;;  %v12809_v31 = vld [vmem:[%s13472_s22 + $0xe94] sm:$0xf0]  ;;  %v10043_v43 = vor.u32 %v12793_v29, %v10042_v11  ;;  %v6640_v6 = vpop.f32.mrf.mxu3  ;;  %v10035_v11 = vor.u32 %v12791_v42, %v10034_v38  ;;  %v12867_v38 = vld [vmem:[%s13472_s22 + $0x1064] sm:$0xf0]  ;;  %v10402_v42 = vld [vmem:[%s13472_s22 + $0x10e0] sm:$0xf] }
 0x109   : > { %6879 = vmatpush.bf16.msrb.mxu2 %v10195_v32  ;;  %v10243_v32 = vor.u32 %v12843_v0, %v10242_v63  ;;  %v14091_v63 = vld [vmem:[#allocation1 + $0x2d] sm:$0xff]  ;;  %v14093_v0 = vld [vmem:[#allocation1 + $0x3f] sm:$0xff]  ;;  %v12897_v6 = vld [vmem:[%s13472_s22 + $0x1154] sm:$0xf0] }
 0x10a   : > { %6892 = vmatpush.bf16.msrb.mxu3 %v10259_v37  ;;  %v12841_v37 = vld [vmem:[%s13472_s22 + $0xf94] sm:$0xf0]  ;;  %15873 = vst [vmem:[#allocation5_spill] sm:$0xff] %v14093_v0  ;;  %v10458_v62 = vld [vmem:[%s13472_s22 + $0x1150] sm:$0xf] }
 0x10b   : > { %6854 = vmatpush.bf16.msrb.mxu0 %v10059_v46  ;;  %v12823_v46 = vld [vmem:[%s13472_s22 + $0xf04] sm:$0xf0]  ;;  %v10235_v56 = vor.u32 %v12841_v37, %v10234_v35  ;;  %v10338_v37 = vld [vmem:[%s13472_s22 + $0x1060] sm:$0xf] }
 0x10c   : > { %6867 = vmatpush.bf16.msrb.mxu1 %v10123_v51  ;;  %v10107_v51 = vor.u32 %v12809_v31, %v10106_v30  ;;  %v10163_v29 = vor.u32 %v12823_v46, %v10162_v45  ;;  %v10538_v30 = vld [vmem:[%s13472_s22 + $0x11f0] sm:$0xf]  ;;  %v12917_v31 = vld [vmem:[%s13472_s22 + $0x11f4] sm:$0xf0]  ;;  %v10530_v45 = vld [vmem:[%s13472_s22 + $0x11e0] sm:$0xf] }
 0x10d   : > { %6880 = vmatpush.bf16.msrb.mxu2 %v10187_v52  ;;  %v10171_v52 = vor.u32 %v12825_v34, %v10170_v33  ;;  %v10411_v34 = vor.u32 %v12885_v58, %v10410_v57  ;;  %v12915_v46 = vld [vmem:[%s13472_s22 + $0x11e4] sm:$0xf0]  ;;  %v12881_v58 = vld [vmem:[%s13472_s22 + $0x10d4] sm:$0xf0] }
 0x10e   : > { %6893 = vmatpush.bf16.msrb.mxu3 %v10251_v55  ;;  %v12869_v55 = vld [vmem:[%s13472_s22 + $0x1074] sm:$0xf0]  ;;  %v10531_v57 = vor.u32 %v12915_v46, %v10530_v45  ;;  %v10314_v46 = vld [vmem:[%s13472_s22 + $0x1030] sm:$0xf] }
 0x10f   : > { %6855 = vmatpush.bf16.msrb.mxu0 %v10051_v7  ;;  %v194_v7 = vld [vmem:[%s13467_s18 + $0x20] sm:$0xff]  ;;  %v10347_v33 = vor.u32 %v12869_v55, %v10346_v54  ;;  %v10330_v54 = vld [vmem:[%s13472_s22 + $0x1050] sm:$0xf]  ;;  %v12865_v55 = vld [vmem:[%s13472_s22 + $0x1054] sm:$0xf0] }
 0x110   : > { %6868 = vmatpush.bf16.msrb.mxu1 %v10115_v26  ;;  %v12901_v26 = vld [vmem:[%s13472_s22 + $0x1174] sm:$0xf0]  ;;  %1263 = vst [vmem:[#allocation1] ss:$9 sm:$0xff] %v194_v7  ;;  %v10522_v7 = vld [vmem:[%s13472_s22 + $0x11d0] sm:$0xf] }
 0x111   : > { %6881 = vmatpush.bf16.msrb.mxu2 %v10179_v28  ;;  %v10099_v28 = vor.u32 %v12807_v44, %v10098_v20  ;;  %v10475_v35 = vor.u32 %v12901_v26, %v10474_v12  ;;  %v10466_v20 = vld [vmem:[%s13472_s22 + $0x1160] sm:$0xf]  ;;  %v12899_v44 = vld [vmem:[%s13472_s22 + $0x1164] sm:$0xf0]  ;;  %v10331_v12 = vor.u32 %v12865_v55, %v10330_v54  ;;  %v12877_v55 = vld [vmem:[%s13472_s22 + $0x10b4] sm:$0xf0] }
 0x112   : > { %6894 = vmatpush.bf16.msrb.mxu3 %v10243_v32  ;;  %v10227_v32 = vor.u32 %v12839_v25, %v10226_v53  ;;  %v10467_v25 = vor.u32 %v12899_v44, %v10466_v20 }
 0x113   : > { %6856 = vmatpush.bf16.msrb.mxu0 %v10043_v43  ;;  %v10539_v43 = vor.u32 %v12917_v31, %v10538_v30  ;;  %v12863_v30 = vld [vmem:[%s13472_s22 + $0x1044] sm:$0xf0]  ;;  %v10386_v31 = vld [vmem:[%s13472_s22 + $0x10c0] sm:$0xf] }
 0x114   : > { %6869 = vmatpush.bf16.msrb.mxu1 %v10107_v51  ;;  %v12883_v51 = vld [vmem:[%s13472_s22 + $0x10e4] sm:$0xf0] }
 0x115   : > { %6882 = vmatpush.bf16.msrb.mxu2 %v10171_v52  ;;  %v10339_v52 = vor.u32 %v12867_v38, %v10338_v37  ;;  %v10403_v53 = vor.u32 %v12883_v51, %v10402_v42  ;;  %v10514_v38 = vld [vmem:[%s13472_s22 + $0x11c0] sm:$0xf]  ;;  %v12911_v42 = vld [vmem:[%s13472_s22 + $0x11c4] sm:$0xf0] }
 0x116   : > { %6895 = vmatpush.bf16.msrb.mxu3 %v10235_v56  ;;  %v10394_v56 = vld [vmem:[%s13472_s22 + $0x10d0] sm:$0xf] }
 0x117   : > { %6857 = vmatpush.bf16.msrb.mxu0 %v10035_v11  ;;  %v12913_v11 = vld [vmem:[%s13472_s22 + $0x11d4] sm:$0xf0]  ;;  %v10395_v26 = vor.u32 %v12881_v58, %v10394_v56  ;;  %v6651_v37 = vpop.f32.mrf.mxu0  ;;  %v10442_v56 = vld [vmem:[%s13472_s22 + $0x1130] sm:$0xf] }
 0x118   : > { %6870 = vmatpush.bf16.msrb.mxu1 %v10099_v28  ;;  %v10459_v28 = vor.u32 %v12897_v6, %v10458_v62  ;;  %v6664_v20 = vpop.f32.mrf.mxu1  ;;  %v12909_v58 = vld [vmem:[%s13472_s22 + $0x11b4] sm:$0xf0] }
 0x119   : > { %6883 = vmatpush.bf16.msrb.mxu2 %v10163_v29  ;;  %v10322_v29 = vld [vmem:[%s13472_s22 + $0x1040] sm:$0xf] }
 0x11a   : > { %6896 = vmatpush.bf16.msrb.mxu3 %v10227_v32  ;;  %6858 = vmatmul.bf16.vlgmr.msrb.gmra.mxu0 %v14087_v59  ;;  %v10523_v32 = vor.u32 %v12913_v11, %v10522_v7  ;;  %v10323_v51 = vor.u32 %v12863_v30, %v10322_v29  ;;  %v10306_v11 = vld [vmem:[%s13472_s22 + $0x1020] sm:$0xf]  ;;  %v12875_v30 = vld [vmem:[%s13472_s22 + $0x10a4] sm:$0xf0] }
 0x11b   : > { %6902 = vmatpush.bf16.msra.mxu0 %v10347_v33  ;;  %6871 = vmatmul.bf16.vlgmr.msrb.gmra.mxu1 %v14091_v63  ;;  %v12879_v33 = vld [vmem:[%s13472_s22 + $0x10c4] sm:$0xf0] }
 0x11c   : > { %6915 = vmatpush.bf16.msra.mxu1 %v10411_v34  ;;  %6884 = vmatmul.bf16.vlgmr.msrb.gmra.mxu2 %v14089_v60  ;;  %v10450_v34 = vld [vmem:[%s13472_s22 + $0x1140] sm:$0xf]  ;;  %v10387_v44 = vor.u32 %v12879_v33, %v10386_v31 }
 0x11d   : > { %6928 = vmatpush.bf16.msra.mxu2 %v10475_v35  ;;  %6897 = vmatmul.bf16.vlgmr.msrb.gmra.mxu3 %v14093_v0  ;;  %v12895_v35 = vld [vmem:[%s13472_s22 + $0x1144] sm:$0xf0]  ;;  %v10434_v31 = vld [vmem:[%s13472_s22 + $0x1120] sm:$0xf] }
 0x11e   : > { %6941 = vmatpush.bf16.msra.mxu3 %v10539_v43  ;;  %v6652_v43 = vadd.f32 %v6651_v37, %v14066_v24  ;;  %v10451_v45 = vor.u32 %v12895_v35, %v10450_v34  ;;  %v12893_v24 = vld [vmem:[%s13472_s22 + $0x1134] sm:$0xf0]  ;;  %v10498_v35 = vld [vmem:[%s13472_s22 + $0x11a0] sm:$0xf]  ;;  %v12907_v37 = vld [vmem:[%s13472_s22 + $0x11a4] sm:$0xf0] }
 0x11f   : > { %6903 = vmatpush.bf16.msra.mxu0 %v10339_v52  ;;  %v12861_v52 = vld [vmem:[%s13472_s22 + $0x1034] sm:$0xf0]  ;;  %v10443_v7 = vor.u32 %v12893_v24, %v10442_v56  ;;  %v6677_v29 = vpop.f32.mrf.mxu2  ;;  %v10490_v56 = vld [vmem:[%s13472_s22 + $0x1190] sm:$0xf]  ;;  %v10914_v0 = vld [vmem:[%s13472_s22 + $0x14e0] sm:$0xf] }
 0x120   : > { %6916 = vmatpush.bf16.msra.mxu1 %v10403_v53  ;;  %v10378_v53 = vld [vmem:[%s13472_s22 + $0x10b0] sm:$0xf]  ;;  %v6665_v54 = vadd.f32 %v6664_v20, %v6652_v43  ;;  %v10315_v62 = vor.u32 %v12861_v52, %v10314_v46  ;;  %v6690_v34 = vpop.f32.mrf.mxu3  ;;  %v6666_v43 = vpop.f32.mrf.mxu1  ;;  %v12857_v46 = vld [vmem:[%s13472_s22 + $0x1014] sm:$0xf0] }
 0x121   : > { %6929 = vmatpush.bf16.msra.mxu2 %v10467_v25  ;;  %v10515_v25 = vor.u32 %v12911_v42, %v10514_v38  ;;  %v10379_v6 = vor.u32 %v12877_v55, %v10378_v53  ;;  %v6653_v38 = vpop.f32.mrf.mxu0  ;;  %v10362_v52 = vld [vmem:[%s13472_s22 + $0x1090] sm:$0xf]  ;;  %v10499_v53 = vor.u32 %v12907_v37, %v10498_v35  ;;  %v12889_v55 = vld [vmem:[%s13472_s22 + $0x1114] sm:$0xf0] }
 0x122   : > { %6942 = vmatpush.bf16.msra.mxu3 %v10531_v57  ;;  %v10506_v57 = vld [vmem:[%s13472_s22 + $0x11b0] sm:$0xf]  ;;  %v6678_v33 = vadd.f32 %v6677_v29, %v6665_v54  ;;  %v12905_v24 = vld [vmem:[%s13472_s22 + $0x1194] sm:$0xf0]  ;;  %v12887_v29 = vld [vmem:[%s13472_s22 + $0x1104] sm:$0xf0] }
 0x123   : > { %6904 = vmatpush.bf16.msra.mxu0 %v10331_v12  ;;  %v12859_v12 = vld [vmem:[%s13472_s22 + $0x1024] sm:$0xf0]  ;;  %v10426_v54 = vld [vmem:[%s13472_s22 + $0x1110] sm:$0xf] }
 0x124   : > { %6917 = vmatpush.bf16.msra.mxu1 %v10395_v26  ;;  %v10370_v26 = vld [vmem:[%s13472_s22 + $0x10a0] sm:$0xf]  ;;  %v10307_v42 = vor.u32 %v12859_v12, %v10306_v11  ;;  %v12871_v12 = vld [vmem:[%s13472_s22 + $0x1084] sm:$0xf0]  ;;  %v10666_v35 = vld [vmem:[%s13472_s22 + $0x12f0] sm:$0xf] }
 0x125   : > { %6930 = vmatpush.bf16.msra.mxu2 %v10459_v28  ;;  %v10507_v28 = vor.u32 %v12909_v58, %v10506_v57  ;;  %v10371_v20 = vor.u32 %v12875_v30, %v10370_v26  ;;  %v10290_v58 = vld [vmem:[%s13472_s22 + $0x1000] sm:$0xf]  ;;  %v10730_v43 = vld [vmem:[%s13472_s22 + $0x1370] sm:$0xf] }
 0x126   : > { %6943 = vmatpush.bf16.msra.mxu3 %v10523_v32  ;;  %v12891_v32 = vld [vmem:[%s13472_s22 + $0x1124] sm:$0xf0]  ;;  %v10354_v11 = vld [vmem:[%s13472_s22 + $0x1080] sm:$0xf] }
 0x127   : > { %6905 = vmatpush.bf16.msra.mxu0 %v10323_v51  ;;  %v14145_v51 = vadd.f32 %v6690_v34, %v6678_v33  ;;  %v10418_v26 = vld [vmem:[%s13472_s22 + $0x1100] sm:$0xf]  ;;  %v10602_v33 = vld [vmem:[%s13472_s22 + $0x1270] sm:$0xf]  ;;  %v12933_v34 = vld [vmem:[%s13472_s22 + $0x1274] sm:$0xf0] }
 0x128   : > { %6918 = vmatpush.bf16.msra.mxu1 %v10387_v44  ;;  %v10435_v44 = vor.u32 %v12891_v32, %v10434_v31  ;;  %v10482_v30 = vld [vmem:[%s13472_s22 + $0x1180] sm:$0xf]  ;;  %v12903_v31 = vld [vmem:[%s13472_s22 + $0x1184] sm:$0xf0]  ;;  %v6679_v32 = vpop.f32.mrf.mxu2  ;;  %v6692_v37 = vpop.f32.mrf.mxu3 }
 0x129   : > { %6931 = vmatpush.bf16.msra.mxu2 %v10451_v45  ;;  %v10298_v45 = vld [vmem:[%s13472_s22 + $0x1010] sm:$0xf] }
 0x12a   : > { %6944 = vmatpush.bf16.msra.mxu3 %v10515_v25  ;;  %v12873_v25 = vld [vmem:[%s13472_s22 + $0x1094] sm:$0xf0]  ;;  %v10299_v57 = vor.u32 %v12857_v46, %v10298_v45  ;;  %v10419_v45 = vor.u32 %v12887_v29, %v10418_v26  ;;  %v10794_v46 = vld [vmem:[%s13472_s22 + $0x13f0] sm:$0xf]  ;;  %v12979_v26 = vld [vmem:[%s13472_s22 + $0x13e4] sm:$0xf0] }
 0x12b   : > { %6906 = vmatpush.bf16.msra.mxu0 %v10315_v62  ;;  %v12855_v62 = vld [vmem:[%s13472_s22 + $0x1004] sm:$0xf0]  ;;  %v10650_v37 = vld [vmem:[%s13472_s22 + $0x12d0] sm:$0xf] }
 0x12c   : > { %6919 = vmatpush.bf16.msra.mxu1 %v10379_v6  ;;  %v10363_v6 = vor.u32 %v12873_v25, %v10362_v52  ;;  %v10291_v38 = vor.u32 %v12855_v62, %v10290_v58  ;;  %v12981_v52 = vld [vmem:[%s13472_s22 + $0x13f4] sm:$0xf0]  ;;  %v10603_v25 = vor.u32 %v12933_v34, %v10602_v33  ;;  %v12947_v62 = vld [vmem:[%s13472_s22 + $0x12e4] sm:$0xf0]  ;;  %v10586_v34 = vld [vmem:[%s13472_s22 + $0x1250] sm:$0xf] }
 0x12d   : > { %6932 = vmatpush.bf16.msra.mxu2 %v10443_v7  ;;  %v10427_v7 = vor.u32 %v12889_v55, %v10426_v54  ;;  %v10795_v58 = vor.u32 %v12981_v52, %v10794_v46  ;;  %v14183_v29 = vld [vmem:[#allocation1 + $0x9] sm:$0xff] }
 0x12e   : > { %6945 = vmatpush.bf16.msra.mxu3 %v10507_v28  ;;  %v10491_v28 = vor.u32 %v12905_v24, %v10490_v56  ;;  %v10594_v56 = vld [vmem:[%s13472_s22 + $0x1260] sm:$0xf]  ;;  %v12931_v24 = vld [vmem:[%s13472_s22 + $0x1264] sm:$0xf0]  ;;  %15876 = vst [vmem:[#allocation8_spill] sm:$0xff] %v14183_v29 }
 0x12f   : > { %6907 = vmatpush.bf16.msra.mxu0 %v10307_v42  ;;  %v12949_v42 = vld [vmem:[%s13472_s22 + $0x12f4] sm:$0xf0] }
 0x130   : > { %6920 = vmatpush.bf16.msra.mxu1 %v10371_v20  ;;  %v12965_v20 = vld [vmem:[%s13472_s22 + $0x1374] sm:$0xf0]  ;;  %v10667_v54 = vor.u32 %v12949_v42, %v10666_v35 }
 0x131   : > { %6933 = vmatpush.bf16.msra.mxu2 %v10435_v44  ;;  %v10355_v44 = vor.u32 %v12871_v12, %v10354_v11  ;;  %v10731_v55 = vor.u32 %v12965_v20, %v10730_v43  ;;  %v14177_v11 = vld [vmem:[#allocation1] sm:$0xff]  ;;  %v12929_v35 = vld [vmem:[%s13472_s22 + $0x1254] sm:$0xf0]  ;;  %v10714_v43 = vld [vmem:[%s13472_s22 + $0x1350] sm:$0xf] }
 0x132   : > { %6946 = vmatpush.bf16.msra.mxu3 %v10499_v53  ;;  %v10483_v53 = vor.u32 %v12903_v31, %v10482_v30  ;;  %15874 = vst [vmem:[#allocation6_spill] sm:$0xff] %v14177_v11  ;;  %v10786_v12 = vld [vmem:[%s13472_s22 + $0x13e0] sm:$0xf]  ;;  %v10595_v31 = vor.u32 %v12931_v24, %v10594_v56  ;;  %v12945_v42 = vld [vmem:[%s13472_s22 + $0x12d4] sm:$0xf0]  ;;  %v10587_v46 = vor.u32 %v12929_v35, %v10586_v34 }
 0x133   : > { %6908 = vmatpush.bf16.msra.mxu0 %v10299_v57  ;;  %v10658_v57 = vld [vmem:[%s13472_s22 + $0x12e0] sm:$0xf]  ;;  %v12961_v20 = vld [vmem:[%s13472_s22 + $0x1354] sm:$0xf0]  ;;  %v10651_v52 = vor.u32 %v12945_v42, %v10650_v37  ;;  %v12943_v24 = vld [vmem:[%s13472_s22 + $0x12c4] sm:$0xf0] }
 0x134   : > { %6921 = vmatpush.bf16.msra.mxu1 %v10363_v6  ;;  %v10722_v6 = vld [vmem:[%s13472_s22 + $0x1360] sm:$0xf]  ;;  %v10659_v32 = vor.u32 %v12947_v62, %v10658_v57  ;;  %v10570_v34 = vld [vmem:[%s13472_s22 + $0x1230] sm:$0xf]  ;;  %v12925_v35 = vld [vmem:[%s13472_s22 + $0x1234] sm:$0xf0] }
 0x135   : > { %6934 = vmatpush.bf16.msra.mxu2 %v10427_v7  ;;  %v12963_v7 = vld [vmem:[%s13472_s22 + $0x1364] sm:$0xf0]  ;;  %v14185_v30 = vld [vmem:[#allocation1 + $0x1b] sm:$0xff]  ;;  %v10634_v37 = vld [vmem:[%s13472_s22 + $0x12b0] sm:$0xf] }
 0x136   : > { %6947 = vmatpush.bf16.msra.mxu3 %v10491_v28  ;;  %v14181_v28 = vld [vmem:[#allocation1 + $0x12] sm:$0xff]  ;;  %15877 = vst [vmem:[#allocation9_spill] sm:$0xff] %v14185_v30  ;;  %v10723_v33 = vor.u32 %v12963_v7, %v10722_v6  ;;  %v10706_v57 = vld [vmem:[%s13472_s22 + $0x1340] sm:$0xf]  ;;  %v12975_v7 = vld [vmem:[%s13472_s22 + $0x13c4] sm:$0xf0] }
 0x137   : > { %6909 = vmatpush.bf16.msra.mxu0 %v10291_v38  ;;  %15875 = vst [vmem:[#allocation7_spill] sm:$0xff] %v14181_v28  ;;  %v10787_v38 = vor.u32 %v12979_v26, %v10786_v12  ;;  %v6703_v62 = vpop.f32.mrf.mxu0  ;;  %v10770_v6 = vld [vmem:[%s13472_s22 + $0x13c0] sm:$0xf] }
 0x138   : > { %6922 = vmatpush.bf16.msra.mxu1 %v10355_v44  ;;  %v10778_v44 = vld [vmem:[%s13472_s22 + $0x13d0] sm:$0xf]  ;;  %v6704_v12 = vadd.f32 %v6703_v62, %v14145_v51  ;;  %v12957_v51 = vld [vmem:[%s13472_s22 + $0x1334] sm:$0xf0]  ;;  %v12955_v62 = vld [vmem:[%s13472_s22 + $0x1324] sm:$0xf0] }
 0x139   : > { %6935 = vmatpush.bf16.msra.mxu2 %v10419_v45  ;;  %v12977_v45 = vld [vmem:[%s13472_s22 + $0x13d4] sm:$0xf0] }
 0x13a   : > { %6948 = vmatpush.bf16.msra.mxu3 %v10483_v53  ;;  %6910 = vmatmul.bf16.vlgmr.msra.gmra.mxu0 %v14177_v11  ;;  %v10715_v53 = vor.u32 %v12961_v20, %v10714_v43  ;;  %v10779_v56 = vor.u32 %v12977_v45, %v10778_v44  ;;  %v12941_v43 = vld [vmem:[%s13472_s22 + $0x12b4] sm:$0xf0]  ;;  %v10698_v20 = vld [vmem:[%s13472_s22 + $0x1330] sm:$0xf]  ;;  %v12995_v11 = vld [vmem:[%s13472_s22 + $0x1464] sm:$0xf0] }
 0x13b   : > { %6954 = vmatpush.bf16.msrb.mxu0 %v10603_v25  ;;  %6923 = vmatmul.bf16.vlgmr.msra.gmra.mxu1 %v14183_v29  ;;  %v10578_v25 = vld [vmem:[%s13472_s22 + $0x1240] sm:$0xf]  ;;  %v10762_v44 = vld [vmem:[%s13472_s22 + $0x13b0] sm:$0xf]  ;;  %v12973_v45 = vld [vmem:[%s13472_s22 + $0x13b4] sm:$0xf0] }
 0x13c   : > { %6967 = vmatpush.bf16.msrb.mxu1 %v10667_v54  ;;  %6936 = vmatmul.bf16.vlgmr.msra.gmra.mxu2 %v14181_v28  ;;  %v12927_v54 = vld [vmem:[%s13472_s22 + $0x1244] sm:$0xf0]  ;;  %v13045_v29 = vld [vmem:[%s13472_s22 + $0x15f4] sm:$0xf0]  ;;  %v10850_v28 = vld [vmem:[%s13472_s22 + $0x1460] sm:$0xf] }
 0x13d   : > { %6980 = vmatpush.bf16.msrb.mxu2 %v10731_v55  ;;  %6949 = vmatmul.bf16.vlgmr.msra.gmra.mxu3 %v14185_v30  ;;  %v10642_v55 = vld [vmem:[%s13472_s22 + $0x12c0] sm:$0xf]  ;;  %v10579_v26 = vor.u32 %v12927_v54, %v10578_v25  ;;  %v12923_v54 = vld [vmem:[%s13472_s22 + $0x1224] sm:$0xf0]  ;;  %v11050_v30 = vld [vmem:[%s13472_s22 + $0x15f0] sm:$0xf] }
 0x13e   : > { %6993 = vmatpush.bf16.msrb.mxu3 %v10795_v58  ;;  %v12959_v58 = vld [vmem:[%s13472_s22 + $0x1344] sm:$0xf0]  ;;  %v10562_v25 = vld [vmem:[%s13472_s22 + $0x1220] sm:$0xf] }
 0x13f   : > { %6955 = vmatpush.bf16.msrb.mxu0 %v10595_v31  ;;  %v6716_v31 = vpop.f32.mrf.mxu1 }
 0x140   : > { %6968 = vmatpush.bf16.msrb.mxu1 %v10659_v32  ;;  %v10643_v32 = vor.u32 %v12943_v24, %v10642_v55  ;;  %v6717_v42 = vadd.f32 %v6716_v31, %v6704_v12  ;;  %v10626_v55 = vld [vmem:[%s13472_s22 + $0x12a0] sm:$0xf]  ;;  %v6729_v24 = vpop.f32.mrf.mxu2  ;;  %v6705_v31 = vpop.f32.mrf.mxu0 }
 0x141   : > { %6981 = vmatpush.bf16.msrb.mxu2 %v10723_v33  ;;  %v10707_v33 = vor.u32 %v12959_v58, %v10706_v57  ;;  %v12939_v57 = vld [vmem:[%s13472_s22 + $0x12a4] sm:$0xf0]  ;;  %v10690_v58 = vld [vmem:[%s13472_s22 + $0x1320] sm:$0xf] }
 0x142   : > { %6994 = vmatpush.bf16.msrb.mxu3 %v10787_v38  ;;  %v10771_v38 = vor.u32 %v12975_v7, %v10770_v6  ;;  %v6730_v6 = vadd.f32 %v6729_v24, %v6717_v42  ;;  %v6742_v7 = vpop.f32.mrf.mxu3  ;;  %v10754_v12 = vld [vmem:[%s13472_s22 + $0x13a0] sm:$0xf]  ;;  %v12921_v42 = vld [vmem:[%s13472_s22 + $0x1214] sm:$0xf0]  ;;  %v12935_v24 = vld [vmem:[%s13472_s22 + $0x1284] sm:$0xf0] }
 0x143   : > { %6956 = vmatpush.bf16.msrb.mxu0 %v10587_v46  ;;  %v10571_v46 = vor.u32 %v12925_v35, %v10570_v34 }
 0x144   : > { %6969 = vmatpush.bf16.msrb.mxu1 %v10651_v52  ;;  %v10635_v52 = vor.u32 %v12941_v43, %v10634_v37  ;;  %v14225_v35 = vadd.f32 %v6742_v7, %v6730_v6  ;;  %v10627_v37 = vor.u32 %v12939_v57, %v10626_v55  ;;  %v10618_v43 = vld [vmem:[%s13472_s22 + $0x1290] sm:$0xf]  ;;  %v10610_v55 = vld [vmem:[%s13472_s22 + $0x1280] sm:$0xf]  ;;  %v12967_v7 = vld [vmem:[%s13472_s22 + $0x1384] sm:$0xf0] }
 0x145   : > { %6982 = vmatpush.bf16.msrb.mxu2 %v10715_v53  ;;  %v10699_v53 = vor.u32 %v12957_v51, %v10698_v20  ;;  %v12937_v20 = vld [vmem:[%s13472_s22 + $0x1294] sm:$0xf0]  ;;  %v10674_v57 = vld [vmem:[%s13472_s22 + $0x1300] sm:$0xf] }
 0x146   : > { %6995 = vmatpush.bf16.msrb.mxu3 %v10779_v56  ;;  %v10763_v56 = vor.u32 %v12973_v45, %v10762_v44  ;;  %v10682_v44 = vld [vmem:[%s13472_s22 + $0x1310] sm:$0xf]  ;;  %v12953_v45 = vld [vmem:[%s13472_s22 + $0x1314] sm:$0xf0]  ;;  %v10738_v6 = vld [vmem:[%s13472_s22 + $0x1380] sm:$0xf] }
 0x147   : > { %6957 = vmatpush.bf16.msrb.mxu0 %v10579_v26  ;;  %v12971_v26 = vld [vmem:[%s13472_s22 + $0x13a4] sm:$0xf0]  ;;  %v6718_v34 = vpop.f32.mrf.mxu1 }
 0x148   : > { %6970 = vmatpush.bf16.msrb.mxu1 %v10643_v32  ;;  %v10563_v32 = vor.u32 %v12923_v54, %v10562_v25  ;;  %v10755_v51 = vor.u32 %v12971_v26, %v10754_v12  ;;  %v12919_v25 = vld [vmem:[%s13472_s22 + $0x1204] sm:$0xf0]  ;;  %v10858_v12 = vld [vmem:[%s13472_s22 + $0x1470] sm:$0xf]  ;;  %v12997_v26 = vld [vmem:[%s13472_s22 + $0x1474] sm:$0xf0] }
 0x149   : > { %6983 = vmatpush.bf16.msrb.mxu2 %v10707_v33  ;;  %v10554_v33 = vld [vmem:[%s13472_s22 + $0x1210] sm:$0xf]  ;;  %v14246_v34 = vld [vmem:[#allocation1 + $0x24] sm:$0xff] }
 0x14a   : > { %6996 = vmatpush.bf16.msrb.mxu3 %v10771_v38  ;;  %v10691_v38 = vor.u32 %v12955_v62, %v10690_v58  ;;  %v10555_v54 = vor.u32 %v12921_v42, %v10554_v33  ;;  %v12951_v58 = vld [vmem:[%s13472_s22 + $0x1304] sm:$0xf0]  ;;  %v10683_v62 = vor.u32 %v12953_v45, %v10682_v44  ;;  %v13013_v33 = vld [vmem:[%s13472_s22 + $0x14f4] sm:$0xf0]  ;;  %15878 = vst [vmem:[#allocation10_spill] sm:$0xff] %v14246_v34 }
 0x14b   : > { %6958 = vmatpush.bf16.msrb.mxu0 %v10571_v46  ;;  %v10746_v46 = vld [vmem:[%s13472_s22 + $0x1390] sm:$0xf]  ;;  %v14248_v42 = vld [vmem:[#allocation1 + $0x36] sm:$0xff]  ;;  %v195_v44 = vld [vmem:[%s13467_s18 + $0x28] sm:$0xff] }
 0x14c   : > { %6971 = vmatpush.bf16.msrb.mxu1 %v10635_v52  ;;  %v12969_v52 = vld [vmem:[%s13472_s22 + $0x1394] sm:$0xf0]  ;;  %15879 = vst [vmem:[#allocation11_spill] sm:$0xff] %v14248_v42 }
 0x14d   : > { %6984 = vmatpush.bf16.msrb.mxu2 %v10699_v53  ;;  %v10546_v53 = vld [vmem:[%s13472_s22 + $0x1200] sm:$0xf]  ;;  %v10747_v31 = vor.u32 %v12969_v52, %v10746_v46  ;;  %v13029_v46 = vld [vmem:[%s13472_s22 + $0x1574] sm:$0xf0]  ;;  %v10611_v52 = vor.u32 %v12935_v24, %v10610_v55  ;;  %v13027_v24 = vld [vmem:[%s13472_s22 + $0x1564] sm:$0xf0] }
 0x14e   : > { %6997 = vmatpush.bf16.msrb.mxu3 %v10763_v56  ;;  %v10619_v56 = vor.u32 %v12937_v20, %v10618_v43  ;;  %v14252_v43 = vld [vmem:[#allocation1 + $0x3f] sm:$0xff]  ;;  %v6744_v20 = vpop.f32.mrf.mxu3  ;;  %v10547_v45 = vor.u32 %v12919_v25, %v10546_v53 }
 0x14f   : > { %6959 = vmatpush.bf16.msrb.mxu0 %v10563_v32  ;;  %v10922_v32 = vld [vmem:[%s13472_s22 + $0x14f0] sm:$0xf]  ;;  %15881 = vst [vmem:[#allocation13_spill] sm:$0xff] %v14252_v43  ;;  %v10859_v20 = vor.u32 %v12997_v26, %v10858_v12  ;;  %v10978_v55 = vld [vmem:[%s13472_s22 + $0x1560] sm:$0xf] }
 0x150   : > { %6972 = vmatpush.bf16.msrb.mxu1 %v10627_v37  ;;  %v6731_v37 = vpop.f32.mrf.mxu2  ;;  %v10923_v53 = vor.u32 %v13013_v33, %v10922_v32  ;;  %v12993_v12 = vld [vmem:[%s13472_s22 + $0x1454] sm:$0xf0]  ;;  %v10906_v26 = vld [vmem:[%s13472_s22 + $0x14d0] sm:$0xf] }
 0x151   : > { %6985 = vmatpush.bf16.msrb.mxu2 %v10691_v38  ;;  %v14250_v38 = vld [vmem:[#allocation1 + $0x2d] sm:$0xff]  ;;  %v10675_v37 = vor.u32 %v12951_v58, %v10674_v57  ;;  %v11042_v57 = vld [vmem:[%s13472_s22 + $0x15e0] sm:$0xf]  ;;  %v13043_v58 = vld [vmem:[%s13472_s22 + $0x15e4] sm:$0xf0] }
 0x152   : > { %6998 = vmatpush.bf16.msrb.mxu3 %v10755_v51  ;;  %15880 = vst [vmem:[#allocation12_spill] sm:$0xff] %v14250_v38  ;;  %v10986_v51 = vld [vmem:[%s13472_s22 + $0x1570] sm:$0xf]  ;;  %v13009_v32 = vld [vmem:[%s13472_s22 + $0x14d4] sm:$0xf0] }
 0x153   : > { %6960 = vmatpush.bf16.msrb.mxu0 %v10555_v54  ;;  %1273 = vst [vmem:[#allocation1] ss:$9 sm:$0xff] %v195_v44  ;;  %v10739_v54 = vor.u32 %v12967_v7, %v10738_v6  ;;  %v10987_v25 = vor.u32 %v13029_v46, %v10986_v51  ;;  %v10851_v6 = vor.u32 %v12995_v11, %v10850_v28  ;;  %v10842_v7 = vld [vmem:[%s13472_s22 + $0x1450] sm:$0xf]  ;;  %v13025_v44 = vld [vmem:[%s13472_s22 + $0x1554] sm:$0xf0] }
 0x154   : > { %6973 = vmatpush.bf16.msrb.mxu1 %v10619_v56  ;;  %v11051_v56 = vor.u32 %v13045_v29, %v11050_v30  ;;  %v10979_v30 = vor.u32 %v13027_v24, %v10978_v55  ;;  %v10970_v33 = vld [vmem:[%s13472_s22 + $0x1550] sm:$0xf]  ;;  %v13041_v11 = vld [vmem:[%s13472_s22 + $0x15d4] sm:$0xf0]  ;;  %v10843_v28 = vor.u32 %v12993_v12, %v10842_v7  ;;  %v10834_v46 = vld [vmem:[%s13472_s22 + $0x1440] sm:$0xf] }
 0x155   : > { %6986 = vmatpush.bf16.msrb.mxu2 %v10683_v62  ;;  %v13011_v62 = vld [vmem:[%s13472_s22 + $0x14e4] sm:$0xf0]  ;;  %v10971_v51 = vor.u32 %v13025_v44, %v10970_v33  ;;  %v12989_v7 = vld [vmem:[%s13472_s22 + $0x1434] sm:$0xf0]  ;;  %v10890_v12 = vld [vmem:[%s13472_s22 + $0x14b0] sm:$0xf] }
 0x156   : > { %6999 = vmatpush.bf16.msrb.mxu3 %v10747_v31  ;;  %v10915_v29 = vor.u32 %v13011_v62, %v10914_v0  ;;  %v11043_v31 = vor.u32 %v13043_v58, %v11042_v57  ;;  %v11034_v0 = vld [vmem:[%s13472_s22 + $0x15d0] sm:$0xf]  ;;  %v11026_v62 = vld [vmem:[%s13472_s22 + $0x15c0] sm:$0xf]  ;;  %v13039_v55 = vld [vmem:[%s13472_s22 + $0x15c4] sm:$0xf0] }
 0x157   : > { %6961 = vmatpush.bf16.msrb.mxu0 %v10547_v45  ;;  %v10907_v45 = vor.u32 %v13009_v32, %v10906_v26  ;;  %v11027_v26 = vor.u32 %v13039_v55, %v11026_v62  ;;  %v13005_v32 = vld [vmem:[%s13472_s22 + $0x14b4] sm:$0xf0]  ;;  %v10954_v33 = vld [vmem:[%s13472_s22 + $0x1530] sm:$0xf]  ;;  %v11010_v55 = vld [vmem:[%s13472_s22 + $0x15a0] sm:$0xf] }
 0x158   : > { %6974 = vmatpush.bf16.msrb.mxu1 %v10611_v52  ;;  %v12991_v52 = vld [vmem:[%s13472_s22 + $0x1444] sm:$0xf0]  ;;  %v6768_v58 = vpop.f32.mrf.mxu1  ;;  %v11018_v44 = vld [vmem:[%s13472_s22 + $0x15b0] sm:$0xf] }
 0x159   : > { %6987 = vmatpush.bf16.msrb.mxu2 %v10675_v37  ;;  %v10898_v37 = vld [vmem:[%s13472_s22 + $0x14c0] sm:$0xf]  ;;  %v10835_v57 = vor.u32 %v12991_v52, %v10834_v46  ;;  %v12987_v46 = vld [vmem:[%s13472_s22 + $0x1424] sm:$0xf0] }
 0x15a   : > { %7000 = vmatpush.bf16.msrb.mxu3 %v10739_v54  ;;  %6962 = vmatmul.bf16.vlgmr.msrb.gmra.mxu0 %v14246_v34  ;;  %v11035_v54 = vor.u32 %v13041_v11, %v11034_v0  ;;  %v13037_v0 = vld [vmem:[%s13472_s22 + $0x15b4] sm:$0xf0]  ;;  %v10882_v52 = vld [vmem:[%s13472_s22 + $0x14a0] sm:$0xf] }
 0x15b   : > { %7006 = vmatpush.bf16.msra.mxu0 %v10859_v20  ;;  %6975 = vmatmul.bf16.vlgmr.msrb.gmra.mxu1 %v14250_v38  ;;  %v13007_v20 = vld [vmem:[%s13472_s22 + $0x14c4] sm:$0xf0]  ;;  %v11362_v38 = vld [vmem:[%s13472_s22 + $0x1860] sm:$0xf] }
 0x15c   : > { %7019 = vmatpush.bf16.msra.mxu1 %v10923_v53  ;;  %6988 = vmatmul.bf16.vlgmr.msrb.gmra.mxu2 %v14248_v42  ;;  %v10962_v53 = vld [vmem:[%s13472_s22 + $0x1540] sm:$0xf]  ;;  %v13123_v42 = vld [vmem:[%s13472_s22 + $0x1864] sm:$0xf0] }
 0x15d   : > { %7032 = vmatpush.bf16.msra.mxu2 %v10987_v25  ;;  %7001 = vmatmul.bf16.vlgmr.msrb.gmra.mxu3 %v14252_v43  ;;  %v13023_v25 = vld [vmem:[%s13472_s22 + $0x1544] sm:$0xf0]  ;;  %v11426_v34 = vld [vmem:[%s13472_s22 + $0x18e0] sm:$0xf] }
 0x15e   : > { %7045 = vmatpush.bf16.msra.mxu3 %v11051_v56  ;;  %v6755_v56 = vpop.f32.mrf.mxu0  ;;  %v13091_v43 = vld [vmem:[%s13472_s22 + $0x1764] sm:$0xf0] }
 0x15f   : > { %7007 = vmatpush.bf16.msra.mxu0 %v10851_v6  ;;  %v6756_v24 = vadd.f32 %v6755_v56, %v14225_v35  ;;  %v10899_v6 = vor.u32 %v13007_v20, %v10898_v37  ;;  %v13021_v35 = vld [vmem:[%s13472_s22 + $0x1534] sm:$0xf0]  ;;  %v11019_v37 = vor.u32 %v13037_v0, %v11018_v44  ;;  %v13003_v20 = vld [vmem:[%s13472_s22 + $0x14a4] sm:$0xf0]  ;;  %v11002_v0 = vld [vmem:[%s13472_s22 + $0x1590] sm:$0xf] }
 0x160   : > { %7020 = vmatpush.bf16.msra.mxu1 %v10915_v29  ;;  %v10963_v29 = vor.u32 %v13023_v25, %v10962_v53  ;;  %v10946_v53 = vld [vmem:[%s13472_s22 + $0x1520] sm:$0xf]  ;;  %v13019_v25 = vld [vmem:[%s13472_s22 + $0x1524] sm:$0xf0]  ;;  %v6794_v62 = vpop.f32.mrf.mxu3  ;;  %v13017_v44 = vld [vmem:[%s13472_s22 + $0x1514] sm:$0xf0] }
 0x161   : > { %7033 = vmatpush.bf16.msra.mxu2 %v10979_v30  ;;  %v10826_v30 = vld [vmem:[%s13472_s22 + $0x1430] sm:$0xf] }
 0x162   : > { %7046 = vmatpush.bf16.msra.mxu3 %v11043_v31  ;;  %v6769_v31 = vadd.f32 %v6768_v58, %v6756_v24  ;;  %v10827_v11 = vor.u32 %v12989_v7, %v10826_v30  ;;  %v13035_v24 = vld [vmem:[%s13472_s22 + $0x15a4] sm:$0xf0]  ;;  %v10883_v30 = vor.u32 %v13003_v20, %v10882_v52  ;;  %v10947_v7 = vor.u32 %v13019_v25, %v10946_v53  ;;  %v10930_v20 = vld [vmem:[%s13472_s22 + $0x1500] sm:$0xf] }
 0x163   : > { %7008 = vmatpush.bf16.msra.mxu0 %v10843_v28  ;;  %v10891_v28 = vor.u32 %v13005_v32, %v10890_v12  ;;  %v10810_v12 = vld [vmem:[%s13472_s22 + $0x1410] sm:$0xf]  ;;  %v11011_v32 = vor.u32 %v13035_v24, %v11010_v55  ;;  %v13015_v25 = vld [vmem:[%s13472_s22 + $0x1504] sm:$0xf0] }
 0x164   : > { %7021 = vmatpush.bf16.msra.mxu1 %v10907_v45  ;;  %v10955_v45 = vor.u32 %v13021_v35, %v10954_v33  ;;  %v13001_v33 = vld [vmem:[%s13472_s22 + $0x1494] sm:$0xf0]  ;;  %v10938_v35 = vld [vmem:[%s13472_s22 + $0x1510] sm:$0xf] }
 0x165   : > { %7034 = vmatpush.bf16.msra.mxu2 %v10971_v51  ;;  %v10818_v51 = vld [vmem:[%s13472_s22 + $0x1420] sm:$0xf]  ;;  %v10939_v52 = vor.u32 %v13017_v44, %v10938_v35  ;;  %v11114_v24 = vld [vmem:[%s13472_s22 + $0x1670] sm:$0xf]  ;;  %v13109_v35 = vld [vmem:[%s13472_s22 + $0x17f4] sm:$0xf0] }
 0x166   : > { %7047 = vmatpush.bf16.msra.mxu3 %v11035_v54  ;;  %v6781_v54 = vpop.f32.mrf.mxu2  ;;  %v10819_v58 = vor.u32 %v12987_v46, %v10818_v51  ;;  %v12983_v51 = vld [vmem:[%s13472_s22 + $0x1404] sm:$0xf0] }
 0x167   : > { %7009 = vmatpush.bf16.msra.mxu0 %v10835_v57  ;;  %v6782_v56 = vadd.f32 %v6781_v54, %v6769_v31  ;;  %v6757_v57 = vpop.f32.mrf.mxu0  ;;  %v10874_v31 = vld [vmem:[%s13472_s22 + $0x1490] sm:$0xf]  ;;  %v12999_v54 = vld [vmem:[%s13472_s22 + $0x1484] sm:$0xf0] }
 0x168   : > { %7022 = vmatpush.bf16.msra.mxu1 %v10899_v6  ;;  %v6770_v6 = vpop.f32.mrf.mxu1  ;;  %v10875_v46 = vor.u32 %v13001_v33, %v10874_v31  ;;  %v13061_v57 = vld [vmem:[%s13472_s22 + $0x1674] sm:$0xf0]  ;;  %v11306_v33 = vld [vmem:[%s13472_s22 + $0x17f0] sm:$0xf] }
 0x169   : > { %7035 = vmatpush.bf16.msra.mxu2 %v10963_v29  ;;  %v14304_v29 = vadd.f32 %v6794_v62, %v6782_v56  ;;  %v10994_v56 = vld [vmem:[%s13472_s22 + $0x1580] sm:$0xf]  ;;  %v13031_v62 = vld [vmem:[%s13472_s22 + $0x1584] sm:$0xf0]  ;;  %v6796_v6 = vpop.f32.mrf.mxu3 }
 0x16a   : > { %7048 = vmatpush.bf16.msra.mxu3 %v11027_v26  ;;  %v12985_v26 = vld [vmem:[%s13472_s22 + $0x1414] sm:$0xf0]  ;;  %v10995_v44 = vor.u32 %v13031_v62, %v10994_v56  ;;  %v13075_v6 = vld [vmem:[%s13472_s22 + $0x16e4] sm:$0xf0] }
 0x16b   : > { %7010 = vmatpush.bf16.msra.mxu0 %v10827_v11  ;;  %v13033_v11 = vld [vmem:[%s13472_s22 + $0x1594] sm:$0xf0] }
 0x16c   : > { %7023 = vmatpush.bf16.msra.mxu1 %v10891_v28  ;;  %v10811_v28 = vor.u32 %v12985_v26, %v10810_v12  ;;  %v11003_v53 = vor.u32 %v13033_v11, %v11002_v0  ;;  %v11242_v12 = vld [vmem:[%s13472_s22 + $0x1770] sm:$0xf]  ;;  %v13093_v26 = vld [vmem:[%s13472_s22 + $0x1774] sm:$0xf0]  ;;  %v11115_v0 = vor.u32 %v13061_v57, %v11114_v24 }
 0x16d   : > { %7036 = vmatpush.bf16.msra.mxu2 %v10955_v45  ;;  %v10802_v45 = vld [vmem:[%s13472_s22 + $0x1400] sm:$0xf] }
 0x16e   : > { %7049 = vmatpush.bf16.msra.mxu3 %v11019_v37  ;;  %v10866_v37 = vld [vmem:[%s13472_s22 + $0x1480] sm:$0xf]  ;;  %v6783_v55 = vpop.f32.mrf.mxu2 }
 0x16f   : > { %7011 = vmatpush.bf16.msra.mxu0 %v10819_v58  ;;  %v11178_v58 = vld [vmem:[%s13472_s22 + $0x16f0] sm:$0xf]  ;;  %v10867_v31 = vor.u32 %v12999_v54, %v10866_v37  ;;  %v11170_v55 = vld [vmem:[%s13472_s22 + $0x16e0] sm:$0xf] }
 0x170   : > { %7024 = vmatpush.bf16.msra.mxu1 %v10883_v30  ;;  %v10803_v30 = vor.u32 %v12983_v51, %v10802_v45  ;;  %v11106_v45 = vld [vmem:[%s13472_s22 + $0x1660] sm:$0xf]  ;;  %v13059_v51 = vld [vmem:[%s13472_s22 + $0x1664] sm:$0xf0]  ;;  %v11171_v24 = vor.u32 %v13075_v6, %v11170_v55 }
 0x171   : > { %7037 = vmatpush.bf16.msra.mxu2 %v10947_v7  ;;  %v13077_v7 = vld [vmem:[%s13472_s22 + $0x16f4] sm:$0xf0]  ;;  %v14336_v37 = vld [vmem:[#allocation1] sm:$0xff]  ;;  %v11107_v62 = vor.u32 %v13059_v51, %v11106_v45  ;;  %v13071_v55 = vld [vmem:[%s13472_s22 + $0x16c4] sm:$0xf0] }
 0x172   : > { %7050 = vmatpush.bf16.msra.mxu3 %v11011_v32  ;;  %v10931_v32 = vor.u32 %v13015_v25, %v10930_v20  ;;  %v11179_v11 = vor.u32 %v13077_v7, %v11178_v58  ;;  %15882 = vst [vmem:[#allocation14_spill] sm:$0xff] %v14336_v37  ;;  %v11298_v54 = vld [vmem:[%s13472_s22 + $0x17e0] sm:$0xf]  ;;  %v13107_v20 = vld [vmem:[%s13472_s22 + $0x17e4] sm:$0xf0] }
 0x173   : > { %7012 = vmatpush.bf16.msra.mxu0 %v10811_v28  ;;  %v11243_v28 = vor.u32 %v13093_v26, %v11242_v12  ;;  %v14342_v25 = vld [vmem:[#allocation1 + $0x9] sm:$0xff]  ;;  %v14344_v56 = vld [vmem:[#allocation1 + $0x1b] sm:$0xff]  ;;  %v11299_v12 = vor.u32 %v13107_v20, %v11298_v54 }
 0x174   : > { %7025 = vmatpush.bf16.msra.mxu1 %v10875_v46  ;;  %v11307_v46 = vor.u32 %v13109_v35, %v11306_v33  ;;  %15884 = vst [vmem:[#allocation16_spill] sm:$0xff] %v14342_v25  ;;  %v11098_v58 = vld [vmem:[%s13472_s22 + $0x1650] sm:$0xf]  ;;  %v13073_v26 = vld [vmem:[%s13472_s22 + $0x16d4] sm:$0xf0] }
 0x175   : > { %7038 = vmatpush.bf16.msra.mxu2 %v10939_v52  ;;  %v11234_v52 = vld [vmem:[%s13472_s22 + $0x1760] sm:$0xf]  ;;  %15885 = vst [vmem:[#allocation17_spill] sm:$0xff] %v14344_v56  ;;  %v11162_v7 = vld [vmem:[%s13472_s22 + $0x16d0] sm:$0xf] }
 0x176   : > { %7051 = vmatpush.bf16.msra.mxu3 %v11003_v53  ;;  %v14340_v53 = vld [vmem:[#allocation1 + $0x12] sm:$0xff]  ;;  %v11235_v57 = vor.u32 %v13091_v43, %v11234_v52  ;;  %v11154_v45 = vld [vmem:[%s13472_s22 + $0x16c0] sm:$0xf]  ;;  %v13087_v6 = vld [vmem:[%s13472_s22 + $0x1744] sm:$0xf0] }
 0x177   : > { %7013 = vmatpush.bf16.msra.mxu0 %v10803_v30  ;;  %15883 = vst [vmem:[#allocation15_spill] sm:$0xff] %v14340_v53  ;;  %v13057_v30 = vld [vmem:[%s13472_s22 + $0x1654] sm:$0xf0]  ;;  %v11290_v43 = vld [vmem:[%s13472_s22 + $0x17d0] sm:$0xf]  ;;  %v6807_v52 = vpop.f32.mrf.mxu0 }
 0x178   : > { %7026 = vmatpush.bf16.msra.mxu1 %v10867_v31  ;;  %v11226_v31 = vld [vmem:[%s13472_s22 + $0x1750] sm:$0xf]  ;;  %v13105_v33 = vld [vmem:[%s13472_s22 + $0x17d4] sm:$0xf0]  ;;  %v11099_v35 = vor.u32 %v13057_v30, %v11098_v58  ;;  %v11282_v54 = vld [vmem:[%s13472_s22 + $0x17c0] sm:$0xf]  ;;  %v11155_v58 = vor.u32 %v13071_v55, %v11154_v45 }
 0x179   : > { %7039 = vmatpush.bf16.msra.mxu2 %v10931_v32  ;;  %v13089_v32 = vld [vmem:[%s13472_s22 + $0x1754] sm:$0xf0]  ;;  %v11291_v51 = vor.u32 %v13105_v33, %v11290_v43  ;;  %v13103_v20 = vld [vmem:[%s13472_s22 + $0x17c4] sm:$0xf0]  ;;  %v11210_v33 = vld [vmem:[%s13472_s22 + $0x1730] sm:$0xf] }
 0x17a   : > { %7052 = vmatpush.bf16.msra.mxu3 %v10995_v44  ;;  %7014 = vmatmul.bf16.vlgmr.msra.gmra.mxu0 %v14336_v37  ;;  %v11163_v44 = vor.u32 %v13073_v26, %v11162_v7  ;;  %v11082_v7 = vld [vmem:[%s13472_s22 + $0x1630] sm:$0xf]  ;;  %v13069_v43 = vld [vmem:[%s13472_s22 + $0x16b4] sm:$0xf0]  ;;  %v11074_v45 = vld [vmem:[%s13472_s22 + $0x1620] sm:$0xf] }
 0x17b   : > { %7058 = vmatpush.bf16.msrb.mxu0 %v11115_v0  ;;  %7027 = vmatmul.bf16.vlgmr.msra.gmra.mxu1 %v14342_v25  ;;  %v11227_v0 = vor.u32 %v13089_v32, %v11226_v31  ;;  %v11146_v26 = vld [vmem:[%s13472_s22 + $0x16b0] sm:$0xf]  ;;  %v11283_v31 = vor.u32 %v13103_v20, %v11282_v54  ;;  %v11138_v55 = vld [vmem:[%s13472_s22 + $0x16a0] sm:$0xf]  ;;  %v13083_v20 = vld [vmem:[%s13472_s22 + $0x1724] sm:$0xf0] }
 0x17c   : > { %7071 = vmatpush.bf16.msrb.mxu1 %v11179_v11  ;;  %7040 = vmatmul.bf16.vlgmr.msra.gmra.mxu2 %v14340_v53  ;;  %v11090_v11 = vld [vmem:[%s13472_s22 + $0x1640] sm:$0xf]  ;;  %v14407_v25 = vld [vmem:[#allocation1 + $0x36] sm:$0xff]  ;;  %v11562_v53 = vld [vmem:[%s13472_s22 + $0x19f0] sm:$0xf] }
 0x17d   : > { %7084 = vmatpush.bf16.msrb.mxu2 %v11243_v28  ;;  %7053 = vmatmul.bf16.vlgmr.msra.gmra.mxu3 %v14344_v56  ;;  %v13055_v28 = vld [vmem:[%s13472_s22 + $0x1644] sm:$0xf0]  ;;  %v11202_v54 = vld [vmem:[%s13472_s22 + $0x1720] sm:$0xf]  ;;  %v11434_v56 = vld [vmem:[%s13472_s22 + $0x18f0] sm:$0xf] }
 0x17e   : > { %7097 = vmatpush.bf16.msrb.mxu3 %v11307_v46  ;;  %v11218_v46 = vld [vmem:[%s13472_s22 + $0x1740] sm:$0xf]  ;;  %15887 = vst [vmem:[#allocation19_spill] sm:$0xff] %v14407_v25  ;;  %v13173_v37 = vld [vmem:[%s13472_s22 + $0x19f4] sm:$0xf0] }
 0x17f   : > { %7059 = vmatpush.bf16.msrb.mxu0 %v11107_v62  ;;  %v6808_v62 = vadd.f32 %v6807_v52, %v14304_v29  ;;  %v11219_v30 = vor.u32 %v13087_v6, %v11218_v46  ;;  %v13085_v29 = vld [vmem:[%s13472_s22 + $0x1734] sm:$0xf0]  ;;  %v6833_v6 = vpop.f32.mrf.mxu2  ;;  %v13067_v52 = vld [vmem:[%s13472_s22 + $0x16a4] sm:$0xf0] }
 0x180   : > { %7072 = vmatpush.bf16.msrb.mxu1 %v11171_v24  ;;  %v11091_v24 = vor.u32 %v13055_v28, %v11090_v11  ;;  %v11147_v11 = vor.u32 %v13069_v43, %v11146_v26  ;;  %v11211_v28 = vor.u32 %v13085_v29, %v11210_v33  ;;  %v11203_v43 = vor.u32 %v13083_v20, %v11202_v54  ;;  %v13049_v33 = vld [vmem:[%s13472_s22 + $0x1614] sm:$0xf0]  ;;  %v11130_v29 = vld [vmem:[%s13472_s22 + $0x1690] sm:$0xf]  ;;  %v13063_v54 = vld [vmem:[%s13472_s22 + $0x1684] sm:$0xf0] }
 0x181   : > { %7085 = vmatpush.bf16.msrb.mxu2 %v11235_v57  ;;  %v6820_v57 = vpop.f32.mrf.mxu1  ;;  %v11186_v20 = vld [vmem:[%s13472_s22 + $0x1700] sm:$0xf] }
 0x182   : > { %7098 = vmatpush.bf16.msrb.mxu3 %v11299_v12  ;;  %v13053_v12 = vld [vmem:[%s13472_s22 + $0x1634] sm:$0xf0]  ;;  %v6821_v32 = vadd.f32 %v6820_v57, %v6808_v62  ;;  %v11266_v57 = vld [vmem:[%s13472_s22 + $0x17a0] sm:$0xf] }
 0x183   : > { %7060 = vmatpush.bf16.msrb.mxu0 %v11099_v35  ;;  %v11274_v35 = vld [vmem:[%s13472_s22 + $0x17b0] sm:$0xf] }
 0x184   : > { %7073 = vmatpush.bf16.msrb.mxu1 %v11163_v44  ;;  %v13101_v44 = vld [vmem:[%s13472_s22 + $0x17b4] sm:$0xf0]  ;;  %v6834_v62 = vadd.f32 %v6833_v6, %v6821_v32  ;;  %v11139_v32 = vor.u32 %v13067_v52, %v11138_v55  ;;  %v13047_v6 = vld [vmem:[%s13472_s22 + $0x1604] sm:$0xf0]  ;;  %v11122_v52 = vld [vmem:[%s13472_s22 + $0x1680] sm:$0xf] }
 0x185   : > { %7086 = vmatpush.bf16.msrb.mxu2 %v11227_v0  ;;  %v11083_v0 = vor.u32 %v13053_v12, %v11082_v7  ;;  %v11275_v46 = vor.u32 %v13101_v44, %v11274_v35  ;;  %v11066_v12 = vld [vmem:[%s13472_s22 + $0x1610] sm:$0xf]  ;;  %v13065_v35 = vld [vmem:[%s13472_s22 + $0x1694] sm:$0xf0] }
 0x186   : > { %7099 = vmatpush.bf16.msrb.mxu3 %v11291_v51  ;;  %v13051_v51 = vld [vmem:[%s13472_s22 + $0x1624] sm:$0xf0]  ;;  %v11067_v55 = vor.u32 %v13049_v33, %v11066_v12  ;;  %v13141_v12 = vld [vmem:[%s13472_s22 + $0x18f4] sm:$0xf0] }
 0x187   : > { %7061 = vmatpush.bf16.msrb.mxu0 %v11091_v24  ;;  %v6846_v24 = vpop.f32.mrf.mxu3  ;;  %v11075_v7 = vor.u32 %v13051_v51, %v11074_v45  ;;  %v13081_v45 = vld [vmem:[%s13472_s22 + $0x1714] sm:$0xf0]  ;;  %v11258_v51 = vld [vmem:[%s13472_s22 + $0x1790] sm:$0xf]  ;;  %v14405_v33 = vld [vmem:[#allocation1 + $0x24] sm:$0xff] }
 0x188   : > { %7074 = vmatpush.bf16.msrb.mxu1 %v11155_v58  ;;  %v13099_v58 = vld [vmem:[%s13472_s22 + $0x17a4] sm:$0xf0]  ;;  %15886 = vst [vmem:[#allocation18_spill] sm:$0xff] %v14405_v33 }
 0x189   : > { %7087 = vmatpush.bf16.msrb.mxu2 %v11219_v30  ;;  %v6809_v30 = vpop.f32.mrf.mxu0  ;;  %v6822_v26 = vpop.f32.mrf.mxu1  ;;  %v11267_v44 = vor.u32 %v13099_v58, %v11266_v57  ;;  %v11250_v57 = vld [vmem:[%s13472_s22 + $0x1780] sm:$0xf]  ;;  %v13095_v58 = vld [vmem:[%s13472_s22 + $0x1784] sm:$0xf0] }
 0x18a   : > { %7100 = vmatpush.bf16.msrb.mxu3 %v11283_v31  ;;  %v14384_v31 = vadd.f32 %v6846_v24, %v6834_v62  ;;  %v13079_v62 = vld [vmem:[%s13472_s22 + $0x1704] sm:$0xf0]  ;;  %v11370_v30 = vld [vmem:[%s13472_s22 + $0x1870] sm:$0xf]  ;;  %v13125_v26 = vld [vmem:[%s13472_s22 + $0x1874] sm:$0xf0] }
 0x18b   : > { %7062 = vmatpush.bf16.msrb.mxu0 %v11083_v0  ;;  %v11194_v0 = vld [vmem:[%s13472_s22 + $0x1710] sm:$0xf] }
 0x18c   : > { %7075 = vmatpush.bf16.msrb.mxu1 %v11147_v11  ;;  %v13097_v11 = vld [vmem:[%s13472_s22 + $0x1794] sm:$0xf0]  ;;  %v11195_v24 = vor.u32 %v13081_v45, %v11194_v0  ;;  %v196_v0 = vld [vmem:[%s13467_s18 + $0x30] sm:$0xff] }
 0x18d   : > { %7088 = vmatpush.bf16.msrb.mxu2 %v11211_v28  ;;  %v11058_v28 = vld [vmem:[%s13472_s22 + $0x1600] sm:$0xf] }
 0x18e   : > { %7101 = vmatpush.bf16.msrb.mxu3 %v11275_v46  ;;  %v11131_v46 = vor.u32 %v13065_v35, %v11130_v29  ;;  %v14411_v29 = vld [vmem:[#allocation1 + $0x3f] sm:$0xff]  ;;  %v11059_v45 = vor.u32 %v13047_v6, %v11058_v28  ;;  %v11435_v28 = vor.u32 %v13141_v12, %v11434_v56  ;;  %v11363_v56 = vor.u32 %v13123_v42, %v11362_v38  ;;  %v11482_v12 = vld [vmem:[%s13472_s22 + $0x1950] sm:$0xf]  ;;  %v13169_v42 = vld [vmem:[%s13472_s22 + $0x19d4] sm:$0xf0] }
 0x18f   : > { %7063 = vmatpush.bf16.msrb.mxu0 %v11075_v7  ;;  %v11259_v7 = vor.u32 %v13097_v11, %v11258_v51  ;;  %15889 = vst [vmem:[#allocation21_spill] sm:$0xff] %v14411_v29  ;;  %v6848_v35 = vpop.f32.mrf.mxu3  ;;  %v13157_v51 = vld [vmem:[%s13472_s22 + $0x1974] sm:$0xf0]  ;;  %v11123_v11 = vor.u32 %v13063_v54, %v11122_v52  ;;  %v11490_v52 = vld [vmem:[%s13472_s22 + $0x1960] sm:$0xf] }
 0x190   : > { %7076 = vmatpush.bf16.msrb.mxu1 %v11139_v32  ;;  %v6835_v32 = vpop.f32.mrf.mxu2  ;;  %v11371_v35 = vor.u32 %v13125_v26, %v11370_v30  ;;  %v13155_v54 = vld [vmem:[%s13472_s22 + $0x1964] sm:$0xf0]  ;;  %v11418_v30 = vld [vmem:[%s13472_s22 + $0x18d0] sm:$0xf] }
 0x191   : > { %7089 = vmatpush.bf16.msrb.mxu2 %v11203_v43  ;;  %v14409_v43 = vld [vmem:[#allocation1 + $0x2d] sm:$0xff]  ;;  %v11187_v32 = vor.u32 %v13079_v62, %v11186_v20  ;;  %v11554_v20 = vld [vmem:[%s13472_s22 + $0x19e0] sm:$0xf]  ;;  %v13171_v62 = vld [vmem:[%s13472_s22 + $0x19e4] sm:$0xf0] }
 0x192   : > { %7102 = vmatpush.bf16.msrb.mxu3 %v11267_v44  ;;  %15888 = vst [vmem:[#allocation20_spill] sm:$0xff] %v14409_v43  ;;  %v11498_v44 = vld [vmem:[%s13472_s22 + $0x1970] sm:$0xf]  ;;  %v11555_v26 = vor.u32 %v13171_v62, %v11554_v20 }
 0x193   : > { %7064 = vmatpush.bf16.msrb.mxu0 %v11067_v55  ;;  %1283 = vst [vmem:[#allocation1] ss:$9 sm:$0xff] %v196_v0  ;;  %v11251_v55 = vor.u32 %v13095_v58, %v11250_v57  ;;  %v11499_v6 = vor.u32 %v13157_v51, %v11498_v44  ;;  %v11354_v57 = vld [vmem:[%s13472_s22 + $0x1850] sm:$0xf]  ;;  %v13121_v58 = vld [vmem:[%s13472_s22 + $0x1854] sm:$0xf0] }
 0x194   : > { %7077 = vmatpush.bf16.msrb.mxu1 %v11131_v46  ;;  %v11563_v46 = vor.u32 %v13173_v37, %v11562_v53  ;;  %v11491_v53 = vor.u32 %v13155_v54, %v11490_v52  ;;  %v13153_v0 = vld [vmem:[%s13472_s22 + $0x1954] sm:$0xf0]  ;;  %v11355_v38 = vor.u32 %v13121_v58, %v11354_v57  ;;  %v11346_v51 = vld [vmem:[%s13472_s22 + $0x1840] sm:$0xf]  ;;  %v13167_v52 = vld [vmem:[%s13472_s22 + $0x19c4] sm:$0xf0] }
 0x195   : > { %7090 = vmatpush.bf16.msrb.mxu2 %v11195_v24  ;;  %v13139_v24 = vld [vmem:[%s13472_s22 + $0x18e4] sm:$0xf0]  ;;  %v11483_v44 = vor.u32 %v13153_v0, %v11482_v12  ;;  %v13117_v57 = vld [vmem:[%s13472_s22 + $0x1834] sm:$0xf0]  ;;  %v11402_v58 = vld [vmem:[%s13472_s22 + $0x18b0] sm:$0xf] }
 0x196   : > { %7103 = vmatpush.bf16.msrb.mxu3 %v11259_v7  ;;  %v11427_v37 = vor.u32 %v13139_v24, %v11426_v34  ;;  %v13137_v7 = vld [vmem:[%s13472_s22 + $0x18d4] sm:$0xf0]  ;;  %v11546_v34 = vld [vmem:[%s13472_s22 + $0x19d0] sm:$0xf]  ;;  %v11538_v24 = vld [vmem:[%s13472_s22 + $0x19c0] sm:$0xf] }
 0x197   : > { %7065 = vmatpush.bf16.msrb.mxu0 %v11059_v45  ;;  %v11419_v45 = vor.u32 %v13137_v7, %v11418_v30  ;;  %v11539_v30 = vor.u32 %v13167_v52, %v11538_v24  ;;  %v13133_v7 = vld [vmem:[%s13472_s22 + $0x18b4] sm:$0xf0]  ;;  %v11466_v12 = vld [vmem:[%s13472_s22 + $0x1930] sm:$0xf]  ;;  %v11522_v52 = vld [vmem:[%s13472_s22 + $0x19a0] sm:$0xf] }
 0x198   : > { %7078 = vmatpush.bf16.msrb.mxu1 %v11123_v11  ;;  %v13119_v11 = vld [vmem:[%s13472_s22 + $0x1844] sm:$0xf0]  ;;  %v6872_v62 = vpop.f32.mrf.mxu1  ;;  %v11530_v0 = vld [vmem:[%s13472_s22 + $0x19b0] sm:$0xf] }
 0x199   : > { %7091 = vmatpush.bf16.msrb.mxu2 %v11187_v32  ;;  %v11410_v32 = vld [vmem:[%s13472_s22 + $0x18c0] sm:$0xf]  ;;  %v11347_v20 = vor.u32 %v13119_v11, %v11346_v51  ;;  %v13115_v51 = vld [vmem:[%s13472_s22 + $0x1824] sm:$0xf0] }
 0x19a   : > { %7104 = vmatpush.bf16.msrb.mxu3 %v11251_v55  ;;  %7066 = vmatmul.bf16.vlgmr.msrb.gmra.mxu0 %v14405_v33  ;;  %v11547_v55 = vor.u32 %v13169_v42, %v11546_v34  ;;  %v13165_v34 = vld [vmem:[%s13472_s22 + $0x19b4] sm:$0xf0]  ;;  %v11394_v11 = vld [vmem:[%s13472_s22 + $0x18a0] sm:$0xf] }
 0x19b   : > { %7110 = vmatpush.bf16.msra.mxu0 %v11371_v35  ;;  %7079 = vmatmul.bf16.vlgmr.msrb.gmra.mxu1 %v14409_v43  ;;  %v13135_v35 = vld [vmem:[%s13472_s22 + $0x18c4] sm:$0xf0]  ;;  %v11874_v43 = vld [vmem:[%s13472_s22 + $0x1c60] sm:$0xf] }
 0x19c   : > { %7123 = vmatpush.bf16.msra.mxu1 %v11435_v28  ;;  %7092 = vmatmul.bf16.vlgmr.msrb.gmra.mxu2 %v14407_v25  ;;  %v11474_v28 = vld [vmem:[%s13472_s22 + $0x1940] sm:$0xf]  ;;  %v13251_v25 = vld [vmem:[%s13472_s22 + $0x1c64] sm:$0xf0] }
 0x19d   : > { %7136 = vmatpush.bf16.msra.mxu2 %v11499_v6  ;;  %7105 = vmatmul.bf16.vlgmr.msrb.gmra.mxu3 %v14411_v29  ;;  %v13151_v6 = vld [vmem:[%s13472_s22 + $0x1944] sm:$0xf0]  ;;  %v11938_v33 = vld [vmem:[%s13472_s22 + $0x1ce0] sm:$0xf] }
 0x19e   : > { %7149 = vmatpush.bf16.msra.mxu3 %v11563_v46  ;;  %v6859_v46 = vpop.f32.mrf.mxu0  ;;  %v13219_v29 = vld [vmem:[%s13472_s22 + $0x1b64] sm:$0xf0] }
 0x19f   : > { %7111 = vmatpush.bf16.msra.mxu0 %v11363_v56  ;;  %v6860_v54 = vadd.f32 %v6859_v46, %v14384_v31  ;;  %v11411_v56 = vor.u32 %v13135_v35, %v11410_v32  ;;  %v13149_v31 = vld [vmem:[%s13472_s22 + $0x1934] sm:$0xf0]  ;;  %v11531_v32 = vor.u32 %v13165_v34, %v11530_v0  ;;  %v13131_v35 = vld [vmem:[%s13472_s22 + $0x18a4] sm:$0xf0]  ;;  %v11514_v34 = vld [vmem:[%s13472_s22 + $0x1990] sm:$0xf] }
 0x1a0   : > { %7124 = vmatpush.bf16.msra.mxu1 %v11427_v37  ;;  %v11475_v37 = vor.u32 %v13151_v6, %v11474_v28  ;;  %v11458_v28 = vld [vmem:[%s13472_s22 + $0x1920] sm:$0xf]  ;;  %v13147_v6 = vld [vmem:[%s13472_s22 + $0x1924] sm:$0xf0]  ;;  %v6898_v24 = vpop.f32.mrf.mxu3  ;;  %v13145_v0 = vld [vmem:[%s13472_s22 + $0x1914] sm:$0xf0] }
 0x1a1   : > { %7137 = vmatpush.bf16.msra.mxu2 %v11491_v53  ;;  %v11338_v53 = vld [vmem:[%s13472_s22 + $0x1830] sm:$0xf] }
 0x1a2   : > { %7150 = vmatpush.bf16.msra.mxu3 %v11555_v26  ;;  %v6873_v26 = vadd.f32 %v6872_v62, %v6860_v54  ;;  %v11339_v42 = vor.u32 %v13117_v57, %v11338_v53  ;;  %v13163_v54 = vld [vmem:[%s13472_s22 + $0x19a4] sm:$0xf0]  ;;  %v11395_v53 = vor.u32 %v13131_v35, %v11394_v11  ;;  %v11459_v57 = vor.u32 %v13147_v6, %v11458_v28  ;;  %v11442_v35 = vld [vmem:[%s13472_s22 + $0x1900] sm:$0xf] }
 0x1a3   : > { %7112 = vmatpush.bf16.msra.mxu0 %v11355_v38  ;;  %v11403_v38 = vor.u32 %v13133_v7, %v11402_v58  ;;  %v11322_v58 = vld [vmem:[%s13472_s22 + $0x1810] sm:$0xf]  ;;  %v11523_v7 = vor.u32 %v13163_v54, %v11522_v52  ;;  %v13143_v6 = vld [vmem:[%s13472_s22 + $0x1904] sm:$0xf0] }
 0x1a4   : > { %7125 = vmatpush.bf16.msra.mxu1 %v11419_v45  ;;  %v11467_v45 = vor.u32 %v13149_v31, %v11466_v12  ;;  %v13129_v12 = vld [vmem:[%s13472_s22 + $0x1894] sm:$0xf0]  ;;  %v11450_v31 = vld [vmem:[%s13472_s22 + $0x1910] sm:$0xf] }
 0x1a5   : > { %7138 = vmatpush.bf16.msra.mxu2 %v11483_v44  ;;  %v11330_v44 = vld [vmem:[%s13472_s22 + $0x1820] sm:$0xf]  ;;  %v11451_v11 = vor.u32 %v13145_v0, %v11450_v31  ;;  %v11626_v54 = vld [vmem:[%s13472_s22 + $0x1a70] sm:$0xf]  ;;  %v13237_v31 = vld [vmem:[%s13472_s22 + $0x1bf4] sm:$0xf0] }
 0x1a6   : > { %7151 = vmatpush.bf16.msra.mxu3 %v11547_v55  ;;  %v6885_v55 = vpop.f32.mrf.mxu2  ;;  %v11331_v62 = vor.u32 %v13115_v51, %v11330_v44  ;;  %v13111_v44 = vld [vmem:[%s13472_s22 + $0x1804] sm:$0xf0] }
 0x1a7   : > { %7113 = vmatpush.bf16.msra.mxu0 %v11347_v20  ;;  %v6886_v46 = vadd.f32 %v6885_v55, %v6873_v26  ;;  %v6861_v20 = vpop.f32.mrf.mxu0  ;;  %v11386_v26 = vld [vmem:[%s13472_s22 + $0x1890] sm:$0xf]  ;;  %v13127_v55 = vld [vmem:[%s13472_s22 + $0x1884] sm:$0xf0] }
 0x1a8   : > { %7126 = vmatpush.bf16.msra.mxu1 %v11411_v56  ;;  %v6874_v56 = vpop.f32.mrf.mxu1  ;;  %v11387_v51 = vor.u32 %v13129_v12, %v11386_v26  ;;  %v13189_v20 = vld [vmem:[%s13472_s22 + $0x1a74] sm:$0xf0]  ;;  %v11818_v12 = vld [vmem:[%s13472_s22 + $0x1bf0] sm:$0xf] }
 0x1a9   : > { %7139 = vmatpush.bf16.msra.mxu2 %v11475_v37  ;;  %v14463_v37 = vadd.f32 %v6898_v24, %v6886_v46  ;;  %v11506_v46 = vld [vmem:[%s13472_s22 + $0x1980] sm:$0xf]  ;;  %v13159_v24 = vld [vmem:[%s13472_s22 + $0x1984] sm:$0xf0]  ;;  %v6900_v56 = vpop.f32.mrf.mxu3 }
 0x1aa   : > { %7152 = vmatpush.bf16.msra.mxu3 %v11539_v30  ;;  %v13113_v30 = vld [vmem:[%s13472_s22 + $0x1814] sm:$0xf0]  ;;  %v11507_v0 = vor.u32 %v13159_v24, %v11506_v46  ;;  %v13203_v56 = vld [vmem:[%s13472_s22 + $0x1ae4] sm:$0xf0] }
 0x1ab   : > { %7114 = vmatpush.bf16.msra.mxu0 %v11339_v42  ;;  %v13161_v42 = vld [vmem:[%s13472_s22 + $0x1994] sm:$0xf0] }
 0x1ac   : > { %7127 = vmatpush.bf16.msra.mxu1 %v11403_v38  ;;  %v11323_v38 = vor.u32 %v13113_v30, %v11322_v58  ;;  %v11515_v28 = vor.u32 %v13161_v42, %v11514_v34  ;;  %v11754_v58 = vld [vmem:[%s13472_s22 + $0x1b70] sm:$0xf]  ;;  %v13221_v30 = vld [vmem:[%s13472_s22 + $0x1b74] sm:$0xf0]  ;;  %v11627_v34 = vor.u32 %v13189_v20, %v11626_v54 }
 0x1ad   : > { %7140 = vmatpush.bf16.msra.mxu2 %v11467_v45  ;;  %v11314_v45 = vld [vmem:[%s13472_s22 + $0x1800] sm:$0xf] }
 0x1ae   : > { %7153 = vmatpush.bf16.msra.mxu3 %v11531_v32  ;;  %v11378_v32 = vld [vmem:[%s13472_s22 + $0x1880] sm:$0xf]  ;;  %v6887_v52 = vpop.f32.mrf.mxu2 }
 0x1af   : > { %7115 = vmatpush.bf16.msra.mxu0 %v11331_v62  ;;  %v11690_v62 = vld [vmem:[%s13472_s22 + $0x1af0] sm:$0xf]  ;;  %v11379_v26 = vor.u32 %v13127_v55, %v11378_v32  ;;  %v11682_v52 = vld [vmem:[%s13472_s22 + $0x1ae0] sm:$0xf] }
 0x1b0   : > { %7128 = vmatpush.bf16.msra.mxu1 %v11395_v53  ;;  %v11315_v53 = vor.u32 %v13111_v44, %v11314_v45  ;;  %v11618_v45 = vld [vmem:[%s13472_s22 + $0x1a60] sm:$0xf]  ;;  %v13187_v44 = vld [vmem:[%s13472_s22 + $0x1a64] sm:$0xf0]  ;;  %v11683_v54 = vor.u32 %v13203_v56, %v11682_v52 }
 0x1b1   : > { %7141 = vmatpush.bf16.msra.mxu2 %v11459_v57  ;;  %v13205_v57 = vld [vmem:[%s13472_s22 + $0x1af4] sm:$0xf0]  ;;  %v14495_v32 = vld [vmem:[#allocation1] sm:$0xff]  ;;  %v11619_v24 = vor.u32 %v13187_v44, %v11618_v45  ;;  %v13199_v52 = vld [vmem:[%s13472_s22 + $0x1ac4] sm:$0xf0] }
 0x1b2   : > { %7154 = vmatpush.bf16.msra.mxu3 %v11523_v7  ;;  %v11443_v7 = vor.u32 %v13143_v6, %v11442_v35  ;;  %v11691_v42 = vor.u32 %v13205_v57, %v11690_v62  ;;  %15890 = vst [vmem:[#allocation22_spill] sm:$0xff] %v14495_v32  ;;  %v11810_v55 = vld [vmem:[%s13472_s22 + $0x1be0] sm:$0xf]  ;;  %v13235_v35 = vld [vmem:[%s13472_s22 + $0x1be4] sm:$0xf0] }
 0x1b3   : > { %7116 = vmatpush.bf16.msra.mxu0 %v11323_v38  ;;  %v11755_v38 = vor.u32 %v13221_v30, %v11754_v58  ;;  %v14501_v6 = vld [vmem:[#allocation1 + $0x9] sm:$0xff]  ;;  %v14503_v46 = vld [vmem:[#allocation1 + $0x1b] sm:$0xff]  ;;  %v11811_v58 = vor.u32 %v13235_v35, %v11810_v55 }
 0x1b4   : > { %7129 = vmatpush.bf16.msra.mxu1 %v11387_v51  ;;  %v11819_v51 = vor.u32 %v13237_v31, %v11818_v12  ;;  %15892 = vst [vmem:[#allocation24_spill] sm:$0xff] %v14501_v6  ;;  %v11610_v62 = vld [vmem:[%s13472_s22 + $0x1a50] sm:$0xf]  ;;  %v13201_v30 = vld [vmem:[%s13472_s22 + $0x1ad4] sm:$0xf0] }
 0x1b5   : > { %7142 = vmatpush.bf16.msra.mxu2 %v11451_v11  ;;  %v11746_v11 = vld [vmem:[%s13472_s22 + $0x1b60] sm:$0xf]  ;;  %15893 = vst [vmem:[#allocation25_spill] sm:$0xff] %v14503_v46  ;;  %v11674_v57 = vld [vmem:[%s13472_s22 + $0x1ad0] sm:$0xf] }
 0x1b6   : > { %7155 = vmatpush.bf16.msra.mxu3 %v11515_v28  ;;  %v14499_v28 = vld [vmem:[#allocation1 + $0x12] sm:$0xff]  ;;  %v11747_v20 = vor.u32 %v13219_v29, %v11746_v11  ;;  %v11666_v45 = vld [vmem:[%s13472_s22 + $0x1ac0] sm:$0xf]  ;;  %v13215_v56 = vld [vmem:[%s13472_s22 + $0x1b44] sm:$0xf0] }
 0x1b7   : > { %7117 = vmatpush.bf16.msra.mxu0 %v11315_v53  ;;  %15891 = vst [vmem:[#allocation23_spill] sm:$0xff] %v14499_v28  ;;  %v13185_v53 = vld [vmem:[%s13472_s22 + $0x1a54] sm:$0xf0]  ;;  %v11802_v29 = vld [vmem:[%s13472_s22 + $0x1bd0] sm:$0xf]  ;;  %v6911_v11 = vpop.f32.mrf.mxu0 }
 0x1b8   : > { %7130 = vmatpush.bf16.msra.mxu1 %v11379_v26  ;;  %v11738_v26 = vld [vmem:[%s13472_s22 + $0x1b50] sm:$0xf]  ;;  %v13233_v12 = vld [vmem:[%s13472_s22 + $0x1bd4] sm:$0xf0]  ;;  %v11611_v31 = vor.u32 %v13185_v53, %v11610_v62  ;;  %v11794_v55 = vld [vmem:[%s13472_s22 + $0x1bc0] sm:$0xf]  ;;  %v11667_v62 = vor.u32 %v13199_v52, %v11666_v45 }
 0x1b9   : > { %7143 = vmatpush.bf16.msra.mxu2 %v11443_v7  ;;  %v13217_v7 = vld [vmem:[%s13472_s22 + $0x1b54] sm:$0xf0]  ;;  %v11803_v44 = vor.u32 %v13233_v12, %v11802_v29  ;;  %v13231_v35 = vld [vmem:[%s13472_s22 + $0x1bc4] sm:$0xf0]  ;;  %v11722_v12 = vld [vmem:[%s13472_s22 + $0x1b30] sm:$0xf] }
 0x1ba   : > { %7156 = vmatpush.bf16.msra.mxu3 %v11507_v0  ;;  %7118 = vmatmul.bf16.vlgmr.msra.gmra.mxu0 %v14495_v32  ;;  %v11675_v0 = vor.u32 %v13201_v30, %v11674_v57  ;;  %v11594_v57 = vld [vmem:[%s13472_s22 + $0x1a30] sm:$0xf]  ;;  %v13197_v29 = vld [vmem:[%s13472_s22 + $0x1ab4] sm:$0xf0]  ;;  %v11586_v45 = vld [vmem:[%s13472_s22 + $0x1a20] sm:$0xf] }
 0x1bb   : > { %7162 = vmatpush.bf16.msrb.mxu0 %v11627_v34  ;;  %7131 = vmatmul.bf16.vlgmr.msra.gmra.mxu1 %v14501_v6  ;;  %v11739_v34 = vor.u32 %v13217_v7, %v11738_v26  ;;  %v11658_v30 = vld [vmem:[%s13472_s22 + $0x1ab0] sm:$0xf]  ;;  %v11795_v26 = vor.u32 %v13231_v35, %v11794_v55  ;;  %v11650_v52 = vld [vmem:[%s13472_s22 + $0x1aa0] sm:$0xf]  ;;  %v13211_v35 = vld [vmem:[%s13472_s22 + $0x1b24] sm:$0xf0] }
 0x1bc   : > { %7175 = vmatpush.bf16.msrb.mxu1 %v11691_v42  ;;  %7144 = vmatmul.bf16.vlgmr.msra.gmra.mxu2 %v14499_v28  ;;  %v11602_v42 = vld [vmem:[%s13472_s22 + $0x1a40] sm:$0xf]  ;;  %v14566_v6 = vld [vmem:[#allocation1 + $0x36] sm:$0xff]  ;;  %v12074_v28 = vld [vmem:[%s13472_s22 + $0x1df0] sm:$0xf] }
 0x1bd   : > { %7188 = vmatpush.bf16.msrb.mxu2 %v11755_v38  ;;  %7157 = vmatmul.bf16.vlgmr.msra.gmra.mxu3 %v14503_v46  ;;  %v13183_v38 = vld [vmem:[%s13472_s22 + $0x1a44] sm:$0xf0]  ;;  %v11714_v55 = vld [vmem:[%s13472_s22 + $0x1b20] sm:$0xf]  ;;  %v11946_v46 = vld [vmem:[%s13472_s22 + $0x1cf0] sm:$0xf] }
 0x1be   : > { %7201 = vmatpush.bf16.msrb.mxu3 %v11819_v51  ;;  %v11730_v51 = vld [vmem:[%s13472_s22 + $0x1b40] sm:$0xf]  ;;  %v13301_v32 = vld [vmem:[%s13472_s22 + $0x1df4] sm:$0xf0] }
 0x1bf   : > { %7163 = vmatpush.bf16.msrb.mxu0 %v11619_v24  ;;  %v6912_v24 = vadd.f32 %v6911_v11, %v14463_v37  ;;  %v11731_v53 = vor.u32 %v13215_v56, %v11730_v51  ;;  %v13213_v37 = vld [vmem:[%s13472_s22 + $0x1b34] sm:$0xf0]  ;;  %v6937_v56 = vpop.f32.mrf.mxu2  ;;  %v13195_v11 = vld [vmem:[%s13472_s22 + $0x1aa4] sm:$0xf0] }
 0x1c0   : > { %7176 = vmatpush.bf16.msrb.mxu1 %v11683_v54  ;;  %v11603_v54 = vor.u32 %v13183_v38, %v11602_v42  ;;  %v11659_v42 = vor.u32 %v13197_v29, %v11658_v30  ;;  %v11723_v38 = vor.u32 %v13213_v37, %v11722_v12  ;;  %v11715_v29 = vor.u32 %v13211_v35, %v11714_v55  ;;  %v13177_v12 = vld [vmem:[%s13472_s22 + $0x1a14] sm:$0xf0]  ;;  %v11642_v37 = vld [vmem:[%s13472_s22 + $0x1a90] sm:$0xf]  ;;  %v13191_v55 = vld [vmem:[%s13472_s22 + $0x1a84] sm:$0xf0] }
 0x1c1   : > { %7189 = vmatpush.bf16.msrb.mxu2 %v11747_v20  ;;  %v6924_v20 = vpop.f32.mrf.mxu1  ;;  %v11698_v35 = vld [vmem:[%s13472_s22 + $0x1b00] sm:$0xf] }
 0x1c2   : > { %7202 = vmatpush.bf16.msrb.mxu3 %v11811_v58  ;;  %v13181_v58 = vld [vmem:[%s13472_s22 + $0x1a34] sm:$0xf0]  ;;  %v6925_v7 = vadd.f32 %v6924_v20, %v6912_v24  ;;  %v11778_v20 = vld [vmem:[%s13472_s22 + $0x1ba0] sm:$0xf] }
 0x1c3   : > { %7164 = vmatpush.bf16.msrb.mxu0 %v11611_v31  ;;  %v11786_v31 = vld [vmem:[%s13472_s22 + $0x1bb0] sm:$0xf] }
 0x1c4   : > { %7177 = vmatpush.bf16.msrb.mxu1 %v11675_v0  ;;  %v13229_v0 = vld [vmem:[%s13472_s22 + $0x1bb4] sm:$0xf0]  ;;  %v6938_v24 = vadd.f32 %v6937_v56, %v6925_v7  ;;  %v11651_v7 = vor.u32 %v13195_v11, %v11650_v52  ;;  %v13175_v56 = vld [vmem:[%s13472_s22 + $0x1a04] sm:$0xf0]  ;;  %v11634_v11 = vld [vmem:[%s13472_s22 + $0x1a80] sm:$0xf] }
 0x1c5   : > { %7190 = vmatpush.bf16.msrb.mxu2 %v11739_v34  ;;  %v11595_v34 = vor.u32 %v13181_v58, %v11594_v57  ;;  %v11787_v51 = vor.u32 %v13229_v0, %v11786_v31  ;;  %v11578_v58 = vld [vmem:[%s13472_s22 + $0x1a10] sm:$0xf]  ;;  %v13193_v31 = vld [vmem:[%s13472_s22 + $0x1a94] sm:$0xf0] }
 0x1c6   : > { %7203 = vmatpush.bf16.msrb.mxu3 %v11803_v44  ;;  %v13179_v44 = vld [vmem:[%s13472_s22 + $0x1a24] sm:$0xf0]  ;;  %v11579_v52 = vor.u32 %v13177_v12, %v11578_v58  ;;  %v13269_v58 = vld [vmem:[%s13472_s22 + $0x1cf4] sm:$0xf0] }
 0x1c7   : > { %7165 = vmatpush.bf16.msrb.mxu0 %v11603_v54  ;;  %v6950_v54 = vpop.f32.mrf.mxu3  ;;  %v11587_v57 = vor.u32 %v13179_v44, %v11586_v45  ;;  %v13209_v45 = vld [vmem:[%s13472_s22 + $0x1b14] sm:$0xf0]  ;;  %v11770_v44 = vld [vmem:[%s13472_s22 + $0x1b90] sm:$0xf]  ;;  %v14564_v12 = vld [vmem:[#allocation1 + $0x24] sm:$0xff] }
 0x1c8   : > { %7178 = vmatpush.bf16.msrb.mxu1 %v11667_v62  ;;  %v13227_v62 = vld [vmem:[%s13472_s22 + $0x1ba4] sm:$0xf0] }
 0x1c9   : > { %7191 = vmatpush.bf16.msrb.mxu2 %v11731_v53  ;;  %v6913_v53 = vpop.f32.mrf.mxu0  ;;  %v6926_v30 = vpop.f32.mrf.mxu1  ;;  %v11779_v0 = vor.u32 %v13227_v62, %v11778_v20  ;;  %v11762_v20 = vld [vmem:[%s13472_s22 + $0x1b80] sm:$0xf]  ;;  %v13223_v62 = vld [vmem:[%s13472_s22 + $0x1b84] sm:$0xf0] }
 0x1ca   : > { %7204 = vmatpush.bf16.msrb.mxu3 %v11795_v26  ;;  %v14543_v26 = vadd.f32 %v6950_v54, %v6938_v24  ;;  %v13207_v24 = vld [vmem:[%s13472_s22 + $0x1b04] sm:$0xf0]  ;;  %v11882_v53 = vld [vmem:[%s13472_s22 + $0x1c70] sm:$0xf]  ;;  %v13253_v30 = vld [vmem:[%s13472_s22 + $0x1c74] sm:$0xf0] }
 0x1cb   : > { %7166 = vmatpush.bf16.msrb.mxu0 %v11595_v34  ;;  %v11706_v34 = vld [vmem:[%s13472_s22 + $0x1b10] sm:$0xf] }
 0x1cc   : > { %7179 = vmatpush.bf16.msrb.mxu1 %v11659_v42  ;;  %v13225_v42 = vld [vmem:[%s13472_s22 + $0x1b94] sm:$0xf0]  ;;  %v11707_v54 = vor.u32 %v13209_v45, %v11706_v34 }
 0x1cd   : > { %7192 = vmatpush.bf16.msrb.mxu2 %v11723_v38  ;;  %v11570_v38 = vld [vmem:[%s13472_s22 + $0x1a00] sm:$0xf]  ;;  %v197_v34 = vld [vmem:[%s13467_s18 + $0x38] sm:$0xff] }
 0x1ce   : > { %7205 = vmatpush.bf16.msrb.mxu3 %v11787_v51  ;;  %v11643_v51 = vor.u32 %v13193_v31, %v11642_v37  ;;  %v14570_v37 = vld [vmem:[#allocation1 + $0x3f] sm:$0xff]  ;;  %v11571_v45 = vor.u32 %v13175_v56, %v11570_v38  ;;  %v11947_v38 = vor.u32 %v13269_v58, %v11946_v46  ;;  %v11875_v46 = vor.u32 %v13251_v25, %v11874_v43  ;;  %v11994_v58 = vld [vmem:[%s13472_s22 + $0x1d50] sm:$0xf] }
 0x1cf   : > { %7167 = vmatpush.bf16.msrb.mxu0 %v11587_v57  ;;  %v11771_v57 = vor.u32 %v13225_v42, %v11770_v44  ;;  %15894 = vst [vmem:[#allocation26_spill] sm:$0xff] %v14570_v37  ;;  %v6952_v31 = vpop.f32.mrf.mxu3  ;;  %v13285_v44 = vld [vmem:[%s13472_s22 + $0x1d74] sm:$0xf0]  ;;  %v11635_v42 = vor.u32 %v13191_v55, %v11634_v11  ;;  %v12002_v11 = vld [vmem:[%s13472_s22 + $0x1d60] sm:$0xf] }
 0x1d0   : > { %7180 = vmatpush.bf16.msrb.mxu1 %v11651_v7  ;;  %v6939_v7 = vpop.f32.mrf.mxu2  ;;  %v11883_v31 = vor.u32 %v13253_v30, %v11882_v53  ;;  %v13283_v55 = vld [vmem:[%s13472_s22 + $0x1d64] sm:$0xf0]  ;;  %v11930_v53 = vld [vmem:[%s13472_s22 + $0x1cd0] sm:$0xf] }
 0x1d1   : > { %7193 = vmatpush.bf16.msrb.mxu2 %v11715_v29  ;;  %v14568_v29 = vld [vmem:[#allocation1 + $0x2d] sm:$0xff]  ;;  %v11699_v7 = vor.u32 %v13207_v24, %v11698_v35  ;;  %v12066_v35 = vld [vmem:[%s13472_s22 + $0x1de0] sm:$0xf]  ;;  %v13299_v24 = vld [vmem:[%s13472_s22 + $0x1de4] sm:$0xf0] }
 0x1d2   : > { %7206 = vmatpush.bf16.msrb.mxu3 %v11779_v0  ;;  %v12010_v0 = vld [vmem:[%s13472_s22 + $0x1d70] sm:$0xf]  ;;  %1293 = vst [vmem:[#allocation1] ss:$9 sm:$0xff] %v197_v34  ;;  %v12067_v30 = vor.u32 %v13299_v24, %v12066_v35  ;;  %v13281_v34 = vld [vmem:[%s13472_s22 + $0x1d54] sm:$0xf0] }
 0x1d3   : > { %7168 = vmatpush.bf16.msrb.mxu0 %v11579_v52  ;;  %v11763_v52 = vor.u32 %v13223_v62, %v11762_v20  ;;  %v12011_v56 = vor.u32 %v13285_v44, %v12010_v0  ;;  %v11866_v20 = vld [vmem:[%s13472_s22 + $0x1c50] sm:$0xf]  ;;  %v13249_v62 = vld [vmem:[%s13472_s22 + $0x1c54] sm:$0xf0]  ;;  %v11995_v0 = vor.u32 %v13281_v34, %v11994_v58  ;;  %v11858_v44 = vld [vmem:[%s13472_s22 + $0x1c40] sm:$0xf] }
 0x1d4   : > { %7181 = vmatpush.bf16.msrb.mxu1 %v11643_v51  ;;  %v12075_v51 = vor.u32 %v13301_v32, %v12074_v28  ;;  %v12003_v28 = vor.u32 %v13283_v55, %v12002_v11  ;;  %v12058_v25 = vld [vmem:[%s13472_s22 + $0x1dd0] sm:$0xf]  ;;  %v11867_v43 = vor.u32 %v13249_v62, %v11866_v20  ;;  %v13295_v11 = vld [vmem:[%s13472_s22 + $0x1dc4] sm:$0xf0]  ;;  %v13245_v20 = vld [vmem:[%s13472_s22 + $0x1c34] sm:$0xf0] }
 0x1d5   : > { %7194 = vmatpush.bf16.msrb.mxu2 %v11707_v54  ;;  %v13267_v54 = vld [vmem:[%s13472_s22 + $0x1ce4] sm:$0xf0]  ;;  %v11914_v62 = vld [vmem:[%s13472_s22 + $0x1cb0] sm:$0xf] }
 0x1d6   : > { %7207 = vmatpush.bf16.msrb.mxu3 %v11771_v57  ;;  %v11939_v32 = vor.u32 %v13267_v54, %v11938_v33  ;;  %v13265_v57 = vld [vmem:[%s13472_s22 + $0x1cd4] sm:$0xf0]  ;;  %v12050_v54 = vld [vmem:[%s13472_s22 + $0x1dc0] sm:$0xf]  ;;  %v11978_v58 = vld [vmem:[%s13472_s22 + $0x1d30] sm:$0xf] }
 0x1d7   : > { %7169 = vmatpush.bf16.msrb.mxu0 %v11571_v45  ;;  %v13297_v33 = vld [vmem:[%s13472_s22 + $0x1dd4] sm:$0xf0]  ;;  %v11931_v45 = vor.u32 %v13265_v57, %v11930_v53  ;;  %v12051_v53 = vor.u32 %v13295_v11, %v12050_v54  ;;  %v12042_v34 = vld [vmem:[%s13472_s22 + $0x1db0] sm:$0xf]  ;;  %v12034_v11 = vld [vmem:[%s13472_s22 + $0x1da0] sm:$0xf] }
 0x1d8   : > { %7182 = vmatpush.bf16.msrb.mxu1 %v11635_v42  ;;  %v13247_v42 = vld [vmem:[%s13472_s22 + $0x1c44] sm:$0xf0]  ;;  %v6976_v24 = vpop.f32.mrf.mxu1  ;;  %v13261_v57 = vld [vmem:[%s13472_s22 + $0x1cb4] sm:$0xf0] }
 0x1d9   : > { %7195 = vmatpush.bf16.msrb.mxu2 %v11699_v7  ;;  %v11922_v7 = vld [vmem:[%s13472_s22 + $0x1cc0] sm:$0xf]  ;;  %v11859_v35 = vor.u32 %v13247_v42, %v11858_v44  ;;  %v13243_v44 = vld [vmem:[%s13472_s22 + $0x1c24] sm:$0xf0] }
 0x1da   : > { %7208 = vmatpush.bf16.msrb.mxu3 %v11763_v52  ;;  %7170 = vmatmul.bf16.vlgmr.msrb.gmra.mxu0 %v14564_v12  ;;  %v12059_v52 = vor.u32 %v13297_v33, %v12058_v25  ;;  %v13293_v25 = vld [vmem:[%s13472_s22 + $0x1db4] sm:$0xf0]  ;;  %v11906_v42 = vld [vmem:[%s13472_s22 + $0x1ca0] sm:$0xf] }
 0x1db   : > { %7214 = vmatpush.bf16.msra.mxu0 %v11883_v31  ;;  %7183 = vmatmul.bf16.vlgmr.msrb.gmra.mxu1 %v14568_v29  ;;  %v13263_v31 = vld [vmem:[%s13472_s22 + $0x1cc4] sm:$0xf0] }
 0x1dc   : > { %7227 = vmatpush.bf16.msra.mxu1 %v11947_v38  ;;  %7196 = vmatmul.bf16.vlgmr.msrb.gmra.mxu2 %v14566_v6  ;;  %v11986_v38 = vld [vmem:[%s13472_s22 + $0x1d40] sm:$0xf] }
 0x1dd   : > { %7240 = vmatpush.bf16.msra.mxu2 %v12011_v56  ;;  %7209 = vmatmul.bf16.vlgmr.msrb.gmra.mxu3 %v14570_v37  ;;  %v13279_v56 = vld [vmem:[%s13472_s22 + $0x1d44] sm:$0xf0] }
 0x1de   : > { %7253 = vmatpush.bf16.msra.mxu3 %v12075_v51  ;;  %v6963_v51 = vpop.f32.mrf.mxu0  ;;  %v13347_v37 = vld [vmem:[%s13472_s22 + $0x1f64] sm:$0xf0] }
 0x1df   : > { %7215 = vmatpush.bf16.msra.mxu0 %v11875_v46  ;;  %v6964_v55 = vadd.f32 %v6963_v51, %v14543_v26  ;;  %v11923_v46 = vor.u32 %v13263_v31, %v11922_v7  ;;  %v13277_v26 = vld [vmem:[%s13472_s22 + $0x1d34] sm:$0xf0]  ;;  %v12043_v7 = vor.u32 %v13293_v25, %v12042_v34  ;;  %v13259_v31 = vld [vmem:[%s13472_s22 + $0x1ca4] sm:$0xf0]  ;;  %v12026_v25 = vld [vmem:[%s13472_s22 + $0x1d90] sm:$0xf] }
 0x1e0   : > { %7228 = vmatpush.bf16.msra.mxu1 %v11939_v32  ;;  %v11987_v32 = vor.u32 %v13279_v56, %v11986_v38  ;;  %v11970_v38 = vld [vmem:[%s13472_s22 + $0x1d20] sm:$0xf]  ;;  %v13275_v56 = vld [vmem:[%s13472_s22 + $0x1d24] sm:$0xf0]  ;;  %v7002_v54 = vpop.f32.mrf.mxu3  ;;  %v13273_v34 = vld [vmem:[%s13472_s22 + $0x1d14] sm:$0xf0] }
 0x1e1   : > { %7241 = vmatpush.bf16.msra.mxu2 %v12003_v28  ;;  %v11850_v28 = vld [vmem:[%s13472_s22 + $0x1c30] sm:$0xf] }
 0x1e2   : > { %7254 = vmatpush.bf16.msra.mxu3 %v12067_v30  ;;  %v6977_v30 = vadd.f32 %v6976_v24, %v6964_v55  ;;  %v11851_v33 = vor.u32 %v13245_v20, %v11850_v28  ;;  %v13291_v55 = vld [vmem:[%s13472_s22 + $0x1da4] sm:$0xf0]  ;;  %v11907_v28 = vor.u32 %v13259_v31, %v11906_v42  ;;  %v11971_v20 = vor.u32 %v13275_v56, %v11970_v38  ;;  %v11954_v31 = vld [vmem:[%s13472_s22 + $0x1d00] sm:$0xf] }
 0x1e3   : > { %7216 = vmatpush.bf16.msra.mxu0 %v11867_v43  ;;  %v11915_v43 = vor.u32 %v13261_v57, %v11914_v62  ;;  %v11834_v62 = vld [vmem:[%s13472_s22 + $0x1c10] sm:$0xf]  ;;  %v12035_v57 = vor.u32 %v13291_v55, %v12034_v11  ;;  %v13271_v56 = vld [vmem:[%s13472_s22 + $0x1d04] sm:$0xf0] }
 0x1e4   : > { %7229 = vmatpush.bf16.msra.mxu1 %v11931_v45  ;;  %v11979_v45 = vor.u32 %v13277_v26, %v11978_v58  ;;  %v13257_v58 = vld [vmem:[%s13472_s22 + $0x1c94] sm:$0xf0]  ;;  %v11962_v26 = vld [vmem:[%s13472_s22 + $0x1d10] sm:$0xf] }
 0x1e5   : > { %7242 = vmatpush.bf16.msra.mxu2 %v11995_v0  ;;  %v11842_v0 = vld [vmem:[%s13472_s22 + $0x1c20] sm:$0xf]  ;;  %v11963_v42 = vor.u32 %v13273_v34, %v11962_v26  ;;  %v12138_v55 = vld [vmem:[%s13472_s22 + $0x1e70] sm:$0xf]  ;;  %v13365_v26 = vld [vmem:[%s13472_s22 + $0x1ff4] sm:$0xf0] }
 0x1e6   : > { %7255 = vmatpush.bf16.msra.mxu3 %v12059_v52  ;;  %v6989_v52 = vpop.f32.mrf.mxu2  ;;  %v11843_v24 = vor.u32 %v13243_v44, %v11842_v0  ;;  %v13239_v0 = vld [vmem:[%s13472_s22 + $0x1c04] sm:$0xf0] }
 0x1e7   : > { %7217 = vmatpush.bf16.msra.mxu0 %v11859_v35  ;;  %v6990_v51 = vadd.f32 %v6989_v52, %v6977_v30  ;;  %v6965_v35 = vpop.f32.mrf.mxu0  ;;  %v11898_v30 = vld [vmem:[%s13472_s22 + $0x1c90] sm:$0xf]  ;;  %v13255_v52 = vld [vmem:[%s13472_s22 + $0x1c84] sm:$0xf0] }
 0x1e8   : > { %7230 = vmatpush.bf16.msra.mxu1 %v11923_v46  ;;  %v6978_v46 = vpop.f32.mrf.mxu1  ;;  %v11899_v44 = vor.u32 %v13257_v58, %v11898_v30  ;;  %v13317_v35 = vld [vmem:[%s13472_s22 + $0x1e74] sm:$0xf0]  ;;  %v12330_v58 = vld [vmem:[%s13472_s22 + $0x1ff0] sm:$0xf] }
 0x1e9   : > { %7243 = vmatpush.bf16.msra.mxu2 %v11987_v32  ;;  %v14622_v32 = vadd.f32 %v7002_v54, %v6990_v51  ;;  %v12018_v51 = vld [vmem:[%s13472_s22 + $0x1d80] sm:$0xf]  ;;  %v13287_v54 = vld [vmem:[%s13472_s22 + $0x1d84] sm:$0xf0]  ;;  %v7004_v46 = vpop.f32.mrf.mxu3 }
 0x1ea   : > { %7256 = vmatpush.bf16.msra.mxu3 %v12051_v53  ;;  %v13241_v53 = vld [vmem:[%s13472_s22 + $0x1c14] sm:$0xf0]  ;;  %v12019_v34 = vor.u32 %v13287_v54, %v12018_v51  ;;  %v13331_v46 = vld [vmem:[%s13472_s22 + $0x1ee4] sm:$0xf0] }
 0x1eb   : > { %7218 = vmatpush.bf16.msra.mxu0 %v11851_v33  ;;  %v13289_v33 = vld [vmem:[%s13472_s22 + $0x1d94] sm:$0xf0] }
 0x1ec   : > { %7231 = vmatpush.bf16.msra.mxu1 %v11915_v43  ;;  %v11835_v43 = vor.u32 %v13241_v53, %v11834_v62  ;;  %v12027_v38 = vor.u32 %v13289_v33, %v12026_v25  ;;  %v12266_v62 = vld [vmem:[%s13472_s22 + $0x1f70] sm:$0xf]  ;;  %v13349_v53 = vld [vmem:[%s13472_s22 + $0x1f74] sm:$0xf0]  ;;  %v12139_v25 = vor.u32 %v13317_v35, %v12138_v55 }
 0x1ed   : > { %7244 = vmatpush.bf16.msra.mxu2 %v11979_v45  ;;  %v11826_v45 = vld [vmem:[%s13472_s22 + $0x1c00] sm:$0xf] }
 0x1ee   : > { %7257 = vmatpush.bf16.msra.mxu3 %v12043_v7  ;;  %v11890_v7 = vld [vmem:[%s13472_s22 + $0x1c80] sm:$0xf]  ;;  %v6991_v11 = vpop.f32.mrf.mxu2 }
 0x1ef   : > { %7219 = vmatpush.bf16.msra.mxu0 %v11843_v24  ;;  %v12202_v24 = vld [vmem:[%s13472_s22 + $0x1ef0] sm:$0xf]  ;;  %v11891_v30 = vor.u32 %v13255_v52, %v11890_v7  ;;  %v12194_v11 = vld [vmem:[%s13472_s22 + $0x1ee0] sm:$0xf] }
 0x1f0   : > { %7232 = vmatpush.bf16.msra.mxu1 %v11907_v28  ;;  %v11827_v28 = vor.u32 %v13239_v0, %v11826_v45  ;;  %v12130_v45 = vld [vmem:[%s13472_s22 + $0x1e60] sm:$0xf]  ;;  %v13315_v0 = vld [vmem:[%s13472_s22 + $0x1e64] sm:$0xf0]  ;;  %v12195_v55 = vor.u32 %v13331_v46, %v12194_v11 }
 0x1f1   : > { %7245 = vmatpush.bf16.msra.mxu2 %v11971_v20  ;;  %v13333_v20 = vld [vmem:[%s13472_s22 + $0x1ef4] sm:$0xf0]  ;;  %v1294_v7 = vld [vmem:[#allocation1] sm:$0xff]  ;;  %v12131_v54 = vor.u32 %v13315_v0, %v12130_v45  ;;  %v13327_v11 = vld [vmem:[%s13472_s22 + $0x1ec4] sm:$0xf0] }
 0x1f2   : > { %7258 = vmatpush.bf16.msra.mxu3 %v12035_v57  ;;  %v11955_v57 = vor.u32 %v13271_v56, %v11954_v31  ;;  %v12203_v33 = vor.u32 %v13333_v20, %v12202_v24  ;;  %v12322_v52 = vld [vmem:[%s13472_s22 + $0x1fe0] sm:$0xf]  ;;  %v13363_v31 = vld [vmem:[%s13472_s22 + $0x1fe4] sm:$0xf0]  ;;  %v12122_v24 = vld [vmem:[%s13472_s22 + $0x1e50] sm:$0xf] }
 0x1f3   : > { %7220 = vmatpush.bf16.msra.mxu0 %v11835_v43  ;;  %v12267_v43 = vor.u32 %v13349_v53, %v12266_v62  ;;  %v1295_v56 = vld [vmem:[#allocation1 + $0x9] sm:$0xff]  ;;  %v1297_v51 = vld [vmem:[#allocation1 + $0x1b] sm:$0xff]  ;;  %v12323_v62 = vor.u32 %v13363_v31, %v12322_v52 }
 0x1f4   : > { %7233 = vmatpush.bf16.msra.mxu1 %v11899_v44  ;;  %v12331_v44 = vor.u32 %v13365_v26, %v12330_v58  ;;  %v12186_v20 = vld [vmem:[%s13472_s22 + $0x1ed0] sm:$0xf]  ;;  %v13329_v53 = vld [vmem:[%s13472_s22 + $0x1ed4] sm:$0xf0]  ;;  %v12178_v45 = vld [vmem:[%s13472_s22 + $0x1ec0] sm:$0xf] }
 0x1f5   : > { %7246 = vmatpush.bf16.msra.mxu2 %v11963_v42  ;;  %v12258_v42 = vld [vmem:[%s13472_s22 + $0x1f60] sm:$0xf]  ;;  %v12314_v58 = vld [vmem:[%s13472_s22 + $0x1fd0] sm:$0xf]  ;;  %v13361_v26 = vld [vmem:[%s13472_s22 + $0x1fd4] sm:$0xf0] }
 0x1f6   : > { %7259 = vmatpush.bf16.msra.mxu3 %v12027_v38  ;;  %v1296_v38 = vld [vmem:[#allocation1 + $0x12] sm:$0xff]  ;;  %v12259_v35 = vor.u32 %v13347_v37, %v12258_v42  ;;  %v12315_v0 = vor.u32 %v13361_v26, %v12314_v58  ;;  %v13343_v46 = vld [vmem:[%s13472_s22 + $0x1f44] sm:$0xf0] }
 0x1f7   : > { %7221 = vmatpush.bf16.msra.mxu0 %v11827_v28  ;;  %v13313_v28 = vld [vmem:[%s13472_s22 + $0x1e54] sm:$0xf0]  ;;  %v7015_v42 = vpop.f32.mrf.mxu0  ;;  %v13359_v52 = vld [vmem:[%s13472_s22 + $0x1fc4] sm:$0xf0] }
 0x1f8   : > { %7234 = vmatpush.bf16.msra.mxu1 %v11891_v30  ;;  %v12250_v30 = vld [vmem:[%s13472_s22 + $0x1f50] sm:$0xf]  ;;  %v12123_v37 = vor.u32 %v13313_v28, %v12122_v24  ;;  %v7016_v31 = vadd.f32 %v7015_v42, %v14622_v32  ;;  %v13341_v32 = vld [vmem:[%s13472_s22 + $0x1f34] sm:$0xf0] }
 0x1f9   : > { %7247 = vmatpush.bf16.msra.mxu2 %v11955_v57  ;;  %v13345_v57 = vld [vmem:[%s13472_s22 + $0x1f54] sm:$0xf0]  ;;  %v12170_v24 = vld [vmem:[%s13472_s22 + $0x1eb0] sm:$0xf] }
 0x1fa   : > { %7260 = vmatpush.bf16.msra.mxu3 %v12019_v34  ;;  %7222 = vmatmul.bf16.vlgmr.msra.gmra.mxu0 %v1294_v7  ;;  %v12187_v34 = vor.u32 %v13329_v53, %v12186_v20  ;;  %v12306_v7 = vld [vmem:[%s13472_s22 + $0x1fc0] sm:$0xf]  ;;  %v12234_v53 = vld [vmem:[%s13472_s22 + $0x1f30] sm:$0xf] }
 0x1fb   : > { %7266 = vmatpush.bf16.msrb.mxu0 %v12139_v25  ;;  %7235 = vmatmul.bf16.vlgmr.msra.gmra.mxu1 %v1295_v56  ;;  %v12251_v25 = vor.u32 %v13345_v57, %v12250_v30  ;;  %v7028_v56 = vpop.f32.mrf.mxu1  ;;  %v12307_v28 = vor.u32 %v13359_v52, %v12306_v7  ;;  %v12298_v30 = vld [vmem:[%s13472_s22 + $0x1fb0] sm:$0xf]  ;;  %v13357_v57 = vld [vmem:[%s13472_s22 + $0x1fb4] sm:$0xf0]  ;;  %v12290_v7 = vld [vmem:[%s13472_s22 + $0x1fa0] sm:$0xf] }
 0x1fc   : > { %7279 = vmatpush.bf16.msrb.mxu1 %v12203_v33  ;;  %7248 = vmatmul.bf16.vlgmr.msra.gmra.mxu2 %v1296_v38  ;;  %v12114_v33 = vld [vmem:[%s13472_s22 + $0x1e40] sm:$0xf]  ;;  %v7029_v20 = vadd.f32 %v7028_v56, %v7016_v31  ;;  %v13355_v52 = vld [vmem:[%s13472_s22 + $0x1fa4] sm:$0xf0] }
 0x1fd   : > { %7292 = vmatpush.bf16.msrb.mxu2 %v12267_v43  ;;  %7261 = vmatmul.bf16.vlgmr.msra.gmra.mxu3 %v1297_v51  ;;  %v13311_v43 = vld [vmem:[%s13472_s22 + $0x1e44] sm:$0xf0]  ;;  %v12179_v51 = vor.u32 %v13327_v11, %v12178_v45  ;;  %v12226_v11 = vld [vmem:[%s13472_s22 + $0x1f20] sm:$0xf] }
 0x1fe   : > { %7305 = vmatpush.bf16.msrb.mxu3 %v12331_v44  ;;  %v12242_v44 = vld [vmem:[%s13472_s22 + $0x1f40] sm:$0xf]  ;;  %v12115_v38 = vor.u32 %v13311_v43, %v12114_v33  ;;  %v12299_v43 = vor.u32 %v13357_v57, %v12298_v30  ;;  %v12282_v30 = vld [vmem:[%s13472_s22 + $0x1f90] sm:$0xf]  ;;  %v13353_v57 = vld [vmem:[%s13472_s22 + $0x1f94] sm:$0xf0] }
 0x1ff   : > { %7267 = vmatpush.bf16.msrb.mxu0 %v12131_v54  ;;  %v12243_v54 = vor.u32 %v13343_v46, %v12242_v44  ;;  %v12162_v33 = vld [vmem:[%s13472_s22 + $0x1ea0] sm:$0xf]  ;;  %v7041_v45 = vpop.f32.mrf.mxu2  ;;  %v13339_v44 = vld [vmem:[%s13472_s22 + $0x1f24] sm:$0xf0]  ;;  %v7017_v31 = vpop.f32.mrf.mxu0 }
 0x200   : > { %7280 = vmatpush.bf16.msrb.mxu1 %v12195_v55  ;;  %v12106_v55 = vld [vmem:[%s13472_s22 + $0x1e30] sm:$0xf]  ;;  %v7042_v46 = vadd.f32 %v7041_v45, %v7029_v20  ;;  %v7054_v42 = vpop.f32.mrf.mxu3  ;;  %v12291_v20 = vor.u32 %v13355_v52, %v12290_v7  ;;  %v12210_v45 = vld [vmem:[%s13472_s22 + $0x1f00] sm:$0xf]  ;;  %v12356_v7 = vld [vmem:[%s13472_s22 + $0x74] sm:$0xf] }
 0x201   : > { %7293 = vmatpush.bf16.msrb.mxu2 %v12259_v35  ;;  %v13309_v35 = vld [vmem:[%s13472_s22 + $0x1e34] sm:$0xf0]  ;;  %v8300_v52 = vld [vmem:[%s13472_s22 + $0x78] sm:$0xf0]  ;;  %v12372_v31 = vld [vmem:[%s13472_s22 + $0xf4] sm:$0xf] }
 0x202   : > { %7306 = vmatpush.bf16.msrb.mxu3 %v12323_v62  ;;  %v13325_v62 = vld [vmem:[%s13472_s22 + $0x1eb4] sm:$0xf0]  ;;  %v12107_v58 = vor.u32 %v13309_v35, %v12106_v55  ;;  %v12227_v55 = vor.u32 %v13339_v44, %v12226_v11  ;;  %v12090_v35 = vld [vmem:[%s13472_s22 + $0x1e10] sm:$0xf]  ;;  %v13335_v11 = vld [vmem:[%s13472_s22 + $0x1f04] sm:$0xf0] }
 0x203   : > { %7268 = vmatpush.bf16.msrb.mxu0 %v12123_v37  ;;  %v12171_v26 = vor.u32 %v13325_v62, %v12170_v24  ;;  %v12235_v37 = vor.u32 %v13341_v32, %v12234_v53  ;;  %v7030_v56 = vpop.f32.mrf.mxu1  ;;  %v13305_v24 = vld [vmem:[%s13472_s22 + $0x1e14] sm:$0xf0]  ;;  %v12218_v53 = vld [vmem:[%s13472_s22 + $0x1f10] sm:$0xf]  ;;  %v12274_v44 = vld [vmem:[%s13472_s22 + $0x1f80] sm:$0xf] }
 0x204   : > { %7281 = vmatpush.bf16.msrb.mxu1 %v12187_v34  ;;  %v12098_v34 = vld [vmem:[%s13472_s22 + $0x1e20] sm:$0xf]  ;;  %v13321_v62 = vld [vmem:[%s13472_s22 + $0x1e94] sm:$0xf0] }
 0x205   : > { %7294 = vmatpush.bf16.msrb.mxu2 %v12251_v25  ;;  %v13307_v25 = vld [vmem:[%s13472_s22 + $0x1e24] sm:$0xf0]  ;;  %v13337_v32 = vld [vmem:[%s13472_s22 + $0x1f14] sm:$0xf0] }
 0x206   : > { %7307 = vmatpush.bf16.msrb.mxu3 %v12315_v0  ;;  %v13323_v0 = vld [vmem:[%s13472_s22 + $0x1ea4] sm:$0xf0] }
 0x207   : > { %7269 = vmatpush.bf16.msrb.mxu0 %v12115_v38  ;;  %v12099_v38 = vor.u32 %v13307_v25, %v12098_v34  ;;  %v12219_v25 = vor.u32 %v13337_v32, %v12218_v53  ;;  %v8303_v32 = vor.u32 %v12356_v7, %v8300_v52 }
 0x208   : > { %7282 = vmatpush.bf16.msrb.mxu1 %v12179_v51  ;;  %v14689_v51 = vadd.f32 %v7054_v42, %v7042_v46  ;;  %v13351_v46 = vld [vmem:[%s13472_s22 + $0x1f84] sm:$0xf0]  ;;  %v7043_v42 = vpop.f32.mrf.mxu2 }
 0x209   : > { %7295 = vmatpush.bf16.msrb.mxu2 %v12243_v54  ;;  %v12163_v54 = vor.u32 %v13323_v0, %v12162_v33  ;;  %v12146_v33 = vld [vmem:[%s13472_s22 + $0x1e80] sm:$0xf]  ;;  %v12283_v0 = vor.u32 %v13353_v57, %v12282_v30  ;;  %v12275_v53 = vor.u32 %v13351_v46, %v12274_v44  ;;  %v8356_v42 = vld [vmem:[%s13472_s22 + $0xe8] sm:$0xf0] }
 0x20a   : > { %7308 = vmatpush.bf16.msrb.mxu3 %v12307_v28  ;;  %v12154_v28 = vld [vmem:[%s13472_s22 + $0x1e90] sm:$0xf]  ;;  %v1301_v44 = vld [vmem:[#allocation1 + $0x3f] sm:$0xff] }
 0x20b   : > { %7270 = vmatpush.bf16.msrb.mxu0 %v12107_v58  ;;  %v12091_v58 = vor.u32 %v13305_v24, %v12090_v35  ;;  %v12155_v34 = vor.u32 %v13321_v62, %v12154_v28  ;;  %v8428_v35 = vld [vmem:[%s13472_s22 + $0x178] sm:$0xf0]  ;;  %v12211_v28 = vor.u32 %v13335_v11, %v12210_v45  ;;  %v8484_v45 = vld [vmem:[%s13472_s22 + $0x1e8] sm:$0xf0] }
 0x20c   : > { %7283 = vmatpush.bf16.msrb.mxu1 %v12171_v26  ;;  %v12082_v26 = vld [vmem:[%s13472_s22 + $0x1e00] sm:$0xf]  ;;  %v8492_v62 = vld [vmem:[%s13472_s22 + $0x1f8] sm:$0xf0]  ;;  %v1299_v11 = vld [vmem:[#allocation1 + $0x2d] sm:$0xff] }
 0x20d   : > { %7296 = vmatpush.bf16.msrb.mxu2 %v12235_v37  ;;  %v13303_v37 = vld [vmem:[%s13472_s22 + $0x1e04] sm:$0xf0] }
 0x20e   : > { %7309 = vmatpush.bf16.msrb.mxu3 %v12299_v43  ;;  %v13319_v43 = vld [vmem:[%s13472_s22 + $0x1e84] sm:$0xf0]  ;;  %v12083_v56 = vor.u32 %v13303_v37, %v12082_v26  ;;  %v8292_v26 = vld [vmem:[%s13472_s22 + $0x68] sm:$0xf0]  ;;  %v12370_v37 = vld [vmem:[%s13472_s22 + $0xe4] sm:$0xf] }
 0x20f   : > { %7271 = vmatpush.bf16.msrb.mxu0 %v12099_v38  ;;  %v7056_v38 = vpop.f32.mrf.mxu3  ;;  %v12147_v24 = vor.u32 %v13319_v43, %v12146_v33  ;;  %v1298_v33 = vld [vmem:[#allocation1 + $0x24] sm:$0xff]  ;;  %v8359_v7 = vor.u32 %v12370_v37, %v8356_v42 }
 0x210   : > { %7284 = vmatpush.bf16.msrb.mxu1 %v12163_v54  ;;  %v8364_v54 = vld [vmem:[%s13472_s22 + $0xf8] sm:$0xf0]  ;;  %v8420_v38 = vld [vmem:[%s13472_s22 + $0x168] sm:$0xf0]  ;;  %v12402_v43 = vld [vmem:[%s13472_s22 + $0x1e4] sm:$0xf] }
 0x211   : > { %7297 = vmatpush.bf16.msrb.mxu2 %v12227_v55  ;;  %v12388_v55 = vld [vmem:[%s13472_s22 + $0x174] sm:$0xf]  ;;  %v8367_v30 = vor.u32 %v12372_v31, %v8364_v54  ;;  %v12382_v42 = vld [vmem:[%s13472_s22 + $0x144] sm:$0xf] }
 0x212   : > { %7310 = vmatpush.bf16.msrb.mxu3 %v12291_v20  ;;  %v12404_v20 = vld [vmem:[%s13472_s22 + $0x1f4] sm:$0xf]  ;;  %v8431_v57 = vor.u32 %v12388_v55, %v8428_v35  ;;  %v8487_v55 = vor.u32 %v12402_v43, %v8484_v45  ;;  %v8348_v35 = vld [vmem:[%s13472_s22 + $0xd8] sm:$0xf0]  ;;  %v8468_v43 = vld [vmem:[%s13472_s22 + $0x1c8] sm:$0xf0] }
 0x213   : > { %7272 = vmatpush.bf16.msrb.mxu0 %v12091_v58  ;;  %v12354_v58 = vld [vmem:[%s13472_s22 + $0x64] sm:$0xf]  ;;  %v12352_v31 = vld [vmem:[%s13472_s22 + $0x54] sm:$0xf] }
 0x214   : > { %7285 = vmatpush.bf16.msrb.mxu1 %v12155_v34  ;;  %v8495_v34 = vor.u32 %v12404_v20, %v8492_v62  ;;  %v8295_v46 = vor.u32 %v12354_v58, %v8292_v26  ;;  %v12368_v54 = vld [vmem:[%s13472_s22 + $0xd4] sm:$0xf]  ;;  %v8476_v62 = vld [vmem:[%s13472_s22 + $0x1d8] sm:$0xf0]  ;;  %v8276_v58 = vld [vmem:[%s13472_s22 + $0x48] sm:$0xf0] }
 0x215   : > { %7298 = vmatpush.bf16.msrb.mxu2 %v12219_v25  ;;  %v12386_v25 = vld [vmem:[%s13472_s22 + $0x164] sm:$0xf]  ;;  %v12400_v20 = vld [vmem:[%s13472_s22 + $0x1d4] sm:$0xf] }
 0x216   : > { %7311 = vmatpush.bf16.msrb.mxu3 %v12283_v0  ;;  %v1300_v0 = vld [vmem:[#allocation1 + $0x36] sm:$0xff]  ;;  %v8423_v52 = vor.u32 %v12386_v25, %v8420_v38  ;;  %v12366_v26 = vld [vmem:[%s13472_s22 + $0xc4] sm:$0xf]  ;;  %v8479_v37 = vor.u32 %v12400_v20, %v8476_v62  ;;  %v8404_v25 = vld [vmem:[%s13472_s22 + $0x148] sm:$0xf0] }
 0x217   : > { %7273 = vmatpush.bf16.msrb.mxu0 %v12083_v56  ;;  %v8284_v56 = vld [vmem:[%s13472_s22 + $0x58] sm:$0xf0]  ;;  %v7067_v38 = vpop.f32.mrf.mxu0 }
 0x218   : > { %7286 = vmatpush.bf16.msrb.mxu1 %v12147_v24  ;;  %v12384_v24 = vld [vmem:[%s13472_s22 + $0x154] sm:$0xf]  ;;  %v7068_v45 = vadd.f32 %v7067_v38, %v14689_v51  ;;  %v8396_v51 = vld [vmem:[%s13472_s22 + $0x138] sm:$0xf0] }
 0x219   : > { %7299 = vmatpush.bf16.msrb.mxu2 %v12211_v28  ;;  %v8412_v28 = vld [vmem:[%s13472_s22 + $0x158] sm:$0xf0] }
 0x21a   : > { %7312 = vmatpush.bf16.msrb.mxu3 %v12275_v53  ;;  %7274 = vmatmul.bf16.vlgmr.msrb.gmra.mxu0 %v1298_v33  ;;  %v8287_v53 = vor.u32 %v12352_v31, %v8284_v56  ;;  %v12398_v33 = vld [vmem:[%s13472_s22 + $0x1c4] sm:$0xf]  ;;  %v12364_v31 = vld [vmem:[%s13472_s22 + $0xb4] sm:$0xf] }
 0x21b   : > { %7318 = vmatpush.bf16.msra.mxu0 %v8303_v32  ;;  %7287 = vmatmul.bf16.vlgmr.msrb.gmra.mxu1 %v1299_v11  ;;  %v8351_v32 = vor.u32 %v12368_v54, %v8348_v35  ;;  %v7080_v11 = vpop.f32.mrf.mxu1  ;;  %v8471_v56 = vor.u32 %v12398_v33, %v8468_v43  ;;  %v12380_v35 = vld [vmem:[%s13472_s22 + $0x134] sm:$0xf]  ;;  %v12394_v33 = vld [vmem:[%s13472_s22 + $0x1a4] sm:$0xf]  ;;  %v8452_v43 = vld [vmem:[%s13472_s22 + $0x1a8] sm:$0xf0] }
 0x21c   : > { %7331 = vmatpush.bf16.msra.mxu1 %v8367_v30  ;;  %7300 = vmatmul.bf16.vlgmr.msrb.gmra.mxu2 %v1300_v0  ;;  %v8415_v30 = vor.u32 %v12384_v24, %v8412_v28  ;;  %v7081_v54 = vadd.f32 %v7080_v11, %v7068_v45  ;;  %v12396_v24 = vld [vmem:[%s13472_s22 + $0x1b4] sm:$0xf]  ;;  %v8460_v28 = vld [vmem:[%s13472_s22 + $0x1b8] sm:$0xf0] }
 0x21d   : > { %7344 = vmatpush.bf16.msra.mxu2 %v8431_v57  ;;  %7313 = vmatmul.bf16.vlgmr.msrb.gmra.mxu3 %v1301_v44  ;;  %v12350_v57 = vld [vmem:[%s13472_s22 + $0x44] sm:$0xf] }
 0x21e   : > { %7357 = vmatpush.bf16.msra.mxu3 %v8495_v34  ;;  %v8340_v34 = vld [vmem:[%s13472_s22 + $0xc8] sm:$0xf0]  ;;  %v8279_v0 = vor.u32 %v12350_v57, %v8276_v58  ;;  %v12362_v57 = vld [vmem:[%s13472_s22 + $0xa4] sm:$0xf]  ;;  %v8463_v58 = vor.u32 %v12396_v24, %v8460_v28  ;;  %v12392_v24 = vld [vmem:[%s13472_s22 + $0x194] sm:$0xf] }
 0x21f   : > { %7319 = vmatpush.bf16.msra.mxu0 %v8295_v46  ;;  %v8343_v44 = vor.u32 %v12366_v26, %v8340_v34  ;;  %v8407_v46 = vor.u32 %v12382_v42, %v8404_v25  ;;  %v7093_v26 = vpop.f32.mrf.mxu2  ;;  %v12378_v34 = vld [vmem:[%s13472_s22 + $0x124] sm:$0xf]  ;;  %v8388_v42 = vld [vmem:[%s13472_s22 + $0x128] sm:$0xf0]  ;;  %v7069_v45 = vpop.f32.mrf.mxu0  ;;  %v8444_v28 = vld [vmem:[%s13472_s22 + $0x198] sm:$0xf0] }
 0x220   : > { %7332 = vmatpush.bf16.msra.mxu1 %v8359_v7  ;;  %v12348_v7 = vld [vmem:[%s13472_s22 + $0x34] sm:$0xf]  ;;  %v7094_v25 = vadd.f32 %v7093_v26, %v7081_v54  ;;  %v7106_v38 = vpop.f32.mrf.mxu3  ;;  %v8455_v54 = vor.u32 %v12394_v33, %v8452_v43  ;;  %v12374_v26 = vld [vmem:[%s13472_s22 + $0x104] sm:$0xf]  ;;  %v8556_v43 = vld [vmem:[%s13472_s22 + $0x278] sm:$0xf0] }
 0x221   : > { %7345 = vmatpush.bf16.msra.mxu2 %v8423_v52  ;;  %v8268_v52 = vld [vmem:[%s13472_s22 + $0x38] sm:$0xf0]  ;;  %v12420_v33 = vld [vmem:[%s13472_s22 + $0x274] sm:$0xf] }
 0x222   : > { %7358 = vmatpush.bf16.msra.mxu3 %v8487_v55  ;;  %v8332_v55 = vld [vmem:[%s13472_s22 + $0xb8] sm:$0xf0]  ;;  %v8271_v20 = vor.u32 %v12348_v7, %v8268_v52  ;;  %v8391_v7 = vor.u32 %v12378_v34, %v8388_v42  ;;  %v12344_v52 = vld [vmem:[%s13472_s22 + $0x14] sm:$0xf]  ;;  %v8372_v34 = vld [vmem:[%s13472_s22 + $0x108] sm:$0xf0] }
 0x223   : > { %7320 = vmatpush.bf16.msra.mxu0 %v8287_v53  ;;  %v8335_v62 = vor.u32 %v12364_v31, %v8332_v55  ;;  %v8399_v53 = vor.u32 %v12380_v35, %v8396_v51  ;;  %v7082_v11 = vpop.f32.mrf.mxu1  ;;  %v8252_v31 = vld [vmem:[%s13472_s22 + $0x18] sm:$0xf0]  ;;  %v12376_v35 = vld [vmem:[%s13472_s22 + $0x114] sm:$0xf]  ;;  %v12390_v42 = vld [vmem:[%s13472_s22 + $0x184] sm:$0xf] }
 0x224   : > { %7333 = vmatpush.bf16.msra.mxu1 %v8351_v32  ;;  %v12346_v32 = vld [vmem:[%s13472_s22 + $0x24] sm:$0xf]  ;;  %v8316_v55 = vld [vmem:[%s13472_s22 + $0x98] sm:$0xf0]  ;;  %v12436_v45 = vld [vmem:[%s13472_s22 + $0x2f4] sm:$0xf] }
 0x225   : > { %7346 = vmatpush.bf16.msra.mxu2 %v8415_v30  ;;  %v8260_v30 = vld [vmem:[%s13472_s22 + $0x28] sm:$0xf0]  ;;  %v8380_v51 = vld [vmem:[%s13472_s22 + $0x118] sm:$0xf0] }
 0x226   : > { %7359 = vmatpush.bf16.msra.mxu3 %v8479_v37  ;;  %v8324_v37 = vld [vmem:[%s13472_s22 + $0xa8] sm:$0xf0] }
 0x227   : > { %7321 = vmatpush.bf16.msra.mxu0 %v8279_v0  ;;  %v8263_v0 = vor.u32 %v12346_v32, %v8260_v30  ;;  %v8383_v30 = vor.u32 %v12376_v35, %v8380_v51  ;;  %v8559_v51 = vor.u32 %v12420_v33, %v8556_v43  ;;  %v8540_v33 = vld [vmem:[%s13472_s22 + $0x258] sm:$0xf0]  ;;  %v12432_v43 = vld [vmem:[%s13472_s22 + $0x2d4] sm:$0xf] }
 0x228   : > { %7334 = vmatpush.bf16.msra.mxu1 %v8343_v44  ;;  %v14756_v44 = vadd.f32 %v7106_v38, %v7094_v25  ;;  %v8436_v25 = vld [vmem:[%s13472_s22 + $0x188] sm:$0xf0]  ;;  %v7095_v38 = vpop.f32.mrf.mxu2 }
 0x229   : > { %7347 = vmatpush.bf16.msra.mxu2 %v8407_v46  ;;  %v8327_v46 = vor.u32 %v12362_v57, %v8324_v37  ;;  %v12358_v57 = vld [vmem:[%s13472_s22 + $0x84] sm:$0xf]  ;;  %v8447_v37 = vor.u32 %v12392_v24, %v8444_v28  ;;  %v8439_v35 = vor.u32 %v12390_v42, %v8436_v25  ;;  %v12416_v38 = vld [vmem:[%s13472_s22 + $0x254] sm:$0xf] }
 0x22a   : > { %7360 = vmatpush.bf16.msra.mxu3 %v8471_v56  ;;  %v12360_v56 = vld [vmem:[%s13472_s22 + $0x94] sm:$0xf] }
 0x22b   : > { %7322 = vmatpush.bf16.msra.mxu0 %v8271_v20  ;;  %v8255_v20 = vor.u32 %v12344_v52, %v8252_v31  ;;  %v8319_v32 = vor.u32 %v12360_v56, %v8316_v55  ;;  %v8684_v52 = vld [vmem:[%s13472_s22 + $0x378] sm:$0xf0]  ;;  %v8375_v56 = vor.u32 %v12374_v26, %v8372_v34  ;;  %v12466_v26 = vld [vmem:[%s13472_s22 + $0x3e4] sm:$0xf] }
 0x22c   : > { %7335 = vmatpush.bf16.msra.mxu1 %v8335_v62  ;;  %v12342_v62 = vld [vmem:[%s13472_s22 + $0x4] sm:$0xf]  ;;  %v8748_v55 = vld [vmem:[%s13472_s22 + $0x3f8] sm:$0xf0] }
 0x22d   : > { %7348 = vmatpush.bf16.msra.mxu2 %v8399_v53  ;;  %v8244_v53 = vld [vmem:[%s13472_s22 + $0x8] sm:$0xf0] }
 0x22e   : > { %7361 = vmatpush.bf16.msra.mxu3 %v8463_v58  ;;  %v8308_v58 = vld [vmem:[%s13472_s22 + $0x88] sm:$0xf0]  ;;  %v8247_v11 = vor.u32 %v12342_v62, %v8244_v53  ;;  %v12434_v53 = vld [vmem:[%s13472_s22 + $0x2e4] sm:$0xf] }
 0x22f   : > { %7323 = vmatpush.bf16.msra.mxu0 %v8263_v0  ;;  %v7108_v0 = vpop.f32.mrf.mxu3  ;;  %v8311_v31 = vor.u32 %v12358_v57, %v8308_v58  ;;  %v8548_v62 = vld [vmem:[%s13472_s22 + $0x268] sm:$0xf0]  ;;  %v12450_v57 = vld [vmem:[%s13472_s22 + $0x364] sm:$0xf] }
 0x230   : > { %7336 = vmatpush.bf16.msra.mxu1 %v8327_v46  ;;  %v8620_v46 = vld [vmem:[%s13472_s22 + $0x2f8] sm:$0xf0]  ;;  %v8676_v58 = vld [vmem:[%s13472_s22 + $0x368] sm:$0xf0] }
 0x231   : > { %7349 = vmatpush.bf16.msra.mxu2 %v8391_v7  ;;  %v12452_v7 = vld [vmem:[%s13472_s22 + $0x374] sm:$0xf]  ;;  %v8623_v24 = vor.u32 %v12436_v45, %v8620_v46  ;;  %v8679_v25 = vor.u32 %v12450_v57, %v8676_v58  ;;  %v8604_v0 = vld [vmem:[%s13472_s22 + $0x2d8] sm:$0xf0] }
 0x232   : > { %7362 = vmatpush.bf16.msra.mxu3 %v8455_v54  ;;  %v12468_v54 = vld [vmem:[%s13472_s22 + $0x3f4] sm:$0xf]  ;;  %v8687_v28 = vor.u32 %v12452_v7, %v8684_v52  ;;  %v8668_v46 = vld [vmem:[%s13472_s22 + $0x358] sm:$0xf0] }
 0x233   : > { %7324 = vmatpush.bf16.msra.mxu0 %v8255_v20  ;;  %v12418_v20 = vld [vmem:[%s13472_s22 + $0x264] sm:$0xf]  ;;  %v12464_v7 = vld [vmem:[%s13472_s22 + $0x3d4] sm:$0xf]  ;;  %v8732_v52 = vld [vmem:[%s13472_s22 + $0x3d8] sm:$0xf0] }
 0x234   : > { %7337 = vmatpush.bf16.msra.mxu1 %v8319_v32  ;;  %v8751_v32 = vor.u32 %v12468_v54, %v8748_v55  ;;  %v8551_v34 = vor.u32 %v12418_v20, %v8548_v62  ;;  %v8532_v55 = vld [vmem:[%s13472_s22 + $0x248] sm:$0xf0]  ;;  %v12462_v20 = vld [vmem:[%s13472_s22 + $0x3c4] sm:$0xf]  ;;  %v12412_v58 = vld [vmem:[%s13472_s22 + $0x234] sm:$0xf] }
 0x235   : > { %7350 = vmatpush.bf16.msra.mxu2 %v8383_v30  ;;  %v8612_v30 = vld [vmem:[%s13472_s22 + $0x2e8] sm:$0xf0] }
 0x236   : > { %7363 = vmatpush.bf16.msra.mxu3 %v8447_v37  ;;  %v8740_v37 = vld [vmem:[%s13472_s22 + $0x3e8] sm:$0xf0]  ;;  %v8615_v42 = vor.u32 %v12434_v53, %v8612_v30 }
 0x237   : > { %7325 = vmatpush.bf16.msra.mxu0 %v8247_v11  ;;  %v8743_v45 = vor.u32 %v12466_v26, %v8740_v37  ;;  %v12448_v11 = vld [vmem:[%s13472_s22 + $0x354] sm:$0xf]  ;;  %v8724_v62 = vld [vmem:[%s13472_s22 + $0x3c8] sm:$0xf0]  ;;  %v8524_v26 = vld [vmem:[%s13472_s22 + $0x238] sm:$0xf0] }
 0x238   : > { %7338 = vmatpush.bf16.msra.mxu1 %v8311_v31  ;;  %v8543_v31 = vor.u32 %v12416_v38, %v8540_v33  ;;  %v8671_v54 = vor.u32 %v12448_v11, %v8668_v46  ;;  %v12428_v37 = vld [vmem:[%s13472_s22 + $0x2b4] sm:$0xf]  ;;  %v12410_v46 = vld [vmem:[%s13472_s22 + $0x224] sm:$0xf] }
 0x239   : > { %7351 = vmatpush.bf16.msra.mxu2 %v8375_v56  ;;  %v8607_v56 = vor.u32 %v12432_v43, %v8604_v0  ;;  %v12444_v38 = vld [vmem:[%s13472_s22 + $0x334] sm:$0xf]  ;;  %v8716_v43 = vld [vmem:[%s13472_s22 + $0x3b8] sm:$0xf0] }
 0x23a   : > { %7364 = vmatpush.bf16.msra.mxu3 %v8439_v35  ;;  %7326 = vmatmul.bf16.vlgmr.msra.gmra.mxu0 %v13578_v22  ;;  %v12430_v35 = vld [vmem:[%s13472_s22 + $0x2c4] sm:$0xf]  ;;  %v8596_v22 = vld [vmem:[%s13472_s22 + $0x2c8] sm:$0xf0]  ;;  %v12460_v33 = vld [vmem:[%s13472_s22 + $0x3b4] sm:$0xf] }
 0x23b   : > { %7370 = vmatpush.bf16.msrb.mxu0 %v8559_v51  ;;  %7339 = vmatmul.bf16.vlgmr.msra.gmra.mxu1 %v13585_v27  ;;  %v8735_v51 = vor.u32 %v12464_v7, %v8732_v52  ;;  %v8599_v30 = vor.u32 %v12430_v35, %v8596_v22  ;;  %v8516_v7 = vld [vmem:[%s13472_s22 + $0x228] sm:$0xf0]  ;;  %v12426_v52 = vld [vmem:[%s13472_s22 + $0x2a4] sm:$0xf] }
 0x23c   : > { %7383 = vmatpush.bf16.msrb.mxu1 %v8623_v24  ;;  %7352 = vmatmul.bf16.vlgmr.msra.gmra.mxu2 %v13576_v21  ;;  %v12414_v21 = vld [vmem:[%s13472_s22 + $0x244] sm:$0xf]  ;;  %v8660_v24 = vld [vmem:[%s13472_s22 + $0x348] sm:$0xf0] }
 0x23d   : > { %7396 = vmatpush.bf16.msrb.mxu2 %v8687_v28  ;;  %7365 = vmatmul.bf16.vlgmr.msra.gmra.mxu3 %v13580_v23  ;;  %v12446_v23 = vld [vmem:[%s13472_s22 + $0x344] sm:$0xf]  ;;  %v7119_v28 = vpop.f32.mrf.mxu0  ;;  %v8535_v53 = vor.u32 %v12414_v21, %v8532_v55  ;;  %v8644_v55 = vld [vmem:[%s13472_s22 + $0x328] sm:$0xf0] }
 0x23e   : > { %7409 = vmatpush.bf16.msrb.mxu3 %v8751_v32  ;;  %v7120_v27 = vadd.f32 %v7119_v28, %v14756_v44  ;;  %v7132_v32 = vpop.f32.mrf.mxu1  ;;  %v8663_v57 = vor.u32 %v12446_v23, %v8660_v24  ;;  %v8652_v44 = vld [vmem:[%s13472_s22 + $0x338] sm:$0xf0]  ;;  %v12442_v21 = vld [vmem:[%s13472_s22 + $0x324] sm:$0xf]  ;;  %v8708_v23 = vld [vmem:[%s13472_s22 + $0x3a8] sm:$0xf0]  ;;  %v8519_v28 = vor.u32 %v12410_v46, %v8516_v7 }
 0x23f   : > { %7371 = vmatpush.bf16.msrb.mxu0 %v8551_v34  ;;  %v8727_v34 = vor.u32 %v12462_v20, %v8724_v62  ;;  %v8655_v11 = vor.u32 %v12444_v38, %v8652_v44  ;;  %v12458_v22 = vld [vmem:[%s13472_s22 + $0x3a4] sm:$0xf] }
 0x240   : > { %7384 = vmatpush.bf16.msrb.mxu1 %v8615_v42  ;;  %v7133_v42 = vadd.f32 %v7132_v32, %v7120_v27  ;;  %v12408_v32 = vld [vmem:[%s13472_s22 + $0x214] sm:$0xf]  ;;  %v12406_v44 = vld [vmem:[%s13472_s22 + $0x204] sm:$0xf] }
 0x241   : > { %7397 = vmatpush.bf16.msrb.mxu2 %v8679_v25  ;;  %v8588_v25 = vld [vmem:[%s13472_s22 + $0x2b8] sm:$0xf0]  ;;  %v12438_v46 = vld [vmem:[%s13472_s22 + $0x304] sm:$0xf] }
 0x242   : > { %7410 = vmatpush.bf16.msrb.mxu3 %v8743_v45  ;;  %v8527_v45 = vor.u32 %v12412_v58, %v8524_v26  ;;  %v8591_v0 = vor.u32 %v12428_v37, %v8588_v25  ;;  %v8711_v58 = vor.u32 %v12458_v22, %v8708_v23  ;;  %v8572_v26 = vld [vmem:[%s13472_s22 + $0x298] sm:$0xf0]  ;;  %v12440_v37 = vld [vmem:[%s13472_s22 + $0x314] sm:$0xf] }
 0x243   : > { %7372 = vmatpush.bf16.msrb.mxu0 %v8543_v31  ;;  %v8719_v31 = vor.u32 %v12460_v33, %v8716_v43  ;;  %v8700_v25 = vld [vmem:[%s13472_s22 + $0x398] sm:$0xf0]  ;;  %v8500_v33 = vld [vmem:[%s13472_s22 + $0x208] sm:$0xf0] }
 0x244   : > { %7385 = vmatpush.bf16.msrb.mxu1 %v8607_v56  ;;  %v7145_v56 = vpop.f32.mrf.mxu2  ;;  %v8503_v22 = vor.u32 %v12406_v44, %v8500_v33  ;;  %v8876_v23 = vld [vmem:[%s13472_s22 + $0x4f8] sm:$0xf0]  ;;  %v12514_v44 = vld [vmem:[%s13472_s22 + $0x564] sm:$0xf]  ;;  %v8932_v33 = vld [vmem:[%s13472_s22 + $0x568] sm:$0xf0] }
 0x245   : > { %7398 = vmatpush.bf16.msrb.mxu2 %v8671_v54  ;;  %v8580_v54 = vld [vmem:[%s13472_s22 + $0x2a8] sm:$0xf0]  ;;  %v7146_v35 = vadd.f32 %v7145_v56, %v7133_v42  ;;  %v7121_v24 = vpop.f32.mrf.mxu0  ;;  %v12456_v42 = vld [vmem:[%s13472_s22 + $0x394] sm:$0xf] }
 0x246   : > { %7411 = vmatpush.bf16.msrb.mxu3 %v8735_v51  ;;  %v7158_v51 = vpop.f32.mrf.mxu3  ;;  %v7134_v20 = vpop.f32.mrf.mxu1  ;;  %v8583_v27 = vor.u32 %v12426_v52, %v8580_v54  ;;  %v8703_v7 = vor.u32 %v12456_v42, %v8700_v25  ;;  %v8628_v52 = vld [vmem:[%s13472_s22 + $0x308] sm:$0xf0]  ;;  %v12516_v24 = vld [vmem:[%s13472_s22 + $0x574] sm:$0xf]  ;;  %v12498_v42 = vld [vmem:[%s13472_s22 + $0x4e4] sm:$0xf] }
 0x247   : > { %7373 = vmatpush.bf16.msrb.mxu0 %v8535_v53  ;;  %v14827_v62 = vadd.f32 %v7158_v51, %v7146_v35  ;;  %v8647_v53 = vor.u32 %v12442_v21, %v8644_v55  ;;  %v8692_v56 = vld [vmem:[%s13472_s22 + $0x388] sm:$0xf0]  ;;  %v12484_v21 = vld [vmem:[%s13472_s22 + $0x474] sm:$0xf]  ;;  %v8812_v55 = vld [vmem:[%s13472_s22 + $0x478] sm:$0xf0] }
 0x248   : > { %7386 = vmatpush.bf16.msrb.mxu1 %v8599_v30  ;;  %v8508_v30 = vld [vmem:[%s13472_s22 + $0x218] sm:$0xf0]  ;;  %v12500_v35 = vld [vmem:[%s13472_s22 + $0x4f4] sm:$0xf] }
 0x249   : > { %7399 = vmatpush.bf16.msrb.mxu2 %v8663_v57  ;;  %v12424_v57 = vld [vmem:[%s13472_s22 + $0x294] sm:$0xf]  ;;  %v8511_v38 = vor.u32 %v12408_v32, %v8508_v30  ;;  %v9004_v32 = vld [vmem:[%s13472_s22 + $0x5f8] sm:$0xf0] }
 0x24a   : > { %7412 = vmatpush.bf16.msrb.mxu3 %v8727_v34  ;;  %v8636_v34 = vld [vmem:[%s13472_s22 + $0x318] sm:$0xf0]  ;;  %v8575_v43 = vor.u32 %v12424_v57, %v8572_v26  ;;  %v8815_v57 = vor.u32 %v12484_v21, %v8812_v55  ;;  %v12512_v21 = vld [vmem:[%s13472_s22 + $0x554] sm:$0xf] }
 0x24b   : > { %7374 = vmatpush.bf16.msrb.mxu0 %v8527_v45  ;;  %v8639_v45 = vor.u32 %v12440_v37, %v8636_v34  ;;  %v12482_v37 = vld [vmem:[%s13472_s22 + $0x464] sm:$0xf]  ;;  %v8804_v34 = vld [vmem:[%s13472_s22 + $0x468] sm:$0xf0]  ;;  %v8924_v55 = vld [vmem:[%s13472_s22 + $0x558] sm:$0xf0] }
 0x24c   : > { %7387 = vmatpush.bf16.msrb.mxu1 %v8591_v0  ;;  %v12422_v0 = vld [vmem:[%s13472_s22 + $0x284] sm:$0xf]  ;;  %v7147_v54 = vpop.f32.mrf.mxu2 }
 0x24d   : > { %7400 = vmatpush.bf16.msrb.mxu2 %v8655_v11  ;;  %v8564_v11 = vld [vmem:[%s13472_s22 + $0x288] sm:$0xf0]  ;;  %v8860_v54 = vld [vmem:[%s13472_s22 + $0x4d8] sm:$0xf0] }
 0x24e   : > { %7413 = vmatpush.bf16.msrb.mxu3 %v8719_v31  ;;  %v12454_v31 = vld [vmem:[%s13472_s22 + $0x384] sm:$0xf]  ;;  %v7160_v51 = vpop.f32.mrf.mxu3  ;;  %v8567_v20 = vor.u32 %v12422_v0, %v8564_v11  ;;  %v8807_v0 = vor.u32 %v12482_v37, %v8804_v34 }
 0x24f   : > { %7375 = vmatpush.bf16.msrb.mxu0 %v8519_v28  ;;  %v8940_v28 = vld [vmem:[%s13472_s22 + $0x578] sm:$0xf0]  ;;  %v8695_v30 = vor.u32 %v12454_v31, %v8692_v56  ;;  %v12496_v31 = vld [vmem:[%s13472_s22 + $0x4d4] sm:$0xf] }
 0x250   : > { %7388 = vmatpush.bf16.msrb.mxu1 %v8583_v27  ;;  %v8631_v27 = vor.u32 %v12438_v46, %v8628_v52  ;;  %v8943_v26 = vor.u32 %v12516_v24, %v8940_v28  ;;  %v8935_v46 = vor.u32 %v12514_v44, %v8932_v33  ;;  %v8796_v52 = vld [vmem:[%s13472_s22 + $0x458] sm:$0xf0]  ;;  %v12478_v24 = vld [vmem:[%s13472_s22 + $0x444] sm:$0xf]  ;;  %v8788_v28 = vld [vmem:[%s13472_s22 + $0x448] sm:$0xf0] }
 0x251   : > { %7401 = vmatpush.bf16.msrb.mxu2 %v8647_v53  ;;  %v12532_v53 = vld [vmem:[%s13472_s22 + $0x5f4] sm:$0xf]  ;;  %v8988_v51 = vld [vmem:[%s13472_s22 + $0x5d8] sm:$0xf0] }
 0x252   : > { %7414 = vmatpush.bf16.msrb.mxu3 %v8711_v58  ;;  %v8879_v58 = vor.u32 %v12500_v35, %v8876_v23  ;;  %v9007_v25 = vor.u32 %v12532_v53, %v9004_v32  ;;  %v12528_v35 = vld [vmem:[%s13472_s22 + $0x5d4] sm:$0xf]  ;;  %v8927_v23 = vor.u32 %v12512_v21, %v8924_v55  ;;  %v8916_v53 = vld [vmem:[%s13472_s22 + $0x548] sm:$0xf0] }
 0x253   : > { %7376 = vmatpush.bf16.msrb.mxu0 %v8511_v38  ;;  %v8868_v38 = vld [vmem:[%s13472_s22 + $0x4e8] sm:$0xf0] }
 0x254   : > { %7389 = vmatpush.bf16.msrb.mxu1 %v8575_v43  ;;  %v12530_v43 = vld [vmem:[%s13472_s22 + $0x5e4] sm:$0xf]  ;;  %v8871_v11 = vor.u32 %v12498_v42, %v8868_v38  ;;  %v12476_v42 = vld [vmem:[%s13472_s22 + $0x434] sm:$0xf] }
 0x255   : > { %7402 = vmatpush.bf16.msrb.mxu2 %v8639_v45  ;;  %v8996_v45 = vld [vmem:[%s13472_s22 + $0x5e8] sm:$0xf0]  ;;  %v12492_v38 = vld [vmem:[%s13472_s22 + $0x4b4] sm:$0xf] }
 0x256   : > { %7415 = vmatpush.bf16.msrb.mxu3 %v8703_v7  ;;  %v12480_v7 = vld [vmem:[%s13472_s22 + $0x454] sm:$0xf]  ;;  %v8999_v56 = vor.u32 %v12530_v43, %v8996_v45  ;;  %v8844_v43 = vld [vmem:[%s13472_s22 + $0x4b8] sm:$0xf0] }
 0x257   : > { %7377 = vmatpush.bf16.msrb.mxu0 %v8503_v22  ;;  %v8799_v22 = vor.u32 %v12480_v7, %v8796_v52  ;;  %v7171_v32 = vpop.f32.mrf.mxu0  ;;  %v12508_v45 = vld [vmem:[%s13472_s22 + $0x534] sm:$0xf]  ;;  %v8847_v7 = vor.u32 %v12492_v38, %v8844_v43 }
 0x258   : > { %7390 = vmatpush.bf16.msrb.mxu1 %v8567_v20  ;;  %v8852_v20 = vld [vmem:[%s13472_s22 + $0x4c8] sm:$0xf0] }
 0x259   : > { %7403 = vmatpush.bf16.msrb.mxu2 %v8631_v27  ;;  %v12510_v27 = vld [vmem:[%s13472_s22 + $0x544] sm:$0xf] }
 0x25a   : > { %7416 = vmatpush.bf16.msrb.mxu3 %v8695_v30  ;;  %7378 = vmatmul.bf16.vlgmr.msrb.gmra.mxu0 %v13617_v1  ;;  %v12494_v1 = vld [vmem:[%s13472_s22 + $0x4c4] sm:$0xf]  ;;  %v8919_v34 = vor.u32 %v12510_v27, %v8916_v53 }
 0x25b   : > { %7422 = vmatpush.bf16.msra.mxu0 %v8815_v57  ;;  %7391 = vmatmul.bf16.vlgmr.msrb.gmra.mxu1 %v13621_v3  ;;  %v12526_v30 = vld [vmem:[%s13472_s22 + $0x5c4] sm:$0xf]  ;;  %v8980_v57 = vld [vmem:[%s13472_s22 + $0x5c8] sm:$0xf0]  ;;  %v7172_v3 = vadd.f32 %v7171_v32, %v14827_v62  ;;  %v8855_v37 = vor.u32 %v12494_v1, %v8852_v20  ;;  %v8908_v62 = vld [vmem:[%s13472_s22 + $0x538] sm:$0xf0] }
 0x25c   : > { %7435 = vmatpush.bf16.msra.mxu1 %v8879_v58  ;;  %7404 = vmatmul.bf16.vlgmr.msrb.gmra.mxu2 %v13614_v61  ;;  %v8863_v61 = vor.u32 %v12496_v31, %v8860_v54  ;;  %v8791_v58 = vor.u32 %v12478_v24, %v8788_v28  ;;  %v8983_v44 = vor.u32 %v12526_v30, %v8980_v57  ;;  %v12474_v31 = vld [vmem:[%s13472_s22 + $0x424] sm:$0xf]  ;;  %v8964_v28 = vld [vmem:[%s13472_s22 + $0x5a8] sm:$0xf0]  ;;  %v12472_v30 = vld [vmem:[%s13472_s22 + $0x414] sm:$0xf] }
 0x25d   : > { %7448 = vmatpush.bf16.msra.mxu2 %v8943_v26  ;;  %7417 = vmatmul.bf16.vlgmr.msrb.gmra.mxu3 %v13619_v2  ;;  %v8991_v2 = vor.u32 %v12528_v35, %v8988_v51  ;;  %v7184_v26 = vpop.f32.mrf.mxu1  ;;  %v8911_v52 = vor.u32 %v12508_v45, %v8908_v62  ;;  %v12490_v54 = vld [vmem:[%s13472_s22 + $0x4a4] sm:$0xf]  ;;  %v8836_v35 = vld [vmem:[%s13472_s22 + $0x4a8] sm:$0xf0]  ;;  %v8764_v57 = vld [vmem:[%s13472_s22 + $0x418] sm:$0xf0] }
 0x25e   : > { %7461 = vmatpush.bf16.msra.mxu3 %v9007_v25  ;;  %v8780_v25 = vld [vmem:[%s13472_s22 + $0x438] sm:$0xf0]  ;;  %v7185_v33 = vadd.f32 %v7184_v26, %v7172_v3  ;;  %v12506_v51 = vld [vmem:[%s13472_s22 + $0x524] sm:$0xf]  ;;  %v8839_v53 = vor.u32 %v12490_v54, %v8836_v35  ;;  %v12488_v3 = vld [vmem:[%s13472_s22 + $0x494] sm:$0xf]  ;;  %v8767_v38 = vor.u32 %v12472_v30, %v8764_v57 }
 0x25f   : > { %7423 = vmatpush.bf16.msra.mxu0 %v8807_v0  ;;  %v12524_v0 = vld [vmem:[%s13472_s22 + $0x5b4] sm:$0xf]  ;;  %v7197_v55 = vpop.f32.mrf.mxu2  ;;  %v12522_v24 = vld [vmem:[%s13472_s22 + $0x5a4] sm:$0xf]  ;;  %v7173_v1 = vpop.f32.mrf.mxu0  ;;  %v8828_v26 = vld [vmem:[%s13472_s22 + $0x498] sm:$0xf0] }
 0x260   : > { %7436 = vmatpush.bf16.msra.mxu1 %v8871_v11  ;;  %v8972_v11 = vld [vmem:[%s13472_s22 + $0x5b8] sm:$0xf0]  ;;  %v8831_v43 = vor.u32 %v12488_v3, %v8828_v26  ;;  %v12486_v62 = vld [vmem:[%s13472_s22 + $0x484] sm:$0xf]  ;;  %v12548_v54 = vld [vmem:[%s13472_s22 + $0x674] sm:$0xf] }
 0x261   : > { %7449 = vmatpush.bf16.msra.mxu2 %v8935_v46  ;;  %v8783_v46 = vor.u32 %v12476_v42, %v8780_v25  ;;  %v8975_v21 = vor.u32 %v12524_v0, %v8972_v11  ;;  %v12520_v42 = vld [vmem:[%s13472_s22 + $0x594] sm:$0xf]  ;;  %v8956_v25 = vld [vmem:[%s13472_s22 + $0x598] sm:$0xf0]  ;;  %v8820_v0 = vld [vmem:[%s13472_s22 + $0x488] sm:$0xf0] }
 0x262   : > { %7462 = vmatpush.bf16.msra.mxu3 %v8999_v56  ;;  %v8772_v56 = vld [vmem:[%s13472_s22 + $0x428] sm:$0xf0]  ;;  %v12502_v11 = vld [vmem:[%s13472_s22 + $0x504] sm:$0xf]  ;;  %v12596_v1 = vld [vmem:[%s13472_s22 + $0x7f4] sm:$0xf] }
 0x263   : > { %7424 = vmatpush.bf16.msra.mxu0 %v8799_v22  ;;  %v8900_v22 = vld [vmem:[%s13472_s22 + $0x528] sm:$0xf0]  ;;  %v12546_v57 = vld [vmem:[%s13472_s22 + $0x664] sm:$0xf] }
 0x264   : > { %7437 = vmatpush.bf16.msra.mxu1 %v8863_v61  ;;  %v7198_v61 = vadd.f32 %v7197_v55, %v7185_v33  ;;  %v8903_v32 = vor.u32 %v12506_v51, %v8900_v22  ;;  %v8756_v33 = vld [vmem:[%s13472_s22 + $0x408] sm:$0xf0]  ;;  %v12564_v55 = vld [vmem:[%s13472_s22 + $0x6f4] sm:$0xf]  ;;  %v9132_v22 = vld [vmem:[%s13472_s22 + $0x6f8] sm:$0xf0] }
 0x265   : > { %7450 = vmatpush.bf16.msra.mxu2 %v8927_v23  ;;  %v7210_v23 = vpop.f32.mrf.mxu3  ;;  %v7186_v20 = vpop.f32.mrf.mxu1  ;;  %v9060_v3 = vld [vmem:[%s13472_s22 + $0x668] sm:$0xf0] }
 0x266   : > { %7463 = vmatpush.bf16.msra.mxu3 %v8991_v2  ;;  %v8775_v2 = vor.u32 %v12474_v31, %v8772_v56  ;;  %v14898_v27 = vadd.f32 %v7210_v23, %v7198_v61  ;;  %v8948_v31 = vld [vmem:[%s13472_s22 + $0x588] sm:$0xf0]  ;;  %v12580_v61 = vld [vmem:[%s13472_s22 + $0x774] sm:$0xf]  ;;  %v9196_v23 = vld [vmem:[%s13472_s22 + $0x778] sm:$0xf0] }
 0x267   : > { %7425 = vmatpush.bf16.msra.mxu0 %v8791_v58  ;;  %v8967_v58 = vor.u32 %v12522_v24, %v8964_v28  ;;  %v7199_v56 = vpop.f32.mrf.mxu2  ;;  %v8823_v24 = vor.u32 %v12486_v62, %v8820_v0  ;;  %v9199_v30 = vor.u32 %v12580_v61, %v9196_v23  ;;  %v9052_v62 = vld [vmem:[%s13472_s22 + $0x658] sm:$0xf0]  ;;  %v12560_v0 = vld [vmem:[%s13472_s22 + $0x6d4] sm:$0xf]  ;;  %v9172_v61 = vld [vmem:[%s13472_s22 + $0x748] sm:$0xf0] }
 0x268   : > { %7438 = vmatpush.bf16.msra.mxu1 %v8855_v37  ;;  %v12504_v37 = vld [vmem:[%s13472_s22 + $0x514] sm:$0xf]  ;;  %v9244_v56 = vld [vmem:[%s13472_s22 + $0x7d8] sm:$0xf0]  ;;  %v12590_v23 = vld [vmem:[%s13472_s22 + $0x7c4] sm:$0xf] }
 0x269   : > { %7451 = vmatpush.bf16.msra.mxu2 %v8919_v34  ;;  %v8892_v34 = vld [vmem:[%s13472_s22 + $0x518] sm:$0xf0] }
 0x26a   : > { %7464 = vmatpush.bf16.msra.mxu3 %v8983_v44  ;;  %v12470_v44 = vld [vmem:[%s13472_s22 + $0x404] sm:$0xf]  ;;  %v8895_v45 = vor.u32 %v12504_v37, %v8892_v34  ;;  %v9124_v37 = vld [vmem:[%s13472_s22 + $0x6e8] sm:$0xf0] }
 0x26b   : > { %7426 = vmatpush.bf16.msra.mxu0 %v8783_v46  ;;  %v8959_v46 = vor.u32 %v12520_v42, %v8956_v25  ;;  %v8759_v51 = vor.u32 %v12470_v44, %v8756_v33  ;;  %v12578_v34 = vld [vmem:[%s13472_s22 + $0x764] sm:$0xf]  ;;  %v9188_v42 = vld [vmem:[%s13472_s22 + $0x768] sm:$0xf0]  ;;  %v9063_v44 = vor.u32 %v12546_v57, %v9060_v3  ;;  %v12556_v57 = vld [vmem:[%s13472_s22 + $0x6b4] sm:$0xf] }
 0x26c   : > { %7439 = vmatpush.bf16.msra.mxu1 %v8847_v7  ;;  %v8884_v7 = vld [vmem:[%s13472_s22 + $0x508] sm:$0xf0]  ;;  %v12594_v25 = vld [vmem:[%s13472_s22 + $0x7e4] sm:$0xf] }
 0x26d   : > { %7452 = vmatpush.bf16.msra.mxu2 %v8911_v52  ;;  %v12518_v52 = vld [vmem:[%s13472_s22 + $0x584] sm:$0xf]  ;;  %v7212_v35 = vpop.f32.mrf.mxu3  ;;  %v8887_v28 = vor.u32 %v12502_v11, %v8884_v7  ;;  %v12576_v7 = vld [vmem:[%s13472_s22 + $0x754] sm:$0xf] }
 0x26e   : > { %7465 = vmatpush.bf16.msra.mxu3 %v8975_v21  ;;  %v9068_v21 = vld [vmem:[%s13472_s22 + $0x678] sm:$0xf0]  ;;  %v8951_v20 = vor.u32 %v12518_v52, %v8948_v31  ;;  %v12592_v31 = vld [vmem:[%s13472_s22 + $0x7d4] sm:$0xf]  ;;  %v9044_v35 = vld [vmem:[%s13472_s22 + $0x648] sm:$0xf0] }
 0x26f   : > { %7427 = vmatpush.bf16.msra.mxu0 %v8775_v2  ;;  %v9260_v2 = vld [vmem:[%s13472_s22 + $0x7f8] sm:$0xf0] }
 0x270   : > { %7440 = vmatpush.bf16.msra.mxu1 %v8839_v53  ;;  %v9071_v53 = vor.u32 %v12548_v54, %v9068_v21  ;;  %v9263_v26 = vor.u32 %v12596_v1, %v9260_v2  ;;  %v9180_v52 = vld [vmem:[%s13472_s22 + $0x758] sm:$0xf0] }
 0x271   : > { %7453 = vmatpush.bf16.msra.mxu2 %v8903_v32  ;;  %v9135_v32 = vor.u32 %v12564_v55, %v9132_v22  ;;  %v9183_v21 = vor.u32 %v12576_v7, %v9180_v52  ;;  %v12542_v55 = vld [vmem:[%s13472_s22 + $0x644] sm:$0xf]  ;;  %v9156_v7 = vld [vmem:[%s13472_s22 + $0x728] sm:$0xf0] }
 0x272   : > { %7466 = vmatpush.bf16.msra.mxu3 %v8967_v58  ;;  %v12562_v58 = vld [vmem:[%s13472_s22 + $0x6e4] sm:$0xf]  ;;  %v9047_v1 = vor.u32 %v12542_v55, %v9044_v35 }
 0x273   : > { %7428 = vmatpush.bf16.msra.mxu0 %v8767_v38  ;;  %v9252_v38 = vld [vmem:[%s13472_s22 + $0x7e8] sm:$0xf0]  ;;  %v9127_v33 = vor.u32 %v12562_v58, %v9124_v37  ;;  %v12574_v22 = vld [vmem:[%s13472_s22 + $0x744] sm:$0xf]  ;;  %v12572_v37 = vld [vmem:[%s13472_s22 + $0x734] sm:$0xf] }
 0x274   : > { %7441 = vmatpush.bf16.msra.mxu1 %v8831_v43  ;;  %v9191_v43 = vor.u32 %v12578_v34, %v9188_v42  ;;  %v9255_v11 = vor.u32 %v12594_v25, %v9252_v38  ;;  %v12588_v34 = vld [vmem:[%s13472_s22 + $0x7b4] sm:$0xf]  ;;  %v9228_v42 = vld [vmem:[%s13472_s22 + $0x7b8] sm:$0xf0] }
 0x275   : > { %7454 = vmatpush.bf16.msra.mxu2 %v8895_v45  ;;  %v12544_v45 = vld [vmem:[%s13472_s22 + $0x654] sm:$0xf] }
 0x276   : > { %7467 = vmatpush.bf16.msra.mxu3 %v8959_v46  ;;  %v9116_v46 = vld [vmem:[%s13472_s22 + $0x6d8] sm:$0xf0] }
 0x277   : > { %7429 = vmatpush.bf16.msra.mxu0 %v8759_v51  ;;  %v9119_v54 = vor.u32 %v12560_v0, %v9116_v46  ;;  %v9108_v51 = vld [vmem:[%s13472_s22 + $0x6c8] sm:$0xf0]  ;;  %v12570_v46 = vld [vmem:[%s13472_s22 + $0x724] sm:$0xf] }
 0x278   : > { %7442 = vmatpush.bf16.msra.mxu1 %v8823_v24  ;;  %v9236_v24 = vld [vmem:[%s13472_s22 + $0x7c8] sm:$0xf0]  ;;  %v7236_v2 = vpop.f32.mrf.mxu1 }
 0x279   : > { %7455 = vmatpush.bf16.msra.mxu2 %v8887_v28  ;;  %v9239_v3 = vor.u32 %v12590_v23, %v9236_v24  ;;  %v9084_v23 = vld [vmem:[%s13472_s22 + $0x698] sm:$0xf0]  ;;  %v12568_v24 = vld [vmem:[%s13472_s22 + $0x714] sm:$0xf] }
 0x27a   : > { %7468 = vmatpush.bf16.msra.mxu3 %v8951_v20  ;;  %7430 = vmatmul.bf16.vlgmr.msra.gmra.mxu0 %v13707_v13  ;;  %v9055_v13 = vor.u32 %v12544_v45, %v9052_v62  ;;  %v12554_v45 = vld [vmem:[%s13472_s22 + $0x6a4] sm:$0xf]  ;;  %v9231_v62 = vor.u32 %v12588_v34, %v9228_v42  ;;  %v9204_v42 = vld [vmem:[%s13472_s22 + $0x788] sm:$0xf0] }
 0x27b   : > { %7474 = vmatpush.bf16.msrb.mxu0 %v9071_v53  ;;  %7443 = vmatmul.bf16.vlgmr.msra.gmra.mxu1 %v13713_v17  ;;  %v9247_v17 = vor.u32 %v12592_v31, %v9244_v56  ;;  %v9175_v53 = vor.u32 %v12574_v22, %v9172_v61  ;;  %v12586_v56 = vld [vmem:[%s13472_s22 + $0x7a4] sm:$0xf]  ;;  %v9020_v22 = vld [vmem:[%s13472_s22 + $0x618] sm:$0xf0]  ;;  %v12552_v61 = vld [vmem:[%s13472_s22 + $0x694] sm:$0xf] }
 0x27c   : > { %7487 = vmatpush.bf16.msrb.mxu1 %v9135_v32  ;;  %7456 = vmatmul.bf16.vlgmr.msra.gmra.mxu2 %v13711_v16  ;;  %v12558_v16 = vld [vmem:[%s13472_s22 + $0x6c4] sm:$0xf]  ;;  %v12540_v32 = vld [vmem:[%s13472_s22 + $0x634] sm:$0xf] }
 0x27d   : > { %7500 = vmatpush.bf16.msrb.mxu2 %v9199_v30  ;;  %7469 = vmatmul.bf16.vlgmr.msra.gmra.mxu3 %v13715_v18  ;;  %v7223_v18 = vpop.f32.mrf.mxu0  ;;  %v9111_v20 = vor.u32 %v12558_v16, %v9108_v51  ;;  %v9036_v30 = vld [vmem:[%s13472_s22 + $0x638] sm:$0xf0]  ;;  %v12536_v51 = vld [vmem:[%s13472_s22 + $0x614] sm:$0xf]  ;;  %v12582_v34 = vld [vmem:[%s13472_s22 + $0x784] sm:$0xf] }
 0x27e   : > { %7513 = vmatpush.bf16.msrb.mxu3 %v9263_v26  ;;  %v7224_v28 = vadd.f32 %v7223_v18, %v14898_v27  ;;  %v9100_v26 = vld [vmem:[%s13472_s22 + $0x6b8] sm:$0xf0]  ;;  %v9039_v25 = vor.u32 %v12540_v32, %v9036_v30  ;;  %v9012_v32 = vld [vmem:[%s13472_s22 + $0x608] sm:$0xf0]  ;;  %v9087_v30 = vor.u32 %v12552_v61, %v9084_v23  ;;  %v12642_v61 = vld [vmem:[%s13472_s22 + $0x964] sm:$0xf] }
 0x27f   : > { %7475 = vmatpush.bf16.msrb.mxu0 %v9063_v44  ;;  %v9164_v27 = vld [vmem:[%s13472_s22 + $0x738] sm:$0xf0]  ;;  %v9103_v38 = vor.u32 %v12556_v57, %v9100_v26  ;;  %v7249_v0 = vpop.f32.mrf.mxu2  ;;  %v12566_v26 = vld [vmem:[%s13472_s22 + $0x704] sm:$0xf] }
 0x280   : > { %7488 = vmatpush.bf16.msrb.mxu1 %v9127_v33  ;;  %v7237_v58 = vadd.f32 %v7236_v2, %v7224_v28  ;;  %v9167_v44 = vor.u32 %v12572_v37, %v9164_v27  ;;  %v12538_v33 = vld [vmem:[%s13472_s22 + $0x624] sm:$0xf]  ;;  %v7262_v31 = vpop.f32.mrf.mxu3  ;;  %v7238_v55 = vpop.f32.mrf.mxu1  ;;  %v9148_v28 = vld [vmem:[%s13472_s22 + $0x718] sm:$0xf0]  ;;  %v9140_v27 = vld [vmem:[%s13472_s22 + $0x708] sm:$0xf0] }
 0x281   : > { %7501 = vmatpush.bf16.msrb.mxu2 %v9191_v43  ;;  %v9028_v43 = vld [vmem:[%s13472_s22 + $0x628] sm:$0xf0]  ;;  %v9212_v2 = vld [vmem:[%s13472_s22 + $0x798] sm:$0xf0]  ;;  %v9151_v57 = vor.u32 %v12568_v24, %v9148_v28  ;;  %v12610_v55 = vld [vmem:[%s13472_s22 + $0x864] sm:$0xf] }
 0x282   : > { %7514 = vmatpush.bf16.msrb.mxu3 %v9255_v11  ;;  %v9092_v11 = vld [vmem:[%s13472_s22 + $0x6a8] sm:$0xf0]  ;;  %v7250_v52 = vadd.f32 %v7249_v0, %v7237_v58  ;;  %v12644_v0 = vld [vmem:[%s13472_s22 + $0x974] sm:$0xf]  ;;  %v12658_v23 = vld [vmem:[%s13472_s22 + $0x9e4] sm:$0xf] }
 0x283   : > { %7476 = vmatpush.bf16.msrb.mxu0 %v9055_v13  ;;  %v9220_v13 = vld [vmem:[%s13472_s22 + $0x7a8] sm:$0xf0]  ;;  %v9095_v16 = vor.u32 %v12554_v45, %v9092_v11  ;;  %v9452_v11 = vld [vmem:[%s13472_s22 + $0x978] sm:$0xf0] }
 0x284   : > { %7489 = vmatpush.bf16.msrb.mxu1 %v9119_v54  ;;  %v14969_v35 = vadd.f32 %v7262_v31, %v7250_v52  ;;  %v9223_v18 = vor.u32 %v12586_v56, %v9220_v13  ;;  %v9076_v58 = vld [vmem:[%s13472_s22 + $0x688] sm:$0xf0]  ;;  %v12660_v52 = vld [vmem:[%s13472_s22 + $0x9f4] sm:$0xf]  ;;  %v9516_v31 = vld [vmem:[%s13472_s22 + $0x9f8] sm:$0xf0]  ;;  %v9207_v56 = vor.u32 %v12582_v34, %v9204_v42 }
 0x285   : > { %7502 = vmatpush.bf16.msrb.mxu2 %v9183_v21  ;;  %v7225_v54 = vpop.f32.mrf.mxu0  ;;  %v9031_v21 = vor.u32 %v12538_v33, %v9028_v43  ;;  %v12628_v33 = vld [vmem:[%s13472_s22 + $0x8f4] sm:$0xf]  ;;  %v9508_v24 = vld [vmem:[%s13472_s22 + $0x9e8] sm:$0xf0]  ;;  %v12606_v42 = vld [vmem:[%s13472_s22 + $0x844] sm:$0xf] }
 0x286   : > { %7515 = vmatpush.bf16.msrb.mxu3 %v9247_v17  ;;  %v9159_v17 = vor.u32 %v12570_v46, %v9156_v7  ;;  %v9143_v7 = vor.u32 %v12566_v26, %v9140_v27  ;;  %v12656_v26 = vld [vmem:[%s13472_s22 + $0x9d4] sm:$0xf] }
 0x287   : > { %7477 = vmatpush.bf16.msrb.mxu0 %v9047_v1  ;;  %v12584_v1 = vld [vmem:[%s13472_s22 + $0x794] sm:$0xf] }
 0x288   : > { %7490 = vmatpush.bf16.msrb.mxu1 %v9111_v20  ;;  %v9023_v20 = vor.u32 %v12536_v51, %v9020_v22  ;;  %v9215_v37 = vor.u32 %v12584_v1, %v9212_v2  ;;  %v7264_v43 = vpop.f32.mrf.mxu3  ;;  %v9519_v51 = vor.u32 %v12660_v52, %v9516_v31  ;;  %v9380_v22 = vld [vmem:[%s13472_s22 + $0x8e8] sm:$0xf0]  ;;  %v12604_v52 = vld [vmem:[%s13472_s22 + $0x834] sm:$0xf]  ;;  %v9292_v31 = vld [vmem:[%s13472_s22 + $0x838] sm:$0xf0] }
 0x289   : > { %7503 = vmatpush.bf16.msrb.mxu2 %v9175_v53  ;;  %v12534_v53 = vld [vmem:[%s13472_s22 + $0x604] sm:$0xf] }
 0x28a   : > { %7516 = vmatpush.bf16.msrb.mxu3 %v9239_v3  ;;  %v12550_v3 = vld [vmem:[%s13472_s22 + $0x684] sm:$0xf]  ;;  %v9015_v45 = vor.u32 %v12534_v53, %v9012_v32  ;;  %v9308_v53 = vld [vmem:[%s13472_s22 + $0x858] sm:$0xf0]  ;;  %v12624_v32 = vld [vmem:[%s13472_s22 + $0x8d4] sm:$0xf] }
 0x28b   : > { %7478 = vmatpush.bf16.msrb.mxu0 %v9039_v25  ;;  %v7251_v25 = vpop.f32.mrf.mxu2  ;;  %v9079_v46 = vor.u32 %v12550_v3, %v9076_v58  ;;  %v12640_v3 = vld [vmem:[%s13472_s22 + $0x954] sm:$0xf]  ;;  %v9436_v58 = vld [vmem:[%s13472_s22 + $0x958] sm:$0xf0]  ;;  %v12654_v43 = vld [vmem:[%s13472_s22 + $0x9c4] sm:$0xf] }
 0x28c   : > { %7491 = vmatpush.bf16.msrb.mxu1 %v9103_v38  ;;  %v12612_v38 = vld [vmem:[%s13472_s22 + $0x874] sm:$0xf]  ;;  %v9439_v34 = vor.u32 %v12640_v3, %v9436_v58  ;;  %v9300_v25 = vld [vmem:[%s13472_s22 + $0x848] sm:$0xf0] }
 0x28d   : > { %7504 = vmatpush.bf16.msrb.mxu2 %v9167_v44  ;;  %v9324_v44 = vld [vmem:[%s13472_s22 + $0x878] sm:$0xf0]  ;;  %v9476_v3 = vld [vmem:[%s13472_s22 + $0x9a8] sm:$0xf0] }
 0x28e   : > { %7517 = vmatpush.bf16.msrb.mxu3 %v9231_v62  ;;  %v9388_v62 = vld [vmem:[%s13472_s22 + $0x8f8] sm:$0xf0]  ;;  %v9327_v13 = vor.u32 %v12612_v38, %v9324_v44  ;;  %v9364_v38 = vld [vmem:[%s13472_s22 + $0x8c8] sm:$0xf0]  ;;  %v12638_v44 = vld [vmem:[%s13472_s22 + $0x944] sm:$0xf] }
 0x28f   : > { %7479 = vmatpush.bf16.msrb.mxu0 %v9031_v21  ;;  %v9391_v54 = vor.u32 %v12628_v33, %v9388_v62  ;;  %v9455_v21 = vor.u32 %v12644_v0, %v9452_v11  ;;  %v9428_v33 = vld [vmem:[%s13472_s22 + $0x948] sm:$0xf0]  ;;  %v9303_v0 = vor.u32 %v12606_v42, %v9300_v25  ;;  %v12600_v42 = vld [vmem:[%s13472_s22 + $0x814] sm:$0xf]  ;;  %v9276_v25 = vld [vmem:[%s13472_s22 + $0x818] sm:$0xf0] }
 0x290   : > { %7492 = vmatpush.bf16.msrb.mxu1 %v9095_v16  ;;  %v9316_v16 = vld [vmem:[%s13472_s22 + $0x868] sm:$0xf0] }
 0x291   : > { %7505 = vmatpush.bf16.msrb.mxu2 %v9159_v17  ;;  %v12626_v17 = vld [vmem:[%s13472_s22 + $0x8e4] sm:$0xf]  ;;  %v9319_v28 = vor.u32 %v12610_v55, %v9316_v16  ;;  %v12636_v55 = vld [vmem:[%s13472_s22 + $0x934] sm:$0xf] }
 0x292   : > { %7518 = vmatpush.bf16.msrb.mxu3 %v9223_v18  ;;  %v9444_v18 = vld [vmem:[%s13472_s22 + $0x968] sm:$0xf0]  ;;  %v9383_v1 = vor.u32 %v12626_v17, %v9380_v22  ;;  %v12652_v16 = vld [vmem:[%s13472_s22 + $0x9b4] sm:$0xf]  ;;  %v9484_v17 = vld [vmem:[%s13472_s22 + $0x9b8] sm:$0xf0] }
 0x293   : > { %7480 = vmatpush.bf16.msrb.mxu0 %v9023_v20  ;;  %v9447_v2 = vor.u32 %v12642_v61, %v9444_v18  ;;  %v12608_v20 = vld [vmem:[%s13472_s22 + $0x854] sm:$0xf]  ;;  %v12602_v18 = vld [vmem:[%s13472_s22 + $0x824] sm:$0xf] }
 0x294   : > { %7493 = vmatpush.bf16.msrb.mxu1 %v9087_v30  ;;  %v9511_v30 = vor.u32 %v12658_v23, %v9508_v24  ;;  %v9284_v23 = vld [vmem:[%s13472_s22 + $0x828] sm:$0xf0]  ;;  %v12618_v24 = vld [vmem:[%s13472_s22 + $0x8a4] sm:$0xf] }
 0x295   : > { %7506 = vmatpush.bf16.msrb.mxu2 %v9151_v57  ;;  %v9372_v57 = vld [vmem:[%s13472_s22 + $0x8d8] sm:$0xf0] }
 0x296   : > { %7519 = vmatpush.bf16.msrb.mxu3 %v9215_v37  ;;  %v9500_v37 = vld [vmem:[%s13472_s22 + $0x9d8] sm:$0xf0]  ;;  %v9375_v27 = vor.u32 %v12624_v32, %v9372_v57  ;;  %v12650_v57 = vld [vmem:[%s13472_s22 + $0x9a4] sm:$0xf] }
 0x297   : > { %7481 = vmatpush.bf16.msrb.mxu0 %v9015_v45  ;;  %v9492_v45 = vld [vmem:[%s13472_s22 + $0x9c8] sm:$0xf0] }
 0x298   : > { %7494 = vmatpush.bf16.msrb.mxu1 %v9079_v46  ;;  %v7288_v11 = vpop.f32.mrf.mxu1 }
 0x299   : > { %7507 = vmatpush.bf16.msrb.mxu2 %v9143_v7  ;;  %v9431_v7 = vor.u32 %v12638_v44, %v9428_v33  ;;  %v12632_v44 = vld [vmem:[%s13472_s22 + $0x914] sm:$0xf]  ;;  %v9404_v33 = vld [vmem:[%s13472_s22 + $0x918] sm:$0xf0] }
 0x29a   : > { %7520 = vmatpush.bf16.msrb.mxu3 %v9207_v56  ;;  %7482 = vmatmul.bf16.vlgmr.msrb.gmra.mxu0 %v13773_v47  ;;  %v9311_v47 = vor.u32 %v12608_v20, %v9308_v53  ;;  %v12620_v56 = vld [vmem:[%s13472_s22 + $0x8b4] sm:$0xf]  ;;  %v12634_v20 = vld [vmem:[%s13472_s22 + $0x924] sm:$0xf]  ;;  %v9412_v53 = vld [vmem:[%s13472_s22 + $0x928] sm:$0xf0] }
 0x29b   : > { %7526 = vmatpush.bf16.msra.mxu0 %v9327_v13  ;;  %7495 = vmatmul.bf16.vlgmr.msrb.gmra.mxu1 %v13777_v49  ;;  %v9503_v49 = vor.u32 %v12656_v26, %v9500_v37  ;;  %v9495_v13 = vor.u32 %v12654_v43, %v9492_v45  ;;  %v9287_v26 = vor.u32 %v12602_v18, %v9284_v23  ;;  %v9468_v43 = vld [vmem:[%s13472_s22 + $0x998] sm:$0xf0]  ;;  %v12708_v18 = vld [vmem:[%s13472_s22 + $0xb74] sm:$0xf] }
 0x29c   : > { %7539 = vmatpush.bf16.msra.mxu1 %v9391_v54  ;;  %7508 = vmatmul.bf16.vlgmr.msrb.gmra.mxu2 %v13775_v48  ;;  %v12622_v48 = vld [vmem:[%s13472_s22 + $0x8c4] sm:$0xf]  ;;  %v9279_v45 = vor.u32 %v12600_v42, %v9276_v25  ;;  %v9708_v23 = vld [vmem:[%s13472_s22 + $0xb78] sm:$0xf0]  ;;  %v9764_v25 = vld [vmem:[%s13472_s22 + $0xbe8] sm:$0xf0] }
 0x29d   : > { %7552 = vmatpush.bf16.msra.mxu2 %v9455_v21  ;;  %7521 = vmatmul.bf16.vlgmr.msrb.gmra.mxu3 %v13779_v50  ;;  %v7275_v50 = vpop.f32.mrf.mxu0  ;;  %v9367_v46 = vor.u32 %v12622_v48, %v9364_v38  ;;  %v9356_v21 = vld [vmem:[%s13472_s22 + $0x8b8] sm:$0xf0]  ;;  %v12616_v48 = vld [vmem:[%s13472_s22 + $0x894] sm:$0xf]  ;;  %v12722_v42 = vld [vmem:[%s13472_s22 + $0xbe4] sm:$0xf] }
 0x29e   : > { %7565 = vmatpush.bf16.msra.mxu3 %v9519_v51  ;;  %v7276_v62 = vadd.f32 %v7275_v50, %v14969_v35  ;;  %v9420_v35 = vld [vmem:[%s13472_s22 + $0x938] sm:$0xf0]  ;;  %v9295_v51 = vor.u32 %v12604_v52, %v9292_v31  ;;  %v9359_v22 = vor.u32 %v12620_v56, %v9356_v21  ;;  %v12648_v50 = vld [vmem:[%s13472_s22 + $0x994] sm:$0xf]  ;;  %v9332_v52 = vld [vmem:[%s13472_s22 + $0x888] sm:$0xf0] }
 0x29f   : > { %7527 = vmatpush.bf16.msra.mxu0 %v9319_v28  ;;  %v9423_v61 = vor.u32 %v12636_v55, %v9420_v35  ;;  %v9487_v28 = vor.u32 %v12652_v16, %v9484_v17  ;;  %v9340_v38 = vld [vmem:[%s13472_s22 + $0x898] sm:$0xf0]  ;;  %v12630_v31 = vld [vmem:[%s13472_s22 + $0x904] sm:$0xf]  ;;  %v9471_v56 = vor.u32 %v12648_v50, %v9468_v43  ;;  %v9460_v21 = vld [vmem:[%s13472_s22 + $0x988] sm:$0xf0]  ;;  %v9767_v43 = vor.u32 %v12722_v42, %v9764_v25 }
 0x2a0   : > { %7540 = vmatpush.bf16.msra.mxu1 %v9383_v1  ;;  %v7289_v54 = vadd.f32 %v7288_v11, %v7276_v62  ;;  %v7301_v1 = vpop.f32.mrf.mxu2  ;;  %v7290_v37 = vpop.f32.mrf.mxu1  ;;  %v12598_v62 = vld [vmem:[%s13472_s22 + $0x804] sm:$0xf]  ;;  %v9343_v11 = vor.u32 %v12616_v48, %v9340_v38  ;;  %v12676_v35 = vld [vmem:[%s13472_s22 + $0xa74] sm:$0xf]  ;;  %v9580_v16 = vld [vmem:[%s13472_s22 + $0xa78] sm:$0xf0] }
 0x2a1   : > { %7553 = vmatpush.bf16.msra.mxu2 %v9447_v2  ;;  %v9348_v2 = vld [vmem:[%s13472_s22 + $0x8a8] sm:$0xf0]  ;;  %v12692_v17 = vld [vmem:[%s13472_s22 + $0xaf4] sm:$0xf]  ;;  %v12698_v25 = vld [vmem:[%s13472_s22 + $0xb24] sm:$0xf] }
 0x2a2   : > { %7566 = vmatpush.bf16.msra.mxu3 %v9511_v30  ;;  %v7302_v32 = vadd.f32 %v7301_v1, %v7289_v54  ;;  %v7314_v30 = vpop.f32.mrf.mxu3  ;;  %v12646_v54 = vld [vmem:[%s13472_s22 + $0x984] sm:$0xf]  ;;  %v12724_v1 = vld [vmem:[%s13472_s22 + $0xbf4] sm:$0xf]  ;;  %v9636_v37 = vld [vmem:[%s13472_s22 + $0xae8] sm:$0xf0] }
 0x2a3   : > { %7528 = vmatpush.bf16.msra.mxu0 %v9311_v47  ;;  %v12688_v50 = vld [vmem:[%s13472_s22 + $0xad4] sm:$0xf]  ;;  %v9604_v42 = vld [vmem:[%s13472_s22 + $0xaa8] sm:$0xf0] }
 0x2a4   : > { %7541 = vmatpush.bf16.msra.mxu1 %v9375_v27  ;;  %v15040_v47 = vadd.f32 %v7314_v30, %v7302_v32  ;;  %v9351_v27 = vor.u32 %v12618_v24, %v9348_v2  ;;  %v9772_v2 = vld [vmem:[%s13472_s22 + $0xbf8] sm:$0xf0]  ;;  %v9711_v30 = vor.u32 %v12708_v18, %v9708_v23  ;;  %v12684_v18 = vld [vmem:[%s13472_s22 + $0xab4] sm:$0xf] }
 0x2a5   : > { %7554 = vmatpush.bf16.msra.mxu2 %v9439_v34  ;;  %v7277_v58 = vpop.f32.mrf.mxu0  ;;  %v9415_v34 = vor.u32 %v12634_v20, %v9412_v53  ;;  %v9463_v20 = vor.u32 %v12646_v54, %v9460_v21  ;;  %v9583_v53 = vor.u32 %v12676_v35, %v9580_v16  ;;  %v12702_v54 = vld [vmem:[%s13472_s22 + $0xb44] sm:$0xf]  ;;  %v9684_v21 = vld [vmem:[%s13472_s22 + $0xb48] sm:$0xf0] }
 0x2a6   : > { %7567 = vmatpush.bf16.msra.mxu3 %v9503_v49  ;;  %v9479_v49 = vor.u32 %v12650_v57, %v9476_v3  ;;  %v12674_v57 = vld [vmem:[%s13472_s22 + $0xa64] sm:$0xf]  ;;  %v9572_v3 = vld [vmem:[%s13472_s22 + $0xa68] sm:$0xf0] }
 0x2a7   : > { %7529 = vmatpush.bf16.msra.mxu0 %v9303_v0  ;;  %v9268_v0 = vld [vmem:[%s13472_s22 + $0x808] sm:$0xf0]  ;;  %v12690_v58 = vld [vmem:[%s13472_s22 + $0xae4] sm:$0xf]  ;;  %v9575_v48 = vor.u32 %v12674_v57, %v9572_v3 }
 0x2a8   : > { %7542 = vmatpush.bf16.msra.mxu1 %v9367_v46  ;;  %v9407_v46 = vor.u32 %v12632_v44, %v9404_v33  ;;  %v7303_v55 = vpop.f32.mrf.mxu2  ;;  %v12672_v44 = vld [vmem:[%s13472_s22 + $0xa54] sm:$0xf]  ;;  %v9564_v33 = vld [vmem:[%s13472_s22 + $0xa58] sm:$0xf0] }
 0x2a9   : > { %7555 = vmatpush.bf16.msra.mxu2 %v9431_v7  ;;  %v12614_v7 = vld [vmem:[%s13472_s22 + $0x884] sm:$0xf]  ;;  %v9748_v55 = vld [vmem:[%s13472_s22 + $0xbc8] sm:$0xf0] }
 0x2aa   : > { %7568 = vmatpush.bf16.msra.mxu3 %v9495_v13  ;;  %v9396_v13 = vld [vmem:[%s13472_s22 + $0x908] sm:$0xf0]  ;;  %v9335_v24 = vor.u32 %v12614_v7, %v9332_v52 }
 0x2ab   : > { %7530 = vmatpush.bf16.msra.mxu0 %v9295_v51  ;;  %v7316_v51 = vpop.f32.mrf.mxu3 }
 0x2ac   : > { %7543 = vmatpush.bf16.msra.mxu1 %v9359_v22  ;;  %v9271_v22 = vor.u32 %v12598_v62, %v9268_v0  ;;  %v12704_v62 = vld [vmem:[%s13472_s22 + $0xb54] sm:$0xf]  ;;  %v9692_v0 = vld [vmem:[%s13472_s22 + $0xb58] sm:$0xf0]  ;;  %v9687_v51 = vor.u32 %v12702_v54, %v9684_v21  ;;  %v12662_v21 = vld [vmem:[%s13472_s22 + $0xa04] sm:$0xf] }
 0x2ad   : > { %7556 = vmatpush.bf16.msra.mxu2 %v9423_v61  ;;  %v9644_v61 = vld [vmem:[%s13472_s22 + $0xaf8] sm:$0xf0]  ;;  %v9695_v52 = vor.u32 %v12704_v62, %v9692_v0 }
 0x2ae   : > { %7569 = vmatpush.bf16.msra.mxu3 %v9487_v28  ;;  %v9399_v28 = vor.u32 %v12630_v31, %v9396_v13  ;;  %v9647_v32 = vor.u32 %v12692_v17, %v9644_v61  ;;  %v12670_v31 = vld [vmem:[%s13472_s22 + $0xa44] sm:$0xf]  ;;  %v9620_v13 = vld [vmem:[%s13472_s22 + $0xac8] sm:$0xf0]  ;;  %v9548_v61 = vld [vmem:[%s13472_s22 + $0xa38] sm:$0xf0] }
 0x2af   : > { %7531 = vmatpush.bf16.msra.mxu0 %v9287_v26  ;;  %v9775_v26 = vor.u32 %v12724_v1, %v9772_v2  ;;  %v12700_v1 = vld [vmem:[%s13472_s22 + $0xb34] sm:$0xf]  ;;  %v9676_v2 = vld [vmem:[%s13472_s22 + $0xb38] sm:$0xf0] }
 0x2b0   : > { %7544 = vmatpush.bf16.msra.mxu1 %v9351_v27  ;;  %v12706_v27 = vld [vmem:[%s13472_s22 + $0xb64] sm:$0xf]  ;;  %v9679_v3 = vor.u32 %v12700_v1, %v9676_v2  ;;  %v12740_v1 = vld [vmem:[%s13472_s22 + $0xc74] sm:$0xf]  ;;  %v9836_v2 = vld [vmem:[%s13472_s22 + $0xc78] sm:$0xf0] }
 0x2b1   : > { %7557 = vmatpush.bf16.msra.mxu2 %v9415_v34  ;;  %v9700_v34 = vld [vmem:[%s13472_s22 + $0xb68] sm:$0xf0] }
 0x2b2   : > { %7570 = vmatpush.bf16.msra.mxu3 %v9479_v49  ;;  %v9639_v49 = vor.u32 %v12690_v58, %v9636_v37  ;;  %v9703_v38 = vor.u32 %v12706_v27, %v9700_v34  ;;  %v12666_v58 = vld [vmem:[%s13472_s22 + $0xa24] sm:$0xf] }
 0x2b3   : > { %7532 = vmatpush.bf16.msra.mxu0 %v9279_v45  ;;  %v9628_v45 = vld [vmem:[%s13472_s22 + $0xad8] sm:$0xf0]  ;;  %v12682_v37 = vld [vmem:[%s13472_s22 + $0xaa4] sm:$0xf] }
 0x2b4   : > { %7545 = vmatpush.bf16.msra.mxu1 %v9343_v11  ;;  %v12720_v11 = vld [vmem:[%s13472_s22 + $0xbd4] sm:$0xf]  ;;  %v9631_v7 = vor.u32 %v12688_v50, %v9628_v45  ;;  %v9607_v62 = vor.u32 %v12682_v37, %v9604_v42  ;;  %v10028_v37 = vld [vmem:[%s13472_s22 + $0xdf8] sm:$0xf0] }
 0x2b5   : > { %7558 = vmatpush.bf16.msra.mxu2 %v9407_v46  ;;  %v9756_v46 = vld [vmem:[%s13472_s22 + $0xbd8] sm:$0xf0] }
 0x2b6   : > { %7571 = vmatpush.bf16.msra.mxu3 %v9471_v56  ;;  %v9556_v56 = vld [vmem:[%s13472_s22 + $0xa48] sm:$0xf0] }
 0x2b7   : > { %7533 = vmatpush.bf16.msra.mxu0 %v9271_v22  ;;  %v9559_v35 = vor.u32 %v12670_v31, %v9556_v56  ;;  %v7327_v16 = vpop.f32.mrf.mxu0  ;;  %v12668_v22 = vld [vmem:[%s13472_s22 + $0xa34] sm:$0xf]  ;;  %v9596_v31 = vld [vmem:[%s13472_s22 + $0xa98] sm:$0xf0] }
 0x2b8   : > { %7546 = vmatpush.bf16.msra.mxu1 %v9335_v24  ;;  %v7340_v23 = vpop.f32.mrf.mxu1  ;;  %v12696_v56 = vld [vmem:[%s13472_s22 + $0xb14] sm:$0xf] }
 0x2b9   : > { %7559 = vmatpush.bf16.msra.mxu2 %v9399_v28  ;;  %v9612_v28 = vld [vmem:[%s13472_s22 + $0xab8] sm:$0xf0] }
 0x2ba   : > { %7572 = vmatpush.bf16.msra.mxu3 %v9463_v20  ;;  %7534 = vmatmul.bf16.vlgmr.msra.gmra.mxu0 %v13860_v10  ;;  %v9567_v10 = vor.u32 %v12672_v44, %v9564_v33  ;;  %v7341_v20 = vadd.f32 %v7340_v23, %v7327_v16  ;;  %v9615_v57 = vor.u32 %v12684_v18, %v9612_v28  ;;  %v12714_v44 = vld [vmem:[%s13472_s22 + $0xba4] sm:$0xf]  ;;  %v9732_v33 = vld [vmem:[%s13472_s22 + $0xba8] sm:$0xf0] }
 0x2bb   : > { %7578 = vmatpush.bf16.msrb.mxu0 %v9583_v53  ;;  %7547 = vmatmul.bf16.vlgmr.msra.gmra.mxu1 %v13866_v15  ;;  %v9759_v15 = vor.u32 %v12720_v11, %v9756_v46  ;;  %v12716_v53 = vld [vmem:[%s13472_s22 + $0xbb4] sm:$0xf]  ;;  %v9532_v46 = vld [vmem:[%s13472_s22 + $0xa18] sm:$0xf0]  ;;  %v12678_v16 = vld [vmem:[%s13472_s22 + $0xa84] sm:$0xf] }
 0x2bc   : > { %7591 = vmatpush.bf16.msrb.mxu1 %v9647_v32  ;;  %7560 = vmatmul.bf16.vlgmr.msra.gmra.mxu2 %v13864_v14  ;;  %v12686_v14 = vld [vmem:[%s13472_s22 + $0xac4] sm:$0xf]  ;;  %v9740_v32 = vld [vmem:[%s13472_s22 + $0xbb8] sm:$0xf0]  ;;  %v12664_v11 = vld [vmem:[%s13472_s22 + $0xa14] sm:$0xf] }
 0x2bd   : > { %7604 = vmatpush.bf16.msrb.mxu2 %v9711_v30  ;;  %7573 = vmatmul.bf16.vlgmr.msra.gmra.mxu3 %v13868_v19  ;;  %v12718_v19 = vld [vmem:[%s13472_s22 + $0xbc4] sm:$0xf]  ;;  %v9623_v17 = vor.u32 %v12686_v14, %v9620_v13  ;;  %v9551_v30 = vor.u32 %v12668_v22, %v9548_v61  ;;  %v9743_v34 = vor.u32 %v12716_v53, %v9740_v32  ;;  %v9660_v14 = vld [vmem:[%s13472_s22 + $0xb18] sm:$0xf0]  ;;  %v9652_v18 = vld [vmem:[%s13472_s22 + $0xb08] sm:$0xf0] }
 0x2be   : > { %7617 = vmatpush.bf16.msrb.mxu3 %v9775_v26  ;;  %v9751_v24 = vor.u32 %v12718_v19, %v9748_v55  ;;  %v9540_v26 = vld [vmem:[%s13472_s22 + $0xa28] sm:$0xf0]  ;;  %v9724_v13 = vld [vmem:[%s13472_s22 + $0xb98] sm:$0xf0]  ;;  %v9535_v54 = vor.u32 %v12664_v11, %v9532_v46  ;;  %v12710_v23 = vld [vmem:[%s13472_s22 + $0xb84] sm:$0xf] }
 0x2bf   : > { %7579 = vmatpush.bf16.msrb.mxu0 %v9575_v48  ;;  %v7353_v27 = vpop.f32.mrf.mxu2  ;;  %v9668_v48 = vld [vmem:[%s13472_s22 + $0xb28] sm:$0xf0]  ;;  %v9543_v50 = vor.u32 %v12666_v58, %v9540_v26  ;;  %v7329_v45 = vpop.f32.mrf.mxu0  ;;  %v9900_v32 = vld [vmem:[%s13472_s22 + $0xcf8] sm:$0xf0]  ;;  %v12788_v26 = vld [vmem:[%s13472_s22 + $0xdf4] sm:$0xf] }
 0x2c0   : > { %7592 = vmatpush.bf16.msrb.mxu1 %v9639_v49  ;;  %v7354_v49 = vadd.f32 %v7353_v27, %v7341_v20  ;;  %v9671_v0 = vor.u32 %v12698_v25, %v9668_v48  ;;  %v9524_v19 = vld [vmem:[%s13472_s22 + $0xa08] sm:$0xf0]  ;;  %v12756_v20 = vld [vmem:[%s13472_s22 + $0xcf4] sm:$0xf]  ;;  %v12738_v48 = vld [vmem:[%s13472_s22 + $0xc64] sm:$0xf] }
 0x2c1   : > { %7605 = vmatpush.bf16.msrb.mxu2 %v9703_v38  ;;  %v7366_v38 = vpop.f32.mrf.mxu3  ;;  %v9527_v53 = vor.u32 %v12662_v21, %v9524_v19  ;;  %v9903_v42 = vor.u32 %v12756_v20, %v9900_v32  ;;  %v9956_v45 = vld [vmem:[%s13472_s22 + $0xd68] sm:$0xf0]  ;;  %v10012_v21 = vld [vmem:[%s13472_s22 + $0xdd8] sm:$0xf0]  ;;  %v12748_v20 = vld [vmem:[%s13472_s22 + $0xcb4] sm:$0xf] }
 0x2c2   : > { %7618 = vmatpush.bf16.msrb.mxu3 %v9767_v43  ;;  %v15110_v43 = vadd.f32 %v7366_v38, %v7354_v49  ;;  %v9828_v49 = vld [vmem:[%s13472_s22 + $0xc68] sm:$0xf0]  ;;  %v12754_v38 = vld [vmem:[%s13472_s22 + $0xce4] sm:$0xf] }
 0x2c3   : > { %7580 = vmatpush.bf16.msrb.mxu0 %v9567_v10  ;;  %v12680_v10 = vld [vmem:[%s13472_s22 + $0xa94] sm:$0xf]  ;;  %v9831_v11 = vor.u32 %v12738_v48, %v9828_v49  ;;  %v9796_v48 = vld [vmem:[%s13472_s22 + $0xc28] sm:$0xf0]  ;;  %v12746_v49 = vld [vmem:[%s13472_s22 + $0xca4] sm:$0xf] }
 0x2c4   : > { %7593 = vmatpush.bf16.msrb.mxu1 %v9631_v7  ;;  %v7342_v7 = vpop.f32.mrf.mxu1  ;;  %v9599_v55 = vor.u32 %v12680_v10, %v9596_v31  ;;  %v12752_v31 = vld [vmem:[%s13472_s22 + $0xcd4] sm:$0xf] }
 0x2c5   : > { %7606 = vmatpush.bf16.msrb.mxu2 %v9695_v52  ;;  %v9735_v52 = vor.u32 %v12714_v44, %v9732_v33  ;;  %v10031_v44 = vor.u32 %v12788_v26, %v10028_v37  ;;  %v9892_v33 = vld [vmem:[%s13472_s22 + $0xce8] sm:$0xf0]  ;;  %v12736_v7 = vld [vmem:[%s13472_s22 + $0xc54] sm:$0xf]  ;;  %v9996_v37 = vld [vmem:[%s13472_s22 + $0xdb8] sm:$0xf0] }
 0x2c6   : > { %7619 = vmatpush.bf16.msrb.mxu3 %v9759_v15  ;;  %v12712_v15 = vld [vmem:[%s13472_s22 + $0xb94] sm:$0xf]  ;;  %v9895_v46 = vor.u32 %v12754_v38, %v9892_v33  ;;  %v9860_v33 = vld [vmem:[%s13472_s22 + $0xca8] sm:$0xf0] }
 0x2c7   : > { %7581 = vmatpush.bf16.msrb.mxu0 %v9559_v35  ;;  %v9663_v35 = vor.u32 %v12696_v56, %v9660_v14  ;;  %v7355_v22 = vpop.f32.mrf.mxu2  ;;  %v9727_v61 = vor.u32 %v12712_v15, %v9724_v13  ;;  %v9884_v14 = vld [vmem:[%s13472_s22 + $0xcd8] sm:$0xf0]  ;;  %v12768_v15 = vld [vmem:[%s13472_s22 + $0xd54] sm:$0xf] }
 0x2c8   : > { %7594 = vmatpush.bf16.msrb.mxu1 %v9623_v17  ;;  %v9588_v17 = vld [vmem:[%s13472_s22 + $0xa88] sm:$0xf0]  ;;  %v9948_v13 = vld [vmem:[%s13472_s22 + $0xd58] sm:$0xf0]  ;;  %v9887_v19 = vor.u32 %v12752_v31, %v9884_v14  ;;  %v12780_v26 = vld [vmem:[%s13472_s22 + $0xdb4] sm:$0xf]  ;;  %v9863_v31 = vor.u32 %v12746_v49, %v9860_v33 }
 0x2c9   : > { %7607 = vmatpush.bf16.msrb.mxu2 %v9687_v51  ;;  %v12694_v51 = vld [vmem:[%s13472_s22 + $0xb04] sm:$0xf]  ;;  %v7368_v28 = vpop.f32.mrf.mxu3  ;;  %v9940_v22 = vld [vmem:[%s13472_s22 + $0xd48] sm:$0xf0]  ;;  %v12728_v14 = vld [vmem:[%s13472_s22 + $0xc14] sm:$0xf] }
 0x2ca   : > { %7620 = vmatpush.bf16.msrb.mxu3 %v9751_v24  ;;  %v9716_v24 = vld [vmem:[%s13472_s22 + $0xb88] sm:$0xf0]  ;;  %v9655_v58 = vor.u32 %v12694_v51, %v9652_v18  ;;  %v12766_v51 = vld [vmem:[%s13472_s22 + $0xd44] sm:$0xf] }
 0x2cb   : > { %7582 = vmatpush.bf16.msrb.mxu0 %v9551_v30  ;;  %v12772_v30 = vld [vmem:[%s13472_s22 + $0xd74] sm:$0xf]  ;;  %v9719_v27 = vor.u32 %v12710_v23, %v9716_v24  ;;  %v9943_v28 = vor.u32 %v12766_v51, %v9940_v22  ;;  %v12818_v33 = vld [vmem:[%s13472_s22 + $0xee4] sm:$0xf] }
 0x2cc   : > { %7595 = vmatpush.bf16.msrb.mxu1 %v9615_v57  ;;  %v9964_v57 = vld [vmem:[%s13472_s22 + $0xd78] sm:$0xf0] }
 0x2cd   : > { %7608 = vmatpush.bf16.msrb.mxu2 %v9679_v3  ;;  %v9591_v3 = vor.u32 %v12678_v16, %v9588_v17  ;;  %v9967_v25 = vor.u32 %v12772_v30, %v9964_v57  ;;  %v9812_v16 = vld [vmem:[%s13472_s22 + $0xc48] sm:$0xf0]  ;;  %v9868_v57 = vld [vmem:[%s13472_s22 + $0xcb8] sm:$0xf0] }
 0x2ce   : > { %7621 = vmatpush.bf16.msrb.mxu3 %v9743_v34  ;;  %v9839_v34 = vor.u32 %v12740_v1, %v9836_v2  ;;  %v9876_v17 = vld [vmem:[%s13472_s22 + $0xcc8] sm:$0xf0]  ;;  %v12732_v1 = vld [vmem:[%s13472_s22 + $0xc34] sm:$0xf]  ;;  %v9804_v2 = vld [vmem:[%s13472_s22 + $0xc38] sm:$0xf0] }
 0x2cf   : > { %7583 = vmatpush.bf16.msrb.mxu0 %v9543_v50  ;;  %v12770_v50 = vld [vmem:[%s13472_s22 + $0xd64] sm:$0xf] }
 0x2d0   : > { %7596 = vmatpush.bf16.msrb.mxu1 %v9607_v62  ;;  %v12786_v62 = vld [vmem:[%s13472_s22 + $0xde4] sm:$0xf]  ;;  %v9959_v10 = vor.u32 %v12770_v50, %v9956_v45  ;;  %v9924_v45 = vld [vmem:[%s13472_s22 + $0xd28] sm:$0xf0] }
 0x2d1   : > { %7609 = vmatpush.bf16.msrb.mxu2 %v9671_v0  ;;  %v10020_v0 = vld [vmem:[%s13472_s22 + $0xde8] sm:$0xf0]  ;;  %v12762_v50 = vld [vmem:[%s13472_s22 + $0xd24] sm:$0xf] }
 0x2d2   : > { %7622 = vmatpush.bf16.msrb.mxu3 %v9735_v52  ;;  %v9820_v52 = vld [vmem:[%s13472_s22 + $0xc58] sm:$0xf0]  ;;  %v10023_v56 = vor.u32 %v12786_v62, %v10020_v0 }
 0x2d3   : > { %7584 = vmatpush.bf16.msrb.mxu0 %v9535_v54  ;;  %v12784_v54 = vld [vmem:[%s13472_s22 + $0xdd4] sm:$0xf] }
 0x2d4   : > { %7597 = vmatpush.bf16.msrb.mxu1 %v9599_v55  ;;  %v9951_v55 = vor.u32 %v12768_v15, %v9948_v13  ;;  %v9788_v15 = vld [vmem:[%s13472_s22 + $0xc18] sm:$0xf0]  ;;  %v12744_v13 = vld [vmem:[%s13472_s22 + $0xc94] sm:$0xf] }
 0x2d5   : > { %7610 = vmatpush.bf16.msrb.mxu2 %v9663_v35  ;;  %v12734_v35 = vld [vmem:[%s13472_s22 + $0xc44] sm:$0xf] }
 0x2d6   : > { %7623 = vmatpush.bf16.msrb.mxu3 %v9727_v61  ;;  %v12782_v61 = vld [vmem:[%s13472_s22 + $0xdc4] sm:$0xf]  ;;  %v9815_v18 = vor.u32 %v12734_v35, %v9812_v16  ;;  %v12776_v35 = vld [vmem:[%s13472_s22 + $0xd94] sm:$0xf]  ;;  %v9980_v16 = vld [vmem:[%s13472_s22 + $0xd98] sm:$0xf0] }
 0x2d7   : > { %7585 = vmatpush.bf16.msrb.mxu0 %v9527_v53  ;;  %v7379_v23 = vpop.f32.mrf.mxu0 }
 0x2d8   : > { %7598 = vmatpush.bf16.msrb.mxu1 %v9591_v3  ;;  %v7380_v53 = vadd.f32 %v7379_v23, %v15110_v43  ;;  %v7392_v32 = vpop.f32.mrf.mxu1  ;;  %v12764_v3 = vld [vmem:[%s13472_s22 + $0xd34] sm:$0xf]  ;;  %v9871_v43 = vor.u32 %v12748_v20, %v9868_v57 }
 0x2d9   : > { %7611 = vmatpush.bf16.msrb.mxu2 %v9655_v58  ;;  %v9932_v58 = vld [vmem:[%s13472_s22 + $0xd38] sm:$0xf0] }
 0x2da   : > { %7624 = vmatpush.bf16.msrb.mxu3 %v9719_v27  ;;  %7586 = vmatmul.bf16.vlgmr.msrb.gmra.mxu0 %v13926_v4  ;;  %v9823_v4 = vor.u32 %v12736_v7, %v9820_v52  ;;  %v7393_v27 = vadd.f32 %v7392_v32, %v7380_v53  ;;  %v12804_v53 = vld [vmem:[%s13472_s22 + $0xe74] sm:$0xf]  ;;  %v10092_v32 = vld [vmem:[%s13472_s22 + $0xe78] sm:$0xf0] }
 0x2db   : > { %7630 = vmatpush.bf16.msra.mxu0 %v9839_v34  ;;  %7599 = vmatmul.bf16.vlgmr.msrb.gmra.mxu1 %v13930_v8  ;;  %v10015_v8 = vor.u32 %v12784_v54, %v10012_v21  ;;  %v9807_v34 = vor.u32 %v12732_v1, %v9804_v2  ;;  %v12774_v1 = vld [vmem:[%s13472_s22 + $0xd84] sm:$0xf]  ;;  %v9972_v2 = vld [vmem:[%s13472_s22 + $0xd88] sm:$0xf0] }
 0x2dc   : > { %7643 = vmatpush.bf16.msra.mxu1 %v9903_v42  ;;  %7612 = vmatmul.bf16.vlgmr.msrb.gmra.mxu2 %v13928_v5  ;;  %v12750_v5 = vld [vmem:[%s13472_s22 + $0xcc4] sm:$0xf]  ;;  %v9935_v42 = vor.u32 %v12764_v3, %v9932_v58  ;;  %v10156_v3 = vld [vmem:[%s13472_s22 + $0xef8] sm:$0xf0]  ;;  %v12836_v58 = vld [vmem:[%s13472_s22 + $0xf74] sm:$0xf] }
 0x2dd   : > { %7656 = vmatpush.bf16.msra.mxu2 %v9967_v25  ;;  %7625 = vmatmul.bf16.vlgmr.msrb.gmra.mxu3 %v13932_v9  ;;  %v10004_v9 = vld [vmem:[%s13472_s22 + $0xdc8] sm:$0xf0]  ;;  %v9879_v24 = vor.u32 %v12750_v5, %v9876_v17  ;;  %v12730_v25 = vld [vmem:[%s13472_s22 + $0xc24] sm:$0xf]  ;;  %v9791_v5 = vor.u32 %v12728_v14, %v9788_v15  ;;  %v10076_v14 = vld [vmem:[%s13472_s22 + $0xe58] sm:$0xf0] }
 0x2de   : > { %7669 = vmatpush.bf16.msra.mxu3 %v10031_v44  ;;  %v10007_v30 = vor.u32 %v12782_v61, %v10004_v9  ;;  %v9999_v44 = vor.u32 %v12780_v26, %v9996_v37  ;;  %v9780_v17 = vld [vmem:[%s13472_s22 + $0xc08] sm:$0xf0]  ;;  %v12742_v61 = vld [vmem:[%s13472_s22 + $0xc84] sm:$0xf]  ;;  %v10220_v26 = vld [vmem:[%s13472_s22 + $0xf78] sm:$0xf0] }
 0x2df   : > { %7631 = vmatpush.bf16.msra.mxu0 %v9831_v11  ;;  %v7405_v38 = vpop.f32.mrf.mxu2  ;;  %v12778_v11 = vld [vmem:[%s13472_s22 + $0xda4] sm:$0xf]  ;;  %v7381_v52 = vpop.f32.mrf.mxu0  ;;  %v9844_v9 = vld [vmem:[%s13472_s22 + $0xc88] sm:$0xf0]  ;;  %v10223_v49 = vor.u32 %v12836_v58, %v10220_v26  ;;  %v12816_v15 = vld [vmem:[%s13472_s22 + $0xed4] sm:$0xf] }
 0x2e0   : > { %7644 = vmatpush.bf16.msra.mxu1 %v9895_v46  ;;  %v7406_v62 = vadd.f32 %v7405_v38, %v7393_v27  ;;  %v7418_v0 = vpop.f32.mrf.mxu3  ;;  %v9988_v46 = vld [vmem:[%s13472_s22 + $0xda8] sm:$0xf0]  ;;  %v7394_v54 = vpop.f32.mrf.mxu1  ;;  %v9847_v37 = vor.u32 %v12742_v61, %v9844_v9  ;;  %v12802_v38 = vld [vmem:[%s13472_s22 + $0xe64] sm:$0xf]  ;;  %v12844_v58 = vld [vmem:[%s13472_s22 + $0xfb4] sm:$0xf] }
 0x2e1   : > { %7657 = vmatpush.bf16.msra.mxu2 %v9959_v10  ;;  %v9799_v10 = vor.u32 %v12730_v25, %v9796_v48  ;;  %v9991_v21 = vor.u32 %v12778_v11, %v9988_v46  ;;  %v10095_v25 = vor.u32 %v12804_v53, %v10092_v32  ;;  %v12850_v11 = vld [vmem:[%s13472_s22 + $0xfe4] sm:$0xf]  ;;  %v10276_v46 = vld [vmem:[%s13472_s22 + $0xfe8] sm:$0xf0]  ;;  %v10140_v54 = vld [vmem:[%s13472_s22 + $0xed8] sm:$0xf0] }
 0x2e2   : > { %7670 = vmatpush.bf16.msra.mxu3 %v10023_v56  ;;  %v15181_v7 = vadd.f32 %v7418_v0, %v7406_v62  ;;  %v9927_v56 = vor.u32 %v12762_v50, %v9924_v45  ;;  %v10148_v45 = vld [vmem:[%s13472_s22 + $0xee8] sm:$0xf0]  ;;  %v12834_v62 = vld [vmem:[%s13472_s22 + $0xf64] sm:$0xf]  ;;  %v12812_v53 = vld [vmem:[%s13472_s22 + $0xeb4] sm:$0xf] }
 0x2e3   : > { %7632 = vmatpush.bf16.msra.mxu0 %v9823_v4  ;;  %v9852_v4 = vld [vmem:[%s13472_s22 + $0xc98] sm:$0xf0]  ;;  %v10212_v0 = vld [vmem:[%s13472_s22 + $0xf68] sm:$0xf0]  ;;  %v10151_v52 = vor.u32 %v12818_v33, %v10148_v45  ;;  %v12846_v61 = vld [vmem:[%s13472_s22 + $0xfc4] sm:$0xf] }
 0x2e4   : > { %7645 = vmatpush.bf16.msra.mxu1 %v9887_v19  ;;  %v12760_v19 = vld [vmem:[%s13472_s22 + $0xd14] sm:$0xf]  ;;  %v9855_v51 = vor.u32 %v12744_v13, %v9852_v4  ;;  %v10279_v13 = vor.u32 %v12850_v11, %v10276_v46  ;;  %v10204_v4 = vld [vmem:[%s13472_s22 + $0xf58] sm:$0xf0]  ;;  %v10260_v9 = vld [vmem:[%s13472_s22 + $0xfc8] sm:$0xf0] }
 0x2e5   : > { %7658 = vmatpush.bf16.msra.mxu2 %v9951_v55  ;;  %v9916_v55 = vld [vmem:[%s13472_s22 + $0xd18] sm:$0xf0]  ;;  %v10263_v32 = vor.u32 %v12846_v61, %v10260_v9  ;;  %v10180_v33 = vld [vmem:[%s13472_s22 + $0xf28] sm:$0xf0]  ;;  %v12838_v61 = vld [vmem:[%s13472_s22 + $0xf84] sm:$0xf] }
 0x2e6   : > { %7671 = vmatpush.bf16.msra.mxu3 %v10015_v8  ;;  %v12726_v8 = vld [vmem:[%s13472_s22 + $0xc04] sm:$0xf]  ;;  %v9919_v22 = vor.u32 %v12760_v19, %v9916_v55  ;;  %v12848_v19 = vld [vmem:[%s13472_s22 + $0xfd4] sm:$0xf]  ;;  %v10268_v55 = vld [vmem:[%s13472_s22 + $0xfd8] sm:$0xf0] }
 0x2e7   : > { %7633 = vmatpush.bf16.msra.mxu0 %v9815_v18  ;;  %v12758_v18 = vld [vmem:[%s13472_s22 + $0xd04] sm:$0xf]  ;;  %v7407_v23 = vpop.f32.mrf.mxu2  ;;  %v9783_v57 = vor.u32 %v12726_v8, %v9780_v17  ;;  %v10068_v8 = vld [vmem:[%s13472_s22 + $0xe48] sm:$0xf0]  ;;  %v10252_v26 = vld [vmem:[%s13472_s22 + $0xfb8] sm:$0xf0] }
 0x2e8   : > { %7646 = vmatpush.bf16.msra.mxu1 %v9879_v24  ;;  %v9983_v24 = vor.u32 %v12776_v35, %v9980_v16  ;;  %v7420_v20 = vpop.f32.mrf.mxu3  ;;  %v10143_v35 = vor.u32 %v12816_v15, %v10140_v54  ;;  %v10132_v17 = vld [vmem:[%s13472_s22 + $0xec8] sm:$0xf0]  ;;  %v10044_v15 = vld [vmem:[%s13472_s22 + $0xe18] sm:$0xf0] }
 0x2e9   : > { %7659 = vmatpush.bf16.msra.mxu2 %v9943_v28  ;;  %v9908_v28 = vld [vmem:[%s13472_s22 + $0xd08] sm:$0xf0]  ;;  %v10060_v20 = vld [vmem:[%s13472_s22 + $0xe38] sm:$0xf0] }
 0x2ea   : > { %7672 = vmatpush.bf16.msra.mxu3 %v10007_v30  ;;  %v12820_v30 = vld [vmem:[%s13472_s22 + $0xef4] sm:$0xf]  ;;  %v9911_v27 = vor.u32 %v12758_v18, %v9908_v28  ;;  %v10228_v9 = vld [vmem:[%s13472_s22 + $0xf88] sm:$0xf0] }
 0x2eb   : > { %7634 = vmatpush.bf16.msra.mxu0 %v9807_v34  ;;  %v12852_v34 = vld [vmem:[%s13472_s22 + $0xff4] sm:$0xf]  ;;  %v10159_v48 = vor.u32 %v12820_v30, %v10156_v3 }
 0x2ec   : > { %7647 = vmatpush.bf16.msra.mxu1 %v9871_v43  ;;  %v10284_v43 = vld [vmem:[%s13472_s22 + $0xff8] sm:$0xf0]  ;;  %v12828_v3 = vld [vmem:[%s13472_s22 + $0xf34] sm:$0xf] }
 0x2ed   : > { %7660 = vmatpush.bf16.msra.mxu2 %v9935_v42  ;;  %v9975_v42 = vor.u32 %v12774_v1, %v9972_v2  ;;  %v10287_v50 = vor.u32 %v12852_v34, %v10284_v43  ;;  %v12796_v2 = vld [vmem:[%s13472_s22 + $0xe34] sm:$0xf]  ;;  %v12794_v43 = vld [vmem:[%s13472_s22 + $0xe24] sm:$0xf] }
 0x2ee   : > { %7673 = vmatpush.bf16.msra.mxu3 %v9999_v44  ;;  %v10084_v44 = vld [vmem:[%s13472_s22 + $0xe68] sm:$0xf0] }
 0x2ef   : > { %7635 = vmatpush.bf16.msra.mxu0 %v9799_v10  ;;  %v10087_v10 = vor.u32 %v12802_v38, %v10084_v44  ;;  %v10116_v38 = vld [vmem:[%s13472_s22 + $0xea8] sm:$0xf0]  ;;  %v12826_v44 = vld [vmem:[%s13472_s22 + $0xf24] sm:$0xf] }
 0x2f0   : > { %7648 = vmatpush.bf16.msra.mxu1 %v9863_v31  ;;  %v10215_v31 = vor.u32 %v12834_v62, %v10212_v0  ;;  %v12842_v62 = vld [vmem:[%s13472_s22 + $0xfa4] sm:$0xf]  ;;  %v10244_v0 = vld [vmem:[%s13472_s22 + $0xfa8] sm:$0xf0] }
 0x2f1   : > { %7661 = vmatpush.bf16.msra.mxu2 %v9927_v56  ;;  %v12800_v56 = vld [vmem:[%s13472_s22 + $0xe54] sm:$0xf]  ;;  %v10247_v54 = vor.u32 %v12842_v62, %v10244_v0 }
 0x2f2   : > { %7674 = vmatpush.bf16.msra.mxu3 %v9991_v21  ;;  %v12832_v21 = vld [vmem:[%s13472_s22 + $0xf54] sm:$0xf] }
 0x2f3   : > { %7636 = vmatpush.bf16.msra.mxu0 %v9791_v5  ;;  %v10207_v16 = vor.u32 %v12832_v21, %v10204_v4  ;;  %v12798_v5 = vld [vmem:[%s13472_s22 + $0xe44] sm:$0xf]  ;;  %v10108_v21 = vld [vmem:[%s13472_s22 + $0xe98] sm:$0xf0]  ;;  %v12824_v4 = vld [vmem:[%s13472_s22 + $0xf14] sm:$0xf] }
 0x2f4   : > { %7649 = vmatpush.bf16.msra.mxu1 %v9855_v51  ;;  %v12830_v51 = vld [vmem:[%s13472_s22 + $0xf44] sm:$0xf]  ;;  %v10071_v23 = vor.u32 %v12798_v5, %v10068_v8  ;;  %v10036_v5 = vld [vmem:[%s13472_s22 + $0xe08] sm:$0xf0]  ;;  %v12864_v0 = vld [vmem:[%s13472_s22 + $0x1054] sm:$0xf] }
 0x2f5   : > { %7662 = vmatpush.bf16.msra.mxu2 %v9919_v22  ;;  %v10196_v22 = vld [vmem:[%s13472_s22 + $0xf48] sm:$0xf0] }
 0x2f6   : > { %7675 = vmatpush.bf16.msra.mxu3 %v9983_v24  ;;  %v10199_v1 = vor.u32 %v12830_v51, %v10196_v22  ;;  %v12822_v51 = vld [vmem:[%s13472_s22 + $0xf04] sm:$0xf] }
 0x2f7   : > { %7637 = vmatpush.bf16.msra.mxu0 %v9783_v57  ;;  %v10124_v57 = vld [vmem:[%s13472_s22 + $0xeb8] sm:$0xf0] }
 0x2f8   : > { %7650 = vmatpush.bf16.msra.mxu1 %v9847_v37  ;;  %v7444_v24 = vpop.f32.mrf.mxu1  ;;  %v10063_v37 = vor.u32 %v12796_v2, %v10060_v20  ;;  %v10412_v20 = vld [vmem:[%s13472_s22 + $0x10f8] sm:$0xf0] }
 0x2f9   : > { %7663 = vmatpush.bf16.msra.mxu2 %v9911_v27  ;;  %v10127_v27 = vor.u32 %v12812_v53, %v10124_v57  ;;  %v12900_v53 = vld [vmem:[%s13472_s22 + $0x1174] sm:$0xf] }
 0x2fa   : > { %7676 = vmatpush.bf16.msra.mxu3 %v9975_v42  ;;  %7638 = vmatmul.bf16.vlgmr.msra.gmra.mxu0 %v14018_v36  ;;  %v10079_v36 = vor.u32 %v12800_v56, %v10076_v14  ;;  %v10052_v42 = vld [vmem:[%s13472_s22 + $0xe28] sm:$0xf0]  ;;  %v10183_v56 = vor.u32 %v12826_v44, %v10180_v33  ;;  %v12792_v14 = vld [vmem:[%s13472_s22 + $0xe14] sm:$0xf]  ;;  %v12914_v44 = vld [vmem:[%s13472_s22 + $0x11e4] sm:$0xf] }
 0x2fb   : > { %7682 = vmatpush.bf16.msrb.mxu0 %v10095_v25  ;;  %7651 = vmatmul.bf16.vlgmr.msra.gmra.mxu1 %v14024_v40  ;;  %v10271_v40 = vor.u32 %v12848_v19, %v10268_v55  ;;  %v12810_v25 = vld [vmem:[%s13472_s22 + $0xea4] sm:$0xf]  ;;  %v10055_v46 = vor.u32 %v12794_v43, %v10052_v42  ;;  %v10172_v19 = vld [vmem:[%s13472_s22 + $0xf18] sm:$0xf0]  ;;  %v12840_v55 = vld [vmem:[%s13472_s22 + $0xf94] sm:$0xf] }
 0x2fc   : > { %7695 = vmatpush.bf16.msrb.mxu1 %v10159_v48  ;;  %7664 = vmatmul.bf16.vlgmr.msra.gmra.mxu2 %v14022_v39  ;;  %v12814_v39 = vld [vmem:[%s13472_s22 + $0xec4] sm:$0xf]  ;;  %v10255_v48 = vor.u32 %v12844_v58, %v10252_v26  ;;  %v10231_v58 = vor.u32 %v12838_v61, %v10228_v9  ;;  %v10340_v43 = vld [vmem:[%s13472_s22 + $0x1068] sm:$0xf0]  ;;  %v12860_v61 = vld [vmem:[%s13472_s22 + $0x1034] sm:$0xf] }
 0x2fd   : > { %7708 = vmatpush.bf16.msrb.mxu2 %v10223_v49  ;;  %7677 = vmatmul.bf16.vlgmr.msra.gmra.mxu3 %v14026_v41  ;;  %v7431_v41 = vpop.f32.mrf.mxu0  ;;  %v10135_v28 = vor.u32 %v12814_v39, %v10132_v17  ;;  %v10175_v39 = vor.u32 %v12824_v4, %v10172_v19  ;;  %v10100_v17 = vld [vmem:[%s13472_s22 + $0xe88] sm:$0xf0]  ;;  %v12882_v42 = vld [vmem:[%s13472_s22 + $0x10e4] sm:$0xf]  ;;  %v10316_v9 = vld [vmem:[%s13472_s22 + $0x1038] sm:$0xf0] }
 0x2fe   : > { %7721 = vmatpush.bf16.msrb.mxu3 %v10287_v50  ;;  %v7432_v18 = vadd.f32 %v7431_v41, %v15181_v7  ;;  %v10188_v7 = vld [vmem:[%s13472_s22 + $0xf38] sm:$0xf0]  ;;  %v10164_v41 = vld [vmem:[%s13472_s22 + $0xf08] sm:$0xf0]  ;;  %v12862_v19 = vld [vmem:[%s13472_s22 + $0x1044] sm:$0xf] }
 0x2ff   : > { %7683 = vmatpush.bf16.msrb.mxu0 %v10087_v10  ;;  %v10191_v34 = vor.u32 %v12828_v3, %v10188_v7  ;;  %v7457_v49 = vpop.f32.mrf.mxu2  ;;  %v10167_v57 = vor.u32 %v12822_v51, %v10164_v41  ;;  %v12916_v3 = vld [vmem:[%s13472_s22 + $0x11f4] sm:$0xf]  ;;  %v10540_v7 = vld [vmem:[%s13472_s22 + $0x11f8] sm:$0xf0]  ;;  %v10532_v33 = vld [vmem:[%s13472_s22 + $0x11e8] sm:$0xf0] }
 0x300   : > { %7696 = vmatpush.bf16.msrb.mxu1 %v10151_v52  ;;  %v7445_v30 = vadd.f32 %v7444_v24, %v7432_v18  ;;  %v7470_v45 = vpop.f32.mrf.mxu3  ;;  %v7446_v10 = vpop.f32.mrf.mxu1  ;;  %v10348_v24 = vld [vmem:[%s13472_s22 + $0x1078] sm:$0xf0] }
 0x301   : > { %7709 = vmatpush.bf16.msrb.mxu2 %v10215_v31  ;;  %v10119_v31 = vor.u32 %v12810_v25, %v10116_v38  ;;  %v10543_v25 = vor.u32 %v12916_v3, %v10540_v7  ;;  %v10468_v38 = vld [vmem:[%s13472_s22 + $0x1168] sm:$0xf0]  ;;  %v10535_v10 = vor.u32 %v12914_v44, %v10532_v33  ;;  %v12874_v7 = vld [vmem:[%s13472_s22 + $0x10a4] sm:$0xf] }
 0x302   : > { %7722 = vmatpush.bf16.msrb.mxu3 %v10279_v13  ;;  %v7458_v50 = vadd.f32 %v7457_v49, %v7445_v30  ;;  %v12808_v13 = vld [vmem:[%s13472_s22 + $0xe94] sm:$0xf]  ;;  %v12898_v49 = vld [vmem:[%s13472_s22 + $0x1164] sm:$0xf]  ;;  %v10308_v3 = vld [vmem:[%s13472_s22 + $0x1028] sm:$0xf0] }
 0x303   : > { %7684 = vmatpush.bf16.msrb.mxu0 %v10079_v36  ;;  %v10236_v36 = vld [vmem:[%s13472_s22 + $0xf98] sm:$0xf0]  ;;  %v10111_v8 = vor.u32 %v12808_v13, %v10108_v21  ;;  %v10471_v62 = vor.u32 %v12898_v49, %v10468_v38 }
 0x304   : > { %7697 = vmatpush.bf16.msrb.mxu1 %v10143_v35  ;;  %v15252_v52 = vadd.f32 %v7470_v45, %v7458_v50  ;;  %v10047_v35 = vor.u32 %v12792_v14, %v10044_v15  ;;  %v10239_v22 = vor.u32 %v12840_v55, %v10236_v36  ;;  %v10460_v14 = vld [vmem:[%s13472_s22 + $0x1158] sm:$0xf0]  ;;  %v12912_v15 = vld [vmem:[%s13472_s22 + $0x11d4] sm:$0xf]  ;;  %v10324_v55 = vld [vmem:[%s13472_s22 + $0x1048] sm:$0xf0] }
 0x305   : > { %7710 = vmatpush.bf16.msrb.mxu2 %v10207_v16  ;;  %v7433_v11 = vpop.f32.mrf.mxu0  ;;  %v12790_v16 = vld [vmem:[%s13472_s22 + $0xe04] sm:$0xf]  ;;  %v10524_v13 = vld [vmem:[%s13472_s22 + $0x11d8] sm:$0xf0]  ;;  %v10388_v36 = vld [vmem:[%s13472_s22 + $0x10c8] sm:$0xf0] }
 0x306   : > { %7723 = vmatpush.bf16.msrb.mxu3 %v10271_v40  ;;  %v12806_v40 = vld [vmem:[%s13472_s22 + $0xe84] sm:$0xf]  ;;  %v10039_v2 = vor.u32 %v12790_v16, %v10036_v5  ;;  %v10332_v11 = vld [vmem:[%s13472_s22 + $0x1058] sm:$0xf0]  ;;  %v10452_v16 = vld [vmem:[%s13472_s22 + $0x1148] sm:$0xf0] }
 0x307   : > { %7685 = vmatpush.bf16.msrb.mxu0 %v10071_v23  ;;  %v7459_v18 = vpop.f32.mrf.mxu2  ;;  %v12868_v23 = vld [vmem:[%s13472_s22 + $0x1074] sm:$0xf]  ;;  %v10103_v30 = vor.u32 %v12806_v40, %v10100_v17  ;;  %v10327_v17 = vor.u32 %v12862_v19, %v10324_v55  ;;  %v12870_v19 = vld [vmem:[%s13472_s22 + $0x1084] sm:$0xf]  ;;  %v10356_v55 = vld [vmem:[%s13472_s22 + $0x1088] sm:$0xf0] }
 0x308   : > { %7698 = vmatpush.bf16.msrb.mxu1 %v10135_v28  ;;  %v12884_v28 = vld [vmem:[%s13472_s22 + $0x10f4] sm:$0xf]  ;;  %v10351_v26 = vor.u32 %v12868_v23, %v10348_v24 }
 0x309   : > { %7711 = vmatpush.bf16.msrb.mxu2 %v10199_v1  ;;  %v7472_v1 = vpop.f32.mrf.mxu3  ;;  %v12876_v18 = vld [vmem:[%s13472_s22 + $0x10b4] sm:$0xf] }
 0x30a   : > { %7724 = vmatpush.bf16.msrb.mxu3 %v10263_v32  ;;  %v10476_v32 = vld [vmem:[%s13472_s22 + $0x1178] sm:$0xf0]  ;;  %v12892_v1 = vld [vmem:[%s13472_s22 + $0x1134] sm:$0xf] }
 0x30b   : > { %7686 = vmatpush.bf16.msrb.mxu0 %v10063_v37  ;;  %v10415_v37 = vor.u32 %v12884_v28, %v10412_v20  ;;  %v10380_v28 = vld [vmem:[%s13472_s22 + $0x10b8] sm:$0xf0] }
 0x30c   : > { %7699 = vmatpush.bf16.msrb.mxu1 %v10127_v27  ;;  %v10479_v27 = vor.u32 %v12900_v53, %v10476_v32  ;;  %v10508_v20 = vld [vmem:[%s13472_s22 + $0x11b8] sm:$0xf0]  ;;  %v10319_v53 = vor.u32 %v12860_v61, %v10316_v9  ;;  %v10383_v32 = vor.u32 %v12876_v18, %v10380_v28  ;;  %v10359_v9 = vor.u32 %v12870_v19, %v10356_v55  ;;  %v12974_v55 = vld [vmem:[%s13472_s22 + $0x13c4] sm:$0xf] }
 0x30d   : > { %7712 = vmatpush.bf16.msrb.mxu2 %v10191_v34  ;;  %v12866_v34 = vld [vmem:[%s13472_s22 + $0x1064] sm:$0xf]  ;;  %v10732_v61 = vld [vmem:[%s13472_s22 + $0x1378] sm:$0xf0] }
 0x30e   : > { %7725 = vmatpush.bf16.msrb.mxu3 %v10255_v48  ;;  %v10404_v48 = vld [vmem:[%s13472_s22 + $0x10e8] sm:$0xf0]  ;;  %v10343_v50 = vor.u32 %v12866_v34, %v10340_v43 }
 0x30f   : > { %7687 = vmatpush.bf16.msrb.mxu0 %v10055_v46  ;;  %v10407_v45 = vor.u32 %v12882_v42, %v10404_v48  ;;  %v12880_v46 = vld [vmem:[%s13472_s22 + $0x10d4] sm:$0xf]  ;;  %v10436_v34 = vld [vmem:[%s13472_s22 + $0x1128] sm:$0xf0] }
 0x310   : > { %7700 = vmatpush.bf16.msrb.mxu1 %v10119_v31  ;;  %v10396_v31 = vld [vmem:[%s13472_s22 + $0x10d8] sm:$0xf0]  ;;  %v10500_v48 = vld [vmem:[%s13472_s22 + $0x11a8] sm:$0xf0] }
 0x311   : > { %7713 = vmatpush.bf16.msrb.mxu2 %v10183_v56  ;;  %v12896_v56 = vld [vmem:[%s13472_s22 + $0x1154] sm:$0xf]  ;;  %v10399_v21 = vor.u32 %v12880_v46, %v10396_v31 }
 0x312   : > { %7726 = vmatpush.bf16.msrb.mxu3 %v10247_v54  ;;  %v15895_v54 = vld [vmem:[#allocation5_spill] sm:$0xff]  ;;  %v10463_v4 = vor.u32 %v12896_v56, %v10460_v14  ;;  %v12888_v31 = vld [vmem:[%s13472_s22 + $0x1114] sm:$0xf]  ;;  %v10428_v56 = vld [vmem:[%s13472_s22 + $0x1118] sm:$0xf0] }
 0x313   : > { %7688 = vmatpush.bf16.msrb.mxu0 %v10047_v35  ;;  %v12894_v35 = vld [vmem:[%s13472_s22 + $0x1144] sm:$0xf]  ;;  %v12904_v14 = vld [vmem:[%s13472_s22 + $0x1194] sm:$0xf] }
 0x314   : > { %7701 = vmatpush.bf16.msrb.mxu1 %v10111_v8  ;;  %v12910_v8 = vld [vmem:[%s13472_s22 + $0x11c4] sm:$0xf]  ;;  %v10455_v41 = vor.u32 %v12894_v35, %v10452_v16  ;;  %v10484_v16 = vld [vmem:[%s13472_s22 + $0x1188] sm:$0xf0] }
 0x315   : > { %7714 = vmatpush.bf16.msrb.mxu2 %v10175_v39  ;;  %v10516_v39 = vld [vmem:[%s13472_s22 + $0x11c8] sm:$0xf0]  ;;  %v12902_v35 = vld [vmem:[%s13472_s22 + $0x1184] sm:$0xf] }
 0x316   : > { %7727 = vmatpush.bf16.msrb.mxu3 %v10239_v22  ;;  %v10519_v23 = vor.u32 %v12910_v8, %v10516_v39  ;;  %v12932_v8 = vld [vmem:[%s13472_s22 + $0x1274] sm:$0xf]  ;;  %v10604_v39 = vld [vmem:[%s13472_s22 + $0x1278] sm:$0xf0]  ;;  %v10487_v28 = vor.u32 %v12902_v35, %v10484_v16 }
 0x317   : > { %7689 = vmatpush.bf16.msrb.mxu0 %v10039_v2  ;;  %v7483_v5 = vpop.f32.mrf.mxu0  ;;  %v12908_v2 = vld [vmem:[%s13472_s22 + $0x11b4] sm:$0xf] }
 0x318   : > { %7702 = vmatpush.bf16.msrb.mxu1 %v10103_v30  ;;  %v7484_v40 = vadd.f32 %v7483_v5, %v15252_v52  ;;  %v7496_v51 = vpop.f32.mrf.mxu1  ;;  %v10444_v52 = vld [vmem:[%s13472_s22 + $0x1138] sm:$0xf0] }
 0x319   : > { %7715 = vmatpush.bf16.msrb.mxu2 %v10167_v57  ;;  %v10447_v30 = vor.u32 %v12892_v1, %v10444_v52  ;;  %v12858_v57 = vld [vmem:[%s13472_s22 + $0x1024] sm:$0xf]  ;;  %v10607_v1 = vor.u32 %v12932_v8, %v10604_v39  ;;  %v12924_v8 = vld [vmem:[%s13472_s22 + $0x1234] sm:$0xf]  ;;  %v10572_v39 = vld [vmem:[%s13472_s22 + $0x1238] sm:$0xf0] }
 0x31a   : > { %7728 = vmatpush.bf16.msrb.mxu3 %v10231_v58  ;;  %7690 = vmatmul.bf16.vlgmr.msrb.gmra.mxu0 %v14087_v59  ;;  %v10335_v59 = vor.u32 %v12864_v0, %v10332_v11  ;;  %v7497_v24 = vadd.f32 %v7496_v51, %v7484_v40  ;;  %v10511_v58 = vor.u32 %v12908_v2, %v10508_v20  ;;  %v10300_v0 = vld [vmem:[%s13472_s22 + $0x1018] sm:$0xf0]  ;;  %v12872_v11 = vld [vmem:[%s13472_s22 + $0x1094] sm:$0xf]  ;;  %v12930_v20 = vld [vmem:[%s13472_s22 + $0x1264] sm:$0xf] }
 0x31b   : > { %7734 = vmatpush.bf16.msra.mxu0 %v10351_v26  ;;  %7703 = vmatmul.bf16.vlgmr.msrb.gmra.mxu1 %v14091_v63  ;;  %v10527_v63 = vor.u32 %v12912_v15, %v10524_v13  ;;  %v10311_v38 = vor.u32 %v12858_v57, %v10308_v3  ;;  %v10492_v15 = vld [vmem:[%s13472_s22 + $0x1198] sm:$0xf0]  ;;  %v12948_v40 = vld [vmem:[%s13472_s22 + $0x12f4] sm:$0xf]  ;;  %v10660_v57 = vld [vmem:[%s13472_s22 + $0x12e8] sm:$0xf0] }
 0x31c   : > { %7747 = vmatpush.bf16.msra.mxu1 %v10415_v37  ;;  %7716 = vmatmul.bf16.vlgmr.msrb.gmra.mxu2 %v14089_v60  ;;  %v12878_v60 = vld [vmem:[%s13472_s22 + $0x10c4] sm:$0xf]  ;;  %v10372_v37 = vld [vmem:[%s13472_s22 + $0x10a8] sm:$0xf0] }
 0x31d   : > { %7760 = vmatpush.bf16.msra.mxu2 %v10479_v27  ;;  %7729 = vmatmul.bf16.vlgmr.msrb.gmra.mxu3 %v15895_v54  ;;  %v10391_v22 = vor.u32 %v12878_v60, %v10388_v36  ;;  %v12890_v27 = vld [vmem:[%s13472_s22 + $0x1124] sm:$0xf]  ;;  %v10420_v36 = vld [vmem:[%s13472_s22 + $0x1108] sm:$0xf0] }
 0x31e   : > { %7773 = vmatpush.bf16.msra.mxu3 %v10543_v25  ;;  %v12906_v25 = vld [vmem:[%s13472_s22 + $0x11a4] sm:$0xf] }
 0x31f   : > { %7735 = vmatpush.bf16.msra.mxu0 %v10343_v50  ;;  %v7509_v26 = vpop.f32.mrf.mxu2  ;;  %v7485_v49 = vpop.f32.mrf.mxu0  ;;  %v10375_v50 = vor.u32 %v12874_v7, %v10372_v37  ;;  %v10503_v46 = vor.u32 %v12906_v25, %v10500_v48  ;;  %v12854_v54 = vld [vmem:[%s13472_s22 + $0x1004] sm:$0xf]  ;;  %v10724_v7 = vld [vmem:[%s13472_s22 + $0x1368] sm:$0xf0]  ;;  %v12944_v25 = vld [vmem:[%s13472_s22 + $0x12d4] sm:$0xf] }
 0x320   : > { %7748 = vmatpush.bf16.msra.mxu1 %v10407_v45  ;;  %v7510_v43 = vadd.f32 %v7509_v26, %v7497_v24  ;;  %v7522_v42 = vpop.f32.mrf.mxu3  ;;  %v7498_v44 = vpop.f32.mrf.mxu1  ;;  %v10439_v45 = vor.u32 %v12890_v27, %v10436_v34  ;;  %v12886_v60 = vld [vmem:[%s13472_s22 + $0x1104] sm:$0xf]  ;;  %v10796_v24 = vld [vmem:[%s13472_s22 + $0x13f8] sm:$0xf0]  ;;  %v10788_v26 = vld [vmem:[%s13472_s22 + $0x13e8] sm:$0xf0] }
 0x321   : > { %7761 = vmatpush.bf16.msra.mxu2 %v10471_v62  ;;  %v12856_v62 = vld [vmem:[%s13472_s22 + $0x1014] sm:$0xf]  ;;  %v10423_v18 = vor.u32 %v12886_v60, %v10420_v36  ;;  %v12962_v3 = vld [vmem:[%s13472_s22 + $0x1364] sm:$0xf]  ;;  %v10772_v60 = vld [vmem:[%s13472_s22 + $0x13c8] sm:$0xf0] }
 0x322   : > { %7774 = vmatpush.bf16.msra.mxu3 %v10535_v10  ;;  %v15323_v33 = vadd.f32 %v7522_v42, %v7510_v43  ;;  %v10364_v10 = vld [vmem:[%s13472_s22 + $0x1098] sm:$0xf0]  ;;  %v10303_v13 = vor.u32 %v12856_v62, %v10300_v0  ;;  %v10727_v34 = vor.u32 %v12962_v3, %v10724_v7  ;;  %v12928_v43 = vld [vmem:[%s13472_s22 + $0x1254] sm:$0xf]  ;;  %v15898_v62 = vld [vmem:[#allocation8_spill] sm:$0xff] }
 0x323   : > { %7736 = vmatpush.bf16.msra.mxu0 %v10335_v59  ;;  %v10292_v59 = vld [vmem:[%s13472_s22 + $0x1008] sm:$0xf0]  ;;  %v10588_v42 = vld [vmem:[%s13472_s22 + $0x1258] sm:$0xf0]  ;;  %v15896_v48 = vld [vmem:[#allocation6_spill] sm:$0xff] }
 0x324   : > { %7749 = vmatpush.bf16.msra.mxu1 %v10399_v21  ;;  %v10367_v21 = vor.u32 %v12872_v11, %v10364_v10  ;;  %v10295_v51 = vor.u32 %v12854_v54, %v10292_v59  ;;  %v12960_v44 = vld [vmem:[%s13472_s22 + $0x1354] sm:$0xf]  ;;  %v10780_v11 = vld [vmem:[%s13472_s22 + $0x13d8] sm:$0xf0]  ;;  %v10591_v10 = vor.u32 %v12928_v43, %v10588_v42  ;;  %v10644_v59 = vld [vmem:[%s13472_s22 + $0x12c8] sm:$0xf0] }
 0x325   : > { %7762 = vmatpush.bf16.msra.mxu2 %v10463_v4  ;;  %v10431_v4 = vor.u32 %v12888_v31, %v10428_v56  ;;  %v12976_v0 = vld [vmem:[%s13472_s22 + $0x13d4] sm:$0xf]  ;;  %v12970_v7 = vld [vmem:[%s13472_s22 + $0x13a4] sm:$0xf] }
 0x326   : > { %7775 = vmatpush.bf16.msra.mxu3 %v10527_v63  ;;  %v10495_v63 = vor.u32 %v12904_v14, %v10492_v15  ;;  %v12926_v14 = vld [vmem:[%s13472_s22 + $0x1244] sm:$0xf]  ;;  %v10580_v15 = vld [vmem:[%s13472_s22 + $0x1248] sm:$0xf0]  ;;  %v10783_v54 = vor.u32 %v12976_v0, %v10780_v11  ;;  %v10748_v0 = vld [vmem:[%s13472_s22 + $0x1398] sm:$0xf0] }
 0x327   : > { %7737 = vmatpush.bf16.msra.mxu0 %v10327_v17  ;;  %v7511_v5 = vpop.f32.mrf.mxu2  ;;  %v10583_v36 = vor.u32 %v12926_v14, %v10580_v15  ;;  %v12934_v14 = vld [vmem:[%s13472_s22 + $0x1284] sm:$0xf]  ;;  %v10612_v15 = vld [vmem:[%s13472_s22 + $0x1288] sm:$0xf0] }
 0x328   : > { %7750 = vmatpush.bf16.msra.mxu1 %v10391_v22  ;;  %v7524_v17 = vpop.f32.mrf.mxu3  ;;  %v10668_v22 = vld [vmem:[%s13472_s22 + $0x12f8] sm:$0xf0] }
 0x329   : > { %7763 = vmatpush.bf16.msra.mxu2 %v10455_v41  ;;  %v12964_v41 = vld [vmem:[%s13472_s22 + $0x1374] sm:$0xf]  ;;  %v10671_v52 = vor.u32 %v12948_v40, %v10668_v22  ;;  %v10775_v17 = vor.u32 %v12974_v55, %v10772_v60  ;;  %v10636_v22 = vld [vmem:[%s13472_s22 + $0x12b8] sm:$0xf0] }
 0x32a   : > { %7776 = vmatpush.bf16.msra.mxu3 %v10519_v23  ;;  %v12980_v23 = vld [vmem:[%s13472_s22 + $0x13f4] sm:$0xf]  ;;  %v10735_v2 = vor.u32 %v12964_v41, %v10732_v61  ;;  %v10860_v60 = vld [vmem:[%s13472_s22 + $0x1478] sm:$0xf0] }
 0x32b   : > { %7738 = vmatpush.bf16.msra.mxu0 %v10319_v53  ;;  %v10596_v53 = vld [vmem:[%s13472_s22 + $0x1268] sm:$0xf0]  ;;  %v12940_v40 = vld [vmem:[%s13472_s22 + $0x12b4] sm:$0xf] }
 0x32c   : > { %7751 = vmatpush.bf16.msra.mxu1 %v10383_v32  ;;  %v12946_v32 = vld [vmem:[%s13472_s22 + $0x12e4] sm:$0xf]  ;;  %v10599_v37 = vor.u32 %v12930_v20, %v10596_v53  ;;  %v12956_v41 = vld [vmem:[%s13472_s22 + $0x1334] sm:$0xf]  ;;  %v10628_v53 = vld [vmem:[%s13472_s22 + $0x12a8] sm:$0xf0] }
 0x32d   : > { %7764 = vmatpush.bf16.msra.mxu2 %v10447_v30  ;;  %v10799_v30 = vor.u32 %v12980_v23, %v10796_v24  ;;  %v10663_v27 = vor.u32 %v12946_v32, %v10660_v57  ;;  %v12972_v61 = vld [vmem:[%s13472_s22 + $0x13b4] sm:$0xf]  ;;  %v10639_v23 = vor.u32 %v12940_v40, %v10636_v22  ;;  %v12954_v32 = vld [vmem:[%s13472_s22 + $0x1324] sm:$0xf] }
 0x32e   : > { %7777 = vmatpush.bf16.msra.mxu3 %v10511_v58  ;;  %v12978_v58 = vld [vmem:[%s13472_s22 + $0x13e4] sm:$0xf]  ;;  %v12996_v55 = vld [vmem:[%s13472_s22 + $0x1474] sm:$0xf] }
 0x32f   : > { %7739 = vmatpush.bf16.msra.mxu0 %v10311_v38  ;;  %v10791_v49 = vor.u32 %v12978_v58, %v10788_v26  ;;  %v10652_v38 = vld [vmem:[%s13472_s22 + $0x12d8] sm:$0xf0]  ;;  %v10756_v58 = vld [vmem:[%s13472_s22 + $0x13a8] sm:$0xf0] }
 0x330   : > { %7752 = vmatpush.bf16.msra.mxu1 %v10375_v50  ;;  %v10716_v50 = vld [vmem:[%s13472_s22 + $0x1358] sm:$0xf0]  ;;  %v10655_v31 = vor.u32 %v12944_v25, %v10652_v38  ;;  %v12920_v25 = vld [vmem:[%s13472_s22 + $0x1214] sm:$0xf]  ;;  %v10759_v38 = vor.u32 %v12970_v7, %v10756_v58 }
 0x331   : > { %7765 = vmatpush.bf16.msra.mxu2 %v10439_v45  ;;  %v15897_v45 = vld [vmem:[#allocation7_spill] sm:$0xff]  ;;  %v10719_v56 = vor.u32 %v12960_v44, %v10716_v50  ;;  %v12952_v50 = vld [vmem:[%s13472_s22 + $0x1314] sm:$0xf] }
 0x332   : > { %7778 = vmatpush.bf16.msra.mxu3 %v10503_v46  ;;  %v15899_v46 = vld [vmem:[#allocation9_spill] sm:$0xff]  ;;  %v10620_v44 = vld [vmem:[%s13472_s22 + $0x1298] sm:$0xf0]  ;;  %v13008_v7 = vld [vmem:[%s13472_s22 + $0x14d4] sm:$0xf] }
 0x333   : > { %7740 = vmatpush.bf16.msra.mxu0 %v10303_v13  ;;  %v12942_v13 = vld [vmem:[%s13472_s22 + $0x12c4] sm:$0xf]  ;;  %v15900_v58 = vld [vmem:[#allocation10_spill] sm:$0xff] }
 0x334   : > { %7753 = vmatpush.bf16.msra.mxu1 %v10367_v21  ;;  %v12958_v21 = vld [vmem:[%s13472_s22 + $0x1344] sm:$0xf]  ;;  %v10647_v16 = vor.u32 %v12942_v13, %v10644_v59  ;;  %v10676_v59 = vld [vmem:[%s13472_s22 + $0x1308] sm:$0xf0] }
 0x335   : > { %7766 = vmatpush.bf16.msra.mxu2 %v10431_v4  ;;  %v10708_v4 = vld [vmem:[%s13472_s22 + $0x1348] sm:$0xf0]  ;;  %v12950_v13 = vld [vmem:[%s13472_s22 + $0x1304] sm:$0xf] }
 0x336   : > { %7779 = vmatpush.bf16.msra.mxu3 %v10495_v63  ;;  %v10711_v5 = vor.u32 %v12958_v21, %v10708_v4  ;;  %v12966_v21 = vld [vmem:[%s13472_s22 + $0x1384] sm:$0xf]  ;;  %v10740_v4 = vld [vmem:[%s13472_s22 + $0x1388] sm:$0xf0]  ;;  %v10679_v40 = vor.u32 %v12950_v13, %v10676_v59 }
 0x337   : > { %7741 = vmatpush.bf16.msra.mxu0 %v10295_v51  ;;  %v7535_v19 = vpop.f32.mrf.mxu0  ;;  %v10743_v22 = vor.u32 %v12966_v21, %v10740_v4  ;;  %v11028_v13 = vld [vmem:[%s13472_s22 + $0x15c8] sm:$0xf0] }
 0x338   : > { %7754 = vmatpush.bf16.msra.mxu1 %v10359_v9  ;;  %v7536_v63 = vadd.f32 %v7535_v19, %v15323_v33  ;;  %v7548_v35 = vpop.f32.mrf.mxu1  ;;  %v10700_v33 = vld [vmem:[%s13472_s22 + $0x1338] sm:$0xf0] }
 0x339   : > { %7767 = vmatpush.bf16.msra.mxu2 %v10423_v18  ;;  %v10764_v9 = vld [vmem:[%s13472_s22 + $0x13b8] sm:$0xf0]  ;;  %v10575_v18 = vor.u32 %v12924_v8, %v10572_v39  ;;  %v10703_v24 = vor.u32 %v12956_v41, %v10700_v33  ;;  %v10615_v39 = vor.u32 %v12934_v14, %v10612_v15  ;;  %v10863_v41 = vor.u32 %v12996_v55, %v10860_v60  ;;  %v13038_v15 = vld [vmem:[%s13472_s22 + $0x15c4] sm:$0xf]  ;;  %v12988_v55 = vld [vmem:[%s13472_s22 + $0x1434] sm:$0xf] }
 0x33a   : > { %7780 = vmatpush.bf16.msra.mxu3 %v10487_v28  ;;  %7742 = vmatmul.bf16.vlgmr.msra.gmra.mxu0 %v15896_v48  ;;  %v7549_v51 = vadd.f32 %v7548_v35, %v7536_v63  ;;  %v12922_v28 = vld [vmem:[%s13472_s22 + $0x1224] sm:$0xf]  ;;  %v10556_v48 = vld [vmem:[%s13472_s22 + $0x1218] sm:$0xf0]  ;;  %v13012_v63 = vld [vmem:[%s13472_s22 + $0x14f4] sm:$0xf] }
 0x33b   : > { %7786 = vmatpush.bf16.msrb.mxu0 %v10607_v1  ;;  %7755 = vmatmul.bf16.vlgmr.msra.gmra.mxu1 %v15898_v62  ;;  %v10564_v1 = vld [vmem:[%s13472_s22 + $0x1228] sm:$0xf0]  ;;  %v12968_v62 = vld [vmem:[%s13472_s22 + $0x1394] sm:$0xf]  ;;  %v10559_v11 = vor.u32 %v12920_v25, %v10556_v48  ;;  %v10988_v8 = vld [vmem:[%s13472_s22 + $0x1578] sm:$0xf0] }
 0x33c   : > { %7799 = vmatpush.bf16.msrb.mxu1 %v10671_v52  ;;  %7768 = vmatmul.bf16.vlgmr.msra.gmra.mxu2 %v15897_v45  ;;  %v12938_v52 = vld [vmem:[%s13472_s22 + $0x12a4] sm:$0xf]  ;;  %v10684_v45 = vld [vmem:[%s13472_s22 + $0x1318] sm:$0xf0]  ;;  %v13040_v48 = vld [vmem:[%s13472_s22 + $0x15d4] sm:$0xf] }
 0x33d   : > { %7812 = vmatpush.bf16.msrb.mxu2 %v10735_v2  ;;  %7781 = vmatmul.bf16.vlgmr.msra.gmra.mxu3 %v15899_v46  ;;  %v10767_v2 = vor.u32 %v12972_v61, %v10764_v9  ;;  %v10631_v43 = vor.u32 %v12938_v52, %v10628_v53  ;;  %v12918_v46 = vld [vmem:[%s13472_s22 + $0x1204] sm:$0xf]  ;;  %v10980_v52 = vld [vmem:[%s13472_s22 + $0x1568] sm:$0xf0]  ;;  %v10828_v60 = vld [vmem:[%s13472_s22 + $0x1438] sm:$0xf0] }
 0x33e   : > { %7825 = vmatpush.bf16.msrb.mxu3 %v10799_v30  ;;  %v10692_v30 = vld [vmem:[%s13472_s22 + $0x1328] sm:$0xf0]  ;;  %v12994_v9 = vld [vmem:[%s13472_s22 + $0x1464] sm:$0xf] }
 0x33f   : > { %7787 = vmatpush.bf16.msrb.mxu0 %v10599_v37  ;;  %v7561_v20 = vpop.f32.mrf.mxu2  ;;  %v7537_v26 = vpop.f32.mrf.mxu0  ;;  %v10567_v37 = vor.u32 %v12922_v28, %v10564_v1  ;;  %v10695_v42 = vor.u32 %v12954_v32, %v10692_v30  ;;  %v10916_v28 = vld [vmem:[%s13472_s22 + $0x14e8] sm:$0xf0]  ;;  %v13026_v1 = vld [vmem:[%s13472_s22 + $0x1564] sm:$0xf] }
 0x340   : > { %7800 = vmatpush.bf16.msrb.mxu1 %v10663_v27  ;;  %v7562_v57 = vadd.f32 %v7561_v20, %v7549_v51  ;;  %v7574_v3 = vpop.f32.mrf.mxu3  ;;  %v7550_v27 = vpop.f32.mrf.mxu1  ;;  %v11052_v51 = vld [vmem:[%s13472_s22 + $0x15f8] sm:$0xf0]  ;;  %v11044_v20 = vld [vmem:[%s13472_s22 + $0x15e8] sm:$0xf0]  ;;  %v10983_v30 = vor.u32 %v13026_v1, %v10980_v52  ;;  %v15902_v25 = vld [vmem:[#allocation12_spill] sm:$0xff] }
 0x341   : > { %7813 = vmatpush.bf16.msrb.mxu2 %v10727_v34  ;;  %v13024_v27 = vld [vmem:[%s13472_s22 + $0x1554] sm:$0xf]  ;;  %v13034_v52 = vld [vmem:[%s13472_s22 + $0x15a4] sm:$0xf] }
 0x342   : > { %7826 = vmatpush.bf16.msrb.mxu3 %v10791_v49  ;;  %v15394_v34 = vadd.f32 %v7574_v3, %v7562_v57  ;;  %v12936_v49 = vld [vmem:[%s13472_s22 + $0x1294] sm:$0xf]  ;;  %v10844_v3 = vld [vmem:[%s13472_s22 + $0x1458] sm:$0xf0] }
 0x343   : > { %7788 = vmatpush.bf16.msrb.mxu0 %v10591_v10  ;;  %v10548_v10 = vld [vmem:[%s13472_s22 + $0x1208] sm:$0xf0]  ;;  %v12992_v57 = vld [vmem:[%s13472_s22 + $0x1454] sm:$0xf] }
 0x344   : > { %7801 = vmatpush.bf16.msrb.mxu1 %v10655_v31  ;;  %v10623_v31 = vor.u32 %v12936_v49, %v10620_v44  ;;  %v10551_v35 = vor.u32 %v12918_v46, %v10548_v10  ;;  %v11036_v49 = vld [vmem:[%s13472_s22 + $0x15d8] sm:$0xf0]  ;;  %v10847_v44 = vor.u32 %v12992_v57, %v10844_v3  ;;  %v10900_v10 = vld [vmem:[%s13472_s22 + $0x14c8] sm:$0xf0] }
 0x345   : > { %7814 = vmatpush.bf16.msrb.mxu2 %v10719_v56  ;;  %v10687_v56 = vor.u32 %v12952_v50, %v10684_v45  ;;  %v11039_v46 = vor.u32 %v13040_v48, %v11036_v49  ;;  %v11004_v48 = vld [vmem:[%s13472_s22 + $0x1598] sm:$0xf0] }
 0x346   : > { %7827 = vmatpush.bf16.msrb.mxu3 %v10783_v54  ;;  %v10751_v54 = vor.u32 %v12968_v62, %v10748_v0  ;;  %v12990_v62 = vld [vmem:[%s13472_s22 + $0x1444] sm:$0xf]  ;;  %v10836_v0 = vld [vmem:[%s13472_s22 + $0x1448] sm:$0xf0] }
 0x347   : > { %7789 = vmatpush.bf16.msrb.mxu0 %v10583_v36  ;;  %v7563_v19 = vpop.f32.mrf.mxu2  ;;  %v10839_v59 = vor.u32 %v12990_v62, %v10836_v0  ;;  %v12998_v62 = vld [vmem:[%s13472_s22 + $0x1484] sm:$0xf]  ;;  %v10868_v0 = vld [vmem:[%s13472_s22 + $0x1488] sm:$0xf0] }
 0x348   : > { %7802 = vmatpush.bf16.msrb.mxu1 %v10647_v16  ;;  %v7576_v36 = vpop.f32.mrf.mxu3  ;;  %v10924_v16 = vld [vmem:[%s13472_s22 + $0x14f8] sm:$0xf0] }
 0x349   : > { %7815 = vmatpush.bf16.msrb.mxu2 %v10711_v5  ;;  %v13028_v5 = vld [vmem:[%s13472_s22 + $0x1574] sm:$0xf]  ;;  %v10927_v33 = vor.u32 %v13012_v63, %v10924_v16  ;;  %v11031_v36 = vor.u32 %v13038_v15, %v11028_v13  ;;  %v10892_v16 = vld [vmem:[%s13472_s22 + $0x14b8] sm:$0xf0] }
 0x34a   : > { %7828 = vmatpush.bf16.msrb.mxu3 %v10775_v17  ;;  %v13044_v17 = vld [vmem:[%s13472_s22 + $0x15f4] sm:$0xf]  ;;  %v10991_v61 = vor.u32 %v13028_v5, %v10988_v8  ;;  %v11116_v13 = vld [vmem:[%s13472_s22 + $0x1678] sm:$0xf0] }
 0x34b   : > { %7790 = vmatpush.bf16.msrb.mxu0 %v10575_v18  ;;  %v10852_v18 = vld [vmem:[%s13472_s22 + $0x1468] sm:$0xf0]  ;;  %v13004_v63 = vld [vmem:[%s13472_s22 + $0x14b4] sm:$0xf] }
 0x34c   : > { %7803 = vmatpush.bf16.msrb.mxu1 %v10639_v23  ;;  %v13010_v23 = vld [vmem:[%s13472_s22 + $0x14e4] sm:$0xf]  ;;  %v10855_v53 = vor.u32 %v12994_v9, %v10852_v18  ;;  %v13020_v5 = vld [vmem:[%s13472_s22 + $0x1534] sm:$0xf]  ;;  %v10884_v18 = vld [vmem:[%s13472_s22 + $0x14a8] sm:$0xf0] }
 0x34d   : > { %7816 = vmatpush.bf16.msrb.mxu2 %v10703_v24  ;;  %v11055_v24 = vor.u32 %v13044_v17, %v11052_v51  ;;  %v10919_v32 = vor.u32 %v13010_v23, %v10916_v28  ;;  %v13036_v8 = vld [vmem:[%s13472_s22 + $0x15b4] sm:$0xf]  ;;  %v10895_v17 = vor.u32 %v13004_v63, %v10892_v16  ;;  %v13018_v23 = vld [vmem:[%s13472_s22 + $0x1524] sm:$0xf] }
 0x34e   : > { %7829 = vmatpush.bf16.msrb.mxu3 %v10767_v2  ;;  %v13042_v2 = vld [vmem:[%s13472_s22 + $0x15e4] sm:$0xf]  ;;  %v13060_v15 = vld [vmem:[%s13472_s22 + $0x1674] sm:$0xf] }
 0x34f   : > { %7791 = vmatpush.bf16.msrb.mxu0 %v10567_v37  ;;  %v11047_v26 = vor.u32 %v13042_v2, %v11044_v20  ;;  %v10908_v37 = vld [vmem:[%s13472_s22 + $0x14d8] sm:$0xf0]  ;;  %v11012_v2 = vld [vmem:[%s13472_s22 + $0x15a8] sm:$0xf0] }
 0x350   : > { %7804 = vmatpush.bf16.msrb.mxu1 %v10631_v43  ;;  %v10972_v43 = vld [vmem:[%s13472_s22 + $0x1558] sm:$0xf0]  ;;  %v10911_v50 = vor.u32 %v13008_v7, %v10908_v37  ;;  %v12984_v7 = vld [vmem:[%s13472_s22 + $0x1414] sm:$0xf]  ;;  %v11015_v37 = vor.u32 %v13034_v52, %v11012_v2 }
 0x351   : > { %7817 = vmatpush.bf16.msrb.mxu2 %v10695_v42  ;;  %v15901_v42 = vld [vmem:[#allocation11_spill] sm:$0xff]  ;;  %v10975_v45 = vor.u32 %v13024_v27, %v10972_v43  ;;  %v13016_v43 = vld [vmem:[%s13472_s22 + $0x1514] sm:$0xf] }
 0x352   : > { %7830 = vmatpush.bf16.msrb.mxu3 %v10759_v38  ;;  %v15903_v38 = vld [vmem:[#allocation13_spill] sm:$0xff]  ;;  %v10876_v27 = vld [vmem:[%s13472_s22 + $0x1498] sm:$0xf0]  ;;  %v13072_v52 = vld [vmem:[%s13472_s22 + $0x16d4] sm:$0xf] }
 0x353   : > { %7792 = vmatpush.bf16.msrb.mxu0 %v10559_v11  ;;  %v13006_v11 = vld [vmem:[%s13472_s22 + $0x14c4] sm:$0xf]  ;;  %v15904_v2 = vld [vmem:[#allocation14_spill] sm:$0xff] }
 0x354   : > { %7805 = vmatpush.bf16.msrb.mxu1 %v10623_v31  ;;  %v13022_v31 = vld [vmem:[%s13472_s22 + $0x1544] sm:$0xf]  ;;  %v10903_v4 = vor.u32 %v13006_v11, %v10900_v10  ;;  %v10932_v10 = vld [vmem:[%s13472_s22 + $0x1508] sm:$0xf0] }
 0x355   : > { %7818 = vmatpush.bf16.msrb.mxu2 %v10687_v56  ;;  %v10964_v56 = vld [vmem:[%s13472_s22 + $0x1548] sm:$0xf0]  ;;  %v13014_v11 = vld [vmem:[%s13472_s22 + $0x1504] sm:$0xf] }
 0x356   : > { %7831 = vmatpush.bf16.msrb.mxu3 %v10751_v54  ;;  %v10967_v19 = vor.u32 %v13022_v31, %v10964_v56  ;;  %v13030_v31 = vld [vmem:[%s13472_s22 + $0x1584] sm:$0xf]  ;;  %v10996_v56 = vld [vmem:[%s13472_s22 + $0x1588] sm:$0xf0]  ;;  %v10935_v63 = vor.u32 %v13014_v11, %v10932_v10 }
 0x357   : > { %7793 = vmatpush.bf16.msrb.mxu0 %v10551_v35  ;;  %v7587_v14 = vpop.f32.mrf.mxu0  ;;  %v10999_v16 = vor.u32 %v13030_v31, %v10996_v56  ;;  %v11284_v11 = vld [vmem:[%s13472_s22 + $0x17c8] sm:$0xf0] }
 0x358   : > { %7806 = vmatpush.bf16.msrb.mxu1 %v10615_v39  ;;  %v7588_v54 = vadd.f32 %v7587_v14, %v15394_v34  ;;  %v7600_v21 = vpop.f32.mrf.mxu1  ;;  %v10956_v34 = vld [vmem:[%s13472_s22 + $0x1538] sm:$0xf0] }
 0x359   : > { %7819 = vmatpush.bf16.msrb.mxu2 %v10679_v40  ;;  %v11020_v39 = vld [vmem:[%s13472_s22 + $0x15b8] sm:$0xf0]  ;;  %v10831_v40 = vor.u32 %v12988_v55, %v10828_v60  ;;  %v10959_v51 = vor.u32 %v13020_v5, %v10956_v34  ;;  %v10871_v60 = vor.u32 %v12998_v62, %v10868_v0  ;;  %v11119_v5 = vor.u32 %v13060_v15, %v11116_v13  ;;  %v13102_v0 = vld [vmem:[%s13472_s22 + $0x17c4] sm:$0xf]  ;;  %v13052_v15 = vld [vmem:[%s13472_s22 + $0x1634] sm:$0xf] }
 0x35a   : > { %7832 = vmatpush.bf16.msrb.mxu3 %v10743_v22  ;;  %7794 = vmatmul.bf16.vlgmr.msrb.gmra.mxu0 %v15900_v58  ;;  %v7601_v35 = vadd.f32 %v7600_v21, %v7588_v54  ;;  %v12986_v22 = vld [vmem:[%s13472_s22 + $0x1424] sm:$0xf]  ;;  %v10812_v58 = vld [vmem:[%s13472_s22 + $0x1418] sm:$0xf0]  ;;  %v13076_v54 = vld [vmem:[%s13472_s22 + $0x16f4] sm:$0xf] }
 0x35b   : > { %7838 = vmatpush.bf16.msra.mxu0 %v10863_v41  ;;  %7807 = vmatmul.bf16.vlgmr.msrb.gmra.mxu1 %v15902_v25  ;;  %v10820_v41 = vld [vmem:[%s13472_s22 + $0x1428] sm:$0xf0]  ;;  %v13032_v25 = vld [vmem:[%s13472_s22 + $0x1594] sm:$0xf]  ;;  %v10815_v49 = vor.u32 %v12984_v7, %v10812_v58  ;;  %v11244_v55 = vld [vmem:[%s13472_s22 + $0x1778] sm:$0xf0] }
 0x35c   : > { %7851 = vmatpush.bf16.msra.mxu1 %v10927_v33  ;;  %7820 = vmatmul.bf16.vlgmr.msrb.gmra.mxu2 %v15901_v42  ;;  %v13002_v33 = vld [vmem:[%s13472_s22 + $0x14a4] sm:$0xf]  ;;  %v10940_v42 = vld [vmem:[%s13472_s22 + $0x1518] sm:$0xf0]  ;;  %v13104_v58 = vld [vmem:[%s13472_s22 + $0x17d4] sm:$0xf] }
 0x35d   : > { %7864 = vmatpush.bf16.msra.mxu2 %v10991_v61  ;;  %7833 = vmatmul.bf16.vlgmr.msrb.gmra.mxu3 %v15903_v38  ;;  %v11023_v61 = vor.u32 %v13036_v8, %v11020_v39  ;;  %v10887_v57 = vor.u32 %v13002_v33, %v10884_v18  ;;  %v12982_v38 = vld [vmem:[%s13472_s22 + $0x1404] sm:$0xf]  ;;  %v11236_v33 = vld [vmem:[%s13472_s22 + $0x1768] sm:$0xf0]  ;;  %v11084_v13 = vld [vmem:[%s13472_s22 + $0x1638] sm:$0xf0] }
 0x35e   : > { %7877 = vmatpush.bf16.msra.mxu3 %v11055_v24  ;;  %v10948_v24 = vld [vmem:[%s13472_s22 + $0x1528] sm:$0xf0]  ;;  %v13058_v39 = vld [vmem:[%s13472_s22 + $0x1664] sm:$0xf] }
 0x35f   : > { %7839 = vmatpush.bf16.msra.mxu0 %v10855_v53  ;;  %v7613_v9 = vpop.f32.mrf.mxu2  ;;  %v7589_v20 = vpop.f32.mrf.mxu0  ;;  %v10823_v53 = vor.u32 %v12986_v22, %v10820_v41  ;;  %v10951_v3 = vor.u32 %v13018_v23, %v10948_v24  ;;  %v11172_v22 = vld [vmem:[%s13472_s22 + $0x16e8] sm:$0xf0]  ;;  %v13090_v41 = vld [vmem:[%s13472_s22 + $0x1764] sm:$0xf] }
 0x360   : > { %7852 = vmatpush.bf16.msra.mxu1 %v10919_v32  ;;  %v7614_v28 = vadd.f32 %v7613_v9, %v7601_v35  ;;  %v7626_v1 = vpop.f32.mrf.mxu3  ;;  %v7602_v32 = vpop.f32.mrf.mxu1  ;;  %v11308_v35 = vld [vmem:[%s13472_s22 + $0x17f8] sm:$0xf0]  ;;  %v11300_v9 = vld [vmem:[%s13472_s22 + $0x17e8] sm:$0xf0]  ;;  %v11239_v24 = vor.u32 %v13090_v41, %v11236_v33  ;;  %v15906_v7 = vld [vmem:[#allocation16_spill] sm:$0xff] }
 0x361   : > { %7865 = vmatpush.bf16.msra.mxu2 %v10983_v30  ;;  %v13088_v32 = vld [vmem:[%s13472_s22 + $0x1754] sm:$0xf]  ;;  %v13098_v33 = vld [vmem:[%s13472_s22 + $0x17a4] sm:$0xf] }
 0x362   : > { %7878 = vmatpush.bf16.msra.mxu3 %v11047_v26  ;;  %v15465_v30 = vadd.f32 %v7626_v1, %v7614_v28  ;;  %v13000_v26 = vld [vmem:[%s13472_s22 + $0x1494] sm:$0xf]  ;;  %v11100_v1 = vld [vmem:[%s13472_s22 + $0x1658] sm:$0xf0] }
 0x363   : > { %7840 = vmatpush.bf16.msra.mxu0 %v10847_v44  ;;  %v10804_v44 = vld [vmem:[%s13472_s22 + $0x1408] sm:$0xf0]  ;;  %v13056_v28 = vld [vmem:[%s13472_s22 + $0x1654] sm:$0xf] }
 0x364   : > { %7853 = vmatpush.bf16.msra.mxu1 %v10911_v50  ;;  %v10879_v50 = vor.u32 %v13000_v26, %v10876_v27  ;;  %v10807_v21 = vor.u32 %v12982_v38, %v10804_v44  ;;  %v11292_v26 = vld [vmem:[%s13472_s22 + $0x17d8] sm:$0xf0]  ;;  %v11103_v27 = vor.u32 %v13056_v28, %v11100_v1  ;;  %v11156_v44 = vld [vmem:[%s13472_s22 + $0x16c8] sm:$0xf0] }
 0x365   : > { %7866 = vmatpush.bf16.msra.mxu2 %v10975_v45  ;;  %v10943_v45 = vor.u32 %v13016_v43, %v10940_v42  ;;  %v11295_v38 = vor.u32 %v13104_v58, %v11292_v26  ;;  %v11260_v58 = vld [vmem:[%s13472_s22 + $0x1798] sm:$0xf0] }
 0x366   : > { %7879 = vmatpush.bf16.msra.mxu3 %v11039_v46  ;;  %v11007_v46 = vor.u32 %v13032_v25, %v11004_v48  ;;  %v13054_v25 = vld [vmem:[%s13472_s22 + $0x1644] sm:$0xf]  ;;  %v11092_v48 = vld [vmem:[%s13472_s22 + $0x1648] sm:$0xf0] }
 0x367   : > { %7841 = vmatpush.bf16.msra.mxu0 %v10839_v59  ;;  %v7615_v14 = vpop.f32.mrf.mxu2  ;;  %v11095_v10 = vor.u32 %v13054_v25, %v11092_v48  ;;  %v13062_v25 = vld [vmem:[%s13472_s22 + $0x1684] sm:$0xf]  ;;  %v11124_v48 = vld [vmem:[%s13472_s22 + $0x1688] sm:$0xf0] }
 0x368   : > { %7854 = vmatpush.bf16.msra.mxu1 %v10903_v4  ;;  %v7628_v59 = vpop.f32.mrf.mxu3  ;;  %v11180_v4 = vld [vmem:[%s13472_s22 + $0x16f8] sm:$0xf0] }
 0x369   : > { %7867 = vmatpush.bf16.msra.mxu2 %v10967_v19  ;;  %v13092_v19 = vld [vmem:[%s13472_s22 + $0x1774] sm:$0xf]  ;;  %v11183_v34 = vor.u32 %v13076_v54, %v11180_v4  ;;  %v11287_v59 = vor.u32 %v13102_v0, %v11284_v11  ;;  %v11148_v4 = vld [vmem:[%s13472_s22 + $0x16b8] sm:$0xf0] }
 0x36a   : > { %7880 = vmatpush.bf16.msra.mxu3 %v11031_v36  ;;  %v13108_v36 = vld [vmem:[%s13472_s22 + $0x17f4] sm:$0xf]  ;;  %v11247_v8 = vor.u32 %v13092_v19, %v11244_v55  ;;  %v11372_v11 = vld [vmem:[%s13472_s22 + $0x1878] sm:$0xf0] }
 0x36b   : > { %7842 = vmatpush.bf16.msra.mxu0 %v10831_v40  ;;  %v11108_v40 = vld [vmem:[%s13472_s22 + $0x1668] sm:$0xf0]  ;;  %v13068_v54 = vld [vmem:[%s13472_s22 + $0x16b4] sm:$0xf] }
 0x36c   : > { %7855 = vmatpush.bf16.msra.mxu1 %v10895_v17  ;;  %v13074_v17 = vld [vmem:[%s13472_s22 + $0x16e4] sm:$0xf]  ;;  %v11111_v18 = vor.u32 %v13058_v39, %v11108_v40  ;;  %v13084_v19 = vld [vmem:[%s13472_s22 + $0x1734] sm:$0xf]  ;;  %v11140_v40 = vld [vmem:[%s13472_s22 + $0x16a8] sm:$0xf0] }
 0x36d   : > { %7868 = vmatpush.bf16.msra.mxu2 %v10959_v51  ;;  %v11311_v51 = vor.u32 %v13108_v36, %v11308_v35  ;;  %v11175_v23 = vor.u32 %v13074_v17, %v11172_v22  ;;  %v13100_v55 = vld [vmem:[%s13472_s22 + $0x17b4] sm:$0xf]  ;;  %v11151_v36 = vor.u32 %v13068_v54, %v11148_v4  ;;  %v13082_v17 = vld [vmem:[%s13472_s22 + $0x1724] sm:$0xf] }
 0x36e   : > { %7881 = vmatpush.bf16.msra.mxu3 %v11023_v61  ;;  %v13106_v61 = vld [vmem:[%s13472_s22 + $0x17e4] sm:$0xf]  ;;  %v13124_v0 = vld [vmem:[%s13472_s22 + $0x1874] sm:$0xf] }
 0x36f   : > { %7843 = vmatpush.bf16.msra.mxu0 %v10823_v53  ;;  %v11303_v20 = vor.u32 %v13106_v61, %v11300_v9  ;;  %v11164_v53 = vld [vmem:[%s13472_s22 + $0x16d8] sm:$0xf0]  ;;  %v11268_v61 = vld [vmem:[%s13472_s22 + $0x17a8] sm:$0xf0] }
 0x370   : > { %7856 = vmatpush.bf16.msra.mxu1 %v10887_v57  ;;  %v11228_v57 = vld [vmem:[%s13472_s22 + $0x1758] sm:$0xf0]  ;;  %v11167_v43 = vor.u32 %v13072_v52, %v11164_v53  ;;  %v13048_v52 = vld [vmem:[%s13472_s22 + $0x1614] sm:$0xf]  ;;  %v11271_v53 = vor.u32 %v13098_v33, %v11268_v61 }
 0x371   : > { %7869 = vmatpush.bf16.msra.mxu2 %v10951_v3  ;;  %v15905_v3 = vld [vmem:[#allocation15_spill] sm:$0xff]  ;;  %v11231_v42 = vor.u32 %v13088_v32, %v11228_v57  ;;  %v13080_v57 = vld [vmem:[%s13472_s22 + $0x1714] sm:$0xf] }
 0x372   : > { %7882 = vmatpush.bf16.msra.mxu3 %v11015_v37  ;;  %v15907_v37 = vld [vmem:[#allocation17_spill] sm:$0xff]  ;;  %v11132_v32 = vld [vmem:[%s13472_s22 + $0x1698] sm:$0xf0]  ;;  %v13136_v33 = vld [vmem:[%s13472_s22 + $0x18d4] sm:$0xf] }
 0x373   : > { %7844 = vmatpush.bf16.msra.mxu0 %v10815_v49  ;;  %v13070_v49 = vld [vmem:[%s13472_s22 + $0x16c4] sm:$0xf]  ;;  %v15908_v61 = vld [vmem:[#allocation18_spill] sm:$0xff] }
 0x374   : > { %7857 = vmatpush.bf16.msra.mxu1 %v10879_v50  ;;  %v13086_v50 = vld [vmem:[%s13472_s22 + $0x1744] sm:$0xf]  ;;  %v11159_v56 = vor.u32 %v13070_v49, %v11156_v44  ;;  %v11188_v44 = vld [vmem:[%s13472_s22 + $0x1708] sm:$0xf0] }
 0x375   : > { %7870 = vmatpush.bf16.msra.mxu2 %v10943_v45  ;;  %v11220_v45 = vld [vmem:[%s13472_s22 + $0x1748] sm:$0xf0]  ;;  %v13078_v49 = vld [vmem:[%s13472_s22 + $0x1704] sm:$0xf] }
 0x376   : > { %7883 = vmatpush.bf16.msra.mxu3 %v11007_v46  ;;  %v11223_v14 = vor.u32 %v13086_v50, %v11220_v45  ;;  %v13094_v50 = vld [vmem:[%s13472_s22 + $0x1784] sm:$0xf]  ;;  %v11252_v45 = vld [vmem:[%s13472_s22 + $0x1788] sm:$0xf0]  ;;  %v11191_v54 = vor.u32 %v13078_v49, %v11188_v44 }
 0x377   : > { %7845 = vmatpush.bf16.msra.mxu0 %v10807_v21  ;;  %v7639_v62 = vpop.f32.mrf.mxu0  ;;  %v11255_v4 = vor.u32 %v13094_v50, %v11252_v45  ;;  %v11540_v49 = vld [vmem:[%s13472_s22 + $0x19c8] sm:$0xf0] }
 0x378   : > { %7858 = vmatpush.bf16.msra.mxu1 %v10871_v60  ;;  %v7640_v46 = vadd.f32 %v7639_v62, %v15465_v30  ;;  %v7652_v31 = vpop.f32.mrf.mxu1  ;;  %v11212_v30 = vld [vmem:[%s13472_s22 + $0x1738] sm:$0xf0] }
 0x379   : > { %7871 = vmatpush.bf16.msra.mxu2 %v10935_v63  ;;  %v11276_v60 = vld [vmem:[%s13472_s22 + $0x17b8] sm:$0xf0]  ;;  %v11087_v63 = vor.u32 %v13052_v15, %v11084_v13  ;;  %v11215_v35 = vor.u32 %v13084_v19, %v11212_v30  ;;  %v11127_v13 = vor.u32 %v13062_v25, %v11124_v48  ;;  %v11375_v19 = vor.u32 %v13124_v0, %v11372_v11  ;;  %v13166_v48 = vld [vmem:[%s13472_s22 + $0x19c4] sm:$0xf]  ;;  %v13116_v0 = vld [vmem:[%s13472_s22 + $0x1834] sm:$0xf] }
 0x37a   : > { %7884 = vmatpush.bf16.msra.mxu3 %v10999_v16  ;;  %7846 = vmatmul.bf16.vlgmr.msra.gmra.mxu0 %v15904_v2  ;;  %v7653_v21 = vadd.f32 %v7652_v31, %v7640_v46  ;;  %v13050_v16 = vld [vmem:[%s13472_s22 + $0x1624] sm:$0xf]  ;;  %v11068_v2 = vld [vmem:[%s13472_s22 + $0x1618] sm:$0xf0]  ;;  %v13140_v46 = vld [vmem:[%s13472_s22 + $0x18f4] sm:$0xf] }
 0x37b   : > { %7890 = vmatpush.bf16.msrb.mxu0 %v11119_v5  ;;  %7859 = vmatmul.bf16.vlgmr.msra.gmra.mxu1 %v15906_v7  ;;  %v11076_v5 = vld [vmem:[%s13472_s22 + $0x1628] sm:$0xf0]  ;;  %v13096_v7 = vld [vmem:[%s13472_s22 + $0x1794] sm:$0xf]  ;;  %v11071_v26 = vor.u32 %v13048_v52, %v11068_v2  ;;  %v11500_v15 = vld [vmem:[%s13472_s22 + $0x1978] sm:$0xf0] }
 0x37c   : > { %7903 = vmatpush.bf16.msrb.mxu1 %v11183_v34  ;;  %7872 = vmatmul.bf16.vlgmr.msra.gmra.mxu2 %v15905_v3  ;;  %v13066_v34 = vld [vmem:[%s13472_s22 + $0x16a4] sm:$0xf]  ;;  %v11196_v3 = vld [vmem:[%s13472_s22 + $0x1718] sm:$0xf0]  ;;  %v13168_v2 = vld [vmem:[%s13472_s22 + $0x19d4] sm:$0xf] }
 0x37d   : > { %7916 = vmatpush.bf16.msrb.mxu2 %v11247_v8  ;;  %7885 = vmatmul.bf16.vlgmr.msra.gmra.mxu3 %v15907_v37  ;;  %v11279_v8 = vor.u32 %v13100_v55, %v11276_v60  ;;  %v11143_v28 = vor.u32 %v13066_v34, %v11140_v40  ;;  %v13046_v37 = vld [vmem:[%s13472_s22 + $0x1604] sm:$0xf]  ;;  %v11492_v34 = vld [vmem:[%s13472_s22 + $0x1968] sm:$0xf0]  ;;  %v11340_v11 = vld [vmem:[%s13472_s22 + $0x1838] sm:$0xf0] }
 0x37e   : > { %7929 = vmatpush.bf16.msrb.mxu3 %v11311_v51  ;;  %v11204_v51 = vld [vmem:[%s13472_s22 + $0x1728] sm:$0xf0]  ;;  %v13122_v60 = vld [vmem:[%s13472_s22 + $0x1864] sm:$0xf] }
 0x37f   : > { %7891 = vmatpush.bf16.msrb.mxu0 %v11111_v18  ;;  %v7665_v39 = vpop.f32.mrf.mxu2  ;;  %v7641_v9 = vpop.f32.mrf.mxu0  ;;  %v11079_v18 = vor.u32 %v13050_v16, %v11076_v5  ;;  %v11207_v1 = vor.u32 %v13082_v17, %v11204_v51  ;;  %v11428_v16 = vld [vmem:[%s13472_s22 + $0x18e8] sm:$0xf0]  ;;  %v13154_v5 = vld [vmem:[%s13472_s22 + $0x1964] sm:$0xf] }
 0x380   : > { %7904 = vmatpush.bf16.msrb.mxu1 %v11175_v23  ;;  %v7666_v22 = vadd.f32 %v7665_v39, %v7653_v21  ;;  %v7678_v41 = vpop.f32.mrf.mxu3  ;;  %v7654_v23 = vpop.f32.mrf.mxu1  ;;  %v11564_v21 = vld [vmem:[%s13472_s22 + $0x19f8] sm:$0xf0]  ;;  %v11556_v39 = vld [vmem:[%s13472_s22 + $0x19e8] sm:$0xf0]  ;;  %v11495_v51 = vor.u32 %v13154_v5, %v11492_v34  ;;  %v15910_v52 = vld [vmem:[#allocation20_spill] sm:$0xff] }
 0x381   : > { %7917 = vmatpush.bf16.msrb.mxu2 %v11239_v24  ;;  %v13152_v23 = vld [vmem:[%s13472_s22 + $0x1954] sm:$0xf]  ;;  %v13162_v34 = vld [vmem:[%s13472_s22 + $0x19a4] sm:$0xf] }
 0x382   : > { %7930 = vmatpush.bf16.msrb.mxu3 %v11303_v20  ;;  %v15536_v24 = vadd.f32 %v7678_v41, %v7666_v22  ;;  %v13064_v20 = vld [vmem:[%s13472_s22 + $0x1694] sm:$0xf]  ;;  %v11356_v41 = vld [vmem:[%s13472_s22 + $0x1858] sm:$0xf0] }
 0x383   : > { %7892 = vmatpush.bf16.msrb.mxu0 %v11103_v27  ;;  %v11060_v27 = vld [vmem:[%s13472_s22 + $0x1608] sm:$0xf0]  ;;  %v13120_v22 = vld [vmem:[%s13472_s22 + $0x1854] sm:$0xf] }
 0x384   : > { %7905 = vmatpush.bf16.msrb.mxu1 %v11167_v43  ;;  %v11135_v43 = vor.u32 %v13064_v20, %v11132_v32  ;;  %v11063_v31 = vor.u32 %v13046_v37, %v11060_v27  ;;  %v11548_v20 = vld [vmem:[%s13472_s22 + $0x19d8] sm:$0xf0]  ;;  %v11359_v32 = vor.u32 %v13120_v22, %v11356_v41  ;;  %v11412_v27 = vld [vmem:[%s13472_s22 + $0x18c8] sm:$0xf0] }
 0x385   : > { %7918 = vmatpush.bf16.msrb.mxu2 %v11231_v42  ;;  %v11199_v42 = vor.u32 %v13080_v57, %v11196_v3  ;;  %v11551_v37 = vor.u32 %v13168_v2, %v11548_v20  ;;  %v11516_v2 = vld [vmem:[%s13472_s22 + $0x1998] sm:$0xf0] }
 0x386   : > { %7931 = vmatpush.bf16.msrb.mxu3 %v11295_v38  ;;  %v11263_v38 = vor.u32 %v13096_v7, %v11260_v58  ;;  %v13118_v7 = vld [vmem:[%s13472_s22 + $0x1844] sm:$0xf]  ;;  %v11348_v58 = vld [vmem:[%s13472_s22 + $0x1848] sm:$0xf0] }
 0x387   : > { %7893 = vmatpush.bf16.msrb.mxu0 %v11095_v10  ;;  %v7667_v62 = vpop.f32.mrf.mxu2  ;;  %v11351_v44 = vor.u32 %v13118_v7, %v11348_v58  ;;  %v13126_v7 = vld [vmem:[%s13472_s22 + $0x1884] sm:$0xf]  ;;  %v11380_v58 = vld [vmem:[%s13472_s22 + $0x1888] sm:$0xf0] }
 0x388   : > { %7906 = vmatpush.bf16.msrb.mxu1 %v11159_v56  ;;  %v7680_v10 = vpop.f32.mrf.mxu3  ;;  %v11436_v56 = vld [vmem:[%s13472_s22 + $0x18f8] sm:$0xf0] }
 0x389   : > { %7919 = vmatpush.bf16.msrb.mxu2 %v11223_v14  ;;  %v13156_v14 = vld [vmem:[%s13472_s22 + $0x1974] sm:$0xf]  ;;  %v11439_v30 = vor.u32 %v13140_v46, %v11436_v56  ;;  %v11543_v10 = vor.u32 %v13166_v48, %v11540_v49  ;;  %v11404_v56 = vld [vmem:[%s13472_s22 + $0x18b8] sm:$0xf0] }
 0x38a   : > { %7932 = vmatpush.bf16.msrb.mxu3 %v11287_v59  ;;  %v13172_v59 = vld [vmem:[%s13472_s22 + $0x19f4] sm:$0xf]  ;;  %v11503_v55 = vor.u32 %v13156_v14, %v11500_v15  ;;  %v11628_v49 = vld [vmem:[%s13472_s22 + $0x1a78] sm:$0xf0] }
 0x38b   : > { %7894 = vmatpush.bf16.msrb.mxu0 %v11087_v63  ;;  %v11364_v63 = vld [vmem:[%s13472_s22 + $0x1868] sm:$0xf0]  ;;  %v13132_v46 = vld [vmem:[%s13472_s22 + $0x18b4] sm:$0xf] }
 0x38c   : > { %7907 = vmatpush.bf16.msrb.mxu1 %v11151_v36  ;;  %v13138_v36 = vld [vmem:[%s13472_s22 + $0x18e4] sm:$0xf]  ;;  %v11367_v40 = vor.u32 %v13122_v60, %v11364_v63  ;;  %v13148_v14 = vld [vmem:[%s13472_s22 + $0x1934] sm:$0xf]  ;;  %v11396_v63 = vld [vmem:[%s13472_s22 + $0x18a8] sm:$0xf0] }
 0x38d   : > { %7920 = vmatpush.bf16.msrb.mxu2 %v11215_v35  ;;  %v11567_v35 = vor.u32 %v13172_v59, %v11564_v21  ;;  %v11431_v17 = vor.u32 %v13138_v36, %v11428_v16  ;;  %v13164_v15 = vld [vmem:[%s13472_s22 + $0x19b4] sm:$0xf]  ;;  %v11407_v59 = vor.u32 %v13132_v46, %v11404_v56  ;;  %v13146_v36 = vld [vmem:[%s13472_s22 + $0x1924] sm:$0xf] }
 0x38e   : > { %7933 = vmatpush.bf16.msrb.mxu3 %v11279_v8  ;;  %v13170_v8 = vld [vmem:[%s13472_s22 + $0x19e4] sm:$0xf]  ;;  %v13188_v48 = vld [vmem:[%s13472_s22 + $0x1a74] sm:$0xf] }
 0x38f   : > { %7895 = vmatpush.bf16.msrb.mxu0 %v11079_v18  ;;  %v11559_v9 = vor.u32 %v13170_v8, %v11556_v39  ;;  %v11420_v18 = vld [vmem:[%s13472_s22 + $0x18d8] sm:$0xf0]  ;;  %v11524_v8 = vld [vmem:[%s13472_s22 + $0x19a8] sm:$0xf0] }
 0x390   : > { %7908 = vmatpush.bf16.msrb.mxu1 %v11143_v28  ;;  %v11484_v28 = vld [vmem:[%s13472_s22 + $0x1958] sm:$0xf0]  ;;  %v11423_v57 = vor.u32 %v13136_v33, %v11420_v18  ;;  %v13112_v33 = vld [vmem:[%s13472_s22 + $0x1814] sm:$0xf]  ;;  %v11527_v18 = vor.u32 %v13162_v34, %v11524_v8 }
 0x391   : > { %7921 = vmatpush.bf16.msrb.mxu2 %v11207_v1  ;;  %v15909_v1 = vld [vmem:[#allocation19_spill] sm:$0xff]  ;;  %v11487_v3 = vor.u32 %v13152_v23, %v11484_v28  ;;  %v13144_v28 = vld [vmem:[%s13472_s22 + $0x1914] sm:$0xf] }
 0x392   : > { %7934 = vmatpush.bf16.msrb.mxu3 %v11271_v53  ;;  %v15911_v53 = vld [vmem:[#allocation21_spill] sm:$0xff]  ;;  %v11388_v23 = vld [vmem:[%s13472_s22 + $0x1898] sm:$0xf0]  ;;  %v13200_v34 = vld [vmem:[%s13472_s22 + $0x1ad4] sm:$0xf] }
 0x393   : > { %7896 = vmatpush.bf16.msrb.mxu0 %v11071_v26  ;;  %v13134_v26 = vld [vmem:[%s13472_s22 + $0x18c4] sm:$0xf]  ;;  %v15912_v8 = vld [vmem:[#allocation22_spill] sm:$0xff] }
 0x394   : > { %7909 = vmatpush.bf16.msrb.mxu1 %v11135_v43  ;;  %v13150_v43 = vld [vmem:[%s13472_s22 + $0x1944] sm:$0xf]  ;;  %v11415_v45 = vor.u32 %v13134_v26, %v11412_v27  ;;  %v11444_v27 = vld [vmem:[%s13472_s22 + $0x1908] sm:$0xf0] }
 0x395   : > { %7922 = vmatpush.bf16.msrb.mxu2 %v11199_v42  ;;  %v11476_v42 = vld [vmem:[%s13472_s22 + $0x1948] sm:$0xf0]  ;;  %v13142_v26 = vld [vmem:[%s13472_s22 + $0x1904] sm:$0xf] }
 0x396   : > { %7935 = vmatpush.bf16.msrb.mxu3 %v11263_v38  ;;  %v11479_v62 = vor.u32 %v13150_v43, %v11476_v42  ;;  %v13158_v43 = vld [vmem:[%s13472_s22 + $0x1984] sm:$0xf]  ;;  %v11508_v42 = vld [vmem:[%s13472_s22 + $0x1988] sm:$0xf0]  ;;  %v11447_v46 = vor.u32 %v13142_v26, %v11444_v27 }
 0x397   : > { %7897 = vmatpush.bf16.msrb.mxu0 %v11063_v31  ;;  %v7691_v25 = vpop.f32.mrf.mxu0  ;;  %v11511_v56 = vor.u32 %v13158_v43, %v11508_v42  ;;  %v11796_v26 = vld [vmem:[%s13472_s22 + $0x1bc8] sm:$0xf0] }
 0x398   : > { %7910 = vmatpush.bf16.msrb.mxu1 %v11127_v13  ;;  %v7692_v38 = vadd.f32 %v7691_v25, %v15536_v24  ;;  %v7704_v50 = vpop.f32.mrf.mxu1  ;;  %v11468_v24 = vld [vmem:[%s13472_s22 + $0x1938] sm:$0xf0] }
 0x399   : > { %7923 = vmatpush.bf16.msrb.mxu2 %v11191_v54  ;;  %v11532_v13 = vld [vmem:[%s13472_s22 + $0x19b8] sm:$0xf0]  ;;  %v11343_v54 = vor.u32 %v13116_v0, %v11340_v11  ;;  %v11471_v21 = vor.u32 %v13148_v14, %v11468_v24  ;;  %v11383_v11 = vor.u32 %v13126_v7, %v11380_v58  ;;  %v11631_v14 = vor.u32 %v13188_v48, %v11628_v49  ;;  %v13230_v58 = vld [vmem:[%s13472_s22 + $0x1bc4] sm:$0xf]  ;;  %v13180_v48 = vld [vmem:[%s13472_s22 + $0x1a34] sm:$0xf] }
 0x39a   : > { %7936 = vmatpush.bf16.msrb.mxu3 %v11255_v4  ;;  %7898 = vmatmul.bf16.vlgmr.msrb.gmra.mxu0 %v15908_v61  ;;  %v7705_v31 = vadd.f32 %v7704_v50, %v7692_v38  ;;  %v13114_v4 = vld [vmem:[%s13472_s22 + $0x1824] sm:$0xf]  ;;  %v11324_v61 = vld [vmem:[%s13472_s22 + $0x1818] sm:$0xf0]  ;;  %v13204_v38 = vld [vmem:[%s13472_s22 + $0x1af4] sm:$0xf] }
 0x39b   : > { %7942 = vmatpush.bf16.msra.mxu0 %v11375_v19  ;;  %7911 = vmatmul.bf16.vlgmr.msrb.gmra.mxu1 %v15910_v52  ;;  %v11332_v19 = vld [vmem:[%s13472_s22 + $0x1828] sm:$0xf0]  ;;  %v13160_v52 = vld [vmem:[%s13472_s22 + $0x1994] sm:$0xf]  ;;  %v11327_v20 = vor.u32 %v13112_v33, %v11324_v61  ;;  %v11756_v0 = vld [vmem:[%s13472_s22 + $0x1b78] sm:$0xf0] }
 0x39c   : > { %7955 = vmatpush.bf16.msra.mxu1 %v11439_v30  ;;  %7924 = vmatmul.bf16.vlgmr.msrb.gmra.mxu2 %v15909_v1  ;;  %v13130_v30 = vld [vmem:[%s13472_s22 + $0x18a4] sm:$0xf]  ;;  %v11452_v1 = vld [vmem:[%s13472_s22 + $0x1918] sm:$0xf0]  ;;  %v13232_v61 = vld [vmem:[%s13472_s22 + $0x1bd4] sm:$0xf] }
 0x39d   : > { %7968 = vmatpush.bf16.msra.mxu2 %v11503_v55  ;;  %7937 = vmatmul.bf16.vlgmr.msrb.gmra.mxu3 %v15911_v53  ;;  %v11535_v55 = vor.u32 %v13164_v15, %v11532_v13  ;;  %v11399_v22 = vor.u32 %v13130_v30, %v11396_v63  ;;  %v13110_v53 = vld [vmem:[%s13472_s22 + $0x1804] sm:$0xf]  ;;  %v11748_v30 = vld [vmem:[%s13472_s22 + $0x1b68] sm:$0xf0]  ;;  %v11596_v49 = vld [vmem:[%s13472_s22 + $0x1a38] sm:$0xf0] }
 0x39e   : > { %7981 = vmatpush.bf16.msra.mxu3 %v11567_v35  ;;  %v11460_v35 = vld [vmem:[%s13472_s22 + $0x1928] sm:$0xf0]  ;;  %v13186_v13 = vld [vmem:[%s13472_s22 + $0x1a64] sm:$0xf] }
 0x39f   : > { %7943 = vmatpush.bf16.msra.mxu0 %v11367_v40  ;;  %v7717_v60 = vpop.f32.mrf.mxu2  ;;  %v7693_v39 = vpop.f32.mrf.mxu0  ;;  %v11335_v40 = vor.u32 %v13114_v4, %v11332_v19  ;;  %v11463_v41 = vor.u32 %v13146_v36, %v11460_v35  ;;  %v11684_v4 = vld [vmem:[%s13472_s22 + $0x1ae8] sm:$0xf0]  ;;  %v13218_v19 = vld [vmem:[%s13472_s22 + $0x1b64] sm:$0xf] }
 0x3a0   : > { %7956 = vmatpush.bf16.msra.mxu1 %v11431_v17  ;;  %v7718_v16 = vadd.f32 %v7717_v60, %v7705_v31  ;;  %v7730_v5 = vpop.f32.mrf.mxu3  ;;  %v7706_v17 = vpop.f32.mrf.mxu1  ;;  %v11820_v31 = vld [vmem:[%s13472_s22 + $0x1bf8] sm:$0xf0]  ;;  %v11812_v60 = vld [vmem:[%s13472_s22 + $0x1be8] sm:$0xf0]  ;;  %v11751_v35 = vor.u32 %v13218_v19, %v11748_v30  ;;  %v15914_v33 = vld [vmem:[#allocation24_spill] sm:$0xff] }
 0x3a1   : > { %7969 = vmatpush.bf16.msra.mxu2 %v11495_v51  ;;  %v13216_v17 = vld [vmem:[%s13472_s22 + $0x1b54] sm:$0xf]  ;;  %v13226_v30 = vld [vmem:[%s13472_s22 + $0x1ba4] sm:$0xf] }
 0x3a2   : > { %7982 = vmatpush.bf16.msra.mxu3 %v11559_v9  ;;  %v15607_v51 = vadd.f32 %v7730_v5, %v7718_v16  ;;  %v13128_v9 = vld [vmem:[%s13472_s22 + $0x1894] sm:$0xf]  ;;  %v11612_v5 = vld [vmem:[%s13472_s22 + $0x1a58] sm:$0xf0] }
 0x3a3   : > { %7944 = vmatpush.bf16.msra.mxu0 %v11359_v32  ;;  %v11316_v32 = vld [vmem:[%s13472_s22 + $0x1808] sm:$0xf0]  ;;  %v13184_v16 = vld [vmem:[%s13472_s22 + $0x1a54] sm:$0xf] }
 0x3a4   : > { %7957 = vmatpush.bf16.msra.mxu1 %v11423_v57  ;;  %v11391_v57 = vor.u32 %v13128_v9, %v11388_v23  ;;  %v11319_v50 = vor.u32 %v13110_v53, %v11316_v32  ;;  %v11804_v9 = vld [vmem:[%s13472_s22 + $0x1bd8] sm:$0xf0]  ;;  %v11615_v23 = vor.u32 %v13184_v16, %v11612_v5  ;;  %v11668_v32 = vld [vmem:[%s13472_s22 + $0x1ac8] sm:$0xf0] }
 0x3a5   : > { %7970 = vmatpush.bf16.msra.mxu2 %v11487_v3  ;;  %v11455_v3 = vor.u32 %v13144_v28, %v11452_v1  ;;  %v11807_v53 = vor.u32 %v13232_v61, %v11804_v9  ;;  %v11772_v61 = vld [vmem:[%s13472_s22 + $0x1b98] sm:$0xf0] }
 0x3a6   : > { %7983 = vmatpush.bf16.msra.mxu3 %v11551_v37  ;;  %v11519_v37 = vor.u32 %v13160_v52, %v11516_v2  ;;  %v13182_v52 = vld [vmem:[%s13472_s22 + $0x1a44] sm:$0xf]  ;;  %v11604_v2 = vld [vmem:[%s13472_s22 + $0x1a48] sm:$0xf0] }
 0x3a7   : > { %7945 = vmatpush.bf16.msra.mxu0 %v11351_v44  ;;  %v7719_v25 = vpop.f32.mrf.mxu2  ;;  %v11607_v27 = vor.u32 %v13182_v52, %v11604_v2  ;;  %v13190_v52 = vld [vmem:[%s13472_s22 + $0x1a84] sm:$0xf]  ;;  %v11636_v2 = vld [vmem:[%s13472_s22 + $0x1a88] sm:$0xf0] }
 0x3a8   : > { %7958 = vmatpush.bf16.msra.mxu1 %v11415_v45  ;;  %v7732_v44 = vpop.f32.mrf.mxu3  ;;  %v11692_v45 = vld [vmem:[%s13472_s22 + $0x1af8] sm:$0xf0] }
 0x3a9   : > { %7971 = vmatpush.bf16.msra.mxu2 %v11479_v62  ;;  %v13220_v62 = vld [vmem:[%s13472_s22 + $0x1b74] sm:$0xf]  ;;  %v11695_v24 = vor.u32 %v13204_v38, %v11692_v45  ;;  %v11799_v44 = vor.u32 %v13230_v58, %v11796_v26  ;;  %v11660_v45 = vld [vmem:[%s13472_s22 + $0x1ab8] sm:$0xf0] }
 0x3aa   : > { %7984 = vmatpush.bf16.msra.mxu3 %v11543_v10  ;;  %v13236_v10 = vld [vmem:[%s13472_s22 + $0x1bf4] sm:$0xf]  ;;  %v11759_v15 = vor.u32 %v13220_v62, %v11756_v0  ;;  %v11884_v26 = vld [vmem:[%s13472_s22 + $0x1c78] sm:$0xf0] }
 0x3ab   : > { %7946 = vmatpush.bf16.msra.mxu0 %v11343_v54  ;;  %v11620_v54 = vld [vmem:[%s13472_s22 + $0x1a68] sm:$0xf0]  ;;  %v13196_v38 = vld [vmem:[%s13472_s22 + $0x1ab4] sm:$0xf] }
 0x3ac   : > { %7959 = vmatpush.bf16.msra.mxu1 %v11407_v59  ;;  %v13202_v59 = vld [vmem:[%s13472_s22 + $0x1ae4] sm:$0xf]  ;;  %v11623_v63 = vor.u32 %v13186_v13, %v11620_v54  ;;  %v13212_v62 = vld [vmem:[%s13472_s22 + $0x1b34] sm:$0xf]  ;;  %v11652_v54 = vld [vmem:[%s13472_s22 + $0x1aa8] sm:$0xf0] }
 0x3ad   : > { %7972 = vmatpush.bf16.msra.mxu2 %v11471_v21  ;;  %v11823_v21 = vor.u32 %v13236_v10, %v11820_v31  ;;  %v11687_v36 = vor.u32 %v13202_v59, %v11684_v4  ;;  %v13228_v0 = vld [vmem:[%s13472_s22 + $0x1bb4] sm:$0xf]  ;;  %v11663_v10 = vor.u32 %v13196_v38, %v11660_v45  ;;  %v13210_v59 = vld [vmem:[%s13472_s22 + $0x1b24] sm:$0xf] }
 0x3ae   : > { %7985 = vmatpush.bf16.msra.mxu3 %v11535_v55  ;;  %v13234_v55 = vld [vmem:[%s13472_s22 + $0x1be4] sm:$0xf]  ;;  %v13252_v58 = vld [vmem:[%s13472_s22 + $0x1c74] sm:$0xf] }
 0x3af   : > { %7947 = vmatpush.bf16.msra.mxu0 %v11335_v40  ;;  %v11815_v39 = vor.u32 %v13234_v55, %v11812_v60  ;;  %v11676_v40 = vld [vmem:[%s13472_s22 + $0x1ad8] sm:$0xf0]  ;;  %v11780_v55 = vld [vmem:[%s13472_s22 + $0x1ba8] sm:$0xf0] }
 0x3b0   : > { %7960 = vmatpush.bf16.msra.mxu1 %v11399_v22  ;;  %v11740_v22 = vld [vmem:[%s13472_s22 + $0x1b58] sm:$0xf0]  ;;  %v11679_v28 = vor.u32 %v13200_v34, %v11676_v40  ;;  %v13176_v34 = vld [vmem:[%s13472_s22 + $0x1a14] sm:$0xf]  ;;  %v11783_v40 = vor.u32 %v13226_v30, %v11780_v55 }
 0x3b1   : > { %7973 = vmatpush.bf16.msra.mxu2 %v11463_v41  ;;  %v15913_v41 = vld [vmem:[#allocation23_spill] sm:$0xff]  ;;  %v11743_v1 = vor.u32 %v13216_v17, %v11740_v22  ;;  %v13208_v22 = vld [vmem:[%s13472_s22 + $0x1b14] sm:$0xf] }
 0x3b2   : > { %7986 = vmatpush.bf16.msra.mxu3 %v11527_v18  ;;  %v15915_v18 = vld [vmem:[#allocation25_spill] sm:$0xff]  ;;  %v11644_v17 = vld [vmem:[%s13472_s22 + $0x1a98] sm:$0xf0]  ;;  %v13264_v30 = vld [vmem:[%s13472_s22 + $0x1cd4] sm:$0xf] }
 0x3b3   : > { %7948 = vmatpush.bf16.msra.mxu0 %v11327_v20  ;;  %v13198_v20 = vld [vmem:[%s13472_s22 + $0x1ac4] sm:$0xf] }
 0x3b4   : > { %7961 = vmatpush.bf16.msra.mxu1 %v11391_v57  ;;  %v13214_v57 = vld [vmem:[%s13472_s22 + $0x1b44] sm:$0xf]  ;;  %v11671_v42 = vor.u32 %v13198_v20, %v11668_v32  ;;  %v11700_v32 = vld [vmem:[%s13472_s22 + $0x1b08] sm:$0xf0] }
 0x3b5   : > { %7974 = vmatpush.bf16.msra.mxu2 %v11455_v3  ;;  %v11732_v3 = vld [vmem:[%s13472_s22 + $0x1b48] sm:$0xf0]  ;;  %v13206_v20 = vld [vmem:[%s13472_s22 + $0x1b04] sm:$0xf] }
 0x3b6   : > { %7987 = vmatpush.bf16.msra.mxu3 %v11519_v37  ;;  %v11735_v25 = vor.u32 %v13214_v57, %v11732_v3  ;;  %v13222_v57 = vld [vmem:[%s13472_s22 + $0x1b84] sm:$0xf]  ;;  %v11764_v3 = vld [vmem:[%s13472_s22 + $0x1b88] sm:$0xf0]  ;;  %v11703_v38 = vor.u32 %v13206_v20, %v11700_v32  ;;  %v13244_v20 = vld [vmem:[%s13472_s22 + $0x1c34] sm:$0xf] }
 0x3b7   : > { %7949 = vmatpush.bf16.msra.mxu0 %v11319_v50  ;;  %v7743_v7 = vpop.f32.mrf.mxu0  ;;  %v11767_v45 = vor.u32 %v13222_v57, %v11764_v3  ;;  %v13260_v32 = vld [vmem:[%s13472_s22 + $0x1cb4] sm:$0xf] }
 0x3b8   : > { %7962 = vmatpush.bf16.msra.mxu1 %v11383_v11  ;;  %v7744_v37 = vadd.f32 %v7743_v7, %v15607_v51  ;;  %v7756_v43 = vpop.f32.mrf.mxu1  ;;  %v11724_v51 = vld [vmem:[%s13472_s22 + $0x1b38] sm:$0xf0] }
 0x3b9   : > { %7975 = vmatpush.bf16.msra.mxu2 %v11447_v46  ;;  %v11788_v11 = vld [vmem:[%s13472_s22 + $0x1bb8] sm:$0xf0]  ;;  %v11599_v46 = vor.u32 %v13180_v48, %v11596_v49  ;;  %v11727_v31 = vor.u32 %v13212_v62, %v11724_v51  ;;  %v11639_v49 = vor.u32 %v13190_v52, %v11636_v2  ;;  %v11887_v62 = vor.u32 %v13252_v58, %v11884_v26  ;;  %v13276_v58 = vld [vmem:[%s13472_s22 + $0x1d34] sm:$0xf] }
 0x3ba   : > { %7988 = vmatpush.bf16.msra.mxu3 %v11511_v56  ;;  %7950 = vmatmul.bf16.vlgmr.msra.gmra.mxu0 %v15912_v8  ;;  %v7757_v50 = vadd.f32 %v7756_v43, %v7744_v37  ;;  %v13178_v56 = vld [vmem:[%s13472_s22 + $0x1a24] sm:$0xf]  ;;  %v11580_v8 = vld [vmem:[%s13472_s22 + $0x1a18] sm:$0xf0]  ;;  %v13268_v37 = vld [vmem:[%s13472_s22 + $0x1cf4] sm:$0xf] }
 0x3bb   : > { %7994 = vmatpush.bf16.msrb.mxu0 %v11631_v14  ;;  %7963 = vmatmul.bf16.vlgmr.msra.gmra.mxu1 %v15914_v33  ;;  %v11588_v14 = vld [vmem:[%s13472_s22 + $0x1a28] sm:$0xf0]  ;;  %v13224_v33 = vld [vmem:[%s13472_s22 + $0x1b94] sm:$0xf]  ;;  %v11583_v9 = vor.u32 %v13176_v34, %v11580_v8  ;;  %v12012_v48 = vld [vmem:[%s13472_s22 + $0x1d78] sm:$0xf0] }
 0x3bc   : > { %8007 = vmatpush.bf16.msrb.mxu1 %v11695_v24  ;;  %7976 = vmatmul.bf16.vlgmr.msra.gmra.mxu2 %v15913_v41  ;;  %v13194_v24 = vld [vmem:[%s13472_s22 + $0x1aa4] sm:$0xf]  ;;  %v11708_v41 = vld [vmem:[%s13472_s22 + $0x1b18] sm:$0xf0]  ;;  %v15916_v34 = vld [vmem:[#allocation26_spill] sm:$0xff] }
 0x3bd   : > { %8020 = vmatpush.bf16.msrb.mxu2 %v11759_v15  ;;  %7989 = vmatmul.bf16.vlgmr.msra.gmra.mxu3 %v15915_v18  ;;  %v11791_v15 = vor.u32 %v13228_v0, %v11788_v11  ;;  %v11655_v16 = vor.u32 %v13194_v24, %v11652_v54  ;;  %v13174_v18 = vld [vmem:[%s13472_s22 + $0x1a04] sm:$0xf]  ;;  %v12004_v24 = vld [vmem:[%s13472_s22 + $0x1d68] sm:$0xf0]  ;;  %v13292_v26 = vld [vmem:[%s13472_s22 + $0x1db4] sm:$0xf] }
 0x3be   : > { %8033 = vmatpush.bf16.msrb.mxu3 %v11823_v21  ;;  %v11716_v21 = vld [vmem:[%s13472_s22 + $0x1b28] sm:$0xf0]  ;;  %v13250_v11 = vld [vmem:[%s13472_s22 + $0x1c64] sm:$0xf] }
 0x3bf   : > { %7995 = vmatpush.bf16.msrb.mxu0 %v11623_v63  ;;  %v7769_v13 = vpop.f32.mrf.mxu2  ;;  %v7745_v60 = vpop.f32.mrf.mxu0  ;;  %v11591_v63 = vor.u32 %v13178_v56, %v11588_v14  ;;  %v11719_v5 = vor.u32 %v13210_v59, %v11716_v21  ;;  %v11940_v56 = vld [vmem:[%s13472_s22 + $0x1ce8] sm:$0xf0]  ;;  %v13282_v14 = vld [vmem:[%s13472_s22 + $0x1d64] sm:$0xf] }
 0x3c0   : > { %8008 = vmatpush.bf16.msrb.mxu1 %v11687_v36  ;;  %v7770_v4 = vadd.f32 %v7769_v13, %v7757_v50  ;;  %v7782_v19 = vpop.f32.mrf.mxu3  ;;  %v7758_v36 = vpop.f32.mrf.mxu1  ;;  %v12076_v50 = vld [vmem:[%s13472_s22 + $0x1df8] sm:$0xf0]  ;;  %v12068_v13 = vld [vmem:[%s13472_s22 + $0x1de8] sm:$0xf0]  ;;  %v12007_v21 = vor.u32 %v13282_v14, %v12004_v24 }
 0x3c1   : > { %8021 = vmatpush.bf16.msrb.mxu2 %v11751_v35  ;;  %v11932_v60 = vld [vmem:[%s13472_s22 + $0x1cd8] sm:$0xf0] }
 0x3c2   : > { %8034 = vmatpush.bf16.msrb.mxu3 %v11815_v39  ;;  %v15678_v35 = vadd.f32 %v7782_v19, %v7770_v4  ;;  %v13192_v39 = vld [vmem:[%s13472_s22 + $0x1a94] sm:$0xf]  ;;  %v11868_v19 = vld [vmem:[%s13472_s22 + $0x1c58] sm:$0xf0]  ;;  %v11935_v8 = vor.u32 %v13264_v30, %v11932_v60 }
 0x3c3   : > { %7996 = vmatpush.bf16.msrb.mxu0 %v11615_v23  ;;  %v11572_v23 = vld [vmem:[%s13472_s22 + $0x1a08] sm:$0xf0]  ;;  %v13248_v4 = vld [vmem:[%s13472_s22 + $0x1c54] sm:$0xf]  ;;  %v11996_v36 = vld [vmem:[%s13472_s22 + $0x1d58] sm:$0xf0] }
 0x3c4   : > { %8009 = vmatpush.bf16.msrb.mxu1 %v11679_v28  ;;  %v11647_v28 = vor.u32 %v13192_v39, %v11644_v17  ;;  %v11575_v43 = vor.u32 %v13174_v18, %v11572_v23  ;;  %v11860_v17 = vld [vmem:[%s13472_s22 + $0x1c48] sm:$0xf0]  ;;  %v11964_v30 = vld [vmem:[%s13472_s22 + $0x1d18] sm:$0xf0] }
 0x3c5   : > { %8022 = vmatpush.bf16.msrb.mxu2 %v11743_v1  ;;  %v11711_v1 = vor.u32 %v13208_v22, %v11708_v41  ;;  %v11924_v22 = vld [vmem:[%s13472_s22 + $0x1cc8] sm:$0xf0]  ;;  %v13278_v41 = vld [vmem:[%s13472_s22 + $0x1d44] sm:$0xf]  ;;  %v12028_v60 = vld [vmem:[%s13472_s22 + $0x1d98] sm:$0xf0] }
 0x3c6   : > { %8035 = vmatpush.bf16.msrb.mxu3 %v11807_v53  ;;  %v11775_v53 = vor.u32 %v13224_v33, %v11772_v61  ;;  %v11988_v33 = vld [vmem:[%s13472_s22 + $0x1d48] sm:$0xf0] }
 0x3c7   : > { %7997 = vmatpush.bf16.msrb.mxu0 %v11607_v27  ;;  %v7771_v7 = vpop.f32.mrf.mxu2  ;;  %v12052_v18 = vld [vmem:[%s13472_s22 + $0x1dc8] sm:$0xf0]  ;;  %v11991_v2 = vor.u32 %v13278_v41, %v11988_v33  ;;  %v13316_v41 = vld [vmem:[%s13472_s22 + $0x1e74] sm:$0xf]  ;;  %v12140_v33 = vld [vmem:[%s13472_s22 + $0x1e78] sm:$0xf0] }
 0x3c8   : > { %8010 = vmatpush.bf16.msrb.mxu1 %v11671_v42  ;;  %v7784_v27 = vpop.f32.mrf.mxu3  ;;  %v11948_v42 = vld [vmem:[%s13472_s22 + $0x1cf8] sm:$0xf0] }
 0x3c9   : > { %8023 = vmatpush.bf16.msrb.mxu2 %v11735_v25  ;;  %v13284_v25 = vld [vmem:[%s13472_s22 + $0x1d74] sm:$0xf]  ;;  %v11951_v51 = vor.u32 %v13268_v37, %v11948_v42  ;;  %v11916_v7 = vld [vmem:[%s13472_s22 + $0x1cb8] sm:$0xf0] }
 0x3ca   : > { %8036 = vmatpush.bf16.msrb.mxu3 %v11799_v44  ;;  %v13300_v44 = vld [vmem:[%s13472_s22 + $0x1df4] sm:$0xf]  ;;  %v12015_v0 = vor.u32 %v13284_v25, %v12012_v48  ;;  %v12044_v37 = vld [vmem:[%s13472_s22 + $0x1db8] sm:$0xf0]  ;;  %v13242_v25 = vld [vmem:[%s13472_s22 + $0x1c24] sm:$0xf] }
 0x3cb   : > { %7998 = vmatpush.bf16.msrb.mxu0 %v11599_v46  ;;  %v11876_v46 = vld [vmem:[%s13472_s22 + $0x1c68] sm:$0xf0] }
 0x3cc   : > { %8011 = vmatpush.bf16.msrb.mxu1 %v11663_v10  ;;  %v13266_v10 = vld [vmem:[%s13472_s22 + $0x1ce4] sm:$0xf]  ;;  %v11879_v54 = vor.u32 %v13250_v11, %v11876_v46  ;;  %v11844_v48 = vld [vmem:[%s13472_s22 + $0x1c28] sm:$0xf0] }
 0x3cd   : > { %8024 = vmatpush.bf16.msrb.mxu2 %v11727_v31  ;;  %v12079_v31 = vor.u32 %v13300_v44, %v12076_v50  ;;  %v11943_v59 = vor.u32 %v13266_v10, %v11940_v56  ;;  %v11908_v50 = vld [vmem:[%s13472_s22 + $0x1ca8] sm:$0xf0]  ;;  %v13290_v11 = vld [vmem:[%s13472_s22 + $0x1da4] sm:$0xf] }
 0x3ce   : > { %8037 = vmatpush.bf16.msrb.mxu3 %v11791_v15  ;;  %v13298_v15 = vld [vmem:[%s13472_s22 + $0x1de4] sm:$0xf]  ;;  %v12036_v46 = vld [vmem:[%s13472_s22 + $0x1da8] sm:$0xf0] }
 0x3cf   : > { %7999 = vmatpush.bf16.msrb.mxu0 %v11591_v63  ;;  %v12071_v55 = vor.u32 %v13298_v15, %v12068_v13  ;;  %v13280_v63 = vld [vmem:[%s13472_s22 + $0x1d54] sm:$0xf] }
 0x3d0   : > { %8012 = vmatpush.bf16.msrb.mxu1 %v11655_v16  ;;  %v13296_v16 = vld [vmem:[%s13472_s22 + $0x1dd4] sm:$0xf]  ;;  %v11999_v39 = vor.u32 %v13280_v63, %v11996_v36  ;;  %v13238_v36 = vld [vmem:[%s13472_s22 + $0x1c04] sm:$0xf] }
 0x3d1   : > { %8025 = vmatpush.bf16.msrb.mxu2 %v11719_v5  ;;  %v12060_v5 = vld [vmem:[%s13472_s22 + $0x1dd8] sm:$0xf0]  ;;  %v13240_v13 = vld [vmem:[%s13472_s22 + $0x1c14] sm:$0xf] }
 0x3d2   : > { %8038 = vmatpush.bf16.msrb.mxu3 %v11783_v40  ;;  %v13246_v40 = vld [vmem:[%s13472_s22 + $0x1c44] sm:$0xf] }
 0x3d3   : > { %8000 = vmatpush.bf16.msrb.mxu0 %v11583_v9  ;;  %v13294_v9 = vld [vmem:[%s13472_s22 + $0x1dc4] sm:$0xf] }
 0x3d4   : > { %8013 = vmatpush.bf16.msrb.mxu1 %v11647_v28  ;;  %v11863_v28 = vor.u32 %v13246_v40, %v11860_v17  ;;  %v12055_v57 = vor.u32 %v13294_v9, %v12052_v18  ;;  %v11956_v17 = vld [vmem:[%s13472_s22 + $0x1d08] sm:$0xf0] }
 0x3d5   : > { %8026 = vmatpush.bf16.msrb.mxu2 %v11711_v1 }
 0x3d6   : > { %8039 = vmatpush.bf16.msrb.mxu3 %v11775_v53  ;;  %v11852_v53 = vld [vmem:[%s13472_s22 + $0x1c38] sm:$0xf0] }
 0x3d7   : > { %8001 = vmatpush.bf16.msrb.mxu0 %v11575_v43  ;;  %v7795_v61 = vpop.f32.mrf.mxu0  ;;  %v11855_v27 = vor.u32 %v13244_v20, %v11852_v53  ;;  %v11919_v43 = vor.u32 %v13260_v32, %v11916_v7  ;;  %v13364_v20 = vld [vmem:[%s13472_s22 + $0x1ff4] sm:$0xf]  ;;  %v12332_v53 = vld [vmem:[%s13472_s22 + $0x1ff8] sm:$0xf0] }
 0x3d8   : > { %8014 = vmatpush.bf16.msrb.mxu1 %v11639_v49  ;;  %v7796_v23 = vadd.f32 %v7795_v61, %v15678_v35  ;;  %v7808_v1 = vpop.f32.mrf.mxu1  ;;  %v11980_v35 = vld [vmem:[%s13472_s22 + $0x1d38] sm:$0xf0]  ;;  %v13258_v49 = vld [vmem:[%s13472_s22 + $0x1ca4] sm:$0xf]  ;;  %v13332_v61 = vld [vmem:[%s13472_s22 + $0x1ef4] sm:$0xf] }
 0x3d9   : > { %8027 = vmatpush.bf16.msrb.mxu2 %v11703_v38  ;;  %v11983_v42 = vor.u32 %v13276_v58, %v11980_v35  ;;  %v12047_v38 = vor.u32 %v13292_v26, %v12044_v37  ;;  %v11911_v24 = vor.u32 %v13258_v49, %v11908_v50  ;;  %v13314_v58 = vld [vmem:[%s13472_s22 + $0x1e64] sm:$0xf]  ;;  %v12132_v35 = vld [vmem:[%s13472_s22 + $0x1e68] sm:$0xf0]  ;;  %v12335_v37 = vor.u32 %v13364_v20, %v12332_v53  ;;  %v13312_v50 = vld [vmem:[%s13472_s22 + $0x1e54] sm:$0xf] }
 0x3da   : > { %8040 = vmatpush.bf16.msrb.mxu3 %v11767_v45  ;;  %8002 = vmatmul.bf16.vlgmr.msrb.gmra.mxu0 %v14564_v12  ;;  %v11871_v12 = vor.u32 %v13248_v4, %v11868_v19  ;;  %v7809_v3 = vadd.f32 %v7808_v1, %v7796_v23  ;;  %v13274_v45 = vld [vmem:[%s13472_s22 + $0x1d24] sm:$0xf]  ;;  %v11900_v4 = vld [vmem:[%s13472_s22 + $0x1c98] sm:$0xf0]  ;;  %v13272_v19 = vld [vmem:[%s13472_s22 + $0x1d14] sm:$0xf]  ;;  %v12135_v49 = vor.u32 %v13314_v58, %v12132_v35 }
 0x3db   : > { %8046 = vmatpush.bf16.msra.mxu0 %v11887_v62  ;;  %8015 = vmatmul.bf16.vlgmr.msrb.gmra.mxu1 %v14568_v29  ;;  %v12063_v29 = vor.u32 %v13296_v16, %v12060_v5  ;;  %v11972_v62 = vld [vmem:[%s13472_s22 + $0x1d28] sm:$0xf0]  ;;  %v12204_v23 = vld [vmem:[%s13472_s22 + $0x1ef8] sm:$0xf0]  ;;  %v13330_v26 = vld [vmem:[%s13472_s22 + $0x1ee4] sm:$0xf] }
 0x3dc   : > { %8059 = vmatpush.bf16.msra.mxu1 %v11951_v51  ;;  %8028 = vmatmul.bf16.vlgmr.msrb.gmra.mxu2 %v14566_v6  ;;  %v13262_v6 = vld [vmem:[%s13472_s22 + $0x1cc4] sm:$0xf]  ;;  %v11975_v15 = vor.u32 %v13274_v45, %v11972_v62  ;;  %v11828_v16 = vld [vmem:[%s13472_s22 + $0x1c08] sm:$0xf0]  ;;  %v12268_v1 = vld [vmem:[%s13472_s22 + $0x1f78] sm:$0xf0] }
 0x3dd   : > { %8072 = vmatpush.bf16.msra.mxu2 %v12015_v0  ;;  %8041 = vmatmul.bf16.vlgmr.msrb.gmra.mxu3 %v15916_v34  ;;  %v11927_v52 = vor.u32 %v13262_v6, %v11924_v22  ;;  %v11967_v34 = vor.u32 %v13272_v19, %v11964_v30  ;;  %v13286_v6 = vld [vmem:[%s13472_s22 + $0x1d84] sm:$0xf]  ;;  %v11831_v18 = vor.u32 %v13238_v36, %v11828_v16  ;;  %v12124_v45 = vld [vmem:[%s13472_s22 + $0x1e58] sm:$0xf0]  ;;  %v13328_v62 = vld [vmem:[%s13472_s22 + $0x1ed4] sm:$0xf] }
 0x3de   : > { %8085 = vmatpush.bf16.msra.mxu3 %v12079_v31  ;;  %v11847_v31 = vor.u32 %v13242_v25, %v11844_v48  ;;  %v13362_v25 = vld [vmem:[%s13472_s22 + $0x1fe4] sm:$0xf]  ;;  %v12324_v48 = vld [vmem:[%s13472_s22 + $0x1fe8] sm:$0xf0] }
 0x3df   : > { %8047 = vmatpush.bf16.msra.mxu0 %v11879_v54  ;;  %v7821_v44 = vpop.f32.mrf.mxu2  ;;  %v7797_v10 = vpop.f32.mrf.mxu0  ;;  %v11836_v54 = vld [vmem:[%s13472_s22 + $0x1c18] sm:$0xf0]  ;;  %v12116_v19 = vld [vmem:[%s13472_s22 + $0x1e48] sm:$0xf0]  ;;  %v13326_v30 = vld [vmem:[%s13472_s22 + $0x1ec4] sm:$0xf] }
 0x3e0   : > { %8060 = vmatpush.bf16.msra.mxu1 %v11943_v59  ;;  %v7822_v51 = vadd.f32 %v7821_v44, %v7809_v3  ;;  %v7834_v0 = vpop.f32.mrf.mxu3  ;;  %v7810_v56 = vpop.f32.mrf.mxu1  ;;  %v13256_v59 = vld [vmem:[%s13472_s22 + $0x1c94] sm:$0xf]  ;;  %v11839_v63 = vor.u32 %v13240_v13, %v11836_v54  ;;  %v12207_v3 = vor.u32 %v13332_v61, %v12204_v23  ;;  %v12252_v10 = vld [vmem:[%s13472_s22 + $0x1f58] sm:$0xf0]  ;;  %v12127_v54 = vor.u32 %v13312_v50, %v12124_v45  ;;  %v12244_v36 = vld [vmem:[%s13472_s22 + $0x1f48] sm:$0xf0] }
 0x3e1   : > { %8073 = vmatpush.bf16.msra.mxu2 %v12007_v21  ;;  %v12039_v21 = vor.u32 %v13290_v11, %v12036_v46  ;;  %v11903_v5 = vor.u32 %v13256_v59, %v11900_v4  ;;  %v12188_v11 = vld [vmem:[%s13472_s22 + $0x1ed8] sm:$0xf0]  ;;  %v13344_v46 = vld [vmem:[%s13472_s22 + $0x1f54] sm:$0xf]  ;;  %v13384_v56 = vld [vmem:[#allocation1 + $0x9] sm:$0xff] }
 0x3e2   : > { %8086 = vmatpush.bf16.msra.mxu3 %v12071_v55  ;;  %v15749_v14 = vadd.f32 %v7834_v0, %v7822_v51  ;;  %v13288_v55 = vld [vmem:[%s13472_s22 + $0x1d94] sm:$0xf]  ;;  %v13382_v51 = vld [vmem:[#allocation1] sm:$0xff]  ;;  %v12327_v0 = vor.u32 %v13362_v25, %v12324_v48  ;;  %v12191_v59 = vor.u32 %v13328_v62, %v12188_v11  ;;  %v12172_v61 = vld [vmem:[%s13472_s22 + $0x1eb8] sm:$0xf0] }
 0x3e3   : > { %8048 = vmatpush.bf16.msra.mxu0 %v11871_v12  ;;  %v13254_v12 = vld [vmem:[%s13472_s22 + $0x1c84] sm:$0xf]  ;;  %v12031_v40 = vor.u32 %v13288_v55, %v12028_v60  ;;  %v13385_v13 = vld [vmem:[#allocation1 + $0x1b] sm:$0xff]  ;;  %v12180_v60 = vld [vmem:[%s13472_s22 + $0x1ec8] sm:$0xf0] }
 0x3e4   : > { %8061 = vmatpush.bf16.msra.mxu1 %v11935_v8  ;;  %v11892_v8 = vld [vmem:[%s13472_s22 + $0x1c88] sm:$0xf0]  ;;  %v13310_v4 = vld [vmem:[%s13472_s22 + $0x1e44] sm:$0xf]  ;;  %v12300_v23 = vld [vmem:[%s13472_s22 + $0x1fb8] sm:$0xf0] }
 0x3e5   : > { %8074 = vmatpush.bf16.msra.mxu2 %v11999_v39  ;;  %v13270_v39 = vld [vmem:[%s13472_s22 + $0x1d04] sm:$0xf]  ;;  %v12100_v20 = vld [vmem:[%s13472_s22 + $0x1e28] sm:$0xf0]  ;;  %v12092_v50 = vld [vmem:[%s13472_s22 + $0x1e18] sm:$0xf0] }
 0x3e6   : > { %8087 = vmatpush.bf16.msra.mxu3 %v12063_v29  ;;  %v12020_v29 = vld [vmem:[%s13472_s22 + $0x1d88] sm:$0xf0]  ;;  %v13322_v53 = vld [vmem:[%s13472_s22 + $0x1ea4] sm:$0xf]  ;;  %v13320_v45 = vld [vmem:[%s13472_s22 + $0x1e94] sm:$0xf] }
 0x3e7   : > { %8049 = vmatpush.bf16.msra.mxu0 %v11863_v28  ;;  %v7823_v22 = vpop.f32.mrf.mxu2  ;;  %v13348_v28 = vld [vmem:[%s13472_s22 + $0x1f74] sm:$0xf]  ;;  %v12023_v32 = vor.u32 %v13286_v6, %v12020_v29  ;;  %v12108_v29 = vld [vmem:[%s13472_s22 + $0x1e38] sm:$0xf0]  ;;  %v12228_v58 = vld [vmem:[%s13472_s22 + $0x1f28] sm:$0xf0] }
 0x3e8   : > { %8062 = vmatpush.bf16.msra.mxu1 %v11927_v52  ;;  %v7836_v9 = vpop.f32.mrf.mxu3  ;;  %v11895_v52 = vor.u32 %v13254_v12, %v11892_v8  ;;  %v12271_v7 = vor.u32 %v13348_v28, %v12268_v1  ;;  %v12119_v8 = vor.u32 %v13310_v4, %v12116_v19  ;;  %v13308_v6 = vld [vmem:[%s13472_s22 + $0x1e34] sm:$0xf]  ;;  %v12220_v11 = vld [vmem:[%s13472_s22 + $0x1f18] sm:$0xf0]  ;;  %v13334_v4 = vld [vmem:[%s13472_s22 + $0x1f04] sm:$0xf] }
 0x3e9   : > { %8075 = vmatpush.bf16.msra.mxu2 %v11991_v2  ;;  %v11959_v2 = vor.u32 %v13270_v39, %v11956_v17  ;;  %v13324_v22 = vld [vmem:[%s13472_s22 + $0x1eb4] sm:$0xf]  ;;  %v12111_v28 = vor.u32 %v13308_v6, %v12108_v29  ;;  %v12212_v19 = vld [vmem:[%s13472_s22 + $0x1f08] sm:$0xf0] }
 0x3ea   : > { %8088 = vmatpush.bf16.msra.mxu3 %v12055_v57  ;;  %v12143_v57 = vor.u32 %v13316_v41, %v12140_v33  ;;  %v13340_v9 = vld [vmem:[%s13472_s22 + $0x1f34] sm:$0xf]  ;;  %v12175_v1 = vor.u32 %v13324_v22, %v12172_v61 }
 0x3eb   : > { %8050 = vmatpush.bf16.msra.mxu0 %v11855_v27  ;;  %v12196_v27 = vld [vmem:[%s13472_s22 + $0x1ee8] sm:$0xf0] }
 0x3ec   : > { %8063 = vmatpush.bf16.msra.mxu1 %v11919_v43  ;;  %v13346_v43 = vld [vmem:[%s13472_s22 + $0x1f64] sm:$0xf] }
 0x3ed   : > { %8076 = vmatpush.bf16.msra.mxu2 %v11983_v42  ;;  %v12260_v42 = vld [vmem:[%s13472_s22 + $0x1f68] sm:$0xf0] }
 0x3ee   : > { %8089 = vmatpush.bf16.msra.mxu3 %v12047_v38  ;;  %v12199_v38 = vor.u32 %v13330_v26, %v12196_v27  ;;  %v12263_v44 = vor.u32 %v13346_v43, %v12260_v42  ;;  %v12292_v27 = vld [vmem:[%s13472_s22 + $0x1fa8] sm:$0xf0] }
 0x3ef   : > { %8051 = vmatpush.bf16.msra.mxu0 %v11847_v31  ;;  %v13383_v31 = vld [vmem:[#allocation1 + $0x12] sm:$0xff] }
 0x3f0   : > { %8064 = vmatpush.bf16.msra.mxu1 %v11911_v24  ;;  %v13360_v24 = vld [vmem:[%s13472_s22 + $0x1fd4] sm:$0xf] }
 0x3f1   : > { %8077 = vmatpush.bf16.msra.mxu2 %v11975_v15  ;;  %v12316_v15 = vld [vmem:[%s13472_s22 + $0x1fd8] sm:$0xf0] }
 0x3f2   : > { %8090 = vmatpush.bf16.msra.mxu3 %v12039_v21  ;;  %v12255_v21 = vor.u32 %v13344_v46, %v12252_v10  ;;  %v12319_v55 = vor.u32 %v13360_v24, %v12316_v15  ;;  %v13352_v46 = vld [vmem:[%s13472_s22 + $0x1f94] sm:$0xf]  ;;  %v12284_v10 = vld [vmem:[%s13472_s22 + $0x1f98] sm:$0xf0]  ;;  %v13302_v15 = vld [vmem:[%s13472_s22 + $0x1e04] sm:$0xf] }
 0x3f3   : > { %8052 = vmatpush.bf16.msra.mxu0 %v11839_v63  ;;  %v13342_v63 = vld [vmem:[%s13472_s22 + $0x1f44] sm:$0xf] }
 0x3f4   : > { %8065 = vmatpush.bf16.msra.mxu1 %v11903_v5  ;;  %v13358_v5 = vld [vmem:[%s13472_s22 + $0x1fc4] sm:$0xf]  ;;  %v12247_v17 = vor.u32 %v13342_v63, %v12244_v36 }
 0x3f5   : > { %8078 = vmatpush.bf16.msra.mxu2 %v11967_v34  ;;  %v12308_v34 = vld [vmem:[%s13472_s22 + $0x1fc8] sm:$0xf0] }
 0x3f6   : > { %8091 = vmatpush.bf16.msra.mxu3 %v12031_v40  ;;  %v12183_v40 = vor.u32 %v13326_v30, %v12180_v60  ;;  %v12311_v41 = vor.u32 %v13358_v5, %v12308_v34  ;;  %v12276_v60 = vld [vmem:[%s13472_s22 + $0x1f88] sm:$0xf0]  ;;  %v12215_v5 = vor.u32 %v13334_v4, %v12212_v19 }
 0x3f7   : > { %8053 = vmatpush.bf16.msra.mxu0 %v11831_v18  ;;  %v7847_v16 = vpop.f32.mrf.mxu0  ;;  %v13356_v18 = vld [vmem:[%s13472_s22 + $0x1fb4] sm:$0xf] }
 0x3f8   : > { %8066 = vmatpush.bf16.msra.mxu1 %v11895_v52  ;;  %v7848_v12 = vadd.f32 %v7847_v16, %v15749_v14  ;;  %v7860_v39 = vpop.f32.mrf.mxu1  ;;  %v12236_v14 = vld [vmem:[%s13472_s22 + $0x1f38] sm:$0xf0] }
 0x3f9   : > { %8079 = vmatpush.bf16.msra.mxu2 %v11959_v2  ;;  %v12239_v52 = vor.u32 %v13340_v9, %v12236_v14  ;;  %v13306_v2 = vld [vmem:[%s13472_s22 + $0x1e24] sm:$0xf] }
 0x3fa   : > { %8092 = vmatpush.bf16.msra.mxu3 %v12023_v32  ;;  %8054 = vmatmul.bf16.vlgmr.msra.gmra.mxu0 %v13382_v51  ;;  %v7861_v33 = vadd.f32 %v7860_v39, %v7848_v12  ;;  %v12303_v32 = vor.u32 %v13356_v18, %v12300_v23  ;;  %v12103_v42 = vor.u32 %v13306_v2, %v12100_v20  ;;  %v12156_v51 = vld [vmem:[%s13472_s22 + $0x1e98] sm:$0xf0]  ;;  %v13386_v12 = vld [vmem:[#allocation1 + $0x24] sm:$0xff] }
 0x3fb   : > { %8098 = vmatpush.bf16.msrb.mxu0 %v12143_v57  ;;  %8067 = vmatmul.bf16.vlgmr.msra.gmra.mxu1 %v13384_v56  ;;  %v12159_v56 = vor.u32 %v13320_v45, %v12156_v51  ;;  %v13388_v39 = vld [vmem:[#allocation1 + $0x36] sm:$0xff] }
 0x3fc   : > { %8111 = vmatpush.bf16.msrb.mxu1 %v12207_v3  ;;  %8080 = vmatmul.bf16.vlgmr.msra.gmra.mxu2 %v13383_v31  ;;  %v12164_v3 = vld [vmem:[%s13472_s22 + $0x1ea8] sm:$0xf0] }
 0x3fd   : > { %8124 = vmatpush.bf16.msrb.mxu2 %v12271_v7  ;;  %8093 = vmatmul.bf16.vlgmr.msra.gmra.mxu3 %v13385_v13  ;;  %v13338_v7 = vld [vmem:[%s13472_s22 + $0x1f24] sm:$0xf]  ;;  %v12084_v13 = vld [vmem:[%s13472_s22 + $0x1e08] sm:$0xf0] }
 0x3fe   : > { %8137 = vmatpush.bf16.msrb.mxu3 %v12335_v37  ;;  %v13354_v37 = vld [vmem:[%s13472_s22 + $0x1fa4] sm:$0xf]  ;;  %v12087_v36 = vor.u32 %v13302_v15, %v12084_v13 }
 0x3ff   : > { %8099 = vmatpush.bf16.msrb.mxu0 %v12135_v49  ;;  %v7873_v57 = vpop.f32.mrf.mxu2  ;;  %v7849_v43 = vpop.f32.mrf.mxu0  ;;  %v12167_v49 = vor.u32 %v13322_v53, %v12164_v3  ;;  %v12295_v62 = vor.u32 %v13354_v37, %v12292_v27 }
 0x400   : > { %8112 = vmatpush.bf16.msrb.mxu1 %v12199_v38  ;;  %v7874_v35 = vadd.f32 %v7873_v57, %v7861_v33  ;;  %v7886_v26 = vpop.f32.mrf.mxu3  ;;  %v7862_v25 = vpop.f32.mrf.mxu1  ;;  %v12231_v38 = vor.u32 %v13338_v7, %v12228_v58 }
 0x401   : > { %8125 = vmatpush.bf16.msrb.mxu2 %v12263_v44  ;;  %v13304_v44 = vld [vmem:[%s13472_s22 + $0x1e14] sm:$0xf] }
 0x402   : > { %8138 = vmatpush.bf16.msrb.mxu3 %v12327_v0  ;;  %v7887_v48 = vadd.f32 %v7886_v26, %v7874_v35  ;;  %v13336_v0 = vld [vmem:[%s13472_s22 + $0x1f14] sm:$0xf]  ;;  %v12095_v31 = vor.u32 %v13304_v44, %v12092_v50 }
 0x403   : > { %8100 = vmatpush.bf16.msrb.mxu0 %v12127_v54  ;;  %v12223_v24 = vor.u32 %v13336_v0, %v12220_v11  ;;  %v13318_v54 = vld [vmem:[%s13472_s22 + $0x1e84] sm:$0xf] }
 0x404   : > { %8113 = vmatpush.bf16.msrb.mxu1 %v12191_v59  ;;  %v12287_v59 = vor.u32 %v13352_v46, %v12284_v10 }
 0x405   : > { %8126 = vmatpush.bf16.msrb.mxu2 %v12255_v21  ;;  %v12148_v21 = vld [vmem:[%s13472_s22 + $0x1e88] sm:$0xf0] }
 0x406   : > { %8139 = vmatpush.bf16.msrb.mxu3 %v12319_v55  ;;  %v13350_v55 = vld [vmem:[%s13472_s22 + $0x1f84] sm:$0xf]  ;;  %v12151_v16 = vor.u32 %v13318_v54, %v12148_v21 }
 0x407   : > { %8101 = vmatpush.bf16.msrb.mxu0 %v12119_v8  ;;  %v7875_v30 = vpop.f32.mrf.mxu2  ;;  %v12279_v34 = vor.u32 %v13350_v55, %v12276_v60  ;;  %v13387_v8 = vld [vmem:[#allocation1 + $0x2d] sm:$0xff] }
 0x408   : > { %8114 = vmatpush.bf16.msrb.mxu1 %v12183_v40  ;;  %v7888_v63 = vpop.f32.mrf.mxu3  ;;  %v13389_v40 = vld [vmem:[#allocation1 + $0x3f] sm:$0xff] }
 0x409   : > { %8127 = vmatpush.bf16.msrb.mxu2 %v12247_v17 }
 0x40a   : > { %8140 = vmatpush.bf16.msrb.mxu3 %v12311_v41 }
 0x40b   : > { %8102 = vmatpush.bf16.msrb.mxu0 %v12111_v28 }
 0x40c   : > { %8115 = vmatpush.bf16.msrb.mxu1 %v12175_v1 }
 0x40d   : > { %8128 = vmatpush.bf16.msrb.mxu2 %v12239_v52 }
 0x40e   : > { %8141 = vmatpush.bf16.msrb.mxu3 %v12303_v32 }
 0x40f   : > { %8103 = vmatpush.bf16.msrb.mxu0 %v12103_v42 }
 0x410   : > { %8116 = vmatpush.bf16.msrb.mxu1 %v12167_v49 }
 0x411   : > { %8129 = vmatpush.bf16.msrb.mxu2 %v12231_v38 }
 0x412   : > { %8142 = vmatpush.bf16.msrb.mxu3 %v12295_v62 }
 0x413   : > { %8104 = vmatpush.bf16.msrb.mxu0 %v12095_v31 }
 0x414   : > { %8117 = vmatpush.bf16.msrb.mxu1 %v12159_v56 }
 0x415   : > { %8130 = vmatpush.bf16.msrb.mxu2 %v12223_v24 }
 0x416   : > { %8143 = vmatpush.bf16.msrb.mxu3 %v12287_v59 }
 0x417   : > { %8105 = vmatpush.bf16.msrb.mxu0 %v12087_v36  ;;  %v7899_v17 = vpop.f32.mrf.mxu0 }
 0x418   : > { %8118 = vmatpush.bf16.msrb.mxu1 %v12151_v16  ;;  %v7900_v6 = vadd.f32 %v7899_v17, %v7887_v48  ;;  %v7912_v29 = vpop.f32.mrf.mxu1 }
 0x419   : > { %8131 = vmatpush.bf16.msrb.mxu2 %v12215_v5 }
 0x41a   : > { %8144 = vmatpush.bf16.msrb.mxu3 %v12279_v34  ;;  %8106 = vmatmul.bf16.vlgmr.msrb.gmra.mxu0 %v13386_v12  ;;  %v7913_v22 = vadd.f32 %v7912_v29, %v7900_v6  ;;  %v189_v34 = vld [vmem:[#allocation2] sm:$0xf] }
 0x41b   : > { %8119 = vmatmul.bf16.vlgmr.msrb.gmra.mxu1 %v13387_v8 }
 0x41c   : > { %8132 = vmatmul.bf16.vlgmr.msrb.gmra.mxu2 %v13388_v39 }
 0x41d   : > { %8145 = vmatmul.bf16.vlgmr.msrb.gmra.mxu3 %v13389_v40 }
 0x41f   : > { %v7925_v41 = vpop.f32.mrf.mxu2  ;;  %v7901_v9 = vpop.f32.mrf.mxu0 }
 0x420   : > { %v7926_v33 = vadd.f32 %v7925_v41, %v7913_v22  ;;  %v7938_v61 = vpop.f32.mrf.mxu3  ;;  %v7914_v14 = vpop.f32.mrf.mxu1 }
 0x422   : > { %v7939_v18 = vadd.f32 %v7938_v61, %v7926_v33 }
 0x427   : > { %v7927_v23 = vpop.f32.mrf.mxu2 }
 0x428   : > { %v7940_v28 = vpop.f32.mrf.mxu3 }
 0x437   : > { %v7951_v1 = vpop.f32.mrf.mxu0 }
 0x438   : > { %v7952_v52 = vadd.f32 %v7951_v1, %v7939_v18  ;;  %v7964_v2 = vpop.f32.mrf.mxu1 }
 0x43a   : > { %v7965_v20 = vadd.f32 %v7964_v2, %v7952_v52 }
 0x43f   : > { %v7977_v53 = vpop.f32.mrf.mxu2  ;;  %v7953_v3 = vpop.f32.mrf.mxu0 }
 0x440   : > { %v7978_v32 = vadd.f32 %v7977_v53, %v7965_v20  ;;  %v7990_v57 = vpop.f32.mrf.mxu3  ;;  %v7966_v7 = vpop.f32.mrf.mxu1 }
 0x442   : > { %v7991_v58 = vadd.f32 %v7990_v57, %v7978_v32 }
 0x447   : > { %v7979_v35 = vpop.f32.mrf.mxu2 }
 0x448   : > { %v7992_v26 = vpop.f32.mrf.mxu3 }
 0x457   : > { %v8003_v37 = vpop.f32.mrf.mxu0 }
 0x458   : > { %v8016_v27 = vpop.f32.mrf.mxu1  ;;  %v8004_v45 = vadd.f32 %v8003_v37, %v7991_v58 }
 0x45a   : > { %v8017_v46 = vadd.f32 %v8016_v27, %v8004_v45 }
 0x45f   : > { %v8029_v43 = vpop.f32.mrf.mxu2  ;;  %v8005_v25 = vpop.f32.mrf.mxu0 }
 0x460   : > { %v8042_v42 = vpop.f32.mrf.mxu3  ;;  %v8018_v48 = vpop.f32.mrf.mxu1  ;;  %v8030_v10 = vadd.f32 %v8029_v43, %v8017_v46 }
 0x462   : > { %v8043_v24 = vadd.f32 %v8042_v42, %v8030_v10 }
 0x467   : > { %v8031_v49 = vpop.f32.mrf.mxu2 }
 0x468   : > { %v8044_v38 = vpop.f32.mrf.mxu3 }
 0x477   : > { %v8055_v44 = vpop.f32.mrf.mxu0 }
 0x478   : > { %v8068_v50 = vpop.f32.mrf.mxu1  ;;  %v8056_v15 = vadd.f32 %v8055_v44, %v8043_v24 }
 0x47a   : > { %v8069_v13 = vadd.f32 %v8068_v50, %v8056_v15 }
 0x47f   : > { %v8081_v62 = vpop.f32.mrf.mxu2  ;;  %v8057_v0 = vpop.f32.mrf.mxu0 }
 0x480   : > { %v8094_v51 = vpop.f32.mrf.mxu3  ;;  %v8070_v11 = vpop.f32.mrf.mxu1  ;;  %v8082_v54 = vadd.f32 %v8081_v62, %v8069_v13 }
 0x482   : > { %v8095_v59 = vadd.f32 %v8094_v51, %v8082_v54 }
 0x487   : > { %v8083_v31 = vpop.f32.mrf.mxu2 }
 0x488   : > { %v8096_v56 = vpop.f32.mrf.mxu3 }
 0x497   : > { %v8107_v21 = vpop.f32.mrf.mxu0 }
 0x498   : > { %v8120_v4 = vpop.f32.mrf.mxu1  ;;  %v8108_v19 = vadd.f32 %v8107_v21, %v8095_v59 }
 0x49a   : > { %v8121_v30 = vadd.f32 %v8120_v4, %v8108_v19 }
 0x49f   : > { %v8133_v55 = vpop.f32.mrf.mxu2  ;;  %v8109_v36 = vpop.f32.mrf.mxu0 }
 0x4a0   : > { %v8134_v60 = vadd.f32 %v8133_v55, %v8121_v30  ;;  %v8146_v63 = vpop.f32.mrf.mxu3  ;;  %v8122_v16 = vpop.f32.mrf.mxu1 }
 0x4a2   : > { %v8147_v5 = vadd.f32 %v8146_v63, %v8134_v60 }
 0x4a4   : > { %v8152_v12 = vrot.slane %v8147_v5, 6 }
 0x4a5   : > { %8163 = sbr.rel (%p12336_p6) target bundleno = 1204 (0x4b4), region = 40 }
 0x4a6   : > { %v8154_v8 = vsel %vm8153_vm3, %v15040_v47, %v8152_v12 }
 0x4a7   : > { %v8156_v39 = vadd.f32 %v8154_v8, %v189_v34  ;;  %v8135_v40 = vpop.f32.mrf.mxu2 }
 0x4a8   : > { %v8148_v17 = vpop.f32.mrf.mxu3 }
 0x4a9   : > { %8159 = vst.msk [vmem:[#allocation2] sm:$0xf] %vm8158_vm5, %v8156_v39 }
 0x4aa   : > { %v8165_v6 = vld [vmem:[%s15849_s2] sm:$0x3] }
 0x4ab   : > { %v8167_v29 = vperm.slane %v8165_v6, 0  ;;  %v8168_v22 = vperm.slane %v8165_v6, 1 }
 0x4ad   : > { %v8169_v33 = vrot.slane %v8168_v22, 6 }
 0x4af   : > { %v8170_v61 = vsel %vm8153_vm3, %v8167_v29, %v8169_v33 }
 0x4b0   : > { %v8164_v41 = vld [vmem:[#allocation2] sm:$0xf] }
 0x4b1   : > { %v8172_v47 = vadd.f32 %v8170_v61, %v8164_v41 }
 0x4b3   : > { %8173 = vst.msk [vmem:[#allocation2] sm:$0xf] %vm8158_vm5, %v8172_v47 }
 0x4b4 PF: > { %p13370_p7 = scmp.eq.s32.totalorder %s13458_s13, 1  ;;  %s13431_s25 = smov [#allocation2]  }
 0x4b5   : > { %s8180_s26 = sshll.u32 %s13431_s25, 4  ;;  %s8182_s29 = sshll.u32 %s15850_s3, 4  ;;  %s8181_s26 = int_to_ptr.vmem [resolvable:$true] %s8180_s26  ;;  %s8183_s29 = int_to_ptr.hbm [resolvable:$true] %s8182_s29 }
 0x4b6   : > { %13367 = dma.vmem_to_hbm [thread:$0]  (%p13370_p7), %s8181_s26, 64, %s8183_s29, [#allocation3]  }
 0x4b7   : > { %13423 = dma.done.wait (%p13370_p7), [#allocation3], 64  }
 0x4b8   : > { %13425 = vsyncadd (%p13370_p7), [#allocation3], 4294967232 }
 0x4b9 PF: > { %s14_s12 = sadd.s32 1, %s13428_s12  }
 0x4ba   : > { %p11_p8 = scmp.ge.s32.totalorder %s14_s12, 4  }
 0x4bc   :  { %13 = sbr.rel (!%p11_p8) target bundleno = 1 (0x1), region = 70 }
 0x4c1   :  { %8196 = vsyncpa [#allocation3], 1 }
 0x4c2   :  { %8198 = vsyncpa [#allocation3 + $0x1], 1 }

</bundles_post_ra>
